<compile_context>
chip_gen: v7x
topology: tpu7x:2x2x1
jax: 0.10.0
libtpu: 0.0.40
codegen_flags: <defaults>
</compile_context>

<pallas_src>
import functools

import jax
import jax.numpy as jnp
from jax.experimental import pallas as pl
from jax.experimental.pallas import tpu as pltpu

SQRT2_INV = 0.7071067811865476
BN_EPS = 1e-5
EMB_DIM = 61           # encoder output width
EMB_PAD = 128          # lane-dense padded embedding width
H1_PAD = 256           # 150 -> 256
H2_PAD = 128           # 120 -> 128
H3_PAD = 128           # 100 -> 128

_VMEM_LIMIT_BYTES = 32 * 1024 * 1024   # safe on v5e/v6e/v7x
_ACT_VMEM_BUDGET = 24 * 1024 * 1024    # activation-tile budget inside that


def _round_up(n, m):
    return ((n + m - 1) // m) * m


def _gelu_exact(x):
    # torch.nn.GELU() default is the exact erf formulation.
    return 0.5 * x * (1.0 + jax.lax.erf(x * SQRT2_INV))


# --------------------------------------------------------------------------
# Kernel
# --------------------------------------------------------------------------
def jae_kernel(x_ref,
               w1_ref, b1_ref,
               w2_ref, b2_ref,
               w3_ref, b3_ref,
               w4_ref, b4_ref,
               wd1_ref, bd1_ref,
               wd2_ref, bd2_ref,
               dec_ref, emb_ref):
    def dense(h, w_ref, b_ref):
        # Cast activations to the weight dtype (bf16 by default) on the VPU,
        # accumulate in f32 on the MXU, add the f32 bias.
        return jnp.dot(h.astype(w_ref.dtype), w_ref[...],
                       preferred_element_type=jnp.float32) + b_ref[...]

    # --- encoder (BatchNorm affine already folded into w2/b2, w3/b3, w4/b4) --
    h = _gelu_exact(dense(x_ref[...], w1_ref, b1_ref))
    h = _gelu_exact(dense(h, w2_ref, b2_ref))
    h = _gelu_exact(dense(h, w3_ref, b3_ref))
    emb = dense(h, w4_ref, b4_ref)          # (bm, 128); cols 61..127 are zero
    emb_ref[...] = emb

    # --- decoder -------------------------------------------------------------
    d = jnp.maximum(dense(emb, wd1_ref, bd1_ref), 0.0)
    d = jnp.maximum(dense(d, wd2_ref, bd2_ref), 0.0)
    dec_ref[...] = d


# --------------------------------------------------------------------------
# Wrapper-side parameter preprocessing
# --------------------------------------------------------------------------
def _bn_scale_shift(gamma, beta, mean, var):
    scale = gamma / jnp.sqrt(var + BN_EPS)
    shift = beta - mean * scale
    return scale.reshape(1, -1), shift.reshape(1, -1)


def _fold_bn_into_next(scale, shift, w_next, b_next):
    # (h*s + t) @ W + b  ==  h @ (s^T * W) + (t @ W + b)
    w_f = w_next * scale.reshape(-1, 1)
    b_f = shift @ w_next + b_next
    return w_f, b_f


def _pad2(a, rows, cols):
    return jnp.pad(a, ((0, rows - a.shape[0]), (0, cols - a.shape[1])))


def _prepare_kernel_params(p, use_bf16):
    d = p["w1"].shape[0]

    w1, b1 = p["w1"], p["b1"]
    s1, t1 = _bn_scale_shift(*p["bn1"])
    s2, t2 = _bn_scale_shift(*p["bn2"])
    s3, t3 = _bn_scale_shift(*p["bn3"])

    w2, b2 = _fold_bn_into_next(s1, t1, p["w2"], p["b2"])
    w3, b3 = _fold_bn_into_next(s2, t2, p["w3"], p["b3"])
    w4, b4 = _fold_bn_into_next(s3, t3, p["w4"], p["b4"])

    # Zero-pad hidden widths to lane multiples (exact: padded columns stay 0
    # through GELU/ReLU and padded rows multiply those zeros).
    w1p = _pad2(w1, d, H1_PAD)                    # (D, 256)
    b1p = _pad2(b1, 1, H1_PAD)
    w2p = _pad2(w2, H1_PAD, H2_PAD)               # (256, 128)
    b2p = _pad2(b2, 1, H2_PAD)
    w3p = _pad2(w3, H2_PAD, H3_PAD)               # (128, 128)
    b3p = _pad2(b3, 1, H3_PAD)
    w4p = _pad2(w4, H3_PAD, EMB_PAD)              # (128, 128)
    b4p = _pad2(b4, 1, EMB_PAD)
    wd1p = _pad2(p["wd1"], EMB_PAD, H1_PAD)       # (128, 256)
    bd1p = _pad2(p["bd1"], 1, H1_PAD)
    wd2p = _pad2(p["wd2"], H1_PAD, d)             # (256, D)
    bd2p = p["bd2"]                               # (1, D)

    weights = [w1p, w2p, w3p, w4p, wd1p, wd2p]
    if use_bf16:
        weights = [w.astype(jnp.bfloat16) for w in weights]
    w1p, w2p, w3p, w4p, wd1p, wd2p = weights
    # Biases stay f32 (added after f32 MXU accumulation).
    return (w1p, b1p, w2p, b2p, w3p, b3p, w4p, b4p, wd1p, bd1p, wd2p, bd2p)


# --------------------------------------------------------------------------
# Tile selection
# --------------------------------------------------------------------------
def _tensorcores_per_chip():
    try:
        kind = jax.devices()[0].device_kind.lower()
    except Exception:
        return 1
    if ("v7" in kind) or ("v4" in kind) or ("v5p" in kind):
        return 2          # two TensorCores share the batch grid
    return 1              # v5e / v6e: one TensorCore per chip


def _choose_tiling(batch, d, weight_bytes, cores_per_chip):
    """Pick (bm, b_pad): batch tile and padded batch.

    VMEM budget per batch row: x + decoded tiles (f32, double-buffered by the
    pipeline), the 128-wide emb tile, plus ~6 KB of in-kernel activation
    temporaries.  Weight set counted twice (worst case of double buffering).
    """
    per_row = 2 * 4 * (d + d + EMB_PAD) + 6 * 1024
    avail = max(_ACT_VMEM_BUDGET - 2 * weight_bytes, 8 * per_row)
    cap = min(1024, avail // per_row)
    cap = max(8, cap - (cap % 8))

    # Small batch that is not 8-aligned: single full-extent tile, zero padding.
    if batch <= cap and batch % 8 != 0:
        return batch, batch

    b8 = _round_up(batch, 8)
    min_tiles = cores_per_chip if b8 >= 8 * cores_per_chip else 1

    # Prefer a tile that divides the (8-aligned) batch exactly -> no batch pad,
    # and whose tile count is a multiple of the TensorCore count.
    bm = min(cap, b8)
    bm -= bm % 8
    while bm >= 8:
        if b8 % bm == 0 and (b8 // bm) % min_tiles == 0:
            return bm, b8
        bm -= 8

    # Fallback: pad the batch up to an exact multiple of the tile.
    n = max(min_tiles, -(-b8 // cap))
    if n % min_tiles:
        n += min_tiles - (n % min_tiles)
    bm = _round_up(-(-b8 // n), 8)
    return bm, bm * n


# --------------------------------------------------------------------------
# Forward pass
# --------------------------------------------------------------------------
def jae_forward(x, params, *, nb_cell_types, nb_batches, nb_phases,
                bm=None, use_bf16=True, weight_buffers=1):
    B, D = x.shape

    kparams = _prepare_kernel_params(params, use_bf16)
    weight_bytes = sum(int(p.size) * p.dtype.itemsize for p in kparams)

    if bm is None:
        bm, b_pad = _choose_tiling(B, D, weight_bytes, _tensorcores_per_chip())
    else:
        b_pad = _round_up(B, bm)

    # No feature-axis padding of x (block last dim == full D); batch padding
    # only when the tile does not divide B exactly.
    xp = x if b_pad == B else jnp.pad(x, ((0, b_pad - B), (0, 0)))

    def rep(shape):
        # Replicated parameter block: constant index_map keeps it resident in
        # VMEM across grid steps; single-buffered when Buffered(1) is supported.
        kwargs = {}
        if weight_buffers is not None:
            kwargs["pipeline_mode"] = pl.Buffered(weight_buffers)
        return pl.BlockSpec(shape, lambda i: (0, 0), **kwargs)

    in_specs = [pl.BlockSpec((bm, D), lambda i: (i, 0))]   # x tile (full D)
    in_specs += [rep(p.shape) for p in kparams]

    out_specs = [
        pl.BlockSpec((bm, D), lambda i: (i, 0)),        # decoded (full D)
        pl.BlockSpec((bm, EMB_PAD), lambda i: (i, 0)),  # embedding (lane-dense)
    ]

    decoded_p, emb_p = pl.pallas_call(
        jae_kernel,
        out_shape=(
            jax.ShapeDtypeStruct((b_pad, D), jnp.float32),
            jax.ShapeDtypeStruct((b_pad, EMB_PAD), jnp.float32),
        ),
        grid_spec=pltpu.PrefetchScalarGridSpec(
            num_scalar_prefetch=0,
            grid=(b_pad // bm,),
            in_specs=in_specs,
            out_specs=out_specs,
        ),
        compiler_params=pltpu.CompilerParams(
            dimension_semantics=("parallel",),
            vmem_limit_bytes=_VMEM_LIMIT_BYTES),
    )(xp, *kparams)

    decoded = decoded_p if b_pad == B else decoded_p[:B]
    emb = emb_p[:B, :EMB_DIM]
    c0 = nb_cell_types
    c1 = c0 + nb_batches
    c2 = c1 + nb_phases
    return decoded, emb[:, :c0], emb[:, c0:c1], emb[:, c1:c2]


# --------------------------------------------------------------------------
# Synthetic parameters (torch.nn.Linear layout, raw BatchNorm stats)
# --------------------------------------------------------------------------
def make_params(key, input_dimension):
    dims = [(input_dimension, 150), (150, 120), (120, 100), (100, EMB_DIM),
            (EMB_DIM, 150), (150, input_dimension)]
    keys = jax.random.split(key, 36)
    ki = iter(keys)

    def linear(in_d, out_d):
        w = jax.random.normal(next(ki), (in_d, out_d), jnp.float32) * 0.05
        b = jax.random.normal(next(ki), (1, out_d), jnp.float32) * 0.05
        return w, b

    def bn(n):
        gamma = 1.0 + 0.1 * jax.random.normal(next(ki), (n,), jnp.float32)
        beta = 0.1 * jax.random.normal(next(ki), (n,), jnp.float32)
        run_mean = 0.1 * jax.random.normal(next(ki), (n,), jnp.float32)
        run_var = jnp.abs(1.0 + 0.1 * jax.random.normal(next(ki), (n,), jnp.float32))
        return gamma, beta, run_mean, run_var

    p = {}
    p["w1"], p["b1"] = linear(*dims[0]); p["bn1"] = bn(150)
    p["w2"], p["b2"] = linear(*dims[1]); p["bn2"] = bn(120)
    p["w3"], p["b3"] = linear(*dims[2]); p["bn3"] = bn(100)
    p["w4"], p["b4"] = linear(*dims[3])
    p["wd1"], p["bd1"] = linear(*dims[4])
    p["wd2"], p["bd2"] = linear(*dims[5])
    return p


def jae_forward_ref(x, p, *, nb_cell_types, nb_batches, nb_phases):
    """Pure-JAX reference (un-folded eval-mode BatchNorm, f32 everywhere)."""
    def bn_eval(h, stats):
        gamma, beta, mean, var = stats
        return (h - mean) / jnp.sqrt(var + BN_EPS) * gamma + beta

    h = bn_eval(_gelu_exact(x @ p["w1"] + p["b1"]), p["bn1"])
    h = bn_eval(_gelu_exact(h @ p["w2"] + p["b2"]), p["bn2"])
    h = bn_eval(_gelu_exact(h @ p["w3"] + p["b3"]), p["bn3"])
    emb = h @ p["w4"] + p["b4"]
    d = jnp.maximum(emb @ p["wd1"] + p["bd1"], 0.0)
    d = jnp.maximum(d @ p["wd2"] + p["bd2"], 0.0)
    c0 = nb_cell_types
    c1 = c0 + nb_batches
    c2 = c1 + nb_phases
    return d, emb[:, :c0], emb[:, c0:c1], emb[:, c1:c2]


if __name__ == "__main__":
    key = jax.random.PRNGKey(0)
    k_x, k_p = jax.random.split(key)

    B = 256
    input_dimension = 200
    nb_cell_types, nb_batches, nb_phases = 10, 4, 3

    x = jax.random.normal(k_x, (B, input_dimension), jnp.float32)
    params = make_params(k_p, input_dimension)

    def run(use_bf16, weight_buffers):
        f = jax.jit(functools.partial(
            jae_forward, params=params,
            nb_cell_types=nb_cell_types, nb_batches=nb_batches,
            nb_phases=nb_phases, use_bf16=use_bf16,
            weight_buffers=weight_buffers))
        return jax.block_until_ready(f(x))

    # bf16 MXU path (default).  Fall back to default double-buffered weights
    # if pipeline_mode=Buffered(1) is not supported by this JAX version.
    try:
        outs = run(True, 1)
        wb = 1
    except Exception:
        outs = run(True, None)
        wb = None

    refs = jae_forward_ref(x, params,
                           nb_cell_types=nb_cell_types,
                           nb_batches=nb_batches,
                           nb_phases=nb_phases)

    for o, r in zip(outs, refs):
        assert o.shape == r.shape and o.dtype == r.dtype
        assert jnp.allclose(o, r, atol=2e-2, rtol=2e-2), \
            float(jnp.max(jnp.abs(o - r)))

    # f32 path: exact-semantics parity check.
    outs_f32 = run(False, wb)
    for o, r in zip(outs_f32, refs):
        assert o.shape == r.shape and o.dtype == r.dtype
        assert jnp.allclose(o, r, atol=1e-4, rtol=1e-4), \
            float(jnp.max(jnp.abs(o - r)))

    print("KERNEL_OK")
</pallas_src>

<mosaic_0001>
module attributes {stable_mosaic.version = 11 : i64} {
  func.func @jae_kernel(%arg0: i32, %arg1: memref<256x200xf32, #tpu.memory_space<vmem>>, %arg2: memref<200x256xbf16, #tpu.memory_space<vmem>>, %arg3: memref<1x256xf32, #tpu.memory_space<vmem>>, %arg4: memref<256x128xbf16, #tpu.memory_space<vmem>>, %arg5: memref<1x128xf32, #tpu.memory_space<vmem>>, %arg6: memref<128x128xbf16, #tpu.memory_space<vmem>>, %arg7: memref<1x128xf32, #tpu.memory_space<vmem>>, %arg8: memref<128x128xbf16, #tpu.memory_space<vmem>>, %arg9: memref<1x128xf32, #tpu.memory_space<vmem>>, %arg10: memref<128x256xbf16, #tpu.memory_space<vmem>>, %arg11: memref<1x256xf32, #tpu.memory_space<vmem>>, %arg12: memref<256x200xbf16, #tpu.memory_space<vmem>>, %arg13: memref<1x200xf32, #tpu.memory_space<vmem>>, %arg14: memref<256x200xf32, #tpu.memory_space<vmem>>, %arg15: memref<256x128xf32, #tpu.memory_space<vmem>>) attributes {dimension_semantics = [#tpu.dimension_semantics<parallel>], iteration_bounds = array<i64: 1>, scalar_prefetch = 0 : i64, scratch_operands = 0 : i64, tpu.core_type = #tpu.core_type<tc>, window_params = [{transform_indices = @transform_0, window_bounds = array<i64: 256, 200>}, {pipeline_mode = #tpu.pipeline_mode<synchronous>, transform_indices = @transform_1, window_bounds = array<i64: 200, 256>}, {pipeline_mode = #tpu.pipeline_mode<synchronous>, transform_indices = @transform_2, window_bounds = array<i64: 1, 256>}, {pipeline_mode = #tpu.pipeline_mode<synchronous>, transform_indices = @transform_3, window_bounds = array<i64: 256, 128>}, {pipeline_mode = #tpu.pipeline_mode<synchronous>, transform_indices = @transform_4, window_bounds = array<i64: 1, 128>}, {pipeline_mode = #tpu.pipeline_mode<synchronous>, transform_indices = @transform_5, window_bounds = array<i64: 128, 128>}, {pipeline_mode = #tpu.pipeline_mode<synchronous>, transform_indices = @transform_6, window_bounds = array<i64: 1, 128>}, {pipeline_mode = #tpu.pipeline_mode<synchronous>, transform_indices = @transform_7, window_bounds = array<i64: 128, 128>}, {pipeline_mode = #tpu.pipeline_mode<synchronous>, transform_indices = @transform_8, window_bounds = array<i64: 1, 128>}, {pipeline_mode = #tpu.pipeline_mode<synchronous>, transform_indices = @transform_9, window_bounds = array<i64: 128, 256>}, {pipeline_mode = #tpu.pipeline_mode<synchronous>, transform_indices = @transform_10, window_bounds = array<i64: 1, 256>}, {pipeline_mode = #tpu.pipeline_mode<synchronous>, transform_indices = @transform_11, window_bounds = array<i64: 256, 200>}, {pipeline_mode = #tpu.pipeline_mode<synchronous>, transform_indices = @transform_12, window_bounds = array<i64: 1, 200>}, {transform_indices = @transform_13, window_bounds = array<i64: 256, 200>}, {transform_indices = @transform_14, window_bounds = array<i64: 256, 128>}]} {
    %c0 = arith.constant 0 : index
    %c0_0 = arith.constant 0 : index
    %0 = vector.load %arg1[%c0, %c0_0] : memref<256x200xf32, #tpu.memory_space<vmem>>, vector<256x200xf32>
    %1 = arith.truncf %0 : vector<256x200xf32> to vector<256x200xbf16>
    %c0_1 = arith.constant 0 : index
    %c0_2 = arith.constant 0 : index
    %2 = vector.load %arg2[%c0_1, %c0_2] : memref<200x256xbf16, #tpu.memory_space<vmem>>, vector<200x256xbf16>
    %cst = arith.constant dense<0.000000e+00> : vector<256x256xf32>
    %3 = tpu.matmul %1, %2, %cst {dimension_numbers = #tpu.dot_dimension_numbers<[1], [0], [0], [1], [0, 0, 1, 1], [], []>} : vector<256x200xbf16>, vector<200x256xbf16>, vector<256x256xf32> -> vector<256x256xf32>
    %c0_3 = arith.constant 0 : index
    %c0_4 = arith.constant 0 : index
    %4 = vector.load %arg3[%c0_3, %c0_4] : memref<1x256xf32, #tpu.memory_space<vmem>>, vector<1x256xf32>
    %5 = vector.broadcast %4 : vector<1x256xf32> to vector<256x256xf32>
    %6 = arith.addf %3, %5 : vector<256x256xf32>
    %cst_5 = arith.constant 5.000000e-01 : f32
    %7 = vector.broadcast %cst_5 : f32 to vector<256x256xf32>
    %8 = arith.mulf %7, %6 : vector<256x256xf32>
    %cst_6 = arith.constant 0.707106769 : f32
    %9 = vector.broadcast %cst_6 : f32 to vector<256x256xf32>
    %10 = arith.mulf %6, %9 : vector<256x256xf32>
    %11 = math.erf %10 : vector<256x256xf32>
    %cst_7 = arith.constant 1.000000e+00 : f32
    %12 = vector.broadcast %cst_7 : f32 to vector<256x256xf32>
    %13 = arith.addf %12, %11 : vector<256x256xf32>
    %14 = arith.mulf %8, %13 : vector<256x256xf32>
    %15 = arith.truncf %14 : vector<256x256xf32> to vector<256x256xbf16>
    %c0_8 = arith.constant 0 : index
    %c0_9 = arith.constant 0 : index
    %16 = vector.load %arg4[%c0_8, %c0_9] : memref<256x128xbf16, #tpu.memory_space<vmem>>, vector<256x128xbf16>
    %cst_10 = arith.constant dense<0.000000e+00> : vector<256x128xf32>
    %17 = tpu.matmul %15, %16, %cst_10 {dimension_numbers = #tpu.dot_dimension_numbers<[1], [0], [0], [1], [0, 0, 1, 1], [], []>} : vector<256x256xbf16>, vector<256x128xbf16>, vector<256x128xf32> -> vector<256x128xf32>
    %c0_11 = arith.constant 0 : index
    %c0_12 = arith.constant 0 : index
    %18 = vector.load %arg5[%c0_11, %c0_12] : memref<1x128xf32, #tpu.memory_space<vmem>>, vector<1x128xf32>
    %19 = vector.broadcast %18 : vector<1x128xf32> to vector<256x128xf32>
    %20 = arith.addf %17, %19 : vector<256x128xf32>
    %cst_13 = arith.constant 5.000000e-01 : f32
    %21 = vector.broadcast %cst_13 : f32 to vector<256x128xf32>
    %22 = arith.mulf %21, %20 : vector<256x128xf32>
    %cst_14 = arith.constant 0.707106769 : f32
    %23 = vector.broadcast %cst_14 : f32 to vector<256x128xf32>
    %24 = arith.mulf %20, %23 : vector<256x128xf32>
    %25 = math.erf %24 : vector<256x128xf32>
    %cst_15 = arith.constant 1.000000e+00 : f32
    %26 = vector.broadcast %cst_15 : f32 to vector<256x128xf32>
    %27 = arith.addf %26, %25 : vector<256x128xf32>
    %28 = arith.mulf %22, %27 : vector<256x128xf32>
    %29 = arith.truncf %28 : vector<256x128xf32> to vector<256x128xbf16>
    %c0_16 = arith.constant 0 : index
    %c0_17 = arith.constant 0 : index
    %30 = vector.load %arg6[%c0_16, %c0_17] : memref<128x128xbf16, #tpu.memory_space<vmem>>, vector<128x128xbf16>
    %cst_18 = arith.constant dense<0.000000e+00> : vector<256x128xf32>
    %31 = tpu.matmul %29, %30, %cst_18 {dimension_numbers = #tpu.dot_dimension_numbers<[1], [0], [0], [1], [0, 0, 1, 1], [], []>} : vector<256x128xbf16>, vector<128x128xbf16>, vector<256x128xf32> -> vector<256x128xf32>
    %c0_19 = arith.constant 0 : index
    %c0_20 = arith.constant 0 : index
    %32 = vector.load %arg7[%c0_19, %c0_20] : memref<1x128xf32, #tpu.memory_space<vmem>>, vector<1x128xf32>
    %33 = vector.broadcast %32 : vector<1x128xf32> to vector<256x128xf32>
    %34 = arith.addf %31, %33 : vector<256x128xf32>
    %cst_21 = arith.constant 5.000000e-01 : f32
    %35 = vector.broadcast %cst_21 : f32 to vector<256x128xf32>
    %36 = arith.mulf %35, %34 : vector<256x128xf32>
    %cst_22 = arith.constant 0.707106769 : f32
    %37 = vector.broadcast %cst_22 : f32 to vector<256x128xf32>
    %38 = arith.mulf %34, %37 : vector<256x128xf32>
    %39 = math.erf %38 : vector<256x128xf32>
    %cst_23 = arith.constant 1.000000e+00 : f32
    %40 = vector.broadcast %cst_23 : f32 to vector<256x128xf32>
    %41 = arith.addf %40, %39 : vector<256x128xf32>
    %42 = arith.mulf %36, %41 : vector<256x128xf32>
    %43 = arith.truncf %42 : vector<256x128xf32> to vector<256x128xbf16>
    %c0_24 = arith.constant 0 : index
    %c0_25 = arith.constant 0 : index
    %44 = vector.load %arg8[%c0_24, %c0_25] : memref<128x128xbf16, #tpu.memory_space<vmem>>, vector<128x128xbf16>
    %cst_26 = arith.constant dense<0.000000e+00> : vector<256x128xf32>
    %45 = tpu.matmul %43, %44, %cst_26 {dimension_numbers = #tpu.dot_dimension_numbers<[1], [0], [0], [1], [0, 0, 1, 1], [], []>} : vector<256x128xbf16>, vector<128x128xbf16>, vector<256x128xf32> -> vector<256x128xf32>
    %c0_27 = arith.constant 0 : index
    %c0_28 = arith.constant 0 : index
    %46 = vector.load %arg9[%c0_27, %c0_28] : memref<1x128xf32, #tpu.memory_space<vmem>>, vector<1x128xf32>
    %47 = vector.broadcast %46 : vector<1x128xf32> to vector<256x128xf32>
    %48 = arith.addf %45, %47 : vector<256x128xf32>
    %c0_29 = arith.constant 0 : index
    %c0_30 = arith.constant 0 : index
    %49 = vector.load %arg15[%c0_29, %c0_30] : memref<256x128xf32, #tpu.memory_space<vmem>>, vector<256x128xf32>
    tpu.vector_store %arg15[%c0_29, %c0_30], %48 {strides = array<i32>} : memref<256x128xf32, #tpu.memory_space<vmem>>, vector<256x128xf32>,
    %50 = arith.truncf %48 : vector<256x128xf32> to vector<256x128xbf16>
    %c0_31 = arith.constant 0 : index
    %c0_32 = arith.constant 0 : index
    %51 = vector.load %arg10[%c0_31, %c0_32] : memref<128x256xbf16, #tpu.memory_space<vmem>>, vector<128x256xbf16>
    %cst_33 = arith.constant dense<0.000000e+00> : vector<256x256xf32>
    %52 = tpu.matmul %50, %51, %cst_33 {dimension_numbers = #tpu.dot_dimension_numbers<[1], [0], [0], [1], [0, 0, 1, 1], [], []>} : vector<256x128xbf16>, vector<128x256xbf16>, vector<256x256xf32> -> vector<256x256xf32>
    %c0_34 = arith.constant 0 : index
    %c0_35 = arith.constant 0 : index
    %53 = vector.load %arg11[%c0_34, %c0_35] : memref<1x256xf32, #tpu.memory_space<vmem>>, vector<1x256xf32>
    %54 = vector.broadcast %53 : vector<1x256xf32> to vector<256x256xf32>
    %55 = arith.addf %52, %54 : vector<256x256xf32>
    %cst_36 = arith.constant 0.000000e+00 : f32
    %56 = vector.broadcast %cst_36 : f32 to vector<256x256xf32>
    %57 = arith.maximumf %55, %56 : vector<256x256xf32>
    %58 = arith.truncf %57 : vector<256x256xf32> to vector<256x256xbf16>
    %c0_37 = arith.constant 0 : index
    %c0_38 = arith.constant 0 : index
    %59 = vector.load %arg12[%c0_37, %c0_38] : memref<256x200xbf16, #tpu.memory_space<vmem>>, vector<256x200xbf16>
    %cst_39 = arith.constant dense<0.000000e+00> : vector<256x200xf32>
    %60 = tpu.matmul %58, %59, %cst_39 {dimension_numbers = #tpu.dot_dimension_numbers<[1], [0], [0], [1], [0, 0, 1, 1], [], []>} : vector<256x256xbf16>, vector<256x200xbf16>, vector<256x200xf32> -> vector<256x200xf32>
    %c0_40 = arith.constant 0 : index
    %c0_41 = arith.constant 0 : index
    %61 = vector.load %arg13[%c0_40, %c0_41] : memref<1x200xf32, #tpu.memory_space<vmem>>, vector<1x200xf32>
    %62 = vector.broadcast %61 : vector<1x200xf32> to vector<256x200xf32>
    %63 = arith.addf %60, %62 : vector<256x200xf32>
    %cst_42 = arith.constant 0.000000e+00 : f32
    %64 = vector.broadcast %cst_42 : f32 to vector<256x200xf32>
    %65 = arith.maximumf %63, %64 : vector<256x200xf32>
    %c0_43 = arith.constant 0 : index
    %c0_44 = arith.constant 0 : index
    %66 = vector.load %arg14[%c0_43, %c0_44] : memref<256x200xf32, #tpu.memory_space<vmem>>, vector<256x200xf32>
    tpu.vector_store %arg14[%c0_43, %c0_44], %65 {strides = array<i32>} : memref<256x200xf32, #tpu.memory_space<vmem>>, vector<256x200xf32>,
    return
  }
  func.func @transform_0(%arg0: i32) -> (i32, i32) {
    %c0_i32 = arith.constant 0 : i32
    %c0_i32_0 = arith.constant 0 : i32
    return %arg0, %c0_i32 : i32, i32
  }
  func.func @transform_1(%arg0: i32) -> (i32, i32) {
    %c0_i32 = arith.constant 0 : i32
    %c0_i32_0 = arith.constant 0 : i32
    %c0_i32_1 = arith.constant 0 : i32
    return %c0_i32, %c0_i32_0 : i32, i32
  }
  func.func @transform_2(%arg0: i32) -> (i32, i32) {
    %c0_i32 = arith.constant 0 : i32
    %c0_i32_0 = arith.constant 0 : i32
    %c0_i32_1 = arith.constant 0 : i32
    return %c0_i32, %c0_i32_0 : i32, i32
  }
  func.func @transform_3(%arg0: i32) -> (i32, i32) {
    %c0_i32 = arith.constant 0 : i32
    %c0_i32_0 = arith.constant 0 : i32
    %c0_i32_1 = arith.constant 0 : i32
    return %c0_i32, %c0_i32_0 : i32, i32
  }
  func.func @transform_4(%arg0: i32) -> (i32, i32) {
    %c0_i32 = arith.constant 0 : i32
    %c0_i32_0 = arith.constant 0 : i32
    %c0_i32_1 = arith.constant 0 : i32
    return %c0_i32, %c0_i32_0 : i32, i32
  }
  func.func @transform_5(%arg0: i32) -> (i32, i32) {
    %c0_i32 = arith.constant 0 : i32
    %c0_i32_0 = arith.constant 0 : i32
    %c0_i32_1 = arith.constant 0 : i32
    return %c0_i32, %c0_i32_0 : i32, i32
  }
  func.func @transform_6(%arg0: i32) -> (i32, i32) {
    %c0_i32 = arith.constant 0 : i32
    %c0_i32_0 = arith.constant 0 : i32
    %c0_i32_1 = arith.constant 0 : i32
    return %c0_i32, %c0_i32_0 : i32, i32
  }
  func.func @transform_7(%arg0: i32) -> (i32, i32) {
    %c0_i32 = arith.constant 0 : i32
    %c0_i32_0 = arith.constant 0 : i32
    %c0_i32_1 = arith.constant 0 : i32
    return %c0_i32, %c0_i32_0 : i32, i32
  }
  func.func @transform_8(%arg0: i32) -> (i32, i32) {
    %c0_i32 = arith.constant 0 : i32
    %c0_i32_0 = arith.constant 0 : i32
    %c0_i32_1 = arith.constant 0 : i32
    return %c0_i32, %c0_i32_0 : i32, i32
  }
  func.func @transform_9(%arg0: i32) -> (i32, i32) {
    %c0_i32 = arith.constant 0 : i32
    %c0_i32_0 = arith.constant 0 : i32
    %c0_i32_1 = arith.constant 0 : i32
    return %c0_i32, %c0_i32_0 : i32, i32
  }
  func.func @transform_10(%arg0: i32) -> (i32, i32) {
    %c0_i32 = arith.constant 0 : i32
    %c0_i32_0 = arith.constant 0 : i32
    %c0_i32_1 = arith.constant 0 : i32
    return %c0_i32, %c0_i32_0 : i32, i32
  }
  func.func @transform_11(%arg0: i32) -> (i32, i32) {
    %c0_i32 = arith.constant 0 : i32
    %c0_i32_0 = arith.constant 0 : i32
    %c0_i32_1 = arith.constant 0 : i32
    return %c0_i32, %c0_i32_0 : i32, i32
  }
  func.func @transform_12(%arg0: i32) -> (i32, i32) {
    %c0_i32 = arith.constant 0 : i32
    %c0_i32_0 = arith.constant 0 : i32
    %c0_i32_1 = arith.constant 0 : i32
    return %c0_i32, %c0_i32_0 : i32, i32
  }
  func.func @transform_13(%arg0: i32) -> (i32, i32) {
    %c0_i32 = arith.constant 0 : i32
    %c0_i32_0 = arith.constant 0 : i32
    return %arg0, %c0_i32 : i32, i32
  }
  func.func @transform_14(%arg0: i32) -> (i32, i32) {
    %c0_i32 = arith.constant 0 : i32
    %c0_i32_0 = arith.constant 0 : i32
    return %arg0, %c0_i32 : i32, i32
  }
}

module attributes {stable_mosaic.version = 11 : i64} {
  func.func @jae_kernel(%arg0: i32, %arg1: memref<256x200xf32, #tpu.memory_space<vmem>>, %arg2: memref<200x256xbf16, #tpu.memory_space<vmem>>, %arg3: memref<1x256xf32, #tpu.memory_space<vmem>>, %arg4: memref<256x128xbf16, #tpu.memory_space<vmem>>, %arg5: memref<1x128xf32, #tpu.memory_space<vmem>>, %arg6: memref<128x128xbf16, #tpu.memory_space<vmem>>, %arg7: memref<1x128xf32, #tpu.memory_space<vmem>>, %arg8: memref<128x128xbf16, #tpu.memory_space<vmem>>, %arg9: memref<1x128xf32, #tpu.memory_space<vmem>>, %arg10: memref<128x256xbf16, #tpu.memory_space<vmem>>, %arg11: memref<1x256xf32, #tpu.memory_space<vmem>>, %arg12: memref<256x200xbf16, #tpu.memory_space<vmem>>, %arg13: memref<1x200xf32, #tpu.memory_space<vmem>>, %arg14: memref<256x200xf32, #tpu.memory_space<vmem>>, %arg15: memref<256x128xf32, #tpu.memory_space<vmem>>) attributes {dimension_semantics = [#tpu.dimension_semantics<parallel>], iteration_bounds = array<i64: 1>, scalar_prefetch = 0 : i64, scratch_operands = 0 : i64, tpu.core_type = #tpu.core_type<tc>, window_params = [{transform_indices = @transform_0, window_bounds = array<i64: 256, 200>}, {pipeline_mode = #tpu.pipeline_mode<synchronous>, transform_indices = @transform_1, window_bounds = array<i64: 200, 256>}, {pipeline_mode = #tpu.pipeline_mode<synchronous>, transform_indices = @transform_2, window_bounds = array<i64: 1, 256>}, {pipeline_mode = #tpu.pipeline_mode<synchronous>, transform_indices = @transform_3, window_bounds = array<i64: 256, 128>}, {pipeline_mode = #tpu.pipeline_mode<synchronous>, transform_indices = @transform_4, window_bounds = array<i64: 1, 128>}, {pipeline_mode = #tpu.pipeline_mode<synchronous>, transform_indices = @transform_5, window_bounds = array<i64: 128, 128>}, {pipeline_mode = #tpu.pipeline_mode<synchronous>, transform_indices = @transform_6, window_bounds = array<i64: 1, 128>}, {pipeline_mode = #tpu.pipeline_mode<synchronous>, transform_indices = @transform_7, window_bounds = array<i64: 128, 128>}, {pipeline_mode = #tpu.pipeline_mode<synchronous>, transform_indices = @transform_8, window_bounds = array<i64: 1, 128>}, {pipeline_mode = #tpu.pipeline_mode<synchronous>, transform_indices = @transform_9, window_bounds = array<i64: 128, 256>}, {pipeline_mode = #tpu.pipeline_mode<synchronous>, transform_indices = @transform_10, window_bounds = array<i64: 1, 256>}, {pipeline_mode = #tpu.pipeline_mode<synchronous>, transform_indices = @transform_11, window_bounds = array<i64: 256, 200>}, {pipeline_mode = #tpu.pipeline_mode<synchronous>, transform_indices = @transform_12, window_bounds = array<i64: 1, 200>}, {transform_indices = @transform_13, window_bounds = array<i64: 256, 200>}, {transform_indices = @transform_14, window_bounds = array<i64: 256, 128>}]} {
    %c0 = arith.constant 0 : index
    %c0_0 = arith.constant 0 : index
    %0 = vector.load %arg1[%c0, %c0_0] : memref<256x200xf32, #tpu.memory_space<vmem>>, vector<256x200xf32>
    %1 = arith.truncf %0 : vector<256x200xf32> to vector<256x200xbf16>
    %c0_1 = arith.constant 0 : index
    %c0_2 = arith.constant 0 : index
    %2 = vector.load %arg2[%c0_1, %c0_2] : memref<200x256xbf16, #tpu.memory_space<vmem>>, vector<200x256xbf16>
    %cst = arith.constant dense<0.000000e+00> : vector<256x256xf32>
    %3 = tpu.matmul %1, %2, %cst {dimension_numbers = #tpu.dot_dimension_numbers<[1], [0], [0], [1], [0, 0, 1, 1], [], []>} : vector<256x200xbf16>, vector<200x256xbf16>, vector<256x256xf32> -> vector<256x256xf32>
    %c0_3 = arith.constant 0 : index
    %c0_4 = arith.constant 0 : index
    %4 = vector.load %arg3[%c0_3, %c0_4] : memref<1x256xf32, #tpu.memory_space<vmem>>, vector<1x256xf32>
    %5 = vector.broadcast %4 : vector<1x256xf32> to vector<256x256xf32>
    %6 = arith.addf %3, %5 : vector<256x256xf32>
    %cst_5 = arith.constant 5.000000e-01 : f32
    %7 = vector.broadcast %cst_5 : f32 to vector<256x256xf32>
    %8 = arith.mulf %7, %6 : vector<256x256xf32>
    %cst_6 = arith.constant 0.707106769 : f32
    %9 = vector.broadcast %cst_6 : f32 to vector<256x256xf32>
    %10 = arith.mulf %6, %9 : vector<256x256xf32>
    %11 = math.erf %10 : vector<256x256xf32>
    %cst_7 = arith.constant 1.000000e+00 : f32
    %12 = vector.broadcast %cst_7 : f32 to vector<256x256xf32>
    %13 = arith.addf %12, %11 : vector<256x256xf32>
    %14 = arith.mulf %8, %13 : vector<256x256xf32>
    %15 = arith.truncf %14 : vector<256x256xf32> to vector<256x256xbf16>
    %c0_8 = arith.constant 0 : index
    %c0_9 = arith.constant 0 : index
    %16 = vector.load %arg4[%c0_8, %c0_9] : memref<256x128xbf16, #tpu.memory_space<vmem>>, vector<256x128xbf16>
    %cst_10 = arith.constant dense<0.000000e+00> : vector<256x128xf32>
    %17 = tpu.matmul %15, %16, %cst_10 {dimension_numbers = #tpu.dot_dimension_numbers<[1], [0], [0], [1], [0, 0, 1, 1], [], []>} : vector<256x256xbf16>, vector<256x128xbf16>, vector<256x128xf32> -> vector<256x128xf32>
    %c0_11 = arith.constant 0 : index
    %c0_12 = arith.constant 0 : index
    %18 = vector.load %arg5[%c0_11, %c0_12] : memref<1x128xf32, #tpu.memory_space<vmem>>, vector<1x128xf32>
    %19 = vector.broadcast %18 : vector<1x128xf32> to vector<256x128xf32>
    %20 = arith.addf %17, %19 : vector<256x128xf32>
    %cst_13 = arith.constant 5.000000e-01 : f32
    %21 = vector.broadcast %cst_13 : f32 to vector<256x128xf32>
    %22 = arith.mulf %21, %20 : vector<256x128xf32>
    %cst_14 = arith.constant 0.707106769 : f32
    %23 = vector.broadcast %cst_14 : f32 to vector<256x128xf32>
    %24 = arith.mulf %20, %23 : vector<256x128xf32>
    %25 = math.erf %24 : vector<256x128xf32>
    %cst_15 = arith.constant 1.000000e+00 : f32
    %26 = vector.broadcast %cst_15 : f32 to vector<256x128xf32>
    %27 = arith.addf %26, %25 : vector<256x128xf32>
    %28 = arith.mulf %22, %27 : vector<256x128xf32>
    %29 = arith.truncf %28 : vector<256x128xf32> to vector<256x128xbf16>
    %c0_16 = arith.constant 0 : index
    %c0_17 = arith.constant 0 : index
    %30 = vector.load %arg6[%c0_16, %c0_17] : memref<128x128xbf16, #tpu.memory_space<vmem>>, vector<128x128xbf16>
    %cst_18 = arith.constant dense<0.000000e+00> : vector<256x128xf32>
    %31 = tpu.matmul %29, %30, %cst_18 {dimension_numbers = #tpu.dot_dimension_numbers<[1], [0], [0], [1], [0, 0, 1, 1], [], []>} : vector<256x128xbf16>, vector<128x128xbf16>, vector<256x128xf32> -> vector<256x128xf32>
    %c0_19 = arith.constant 0 : index
    %c0_20 = arith.constant 0 : index
    %32 = vector.load %arg7[%c0_19, %c0_20] : memref<1x128xf32, #tpu.memory_space<vmem>>, vector<1x128xf32>
    %33 = vector.broadcast %32 : vector<1x128xf32> to vector<256x128xf32>
    %34 = arith.addf %31, %33 : vector<256x128xf32>
    %cst_21 = arith.constant 5.000000e-01 : f32
    %35 = vector.broadcast %cst_21 : f32 to vector<256x128xf32>
    %36 = arith.mulf %35, %34 : vector<256x128xf32>
    %cst_22 = arith.constant 0.707106769 : f32
    %37 = vector.broadcast %cst_22 : f32 to vector<256x128xf32>
    %38 = arith.mulf %34, %37 : vector<256x128xf32>
    %39 = math.erf %38 : vector<256x128xf32>
    %cst_23 = arith.constant 1.000000e+00 : f32
    %40 = vector.broadcast %cst_23 : f32 to vector<256x128xf32>
    %41 = arith.addf %40, %39 : vector<256x128xf32>
    %42 = arith.mulf %36, %41 : vector<256x128xf32>
    %43 = arith.truncf %42 : vector<256x128xf32> to vector<256x128xbf16>
    %c0_24 = arith.constant 0 : index
    %c0_25 = arith.constant 0 : index
    %44 = vector.load %arg8[%c0_24, %c0_25] : memref<128x128xbf16, #tpu.memory_space<vmem>>, vector<128x128xbf16>
    %cst_26 = arith.constant dense<0.000000e+00> : vector<256x128xf32>
    %45 = tpu.matmul %43, %44, %cst_26 {dimension_numbers = #tpu.dot_dimension_numbers<[1], [0], [0], [1], [0, 0, 1, 1], [], []>} : vector<256x128xbf16>, vector<128x128xbf16>, vector<256x128xf32> -> vector<256x128xf32>
    %c0_27 = arith.constant 0 : index
    %c0_28 = arith.constant 0 : index
    %46 = vector.load %arg9[%c0_27, %c0_28] : memref<1x128xf32, #tpu.memory_space<vmem>>, vector<1x128xf32>
    %47 = vector.broadcast %46 : vector<1x128xf32> to vector<256x128xf32>
    %48 = arith.addf %45, %47 : vector<256x128xf32>
    %c0_29 = arith.constant 0 : index
    %c0_30 = arith.constant 0 : index
    %49 = vector.load %arg15[%c0_29, %c0_30] : memref<256x128xf32, #tpu.memory_space<vmem>>, vector<256x128xf32>
    tpu.vector_store %arg15[%c0_29, %c0_30], %48 {strides = array<i32>} : memref<256x128xf32, #tpu.memory_space<vmem>>, vector<256x128xf32>,
    %50 = arith.truncf %48 : vector<256x128xf32> to vector<256x128xbf16>
    %c0_31 = arith.constant 0 : index
    %c0_32 = arith.constant 0 : index
    %51 = vector.load %arg10[%c0_31, %c0_32] : memref<128x256xbf16, #tpu.memory_space<vmem>>, vector<128x256xbf16>
    %cst_33 = arith.constant dense<0.000000e+00> : vector<256x256xf32>
    %52 = tpu.matmul %50, %51, %cst_33 {dimension_numbers = #tpu.dot_dimension_numbers<[1], [0], [0], [1], [0, 0, 1, 1], [], []>} : vector<256x128xbf16>, vector<128x256xbf16>, vector<256x256xf32> -> vector<256x256xf32>
    %c0_34 = arith.constant 0 : index
    %c0_35 = arith.constant 0 : index
    %53 = vector.load %arg11[%c0_34, %c0_35] : memref<1x256xf32, #tpu.memory_space<vmem>>, vector<1x256xf32>
    %54 = vector.broadcast %53 : vector<1x256xf32> to vector<256x256xf32>
    %55 = arith.addf %52, %54 : vector<256x256xf32>
    %cst_36 = arith.constant 0.000000e+00 : f32
    %56 = vector.broadcast %cst_36 : f32 to vector<256x256xf32>
    %57 = arith.maximumf %55, %56 : vector<256x256xf32>
    %58 = arith.truncf %57 : vector<256x256xf32> to vector<256x256xbf16>
    %c0_37 = arith.constant 0 : index
    %c0_38 = arith.constant 0 : index
    %59 = vector.load %arg12[%c0_37, %c0_38] : memref<256x200xbf16, #tpu.memory_space<vmem>>, vector<256x200xbf16>
    %cst_39 = arith.constant dense<0.000000e+00> : vector<256x200xf32>
    %60 = tpu.matmul %58, %59, %cst_39 {dimension_numbers = #tpu.dot_dimension_numbers<[1], [0], [0], [1], [0, 0, 1, 1], [], []>} : vector<256x256xbf16>, vector<256x200xbf16>, vector<256x200xf32> -> vector<256x200xf32>
    %c0_40 = arith.constant 0 : index
    %c0_41 = arith.constant 0 : index
    %61 = vector.load %arg13[%c0_40, %c0_41] : memref<1x200xf32, #tpu.memory_space<vmem>>, vector<1x200xf32>
    %62 = vector.broadcast %61 : vector<1x200xf32> to vector<256x200xf32>
    %63 = arith.addf %60, %62 : vector<256x200xf32>
    %cst_42 = arith.constant 0.000000e+00 : f32
    %64 = vector.broadcast %cst_42 : f32 to vector<256x200xf32>
    %65 = arith.maximumf %63, %64 : vector<256x200xf32>
    %c0_43 = arith.constant 0 : index
    %c0_44 = arith.constant 0 : index
    %66 = vector.load %arg14[%c0_43, %c0_44] : memref<256x200xf32, #tpu.memory_space<vmem>>, vector<256x200xf32>
    tpu.vector_store %arg14[%c0_43, %c0_44], %65 {strides = array<i32>} : memref<256x200xf32, #tpu.memory_space<vmem>>, vector<256x200xf32>,
    return
  }
  func.func @transform_0(%arg0: i32) -> (i32, i32) {
    %c0_i32 = arith.constant 0 : i32
    %c0_i32_0 = arith.constant 0 : i32
    return %arg0, %c0_i32 : i32, i32
  }
  func.func @transform_1(%arg0: i32) -> (i32, i32) {
    %c0_i32 = arith.constant 0 : i32
    %c0_i32_0 = arith.constant 0 : i32
    %c0_i32_1 = arith.constant 0 : i32
    return %c0_i32, %c0_i32_0 : i32, i32
  }
  func.func @transform_2(%arg0: i32) -> (i32, i32) {
    %c0_i32 = arith.constant 0 : i32
    %c0_i32_0 = arith.constant 0 : i32
    %c0_i32_1 = arith.constant 0 : i32
    return %c0_i32, %c0_i32_0 : i32, i32
  }
  func.func @transform_3(%arg0: i32) -> (i32, i32) {
    %c0_i32 = arith.constant 0 : i32
    %c0_i32_0 = arith.constant 0 : i32
    %c0_i32_1 = arith.constant 0 : i32
    return %c0_i32, %c0_i32_0 : i32, i32
  }
  func.func @transform_4(%arg0: i32) -> (i32, i32) {
    %c0_i32 = arith.constant 0 : i32
    %c0_i32_0 = arith.constant 0 : i32
    %c0_i32_1 = arith.constant 0 : i32
    return %c0_i32, %c0_i32_0 : i32, i32
  }
  func.func @transform_5(%arg0: i32) -> (i32, i32) {
    %c0_i32 = arith.constant 0 : i32
    %c0_i32_0 = arith.constant 0 : i32
    %c0_i32_1 = arith.constant 0 : i32
    return %c0_i32, %c0_i32_0 : i32, i32
  }
  func.func @transform_6(%arg0: i32) -> (i32, i32) {
    %c0_i32 = arith.constant 0 : i32
    %c0_i32_0 = arith.constant 0 : i32
    %c0_i32_1 = arith.constant 0 : i32
    return %c0_i32, %c0_i32_0 : i32, i32
  }
  func.func @transform_7(%arg0: i32) -> (i32, i32) {
    %c0_i32 = arith.constant 0 : i32
    %c0_i32_0 = arith.constant 0 : i32
    %c0_i32_1 = arith.constant 0 : i32
    return %c0_i32, %c0_i32_0 : i32, i32
  }
  func.func @transform_8(%arg0: i32) -> (i32, i32) {
    %c0_i32 = arith.constant 0 : i32
    %c0_i32_0 = arith.constant 0 : i32
    %c0_i32_1 = arith.constant 0 : i32
    return %c0_i32, %c0_i32_0 : i32, i32
  }
  func.func @transform_9(%arg0: i32) -> (i32, i32) {
    %c0_i32 = arith.constant 0 : i32
    %c0_i32_0 = arith.constant 0 : i32
    %c0_i32_1 = arith.constant 0 : i32
    return %c0_i32, %c0_i32_0 : i32, i32
  }
  func.func @transform_10(%arg0: i32) -> (i32, i32) {
    %c0_i32 = arith.constant 0 : i32
    %c0_i32_0 = arith.constant 0 : i32
    %c0_i32_1 = arith.constant 0 : i32
    return %c0_i32, %c0_i32_0 : i32, i32
  }
  func.func @transform_11(%arg0: i32) -> (i32, i32) {
    %c0_i32 = arith.constant 0 : i32
    %c0_i32_0 = arith.constant 0 : i32
    %c0_i32_1 = arith.constant 0 : i32
    return %c0_i32, %c0_i32_0 : i32, i32
  }
  func.func @transform_12(%arg0: i32) -> (i32, i32) {
    %c0_i32 = arith.constant 0 : i32
    %c0_i32_0 = arith.constant 0 : i32
    %c0_i32_1 = arith.constant 0 : i32
    return %c0_i32, %c0_i32_0 : i32, i32
  }
  func.func @transform_13(%arg0: i32) -> (i32, i32) {
    %c0_i32 = arith.constant 0 : i32
    %c0_i32_0 = arith.constant 0 : i32
    return %arg0, %c0_i32 : i32, i32
  }
  func.func @transform_14(%arg0: i32) -> (i32, i32) {
    %c0_i32 = arith.constant 0 : i32
    %c0_i32_0 = arith.constant 0 : i32
    return %arg0, %c0_i32 : i32, i32
  }
}

</mosaic_0001>

<bundles_post_ra>
// kernel: jae_forward.1
= control target key start
LH: loop header
LB: loop body
LE: loop exit
PB: predicated region body
PF: predicated region fallthrough
CT: control target
= control target key end

     0   :  { %vm305_vm0 = vcmask 588800   ;;  %vm354_vm1 = vcmask 1043456   ;;  %s5282_s1 = inlined_call_operand.vmem [shape: bf16[200,256], index: 1, kind: input, shape index: {}]   ;;  %s5283_s0 = inlined_call_operand.vmem [shape: f32[256,200], index: 0, kind: input, shape index: {}]   ;;  %s5284_s3 = inlined_call_operand.vmem [shape: bf16[256,128], index: 3, kind: input, shape index: {}]   ;;  %s5285_s2 = inlined_call_operand.vmem [shape: f32[1,256], index: 2, kind: input, shape index: {}]   ;;  %s5286_s5 = inlined_call_operand.vmem [shape: bf16[128,128], index: 5, kind: input, shape index: {}]   ;;  %s5287_s4 = inlined_call_operand.vmem [shape: f32[1,128], index: 4, kind: input, shape index: {}]   ;;  %s5288_s7 = inlined_call_operand.vmem [shape: bf16[128,128], index: 7, kind: input, shape index: {}]   ;;  %s5289_s6 = inlined_call_operand.vmem [shape: f32[1,128], index: 6, kind: input, shape index: {}]   ;;  %s5290_s9 = inlined_call_operand.vmem [shape: bf16[128,256], index: 9, kind: input, shape index: {}]   ;;  %s5291_s8 = inlined_call_operand.vmem [shape: f32[1,128], index: 8, kind: input, shape index: {}]   ;;  %s5292_s14 = inlined_call_operand.vmem [shape: f32[256,128], index: 14, kind: output, shape index: {1}]   ;;  %s5293_s11 = inlined_call_operand.vmem [shape: bf16[256,200], index: 11, kind: input, shape index: {}]   ;;  %s5294_s10 = inlined_call_operand.vmem [shape: f32[1,256], index: 10, kind: input, shape index: {}]   ;;  %s5295_s12 = inlined_call_operand.vmem [shape: f32[1,200], index: 12, kind: input, shape index: {}]   ;;  %s5296_s13 = inlined_call_operand.vmem [shape: f32[256,200], index: 13, kind: output, shape index: {0}]  }
   0x1   :  { %v3411_v0 = vld [vmem:[%s5282_s1 + $0x4] ss:$8 sps:$4 sm:$0xff]   ;;  %v3413_v1 = vld [vmem:[%s5282_s1] ss:$8 sps:$4 sm:$0xff]   ;;  %v3414_v2 = vld [vmem:[%s5282_s1 + $0x14] ss:$8 sps:$4 sm:$0xff]  }
   0x2   :  { %361 = vmatprep.subr.bf16.mxu0 %v3411_v0  ;;  %v3416_v3 = vld [vmem:[%s5282_s1 + $0x10] ss:$8 sps:$4 sm:$0xff]   ;;  %v3417_v4 = vld [vmem:[%s5282_s1 + $0x24] ss:$8 sps:$4 sm:$0xff]   ;;  %v3419_v5 = vld [vmem:[%s5282_s1 + $0x20] ss:$8 sps:$4 sm:$0xff]  }
   0x3   :  { %362 = vmatpush1.bf16.msra.mxu0 %v3413_v1  ;;  %v3420_v6 = vld [vmem:[%s5282_s1 + $0x34] ss:$8 sps:$4 sm:$0xff]   ;;  %v3422_v7 = vld [vmem:[%s5282_s1 + $0x30] ss:$8 sps:$4 sm:$0xff]   ;;  %v3423_v8 = vld [vmem:[%s5282_s1 + $0x44] ss:$8 sps:$4 sm:$0xff]  }
   0x4   :  { %363 = vmatprep.subr.bf16.mxu0 %v3414_v2  ;;  %v3425_v9 = vld [vmem:[%s5282_s1 + $0x40] ss:$8 sps:$4 sm:$0xff]   ;;  %v3426_v10 = vld [vmem:[%s5282_s1 + $0x54] ss:$8 sps:$4 sm:$0xff]   ;;  %v3428_v14 = vld [vmem:[%s5282_s1 + $0x50] ss:$8 sps:$4 sm:$0xff]  }
   0x5   :  { %v48_v11 = vld [vmem:[%s5283_s0 + $0x8] sm:$0xff]  ;;  %v50_v12 = vld [vmem:[%s5283_s0 + $0x18] sm:$0xff]  ;;  %v167_v26 = vld [vmem:[%s5282_s1 + $0xc0] sm:$0xff] }
   0x6   :  { %v112_v13 = vpack.c.bf16 %v50_v12, %v48_v11  ;;  %v3429_v15 = vld [vmem:[%s5282_s1 + $0x64] ss:$8 sps:$4 sm:$0xff]   ;;  %v3431_v16 = vld [vmem:[%s5282_s1 + $0x60] ss:$8 sps:$4 sm:$0xff]   ;;  %v3432_v17 = vld [vmem:[%s5282_s1 + $0x74] ss:$8 sps:$4 sm:$0xff]   ;;  %v3021_v28 = vcombine.high %v167_v26, %v167_v26  ;;  %v3020_v29 = vcombine.low %v167_v26, %v167_v26 }
   0x7   :  { %364 = vmatpush1.bf16.msra.mxu0 %v3416_v3  ;;  %v3434_v18 = vld [vmem:[%s5282_s1 + $0x70] ss:$8 sps:$4 sm:$0xff]   ;;  %v3435_v19 = vld [vmem:[%s5282_s1 + $0x84] ss:$8 sps:$4 sm:$0xff]   ;;  %v3437_v20 = vld [vmem:[%s5282_s1 + $0x80] ss:$8 sps:$4 sm:$0xff]  }
   0x8   :  { %365 = vmatprep.subr.bf16.mxu0 %v3417_v4  ;;  %3023 = vmatprep.mubr.msk.bf16.mxu0 %vm305_vm0, %v112_v13  ;;  %v3438_v21 = vld [vmem:[%s5282_s1 + $0x94] ss:$8 sps:$4 sm:$0xff]   ;;  %v3440_v22 = vld [vmem:[%s5282_s1 + $0x90] ss:$8 sps:$4 sm:$0xff]   ;;  %v3441_v23 = vld [vmem:[%s5282_s1 + $0xa4] ss:$8 sps:$4 sm:$0xff]  }
   0x9   :  { %v3443_v24 = vld [vmem:[%s5282_s1 + $0xa0] ss:$8 sps:$4 sm:$0xff]   ;;  %v3444_v25 = vld [vmem:[%s5282_s1 + $0xb4] ss:$8 sps:$4 sm:$0xff]   ;;  %v3446_v27 = vld [vmem:[%s5282_s1 + $0xb0] ss:$8 sps:$4 sm:$0xff]  }
   0xa   :  { %v47_v30 = vld [vmem:[%s5283_s0] sm:$0xff]  ;;  %v49_v31 = vld [vmem:[%s5283_s0 + $0x10] sm:$0xff]  ;;  %v52_v32 = vld [vmem:[%s5283_s0 + $0x28] sm:$0xff]  ;;  %v356_v35 = vsel %vm354_vm1, %v3020_v29, 0 }
   0xb   :  { %366 = vmatpush1.bf16.msra.mxu0 %v3419_v5  ;;  %v54_v33 = vld [vmem:[%s5283_s0 + $0x38] sm:$0xff]  ;;  %v3449_v34 = vld [vmem:[%s5284_s3 + $0x40] sm:$0xff]   ;;  %v3451_v37 = vld [vmem:[%s5284_s3 + $0x48] sm:$0xff]   ;;  %v111_v38 = vpack.c.bf16 %v49_v31, %v47_v30 }
   0xc   :  { %367 = vmatprep.subr.bf16.mxu0 %v3420_v6  ;;  %v3450_v36 = vld [vmem:[%s5284_s3] sm:$0xff]   ;;  %3122 = vmatprep.subr.bf16.mxu1 %v3449_v34  ;;  %v3452_v39 = vld [vmem:[%s5284_s3 + $0x8] sm:$0xff]   ;;  %v114_v40 = vpack.c.bf16 %v54_v33, %v52_v32  ;;  %v53_v42 = vld [vmem:[%s5283_s0 + $0x30] sm:$0xff] }
   0xd   :  { %3123 = vmatpush3.bf16.msra.mxu1 %v3450_v36  ;;  %v51_v41 = vld [vmem:[%s5283_s0 + $0x20] sm:$0xff]  ;;  %v56_v43 = vld [vmem:[%s5283_s0 + $0x48] sm:$0xff]  ;;  %v58_v44 = vld [vmem:[%s5283_s0 + $0x58] sm:$0xff] }
   0xe   :  { %3124 = vmatprep.subr.bf16.mxu1 %v3451_v37  ;;  %v113_v45 = vpack.c.bf16 %v53_v42, %v51_v41  ;;  %v116_v46 = vpack.c.bf16 %v58_v44, %v56_v43  ;;  %v55_v47 = vld [vmem:[%s5283_s0 + $0x40] sm:$0xff]  ;;  %v57_v48 = vld [vmem:[%s5283_s0 + $0x50] sm:$0xff]  ;;  %v60_v49 = vld [vmem:[%s5283_s0 + $0x68] sm:$0xff] }
   0xf   :  { %368 = vmatpush1.bf16.msra.mxu0 %v3422_v7  ;;  %v62_v50 = vld [vmem:[%s5283_s0 + $0x78] sm:$0xff]  ;;  %v115_v51 = vpack.c.bf16 %v57_v48, %v55_v47  ;;  %v59_v53 = vld [vmem:[%s5283_s0 + $0x60] sm:$0xff]  ;;  %v61_v54 = vld [vmem:[%s5283_s0 + $0x70] sm:$0xff] }
  0x10   :  { %369 = vmatprep.subr.bf16.mxu0 %v3423_v8  ;;  %v118_v52 = vpack.c.bf16 %v62_v50, %v60_v49  ;;  %v64_v55 = vld [vmem:[%s5283_s0 + $0x88] sm:$0xff]  ;;  %v66_v56 = vld [vmem:[%s5283_s0 + $0x98] sm:$0xff]  ;;  %v117_v57 = vpack.c.bf16 %v61_v54, %v59_v53  ;;  %v63_v59 = vld [vmem:[%s5283_s0 + $0x80] sm:$0xff] }
  0x11   :  { %3125 = vmatpush3.bf16.msra.mxu1 %v3452_v39  ;;  %v120_v58 = vpack.c.bf16 %v66_v56, %v64_v55  ;;  %v65_v60 = vld [vmem:[%s5283_s0 + $0x90] sm:$0xff]  ;;  %v68_v61 = vld [vmem:[%s5283_s0 + $0xa8] sm:$0xff]  ;;  %v70_v62 = vld [vmem:[%s5283_s0 + $0xb8] sm:$0xff] }
  0x12   :  { %v119_v63 = vpack.c.bf16 %v65_v60, %v63_v59  ;;  %v122_v0 = vpack.c.bf16 %v70_v62, %v68_v61  ;;  %v67_v1 = vld [vmem:[%s5283_s0 + $0xa0] sm:$0xff]  ;;  %v69_v2 = vld [vmem:[%s5283_s0 + $0xb0] sm:$0xff]  ;;  %v72_v3 = vld [vmem:[%s5283_s0 + $0xc8] sm:$0xff] }
  0x13   :  { %370 = vmatpush1.bf16.msra.mxu0 %v3425_v9  ;;  %v74_v4 = vld [vmem:[%s5283_s0 + $0xd8] sm:$0xff]  ;;  %v121_v5 = vpack.c.bf16 %v69_v2, %v67_v1  ;;  %v71_v7 = vld [vmem:[%s5283_s0 + $0xc0] sm:$0xff]  ;;  %v73_v8 = vld [vmem:[%s5283_s0 + $0xd0] sm:$0xff] }
  0x14   :  { %371 = vmatprep.subr.bf16.mxu0 %v3426_v10  ;;  %v124_v6 = vpack.c.bf16 %v74_v4, %v72_v3  ;;  %v76_v9 = vld [vmem:[%s5283_s0 + $0xe8] sm:$0xff]  ;;  %v78_v10 = vld [vmem:[%s5283_s0 + $0xf8] sm:$0xff]  ;;  %v123_v11 = vpack.c.bf16 %v73_v8, %v71_v7  ;;  %v75_v13 = vld [vmem:[%s5283_s0 + $0xe0] sm:$0xff] }
  0x15   :  { %v126_v12 = vpack.c.bf16 %v78_v10, %v76_v9  ;;  %v85_v26 = vld [vmem:[%s5283_s0 + $0x130] sm:$0xff]  ;;  %v87_v31 = vld [vmem:[%s5283_s0 + $0x140] sm:$0xff]  ;;  %v92_v33 = vld [vmem:[%s5283_s0 + $0x168] sm:$0xff] }
  0x16   :  { %v89_v32 = vld [vmem:[%s5283_s0 + $0x150] sm:$0xff]  ;;  %v94_v34 = vld [vmem:[%s5283_s0 + $0x178] sm:$0xff]  ;;  %v91_v37 = vld [vmem:[%s5283_s0 + $0x160] sm:$0xff] }
  0x17   :  { %372 = vmatpush1.bf16.msra.mxu0 %v3428_v14  ;;  %v77_v14 = vld [vmem:[%s5283_s0 + $0xf0] sm:$0xff]  ;;  %v134_v36 = vpack.c.bf16 %v94_v34, %v92_v33  ;;  %v96_v39 = vld [vmem:[%s5283_s0 + $0x188] sm:$0xff]  ;;  %v95_v47 = vld [vmem:[%s5283_s0 + $0x180] sm:$0xff] }
  0x18   :  { %373 = vmatprep.subr.bf16.mxu0 %v3429_v15  ;;  %v80_v15 = vld [vmem:[%s5283_s0 + $0x108] sm:$0xff]  ;;  %v3453_v41 = vld [vmem:[%s5284_s3 + $0x50] sm:$0xff]   ;;  %v102_v50 = vld [vmem:[%s5283_s0 + $0x1b8] sm:$0xff] }
  0x19   :  { %v3454_v43 = vld [vmem:[%s5284_s3 + $0x10] sm:$0xff]   ;;  %3126 = vmatprep.subr.bf16.mxu1 %v3453_v41  ;;  %v100_v49 = vld [vmem:[%s5283_s0 + $0x1a8] sm:$0xff]  ;;  %v3458_v53 = vld [vmem:[%s5284_s3 + $0x20] sm:$0xff]  }
  0x1a   :  { %3127 = vmatpush3.bf16.msra.mxu1 %v3454_v43  ;;  %v97_v48 = vld [vmem:[%s5283_s0 + $0x190] sm:$0xff]  ;;  %v138_v54 = vpack.c.bf16 %v102_v50, %v100_v49  ;;  %v3459_v55 = vld [vmem:[%s5284_s3 + $0x68] sm:$0xff]   ;;  %v106_v60 = vld [vmem:[%s5283_s0 + $0x1d8] sm:$0xff] }
  0x1b   :  { %374 = vmatpush1.bf16.msra.mxu0 %v3431_v16  ;;  %v82_v16 = vld [vmem:[%s5283_s0 + $0x118] sm:$0xff]  ;;  %v3460_v56 = vld [vmem:[%s5284_s3 + $0x28] sm:$0xff]   ;;  %v3461_v61 = vld [vmem:[%s5284_s3 + $0x70] sm:$0xff]  }
  0x1c   :  { %375 = vmatprep.subr.bf16.mxu0 %v3432_v17  ;;  %v125_v17 = vpack.c.bf16 %v77_v14, %v75_v13  ;;  %v104_v59 = vld [vmem:[%s5283_s0 + $0x1c8] sm:$0xff]  ;;  %v3463_v1 = vld [vmem:[%s5284_s3 + $0x78] sm:$0xff]   ;;  %v103_v3 = vld [vmem:[%s5283_s0 + $0x1c0] sm:$0xff] }
  0x1d   :  { %v3464_v2 = vld [vmem:[%s5284_s3 + $0x38] sm:$0xff]   ;;  %v105_v4 = vld [vmem:[%s5283_s0 + $0x1d0] sm:$0xff]  ;;  %v107_v9 = vld [vmem:[%s5283_s0 + $0x1e0] sm:$0xff] }
  0x1e   :  { %v139_v7 = vpack.c.bf16 %v105_v4, %v103_v3  ;;  %v109_v10 = vld [vmem:[%s5283_s0 + $0x1f0] sm:$0xff] }
  0x1f   :  { %376 = vmatpush1.bf16.msra.mxu0 %v3434_v18  ;;  %v128_v18 = vpack.c.bf16 %v82_v16, %v80_v15  ;;  %v168_v15 = vld [vmem:[%s5285_s2] sm:$0x3] }
  0x20   :  { %377 = vmatprep.subr.bf16.mxu0 %v3435_v19  ;;  %v79_v19 = vld [vmem:[%s5283_s0 + $0x100] sm:$0xff] }
  0x23   :  { %378 = vmatpush1.bf16.msra.mxu0 %v3437_v20  ;;  %v81_v20 = vld [vmem:[%s5283_s0 + $0x110] sm:$0xff] }
  0x24   :  { %379 = vmatprep.subr.bf16.mxu0 %v3438_v21  ;;  %v84_v21 = vld [vmem:[%s5283_s0 + $0x128] sm:$0xff] }
  0x27   :  { %380 = vmatpush1.bf16.msra.mxu0 %v3440_v22  ;;  %v86_v22 = vld [vmem:[%s5283_s0 + $0x138] sm:$0xff] }
  0x28   :  { %381 = vmatprep.subr.bf16.mxu0 %v3441_v23  ;;  %v127_v23 = vpack.c.bf16 %v81_v20, %v79_v19 }
  0x2b   :  { %382 = vmatpush1.bf16.msra.mxu0 %v3443_v24  ;;  %v130_v24 = vpack.c.bf16 %v86_v22, %v84_v21 }
  0x2c   :  { %383 = vmatprep.subr.bf16.mxu0 %v3444_v25  ;;  %v83_v25 = vld [vmem:[%s5283_s0 + $0x120] sm:$0xff] }
  0x2d   :  { %v129_v29 = vpack.c.bf16 %v85_v26, %v83_v25 }
  0x2f   :  { %384 = vmatpush1.bf16.msra.mxu0 %v3446_v27  ;;  %v88_v27 = vld [vmem:[%s5283_s0 + $0x148] sm:$0xff] }
  0x30   :  { %3022 = vmatprep.subr.msk.bf16.mxu0 %vm354_vm1, %v3021_v28  ;;  %v90_v28 = vld [vmem:[%s5283_s0 + $0x158] sm:$0xff] }
  0x31   :  { %v132_v30 = vpack.c.bf16 %v90_v28, %v88_v27 }
  0x33   :  { %386 = vmatpush1.bf16.msra.mxu0 %v356_v35  ;;  %v131_v35 = vpack.c.bf16 %v89_v32, %v87_v31 }
  0x36   :  { %394 = vmatmul.mubr.bf16.vlgmr.msra.gmra.mrb[0].mxu0 %v111_v38  ;;  %v93_v38 = vld [vmem:[%s5283_s0 + $0x170] sm:$0xff] }
  0x37   :  { %3024 = vmatprep.mubr.msk.bf16.mxu0 %vm305_vm0, %v114_v40  ;;  %v98_v40 = vld [vmem:[%s5283_s0 + $0x198] sm:$0xff]  ;;  %v133_v42 = vpack.c.bf16 %v93_v38, %v91_v37 }
  0x38   :  { %v136_v44 = vpack.c.bf16 %v98_v40, %v96_v39 }
  0x3e   :  { %404 = vmatmul.mubr.bf16.gmra.mrb[4].mxu0 %v113_v45  ;;  %v3455_v45 = vld [vmem:[%s5284_s3 + $0x58] sm:$0xff]  }
  0x3f   :  { %3025 = vmatprep.mubr.msk.bf16.mxu0 %vm305_vm0, %v116_v46  ;;  %v3456_v46 = vld [vmem:[%s5284_s3 + $0x18] sm:$0xff]   ;;  %3128 = vmatprep.subr.bf16.mxu1 %v3455_v45 }
  0x40   :  { %3129 = vmatpush3.bf16.msra.mxu1 %v3456_v46  ;;  %v3465_v46 = vld [vmem:[%s5286_s5] sm:$0xff]  }
  0x46   :  { %414 = vmatmul.mubr.bf16.gmra.mrb[8].mxu0 %v115_v51  ;;  %v3457_v51 = vld [vmem:[%s5284_s3 + $0x60] sm:$0xff]  }
  0x47   :  { %3026 = vmatprep.mubr.msk.bf16.mxu0 %vm305_vm0, %v118_v52  ;;  %v135_v52 = vpack.c.bf16 %v97_v48, %v95_v47  ;;  %3130 = vmatprep.subr.bf16.mxu1 %v3457_v51 }
  0x48   :  { %3131 = vmatpush3.bf16.msra.mxu1 %v3458_v53 }
  0x49   :  { %3132 = vmatprep.subr.bf16.mxu1 %v3459_v55 }
  0x4c   :  { %3133 = vmatpush3.bf16.msra.mxu1 %v3460_v56 }
  0x4d   :  { %3134 = vmatprep.subr.bf16.mxu1 %v3461_v61 }
  0x4e   :  { %424 = vmatmul.mubr.bf16.gmra.mrb[12].mxu0 %v117_v57  ;;  %v99_v57 = vld [vmem:[%s5283_s0 + $0x1a0] sm:$0xff] }
  0x4f   :  { %3027 = vmatprep.mubr.msk.bf16.mxu0 %vm305_vm0, %v120_v58  ;;  %v101_v58 = vld [vmem:[%s5283_s0 + $0x1b0] sm:$0xff] }
  0x50   :  { %v137_v62 = vpack.c.bf16 %v101_v58, %v99_v57 }
  0x56   :  { %434 = vmatmul.mubr.bf16.gmra.mrb[16].mxu0 %v119_v63  ;;  %v3462_v63 = vld [vmem:[%s5284_s3 + $0x30] sm:$0xff]  }
  0x57   :  { %3028 = vmatprep.mubr.msk.bf16.mxu0 %vm305_vm0, %v122_v0  ;;  %v140_v0 = vpack.c.bf16 %v106_v60, %v104_v59  ;;  %3135 = vmatpush3.bf16.msra.mxu1 %v3462_v63 }
  0x58   :  { %3136 = vmatprep.subr.bf16.mxu1 %v3463_v1 }
  0x5b   :  { %3137 = vmatpush3.bf16.msra.mxu1 %v3464_v2 }
  0x5c   :  { %3282 = vmatprep.subr.bf16.mxu1 %v3465_v46 }
  0x5e   :  { %444 = vmatmul.mubr.bf16.gmra.mrb[20].mxu0 %v121_v5  ;;  %v108_v5 = vld [vmem:[%s5283_s0 + $0x1e8] sm:$0xff] }
  0x5f   :  { %3029 = vmatprep.mubr.msk.bf16.mxu0 %vm305_vm0, %v124_v6  ;;  %v110_v6 = vld [vmem:[%s5283_s0 + $0x1f8] sm:$0xff] }
  0x60   :  { %v142_v8 = vpack.c.bf16 %v110_v6, %v108_v5 }
  0x66   :  { %454 = vmatmul.mubr.bf16.gmra.mrb[24].mxu0 %v123_v11  ;;  %v141_v11 = vpack.c.bf16 %v109_v10, %v107_v9 }
  0x67   :  { %3030 = vmatprep.mubr.msk.bf16.mxu0 %vm305_vm0, %v126_v12  ;;  %v170_v12 = vlaneseq }
  0x69   :  { %v171_v13 = vshrl.u32 %v170_v12, 7 }
  0x6b   :  { %v4216_v14 = vsub.s32 0, %v171_v13  ;;  %v4221_v16 = vsub.s32 1, %v171_v13 }
  0x6e   :  { %464 = vmatmul.mubr.bf16.gmra.mrb[28].mxu0 %v125_v17  ;;  %v4224_v17 = vrot.slane %v168_v15, %v4216_v14 }
  0x6f   :  { %3031 = vmatprep.mubr.msk.bf16.mxu0 %vm305_vm0, %v128_v18  ;;  %v4227_v18 = vrot.slane %v168_v15, %v4221_v16 }
  0x76   :  { %474 = vmatmul.mubr.bf16.gmra.mrb[32].mxu0 %v127_v23 }
  0x77   :  { %3032 = vmatprep.mubr.msk.bf16.mxu0 %vm305_vm0, %v130_v24 }
  0x7e   :  { %484 = vmatmul.mubr.bf16.gmra.mrb[36].mxu0 %v129_v29 }
  0x7f   :  { %3033 = vmatprep.mubr.msk.bf16.mxu0 %vm305_vm0, %v132_v30 }
  0x86   :  { %494 = vmatmul.mubr.bf16.gmra.mrb[40].mxu0 %v131_v35 }
  0x87   :  { %3034 = vmatprep.mubr.msk.bf16.mxu0 %vm305_vm0, %v134_v36 }
  0x8e   :  { %504 = vmatmul.mubr.bf16.gmra.mrb[44].mxu0 %v133_v42 }
  0x8f   :  { %3035 = vmatprep.mubr.msk.bf16.mxu0 %vm305_vm0, %v136_v44 }
  0x96   :  { %514 = vmatmul.mubr.bf16.gmra.mrb[48].mxu0 %v135_v52 }
  0x97   :  { %3036 = vmatprep.mubr.msk.bf16.mxu0 %vm305_vm0, %v138_v54 }
  0x9e   :  { %524 = vmatmul.mubr.bf16.gmra.mrb[52].mxu0 %v137_v62 }
  0x9f   :  { %3037 = vmatprep.mubr.msk.bf16.mxu0 %vm305_vm0, %v140_v0 }
  0xa6   :  { %534 = vmatmul.mubr.bf16.gmra.mrb[56].mxu0 %v139_v7 }
  0xa7   :  { %3038 = vmatprep.mubr.msk.bf16.mxu0 %vm305_vm0, %v142_v8 }
  0xae   :  { %544 = vmatmul.mubr.bf16.gmra.mrb[60].mxu0 %v141_v11 }
 0x109   :  { %v395_v19 = vpop.f32.mrb[0].mxu0 }
 0x10a   :  { %v396_v20 = vadd.f32 %v395_v19, %v4224_v17  ;;  %v397_v21 = vpop.f32.mrb[1].mxu0 }
 0x10b   :  { %v398_v22 = vadd.f32 %v397_v21, %v4227_v18  ;;  %v399_v23 = vpop.f32.mrb[2].mxu0 }
 0x10c   :  { %v618_v24 = vmul.f32 0.70710677, %v396_v20  ;;  %v400_v25 = vadd.f32 %v399_v23, %v4224_v17  ;;  %v401_v26 = vpop.f32.mrb[3].mxu0  ;;  %v554_v42 = vmul.f32 0.5, %v396_v20 }
 0x10d   :  { %v619_v27 = vmul.f32 0.70710677, %v398_v22  ;;  %v402_v28 = vadd.f32 %v401_v26, %v4227_v18  ;;  %v555_v58 = vmul.f32 0.5, %v398_v22  ;;  %v3466_v22 = vld [vmem:[%s5286_s5 + $0x8] sm:$0xff]  }
 0x10e   :  { %3553 = verf.f32 %v618_v24  ;;  %v620_v29 = vmul.f32 0.70710677, %v400_v25  ;;  %v556_v45 = vmul.f32 0.5, %v400_v25 }
 0x10f   :  { %3555 = verf.f32 %v619_v27  ;;  %v621_v30 = vmul.f32 0.70710677, %v402_v28  ;;  %v557_v0 = vmul.f32 0.5, %v402_v28 }
 0x110   :  { %3557 = verf.f32 %v620_v29 }
 0x111   :  { %3559 = verf.f32 %v621_v30  ;;  %v405_v31 = vpop.f32.mrb[4].mxu0 }
 0x112   :  { %v406_v32 = vadd.f32 %v405_v31, %v4224_v17  ;;  %v407_v33 = vpop.f32.mrb[5].mxu0 }
 0x113   :  { %v4235_v34 = vadd.f32 %v407_v33, %v4227_v18  ;;  %v409_v35 = vpop.f32.mrb[6].mxu0 }
 0x114   :  { %v622_v36 = vmul.f32 0.70710677, %v406_v32  ;;  %v410_v37 = vadd.f32 %v409_v35, %v4224_v17  ;;  %v411_v38 = vpop.f32.mrb[7].mxu0  ;;  %v558_v24 = vmul.f32 0.5, %v406_v32 }
 0x115   :  { %v623_v39 = vmul.f32 0.70710677, %v4235_v34  ;;  %v412_v40 = vadd.f32 %v411_v38, %v4227_v18  ;;  %v559_v29 = vmul.f32 0.5, %v4235_v34  ;;  %v3467_v34 = vld [vmem:[%s5286_s5 + $0x10] sm:$0xff]  }
 0x116   :  { %3561 = verf.f32 %v622_v36  ;;  %v624_v41 = vmul.f32 0.70710677, %v410_v37  ;;  %v560_v25 = vmul.f32 0.5, %v410_v37 }
 0x117   :  { %3563 = verf.f32 %v623_v39  ;;  %v625_v43 = vmul.f32 0.70710677, %v412_v40  ;;  %v561_v30 = vmul.f32 0.5, %v412_v40 }
 0x118   :  { %v3554_v44 = vpop.eup %3553  ;;  %3565 = verf.f32 %v624_v41 }
 0x119   :  { %v3556_v47 = vpop.eup %3555  ;;  %v746_v48 = vadd.f32 1.0, %v3554_v44  ;;  %3567 = verf.f32 %v625_v43  ;;  %v415_v49 = vpop.f32.mrb[8].mxu0 }
 0x11a   :  { %v3558_v50 = vpop.eup %3557  ;;  %v4244_v51 = vadd.f32 %v415_v49, %v4224_v17  ;;  %v417_v52 = vpop.f32.mrb[9].mxu0  ;;  %v747_v53 = vadd.f32 1.0, %v3556_v47 }
 0x11b   :  { %v3560_v54 = vpop.eup %3559  ;;  %v748_v55 = vadd.f32 1.0, %v3558_v50  ;;  %v4247_v56 = vadd.f32 %v417_v52, %v4227_v18  ;;  %v419_v57 = vpop.f32.mrb[10].mxu0  ;;  %v810_v3 = vmul.f32 %v746_v48, %v554_v42 }
 0x11c   :  { %v626_v59 = vmul.f32 0.70710677, %v4244_v51  ;;  %v4251_v60 = vadd.f32 %v419_v57, %v4224_v17  ;;  %v421_v61 = vpop.f32.mrb[11].mxu0  ;;  %v749_v62 = vadd.f32 1.0, %v3560_v54  ;;  %v811_v6 = vmul.f32 %v747_v53, %v555_v58 }
 0x11d   :  { %v812_v63 = vmul.f32 %v748_v55, %v556_v45  ;;  %v627_v1 = vmul.f32 0.70710677, %v4247_v56  ;;  %v4255_v2 = vadd.f32 %v421_v61, %v4227_v18  ;;  %v3468_v55 = vld [vmem:[%s5286_s5 + $0x18] sm:$0xff]   ;;  %v562_v58 = vmul.f32 0.5, %v4244_v51 }
 0x11e   :  { %3569 = verf.f32 %v626_v59  ;;  %v628_v4 = vmul.f32 0.70710677, %v4251_v60  ;;  %v813_v7 = vmul.f32 %v749_v62, %v557_v0  ;;  %v564_v59 = vmul.f32 0.5, %v4251_v60 }
 0x11f   :  { %3571 = verf.f32 %v627_v1  ;;  %v629_v5 = vmul.f32 0.70710677, %v4255_v2  ;;  %v874_v9 = vpack.c.bf16 %v812_v63, %v810_v3  ;;  %v563_v0 = vmul.f32 0.5, %v4247_v56 }
 0x120   :  { %v3562_v8 = vpop.eup %3561  ;;  %3573 = verf.f32 %v628_v4  ;;  %v875_v13 = vpack.c.bf16 %v813_v7, %v811_v6  ;;  %v565_v1 = vmul.f32 0.5, %v4255_v2  ;;  %v3469_v2 = vld [vmem:[%s5286_s5 + $0x20] sm:$0xff]  }
 0x121   :  { %v3564_v10 = vpop.eup %3563  ;;  %v750_v11 = vadd.f32 1.0, %v3562_v8  ;;  %3575 = verf.f32 %v629_v5  ;;  %v425_v12 = vpop.f32.mrb[12].mxu0 }
 0x122   :  { %v3566_v15 = vpop.eup %3565  ;;  %v751_v19 = vadd.f32 1.0, %v3564_v10  ;;  %v4260_v20 = vadd.f32 %v425_v12, %v4224_v17  ;;  %v427_v21 = vpop.f32.mrb[13].mxu0  ;;  %1073 = vmatprep.mubr.bf16.mxu1 %v875_v13 }
 0x123   :  { %v3568_v23 = vpop.eup %3567  ;;  %v752_v26 = vadd.f32 1.0, %v3566_v15  ;;  %v4266_v27 = vadd.f32 %v427_v21, %v4227_v18  ;;  %v429_v28 = vpop.f32.mrb[14].mxu0  ;;  %1074 = vmatmul.mubr.bf16.vlgmr.msra.gmra.mrb[0].mxu1 %v874_v9  ;;  %v814_v36 = vmul.f32 %v750_v11, %v558_v24 }
 0x124   :  { %v753_v31 = vadd.f32 1.0, %v3568_v23  ;;  %v630_v33 = vmul.f32 0.70710677, %v4260_v20  ;;  %v431_v35 = vpop.f32.mrb[15].mxu0  ;;  %v4272_v32 = vadd.f32 %v429_v28, %v4224_v17  ;;  %3283 = vmatpush3.bf16.msra.mxu1 %v3465_v46  ;;  %v815_v37 = vmul.f32 %v751_v19, %v559_v29 }
 0x125   :  { %v816_v38 = vmul.f32 %v752_v26, %v560_v25  ;;  %v631_v39 = vmul.f32 0.70710677, %v4266_v27  ;;  %v4275_v42 = vadd.f32 %v431_v35, %v4227_v18  ;;  %3284 = vmatprep.subr.bf16.mxu1 %v3466_v22  ;;  %v3470_v25 = vld [vmem:[%s5286_s5 + $0x28] sm:$0xff]   ;;  %v566_v28 = vmul.f32 0.5, %v4260_v20 }
 0x126   :  { %v817_v41 = vmul.f32 %v753_v31, %v561_v30  ;;  %3577 = verf.f32 %v630_v33  ;;  %v632_v40 = vmul.f32 0.70710677, %v4272_v32  ;;  %v567_v35 = vmul.f32 0.5, %v4266_v27 }
 0x127   :  { %3579 = verf.f32 %v631_v39  ;;  %v876_v43 = vpack.c.bf16 %v816_v38, %v814_v36  ;;  %v633_v45 = vmul.f32 0.70710677, %v4275_v42  ;;  %v568_v36 = vmul.f32 0.5, %v4272_v32 }
 0x128   :  { %v3570_v44 = vpop.eup %3569  ;;  %v877_v47 = vpack.c.bf16 %v817_v41, %v815_v37  ;;  %3581 = verf.f32 %v632_v40  ;;  %3285 = vmatpush3.bf16.msra.mxu1 %v3466_v22  ;;  %v569_v41 = vmul.f32 0.5, %v4275_v42 }
 0x129   :  { %v3572_v46 = vpop.eup %3571  ;;  %v754_v48 = vadd.f32 1.0, %v3570_v44  ;;  %v435_v49 = vpop.f32.mrb[16].mxu0  ;;  %3583 = verf.f32 %v633_v45  ;;  %3286 = vmatprep.subr.bf16.mxu1 %v3467_v34 }
 0x12a   :  { %v3574_v50 = vpop.eup %3573  ;;  %v755_v52 = vadd.f32 1.0, %v3572_v46  ;;  %v4283_v53 = vadd.f32 %v435_v49, %v4224_v17  ;;  %v437_v54 = vpop.f32.mrb[17].mxu0  ;;  %1081 = vmatprep.mubr.bf16.mxu1 %v877_v47 }
 0x12b   :  { %v3576_v57 = vpop.eup %3575  ;;  %v756_v61 = vadd.f32 1.0, %v3574_v50  ;;  %v4291_v62 = vadd.f32 %v437_v54, %v4227_v18  ;;  %v439_v63 = vpop.f32.mrb[18].mxu0  ;;  %1082 = vmatmul.mubr.bf16.gmra.mrb[4].mxu1 %v876_v43  ;;  %v818_v6 = vmul.f32 %v754_v48, %v562_v58 }
 0x12c   :  { %v757_v3 = vadd.f32 1.0, %v3576_v57  ;;  %v634_v4 = vmul.f32 0.70710677, %v4283_v53  ;;  %v441_v5 = vpop.f32.mrb[19].mxu0  ;;  %v4298_v60 = vadd.f32 %v439_v63, %v4224_v17  ;;  %3287 = vmatpush3.bf16.msra.mxu1 %v3467_v34  ;;  %v819_v8 = vmul.f32 %v755_v52, %v563_v0 }
 0x12d   :  { %v820_v7 = vmul.f32 %v756_v61, %v564_v59  ;;  %v635_v51 = vmul.f32 0.70710677, %v4291_v62  ;;  %v4301_v56 = vadd.f32 %v441_v5, %v4227_v18  ;;  %3288 = vmatprep.subr.bf16.mxu1 %v3468_v55  ;;  %v570_v59 = vmul.f32 0.5, %v4283_v53 }
 0x12e   :  { %v821_v9 = vmul.f32 %v757_v3, %v565_v1  ;;  %3585 = verf.f32 %v634_v4  ;;  %v636_v10 = vmul.f32 0.70710677, %v4298_v60  ;;  %v571_v3 = vmul.f32 0.5, %v4291_v62 }
 0x12f   :  { %3587 = verf.f32 %v635_v51  ;;  %v878_v11 = vpack.c.bf16 %v820_v7, %v818_v6  ;;  %v637_v13 = vmul.f32 0.70710677, %v4301_v56  ;;  %v572_v4 = vmul.f32 0.5, %v4298_v60 }
 0x130   :  { %v3578_v12 = vpop.eup %3577  ;;  %v879_v15 = vpack.c.bf16 %v821_v9, %v819_v8  ;;  %3589 = verf.f32 %v636_v10  ;;  %3289 = vmatpush3.bf16.msra.mxu1 %v3468_v55  ;;  %v573_v51 = vmul.f32 0.5, %v4301_v56 }
 0x131   :  { %v3580_v19 = vpop.eup %3579  ;;  %v445_v21 = vpop.f32.mrb[20].mxu0  ;;  %v758_v22 = vadd.f32 1.0, %v3578_v12  ;;  %3591 = verf.f32 %v637_v13  ;;  %3290 = vmatprep.subr.bf16.mxu1 %v3469_v2 }
 0x132   :  { %v4309_v23 = vadd.f32 %v445_v21, %v4224_v17  ;;  %v447_v24 = vpop.f32.mrb[21].mxu0  ;;  %1089 = vmatprep.mubr.bf16.mxu1 %v879_v15  ;;  %v3582_v26 = vpop.eup %3581  ;;  %v759_v29 = vadd.f32 1.0, %v3580_v19 }
 0x133   :  { %v4316_v30 = vadd.f32 %v447_v24, %v4227_v18  ;;  %v449_v31 = vpop.f32.mrb[22].mxu0  ;;  %v3584_v33 = vpop.eup %3583  ;;  %v760_v38 = vadd.f32 1.0, %v3582_v26  ;;  %1090 = vmatmul.mubr.bf16.gmra.mrb[8].mxu1 %v878_v11  ;;  %v822_v43 = vmul.f32 %v758_v22, %v566_v28 }
 0x134   :  { %v638_v39 = vmul.f32 0.70710677, %v4309_v23  ;;  %v451_v37 = vpop.f32.mrb[23].mxu0  ;;  %v761_v34 = vadd.f32 1.0, %v3584_v33  ;;  %v4324_v40 = vadd.f32 %v449_v31, %v4224_v17  ;;  %3291 = vmatpush3.bf16.msra.mxu1 %v3469_v2  ;;  %v823_v32 = vmul.f32 %v759_v29, %v567_v35 }
 0x135   :  { %v639_v20 = vmul.f32 0.70710677, %v4316_v30  ;;  %v824_v44 = vmul.f32 %v760_v38, %v568_v36  ;;  %v4327_v27 = vadd.f32 %v451_v37, %v4227_v18  ;;  %3292 = vmatprep.subr.bf16.mxu1 %v3470_v25  ;;  %v574_v29 = vmul.f32 0.5, %v4309_v23 }
 0x136   :  { %3593 = verf.f32 %v638_v39  ;;  %v825_v45 = vmul.f32 %v761_v34, %v569_v41  ;;  %v640_v47 = vmul.f32 0.70710677, %v4324_v40  ;;  %v575_v38 = vmul.f32 0.5, %v4316_v30 }
 0x137   :  { %3595 = verf.f32 %v639_v20  ;;  %v641_v46 = vmul.f32 0.70710677, %v4327_v27  ;;  %v880_v48 = vpack.c.bf16 %v824_v44, %v822_v43  ;;  %v576_v39 = vmul.f32 0.5, %v4324_v40 }
 0x138   :  { %v3586_v42 = vpop.eup %3585  ;;  %3597 = verf.f32 %v640_v47  ;;  %v881_v52 = vpack.c.bf16 %v825_v45, %v823_v32  ;;  %3293 = vmatpush3.bf16.msra.mxu1 %v3470_v25  ;;  %v577_v20 = vmul.f32 0.5, %v4327_v27 }
 0x139   :  { %v3588_v49 = vpop.eup %3587  ;;  %v455_v50 = vpop.f32.mrb[24].mxu0  ;;  %v762_v54 = vadd.f32 1.0, %v3586_v42  ;;  %3599 = verf.f32 %v641_v46 }
 0x13a   :  { %v4332_v55 = vadd.f32 %v455_v50, %v4224_v17  ;;  %v457_v57 = vpop.f32.mrb[25].mxu0  ;;  %v3590_v58 = vpop.eup %3589  ;;  %v763_v61 = vadd.f32 1.0, %v3588_v49  ;;  %1097 = vmatprep.mubr.bf16.mxu1 %v881_v52 }
 0x13b   :  { %v4336_v63 = vadd.f32 %v457_v57, %v4227_v18  ;;  %v459_v0 = vpop.f32.mrb[26].mxu0  ;;  %v3592_v1 = vpop.eup %3591  ;;  %v764_v5 = vadd.f32 1.0, %v3590_v58  ;;  %1098 = vmatmul.mubr.bf16.gmra.mrb[12].mxu1 %v880_v48  ;;  %v826_v2 = vmul.f32 %v762_v54, %v570_v59 }
 0x13c   :  { %v642_v6 = vmul.f32 0.70710677, %v4332_v55  ;;  %v461_v7 = vpop.f32.mrb[27].mxu0  ;;  %v765_v8 = vadd.f32 1.0, %v3592_v1  ;;  %v4344_v9 = vadd.f32 %v459_v0, %v4224_v17  ;;  %v827_v60 = vmul.f32 %v763_v61, %v571_v3 }
 0x13d   :  { %v643_v53 = vmul.f32 0.70710677, %v4336_v63  ;;  %v828_v10 = vmul.f32 %v764_v5, %v572_v4  ;;  %v4347_v62 = vadd.f32 %v461_v7, %v4227_v18  ;;  %v578_v61 = vmul.f32 0.5, %v4332_v55 }
 0x13e   :  { %3601 = verf.f32 %v642_v6  ;;  %v829_v11 = vmul.f32 %v765_v8, %v573_v51  ;;  %v644_v12 = vmul.f32 0.70710677, %v4344_v9  ;;  %v579_v5 = vmul.f32 0.5, %v4336_v63 }
 0x13f   :  { %3603 = verf.f32 %v643_v53  ;;  %v645_v56 = vmul.f32 0.70710677, %v4347_v62  ;;  %v882_v15 = vpack.c.bf16 %v828_v10, %v826_v2  ;;  %v580_v6 = vmul.f32 0.5, %v4344_v9 }
 0x140   :  { %v3594_v13 = vpop.eup %3593  ;;  %3605 = verf.f32 %v644_v12  ;;  %v883_v22 = vpack.c.bf16 %v829_v11, %v827_v60  ;;  %v581_v53 = vmul.f32 0.5, %v4347_v62 }
 0x141   :  { %v3596_v19 = vpop.eup %3595  ;;  %v465_v21 = vpop.f32.mrb[28].mxu0  ;;  %v766_v24 = vadd.f32 1.0, %v3594_v13  ;;  %3607 = verf.f32 %v645_v56 }
 0x142   :  { %v4352_v25 = vadd.f32 %v465_v21, %v4224_v17  ;;  %v467_v26 = vpop.f32.mrb[29].mxu0  ;;  %v3598_v28 = vpop.eup %3597  ;;  %v767_v31 = vadd.f32 1.0, %v3596_v19  ;;  %1105 = vmatprep.mubr.bf16.mxu1 %v883_v22 }
 0x143   :  { %v4356_v33 = vadd.f32 %v467_v26, %v4227_v18  ;;  %v469_v35 = vpop.f32.mrb[30].mxu0  ;;  %v3600_v36 = vpop.eup %3599  ;;  %v768_v37 = vadd.f32 1.0, %v3598_v28  ;;  %1106 = vmatmul.mubr.bf16.gmra.mrb[16].mxu1 %v882_v15  ;;  %v830_v32 = vmul.f32 %v766_v24, %v574_v29 }
 0x144   :  { %v646_v41 = vmul.f32 0.70710677, %v4352_v25  ;;  %v471_v34 = vpop.f32.mrb[31].mxu0  ;;  %v769_v43 = vadd.f32 1.0, %v3600_v36  ;;  %v4364_v44 = vadd.f32 %v469_v35, %v4224_v17  ;;  %v831_v40 = vmul.f32 %v767_v31, %v575_v38 }
 0x145   :  { %v647_v23 = vmul.f32 0.70710677, %v4356_v33  ;;  %v832_v45 = vmul.f32 %v768_v37, %v576_v39  ;;  %v4367_v30 = vadd.f32 %v471_v34, %v4227_v18  ;;  %v582_v31 = vmul.f32 0.5, %v4352_v25 }
 0x146   :  { %3609 = verf.f32 %v646_v41  ;;  %v833_v47 = vmul.f32 %v769_v43, %v577_v20  ;;  %v648_v42 = vmul.f32 0.70710677, %v4364_v44  ;;  %v583_v37 = vmul.f32 0.5, %v4356_v33 }
 0x147   :  { %3611 = verf.f32 %v647_v23  ;;  %v649_v27 = vmul.f32 0.70710677, %v4367_v30  ;;  %v884_v48 = vpack.c.bf16 %v832_v45, %v830_v32  ;;  %v584_v41 = vmul.f32 0.5, %v4364_v44 }
 0x148   :  { %v3602_v46 = vpop.eup %3601  ;;  %3613 = verf.f32 %v648_v42  ;;  %v885_v52 = vpack.c.bf16 %v833_v47, %v831_v40  ;;  %v585_v23 = vmul.f32 0.5, %v4367_v30 }
 0x149   :  { %v3604_v49 = vpop.eup %3603  ;;  %v475_v50 = vpop.f32.mrb[32].mxu0  ;;  %v770_v54 = vadd.f32 1.0, %v3602_v46  ;;  %3615 = verf.f32 %v649_v27 }
 0x14a   :  { %v4372_v57 = vadd.f32 %v475_v50, %v4224_v17  ;;  %v477_v58 = vpop.f32.mrb[33].mxu0  ;;  %v3606_v59 = vpop.eup %3605  ;;  %v771_v0 = vadd.f32 1.0, %v3604_v49  ;;  %1113 = vmatprep.mubr.bf16.mxu1 %v885_v52 }
 0x14b   :  { %v4376_v1 = vadd.f32 %v477_v58, %v4227_v18  ;;  %v479_v3 = vpop.f32.mrb[34].mxu0  ;;  %v3608_v4 = vpop.eup %3607  ;;  %v772_v7 = vadd.f32 1.0, %v3606_v59  ;;  %1114 = vmatmul.mubr.bf16.gmra.mrb[20].mxu1 %v884_v48  ;;  %v834_v60 = vmul.f32 %v770_v54, %v578_v61 }
 0x14c   :  { %v650_v51 = vmul.f32 0.70710677, %v4372_v57  ;;  %v481_v8 = vpop.f32.mrb[35].mxu0  ;;  %v773_v2 = vadd.f32 1.0, %v3608_v4  ;;  %v4384_v10 = vadd.f32 %v479_v3, %v4224_v17  ;;  %v835_v9 = vmul.f32 %v771_v0, %v579_v5 }
 0x14d   :  { %v651_v55 = vmul.f32 0.70710677, %v4376_v1  ;;  %v836_v11 = vmul.f32 %v772_v7, %v580_v6  ;;  %v4387_v63 = vadd.f32 %v481_v8, %v4227_v18  ;;  %v586_v0 = vmul.f32 0.5, %v4372_v57 }
 0x14e   :  { %3617 = verf.f32 %v650_v51  ;;  %v837_v12 = vmul.f32 %v773_v2, %v581_v53  ;;  %v652_v13 = vmul.f32 0.70710677, %v4384_v10  ;;  %v587_v7 = vmul.f32 0.5, %v4376_v1 }
 0x14f   :  { %3619 = verf.f32 %v651_v55  ;;  %v653_v62 = vmul.f32 0.70710677, %v4387_v63  ;;  %v886_v15 = vpack.c.bf16 %v836_v11, %v834_v60  ;;  %v588_v51 = vmul.f32 0.5, %v4384_v10 }
 0x150   :  { %v3610_v56 = vpop.eup %3609  ;;  %3621 = verf.f32 %v652_v13  ;;  %v887_v22 = vpack.c.bf16 %v837_v12, %v835_v9  ;;  %v589_v55 = vmul.f32 0.5, %v4387_v63 }
 0x151   :  { %v3612_v19 = vpop.eup %3611  ;;  %v485_v21 = vpop.f32.mrb[36].mxu0  ;;  %v774_v24 = vadd.f32 1.0, %v3610_v56  ;;  %3623 = verf.f32 %v653_v62 }
 0x152   :  { %v4392_v26 = vadd.f32 %v485_v21, %v4224_v17  ;;  %v487_v28 = vpop.f32.mrb[37].mxu0  ;;  %v3614_v29 = vpop.eup %3613  ;;  %v775_v35 = vadd.f32 1.0, %v3612_v19  ;;  %1121 = vmatprep.mubr.bf16.mxu1 %v887_v22 }
 0x153   :  { %v4396_v36 = vadd.f32 %v487_v28, %v4227_v18  ;;  %v489_v38 = vpop.f32.mrb[38].mxu0  ;;  %v3616_v39 = vpop.eup %3615  ;;  %v776_v34 = vadd.f32 1.0, %v3614_v29  ;;  %1122 = vmatmul.mubr.bf16.gmra.mrb[24].mxu1 %v886_v15  ;;  %v838_v40 = vmul.f32 %v774_v24, %v582_v31 }
 0x154   :  { %v654_v20 = vmul.f32 0.70710677, %v4392_v26  ;;  %v491_v43 = vpop.f32.mrb[39].mxu0  ;;  %v777_v32 = vadd.f32 1.0, %v3616_v39  ;;  %v4404_v45 = vadd.f32 %v489_v38, %v4224_v17  ;;  %v839_v44 = vmul.f32 %v775_v35, %v583_v37 }
 0x155   :  { %v655_v25 = vmul.f32 0.70710677, %v4396_v36  ;;  %v840_v47 = vmul.f32 %v776_v34, %v584_v41  ;;  %v4407_v33 = vadd.f32 %v491_v43, %v4227_v18  ;;  %v590_v35 = vmul.f32 0.5, %v4392_v26 }
 0x156   :  { %3625 = verf.f32 %v654_v20  ;;  %v841_v42 = vmul.f32 %v777_v32, %v585_v23  ;;  %v656_v46 = vmul.f32 0.70710677, %v4404_v45  ;;  %v591_v34 = vmul.f32 0.5, %v4396_v36 }
 0x157   :  { %3627 = verf.f32 %v655_v25  ;;  %v657_v30 = vmul.f32 0.70710677, %v4407_v33  ;;  %v888_v48 = vpack.c.bf16 %v840_v47, %v838_v40  ;;  %v592_v20 = vmul.f32 0.5, %v4404_v45 }
 0x158   :  { %v3618_v27 = vpop.eup %3617  ;;  %3629 = verf.f32 %v656_v46  ;;  %v889_v52 = vpack.c.bf16 %v841_v42, %v839_v44  ;;  %v593_v25 = vmul.f32 0.5, %v4407_v33 }
 0x159   :  { %v3620_v49 = vpop.eup %3619  ;;  %v495_v50 = vpop.f32.mrb[40].mxu0  ;;  %v778_v54 = vadd.f32 1.0, %v3618_v27  ;;  %3631 = verf.f32 %v657_v30 }
 0x15a   :  { %v4412_v58 = vadd.f32 %v495_v50, %v4224_v17  ;;  %v497_v59 = vpop.f32.mrb[41].mxu0  ;;  %v3622_v61 = vpop.eup %3621  ;;  %v779_v3 = vadd.f32 1.0, %v3620_v49  ;;  %1129 = vmatprep.mubr.bf16.mxu1 %v889_v52 }
 0x15b   :  { %v4416_v4 = vadd.f32 %v497_v59, %v4227_v18  ;;  %v499_v5 = vpop.f32.mrb[42].mxu0  ;;  %v3624_v6 = vpop.eup %3623  ;;  %v780_v8 = vadd.f32 1.0, %v3622_v61  ;;  %1130 = vmatmul.mubr.bf16.gmra.mrb[28].mxu1 %v888_v48  ;;  %v842_v9 = vmul.f32 %v778_v54, %v586_v0 }
 0x15c   :  { %v658_v53 = vmul.f32 0.70710677, %v4412_v58  ;;  %v501_v2 = vpop.f32.mrb[43].mxu0  ;;  %v781_v60 = vadd.f32 1.0, %v3624_v6  ;;  %v4424_v11 = vadd.f32 %v499_v5, %v4224_v17  ;;  %v843_v10 = vmul.f32 %v779_v3, %v587_v7 }
 0x15d   :  { %v659_v57 = vmul.f32 0.70710677, %v4416_v4  ;;  %v844_v12 = vmul.f32 %v780_v8, %v588_v51  ;;  %v4427_v1 = vadd.f32 %v501_v2, %v4227_v18  ;;  %v594_v3 = vmul.f32 0.5, %v4412_v58 }
 0x15e   :  { %3633 = verf.f32 %v658_v53  ;;  %v845_v13 = vmul.f32 %v781_v60, %v589_v55  ;;  %v660_v56 = vmul.f32 0.70710677, %v4424_v11  ;;  %v595_v8 = vmul.f32 0.5, %v4416_v4 }
 0x15f   :  { %3635 = verf.f32 %v659_v57  ;;  %v661_v63 = vmul.f32 0.70710677, %v4427_v1  ;;  %v890_v15 = vpack.c.bf16 %v844_v12, %v842_v9  ;;  %v596_v53 = vmul.f32 0.5, %v4424_v11 }
 0x160   :  { %v3626_v62 = vpop.eup %3625  ;;  %3637 = verf.f32 %v660_v56  ;;  %v891_v22 = vpack.c.bf16 %v845_v13, %v843_v10  ;;  %v597_v57 = vmul.f32 0.5, %v4427_v1 }
 0x161   :  { %v3628_v19 = vpop.eup %3627  ;;  %v505_v21 = vpop.f32.mrb[44].mxu0  ;;  %v782_v24 = vadd.f32 1.0, %v3626_v62  ;;  %3639 = verf.f32 %v661_v63 }
 0x162   :  { %v4432_v28 = vadd.f32 %v505_v21, %v4224_v17  ;;  %v507_v29 = vpop.f32.mrb[45].mxu0  ;;  %v3630_v31 = vpop.eup %3629  ;;  %v783_v38 = vadd.f32 1.0, %v3628_v19  ;;  %1137 = vmatprep.mubr.bf16.mxu1 %v891_v22 }
 0x163   :  { %v4436_v39 = vadd.f32 %v507_v29, %v4227_v18  ;;  %v509_v37 = vpop.f32.mrb[46].mxu0  ;;  %v3632_v41 = vpop.eup %3631  ;;  %v784_v43 = vadd.f32 1.0, %v3630_v31  ;;  %1138 = vmatmul.mubr.bf16.gmra.mrb[32].mxu1 %v890_v15  ;;  %v846_v44 = vmul.f32 %v782_v24, %v590_v35 }
 0x164   :  { %v662_v23 = vmul.f32 0.70710677, %v4432_v28  ;;  %v511_v32 = vpop.f32.mrb[47].mxu0  ;;  %v785_v40 = vadd.f32 1.0, %v3632_v41  ;;  %v4444_v47 = vadd.f32 %v509_v37, %v4224_v17  ;;  %v847_v45 = vmul.f32 %v783_v38, %v591_v34 }
 0x165   :  { %v663_v26 = vmul.f32 0.70710677, %v4436_v39  ;;  %v848_v42 = vmul.f32 %v784_v43, %v592_v20  ;;  %v4447_v36 = vadd.f32 %v511_v32, %v4227_v18  ;;  %v598_v38 = vmul.f32 0.5, %v4432_v28 }
 0x166   :  { %3641 = verf.f32 %v662_v23  ;;  %v849_v46 = vmul.f32 %v785_v40, %v593_v25  ;;  %v664_v27 = vmul.f32 0.70710677, %v4444_v47  ;;  %v599_v43 = vmul.f32 0.5, %v4436_v39 }
 0x167   :  { %3643 = verf.f32 %v663_v26  ;;  %v665_v33 = vmul.f32 0.70710677, %v4447_v36  ;;  %v892_v48 = vpack.c.bf16 %v848_v42, %v846_v44  ;;  %v600_v23 = vmul.f32 0.5, %v4444_v47 }
 0x168   :  { %v3634_v30 = vpop.eup %3633  ;;  %3645 = verf.f32 %v664_v27  ;;  %v893_v52 = vpack.c.bf16 %v849_v46, %v847_v45  ;;  %v601_v26 = vmul.f32 0.5, %v4447_v36 }
 0x169   :  { %v3636_v49 = vpop.eup %3635  ;;  %v515_v50 = vpop.f32.mrb[48].mxu0  ;;  %v786_v54 = vadd.f32 1.0, %v3634_v30  ;;  %3647 = verf.f32 %v665_v33 }
 0x16a   :  { %v4452_v59 = vadd.f32 %v515_v50, %v4224_v17  ;;  %v517_v61 = vpop.f32.mrb[49].mxu0  ;;  %v3638_v0 = vpop.eup %3637  ;;  %v787_v5 = vadd.f32 1.0, %v3636_v49  ;;  %1145 = vmatprep.mubr.bf16.mxu1 %v893_v52 }
 0x16b   :  { %v4456_v6 = vadd.f32 %v517_v61, %v4227_v18  ;;  %v519_v7 = vpop.f32.mrb[50].mxu0  ;;  %v3640_v51 = vpop.eup %3639  ;;  %v788_v2 = vadd.f32 1.0, %v3638_v0  ;;  %1146 = vmatmul.mubr.bf16.gmra.mrb[36].mxu1 %v892_v48  ;;  %v850_v10 = vmul.f32 %v786_v54, %v594_v3 }
 0x16c   :  { %v666_v55 = vmul.f32 0.70710677, %v4452_v59  ;;  %v521_v60 = vpop.f32.mrb[51].mxu0  ;;  %v789_v9 = vadd.f32 1.0, %v3640_v51  ;;  %v4464_v12 = vadd.f32 %v519_v7, %v4224_v17  ;;  %v851_v11 = vmul.f32 %v787_v5, %v595_v8 }
 0x16d   :  { %v667_v58 = vmul.f32 0.70710677, %v4456_v6  ;;  %v852_v13 = vmul.f32 %v788_v2, %v596_v53  ;;  %v4467_v4 = vadd.f32 %v521_v60, %v4227_v18  ;;  %v602_v5 = vmul.f32 0.5, %v4452_v59 }
 0x16e   :  { %3649 = verf.f32 %v666_v55  ;;  %v853_v56 = vmul.f32 %v789_v9, %v597_v57  ;;  %v668_v62 = vmul.f32 0.70710677, %v4464_v12  ;;  %v603_v2 = vmul.f32 0.5, %v4456_v6 }
 0x16f   :  { %3651 = verf.f32 %v667_v58  ;;  %v669_v1 = vmul.f32 0.70710677, %v4467_v4  ;;  %v894_v15 = vpack.c.bf16 %v852_v13, %v850_v10  ;;  %v604_v55 = vmul.f32 0.5, %v4464_v12 }
 0x170   :  { %v3642_v63 = vpop.eup %3641  ;;  %3653 = verf.f32 %v668_v62  ;;  %v895_v22 = vpack.c.bf16 %v853_v56, %v851_v11  ;;  %v605_v58 = vmul.f32 0.5, %v4467_v4 }
 0x171   :  { %v3644_v19 = vpop.eup %3643  ;;  %v525_v21 = vpop.f32.mrb[52].mxu0  ;;  %v790_v24 = vadd.f32 1.0, %v3642_v63  ;;  %3655 = verf.f32 %v669_v1 }
 0x172   :  { %v4472_v29 = vadd.f32 %v525_v21, %v4224_v17  ;;  %v527_v31 = vpop.f32.mrb[53].mxu0  ;;  %v3646_v35 = vpop.eup %3645  ;;  %v791_v37 = vadd.f32 1.0, %v3644_v19  ;;  %1153 = vmatprep.mubr.bf16.mxu1 %v895_v22 }
 0x173   :  { %v4476_v41 = vadd.f32 %v527_v31, %v4227_v18  ;;  %v529_v34 = vpop.f32.mrb[54].mxu0  ;;  %v3648_v20 = vpop.eup %3647  ;;  %v792_v32 = vadd.f32 1.0, %v3646_v35  ;;  %1154 = vmatmul.mubr.bf16.gmra.mrb[40].mxu1 %v894_v15  ;;  %v854_v45 = vmul.f32 %v790_v24, %v598_v38 }
 0x174   :  { %v670_v25 = vmul.f32 0.70710677, %v4472_v29  ;;  %v531_v40 = vpop.f32.mrb[55].mxu0  ;;  %v793_v44 = vadd.f32 1.0, %v3648_v20  ;;  %v4484_v42 = vadd.f32 %v529_v34, %v4224_v17  ;;  %v855_v47 = vmul.f32 %v791_v37, %v599_v43 }
 0x175   :  { %v671_v28 = vmul.f32 0.70710677, %v4476_v41  ;;  %v856_v46 = vmul.f32 %v792_v32, %v600_v23  ;;  %v4487_v39 = vadd.f32 %v531_v40, %v4227_v18  ;;  %v606_v37 = vmul.f32 0.5, %v4472_v29 }
 0x176   :  { %3657 = verf.f32 %v670_v25  ;;  %v857_v27 = vmul.f32 %v793_v44, %v601_v26  ;;  %v672_v30 = vmul.f32 0.70710677, %v4484_v42  ;;  %v607_v32 = vmul.f32 0.5, %v4476_v41 }
 0x177   :  { %3659 = verf.f32 %v671_v28  ;;  %v673_v36 = vmul.f32 0.70710677, %v4487_v39  ;;  %v896_v48 = vpack.c.bf16 %v856_v46, %v854_v45  ;;  %v608_v25 = vmul.f32 0.5, %v4484_v42 }
 0x178   :  { %v3650_v33 = vpop.eup %3649  ;;  %3661 = verf.f32 %v672_v30  ;;  %v897_v52 = vpack.c.bf16 %v857_v27, %v855_v47  ;;  %v609_v28 = vmul.f32 0.5, %v4487_v39 }
 0x179   :  { %v3652_v49 = vpop.eup %3651  ;;  %v535_v50 = vpop.f32.mrb[56].mxu0  ;;  %v794_v54 = vadd.f32 1.0, %v3650_v33  ;;  %3663 = verf.f32 %v673_v36 }
 0x17a   :  { %v4492_v61 = vadd.f32 %v535_v50, %v4224_v17  ;;  %v537_v0 = vpop.f32.mrb[57].mxu0  ;;  %v3654_v3 = vpop.eup %3653  ;;  %v795_v7 = vadd.f32 1.0, %v3652_v49  ;;  %1161 = vmatprep.mubr.bf16.mxu1 %v897_v52 }
 0x17b   :  { %v4496_v51 = vadd.f32 %v537_v0, %v4227_v18  ;;  %v539_v8 = vpop.f32.mrb[58].mxu0  ;;  %v3656_v53 = vpop.eup %3655  ;;  %v796_v60 = vadd.f32 1.0, %v3654_v3  ;;  %1162 = vmatmul.mubr.bf16.gmra.mrb[44].mxu1 %v896_v48  ;;  %v858_v11 = vmul.f32 %v794_v54, %v602_v5 }
 0x17c   :  { %v674_v57 = vmul.f32 0.70710677, %v4492_v61  ;;  %v541_v9 = vpop.f32.mrb[59].mxu0  ;;  %v797_v10 = vadd.f32 1.0, %v3656_v53  ;;  %v540_v13 = vadd.f32 %v539_v8, %v4224_v17  ;;  %v859_v6 = vmul.f32 %v795_v7, %v603_v2 }
 0x17d   :  { %v675_v59 = vmul.f32 0.70710677, %v4496_v51  ;;  %v860_v56 = vmul.f32 %v796_v60, %v604_v55  ;;  %v542_v62 = vadd.f32 %v541_v9, %v4227_v18  ;;  %v610_v3 = vmul.f32 0.5, %v4492_v61 }
 0x17e   :  { %3665 = verf.f32 %v674_v57  ;;  %v861_v63 = vmul.f32 %v797_v10, %v605_v58  ;;  %v676_v12 = vmul.f32 0.70710677, %v540_v13  ;;  %v612_v5 = vmul.f32 0.5, %v540_v13 }
 0x17f   :  { %3667 = verf.f32 %v675_v59  ;;  %v677_v15 = vmul.f32 0.70710677, %v542_v62  ;;  %v898_v19 = vpack.c.bf16 %v860_v56, %v858_v11  ;;  %v611_v8 = vmul.f32 0.5, %v4496_v51 }
 0x180   :  { %v3658_v1 = vpop.eup %3657  ;;  %3669 = verf.f32 %v676_v12  ;;  %v899_v22 = vpack.c.bf16 %v861_v63, %v859_v6  ;;  %v613_v53 = vmul.f32 0.5, %v542_v62 }
 0x181   :  { %v3660_v21 = vpop.eup %3659  ;;  %v545_v4 = vpop.f32.mrb[60].mxu0  ;;  %v798_v24 = vadd.f32 1.0, %v3658_v1  ;;  %3671 = verf.f32 %v677_v15 }
 0x182   :  { %v546_v31 = vadd.f32 %v545_v4, %v4224_v17  ;;  %v547_v35 = vpop.f32.mrb[61].mxu0  ;;  %v3662_v38 = vpop.eup %3661  ;;  %v799_v34 = vadd.f32 1.0, %v3660_v21  ;;  %1169 = vmatprep.mubr.bf16.mxu1 %v899_v22 }
 0x183   :  { %v548_v20 = vadd.f32 %v547_v35, %v4227_v18  ;;  %v549_v43 = vpop.f32.mrb[62].mxu0  ;;  %v3664_v23 = vpop.eup %3663  ;;  %v800_v40 = vadd.f32 1.0, %v3662_v38  ;;  %1170 = vmatmul.mubr.bf16.gmra.mrb[48].mxu1 %v898_v19  ;;  %v862_v47 = vmul.f32 %v798_v24, %v606_v37  ;;  %v3472_v19 = vld [vmem:[%s5286_s5 + $0x38] sm:$0xff]   ;;  %v4524_v37 = vld [vmem:[%s5287_s4] ss:$0 sm:$0xff] }
 0x184   :  { %v678_v26 = vmul.f32 0.70710677, %v546_v31  ;;  %v551_v44 = vpop.f32.mrb[63].mxu0  ;;  %v801_v45 = vadd.f32 1.0, %v3664_v23  ;;  %v550_v29 = vadd.f32 %v549_v43, %v4224_v17  ;;  %v863_v33 = vmul.f32 %v799_v34, %v607_v32  ;;  %v3471_v17 = vld [vmem:[%s5286_s5 + $0x30] sm:$0xff]  }
 0x185   :  { %v679_v46 = vmul.f32 0.70710677, %v548_v20  ;;  %v864_v27 = vmul.f32 %v800_v40, %v608_v25  ;;  %v552_v30 = vadd.f32 %v551_v44, %v4227_v18  ;;  %3294 = vmatprep.subr.bf16.mxu1 %v3471_v17  ;;  %v614_v63 = vmul.f32 0.5, %v546_v31 }
 0x186   :  { %3673 = verf.f32 %v678_v26  ;;  %v865_v36 = vmul.f32 %v801_v45, %v609_v28  ;;  %v680_v41 = vmul.f32 0.70710677, %v550_v29  ;;  %3295 = vmatpush3.bf16.msra.mxu1 %v3471_v17  ;;  %v616_v12 = vmul.f32 0.5, %v550_v29 }
 0x187   :  { %3675 = verf.f32 %v679_v46  ;;  %v681_v48 = vmul.f32 0.70710677, %v552_v30  ;;  %v900_v49 = vpack.c.bf16 %v864_v27, %v862_v47  ;;  %v615_v51 = vmul.f32 0.5, %v548_v20  ;;  %3296 = vmatprep.subr.bf16.mxu1 %v3472_v19 }
 0x188   :  { %v3666_v42 = vpop.eup %3665  ;;  %3677 = verf.f32 %v680_v41  ;;  %v901_v52 = vpack.c.bf16 %v865_v36, %v863_v33  ;;  %v617_v62 = vmul.f32 0.5, %v552_v30  ;;  %v3473_v41 = vld [vmem:[%s5288_s7] sm:$0xff]  }
 0x189   :  { %v3668_v50 = vpop.eup %3667  ;;  %v802_v39 = vadd.f32 1.0, %v3666_v42  ;;  %3679 = verf.f32 %v681_v48  ;;  %3330 = vmatprep.subr.bf16.mxu0 %v3473_v41 }
 0x18a   :  { %v3670_v54 = vpop.eup %3669  ;;  %v803_v0 = vadd.f32 1.0, %v3668_v50  ;;  %1177 = vmatprep.mubr.bf16.mxu1 %v901_v52  ;;  %3297 = vmatpush3.bf16.msra.mxu1 %v3472_v19 }
 0x18b   :  { %v3672_v18 = vpop.eup %3671  ;;  %v804_v7 = vadd.f32 1.0, %v3670_v54  ;;  %1178 = vmatmul.mubr.bf16.gmra.mrb[52].mxu1 %v900_v49  ;;  %v866_v55 = vmul.f32 %v802_v39, %v610_v3  ;;  %3331 = vmatpush3.bf16.msra.mxu0 %v3473_v41 }
 0x18c   :  { %v805_v2 = vadd.f32 1.0, %v3672_v18  ;;  %v867_v57 = vmul.f32 %v803_v0, %v611_v8  ;;  %v3474_v0 = vld [vmem:[%s5288_s7 + $0x8] sm:$0xff]   ;;  %v3475_v18 = vld [vmem:[%s5288_s7 + $0x10] sm:$0xff]  }
 0x18d   :  { %v868_v60 = vmul.f32 %v804_v7, %v612_v5  ;;  %3332 = vmatprep.subr.bf16.mxu0 %v3474_v0 }
 0x18e   :  { %v869_v9 = vmul.f32 %v805_v2, %v613_v53 }
 0x18f   :  { %v902_v10 = vpack.c.bf16 %v868_v60, %v866_v55  ;;  %3333 = vmatpush3.bf16.msra.mxu0 %v3474_v0 }
 0x190   :  { %v3674_v58 = vpop.eup %3673  ;;  %v903_v11 = vpack.c.bf16 %v869_v9, %v867_v57  ;;  %3334 = vmatprep.subr.bf16.mxu0 %v3475_v18 }
 0x191   :  { %v3676_v59 = vpop.eup %3675  ;;  %v806_v56 = vadd.f32 1.0, %v3674_v58  ;;  %v3476_v58 = vld [vmem:[%s5288_s7 + $0x18] sm:$0xff]  }
 0x192   :  { %v3678_v6 = vpop.eup %3677  ;;  %v807_v61 = vadd.f32 1.0, %v3676_v59  ;;  %1185 = vmatprep.mubr.bf16.mxu1 %v903_v11 }
 0x193   :  { %v3680_v13 = vpop.eup %3679  ;;  %v808_v1 = vadd.f32 1.0, %v3678_v6  ;;  %1186 = vmatmul.mubr.bf16.gmra.mrb[56].mxu1 %v902_v10  ;;  %v870_v21 = vmul.f32 %v806_v56, %v614_v63  ;;  %3335 = vmatpush3.bf16.msra.mxu0 %v3475_v18 }
 0x194   :  { %v809_v15 = vadd.f32 1.0, %v3680_v13  ;;  %v871_v22 = vmul.f32 %v807_v61, %v615_v51  ;;  %3336 = vmatprep.subr.bf16.mxu0 %v3476_v58 }
 0x195   :  { %v872_v4 = vmul.f32 %v808_v1, %v616_v12  ;;  %v3477_v1 = vld [vmem:[%s5288_s7 + $0x20] sm:$0xff]  }
 0x196   :  { %v873_v24 = vmul.f32 %v809_v15, %v617_v62 }
 0x197   :  { %v904_v35 = vpack.c.bf16 %v872_v4, %v870_v21  ;;  %3337 = vmatpush3.bf16.msra.mxu0 %v3476_v58 }
 0x198   :  { %v905_v38 = vpack.c.bf16 %v873_v24, %v871_v22  ;;  %3338 = vmatprep.subr.bf16.mxu0 %v3477_v1 }
 0x19a   :  { %1193 = vmatprep.mubr.bf16.mxu1 %v905_v38 }
 0x19b   :  { %1194 = vmatmul.mubr.bf16.gmra.mrb[60].mxu1 %v904_v35  ;;  %3339 = vmatpush3.bf16.msra.mxu0 %v3477_v1 }
 0x1f6   :  { %v3138_v31 = vpop.f32.mrb[0].mxu1 }
 0x1f7   :  { %v3139_v34 = vpop.f32.mrb[1].mxu1 }
 0x1f8   :  { %v3140_v20 = vadd.f32 %v3139_v34, %v3138_v31  ;;  %v3141_v43 = vpop.f32.mrb[2].mxu1  ;;  %v3478_v31 = vld [vmem:[%s5288_s7 + $0x28] sm:$0xff]  }
 0x1f9   :  { %v3142_v23 = vpop.f32.mrb[3].mxu1  ;;  %3340 = vmatprep.subr.bf16.mxu0 %v3478_v31 }
 0x1fa   :  { %v1076_v32 = vadd.f32 %v3140_v20, %v4524_v37  ;;  %v3143_v25 = vadd.f32 %v3142_v23, %v3141_v43  ;;  %3341 = vmatpush3.bf16.msra.mxu0 %v3478_v31 }
 0x1fc   :  { %v1234_v40 = vmul.f32 0.70710677, %v1076_v32  ;;  %v1079_v26 = vadd.f32 %v3143_v25, %v4524_v37  ;;  %v1202_v5 = vmul.f32 0.5, %v1076_v32 }
 0x1fe   :  { %3681 = verf.f32 %v1234_v40  ;;  %v1235_v44 = vmul.f32 0.70710677, %v1079_v26  ;;  %v3144_v28 = vpop.f32.mrb[4].mxu1  ;;  %v1203_v53 = vmul.f32 0.5, %v1079_v26 }
 0x1ff   :  { %v3145_v45 = vpop.f32.mrb[5].mxu1 }
 0x200   :  { %3683 = verf.f32 %v1235_v44  ;;  %v3146_v46 = vadd.f32 %v3145_v45, %v3144_v28  ;;  %v3147_v29 = vpop.f32.mrb[6].mxu1  ;;  %v3479_v28 = vld [vmem:[%s5288_s7 + $0x30] sm:$0xff]  }
 0x201   :  { %v3148_v47 = vpop.f32.mrb[7].mxu1  ;;  %3342 = vmatprep.subr.bf16.mxu0 %v3479_v28 }
 0x202   :  { %v1084_v27 = vadd.f32 %v3146_v46, %v4524_v37  ;;  %v3149_v30 = vadd.f32 %v3148_v47, %v3147_v29  ;;  %3343 = vmatpush3.bf16.msra.mxu0 %v3479_v28 }
 0x204   :  { %v1236_v33 = vmul.f32 0.70710677, %v1084_v27  ;;  %v1087_v36 = vadd.f32 %v3149_v30, %v4524_v37  ;;  %v1204_v19 = vmul.f32 0.5, %v1084_v27 }
 0x206   :  { %3685 = verf.f32 %v1236_v33  ;;  %v1237_v42 = vmul.f32 0.70710677, %v1087_v36  ;;  %v3150_v48 = vpop.f32.mrb[8].mxu1  ;;  %v1205_v21 = vmul.f32 0.5, %v1087_v36 }
 0x207   :  { %v3151_v49 = vpop.f32.mrb[9].mxu1 }
 0x208   :  { %v3682_v50 = vpop.eup %3681  ;;  %3687 = verf.f32 %v1237_v42  ;;  %v3152_v52 = vadd.f32 %v3151_v49, %v3150_v48  ;;  %v3153_v39 = vpop.f32.mrb[10].mxu1 }
 0x209   :  { %v1298_v17 = vadd.f32 1.0, %v3682_v50  ;;  %v3154_v54 = vpop.f32.mrb[11].mxu1 }
 0x20a   :  { %v3684_v3 = vpop.eup %3683  ;;  %v1092_v7 = vadd.f32 %v3152_v52, %v4524_v37  ;;  %v3155_v8 = vadd.f32 %v3154_v54, %v3153_v39 }
 0x20b   :  { %v1299_v2 = vadd.f32 1.0, %v3684_v3  ;;  %v1330_v57 = vmul.f32 %v1298_v17, %v1202_v5 }
 0x20c   :  { %v1238_v55 = vmul.f32 0.70710677, %v1092_v7  ;;  %v1095_v60 = vadd.f32 %v3155_v8, %v4524_v37  ;;  %v1206_v47 = vmul.f32 0.5, %v1092_v7 }
 0x20d   :  { %v1331_v9 = vmul.f32 %v1299_v2, %v1203_v53 }
 0x20e   :  { %3689 = verf.f32 %v1238_v55  ;;  %v1239_v10 = vmul.f32 0.70710677, %v1095_v60  ;;  %v3156_v59 = vpop.f32.mrb[12].mxu1  ;;  %v1207_v27 = vmul.f32 0.5, %v1095_v60 }
 0x20f   :  { %v3157_v11 = vpop.f32.mrb[13].mxu1  ;;  %v1362_v56 = vpack.c.bf16 %v1331_v9, %v1330_v57 }
 0x210   :  { %v3686_v6 = vpop.eup %3685  ;;  %3691 = verf.f32 %v1239_v10  ;;  %v3158_v61 = vadd.f32 %v3157_v11, %v3156_v59  ;;  %v3159_v13 = vpop.f32.mrb[14].mxu1 }
 0x211   :  { %v1300_v63 = vadd.f32 1.0, %v3686_v6  ;;  %v3160_v12 = vpop.f32.mrb[15].mxu1  ;;  %3298 = vmatprep.mubr.bf16.mxu1 %v1362_v56 }
 0x212   :  { %v3688_v51 = vpop.eup %3687  ;;  %v1100_v62 = vadd.f32 %v3158_v61, %v4524_v37  ;;  %v3161_v15 = vadd.f32 %v3160_v12, %v3159_v13 }
 0x213   :  { %v1301_v4 = vadd.f32 1.0, %v3688_v51  ;;  %v1332_v35 = vmul.f32 %v1300_v63, %v1204_v19 }
 0x214   :  { %v1240_v22 = vmul.f32 0.70710677, %v1100_v62  ;;  %v1103_v24 = vadd.f32 %v3161_v15, %v4524_v37  ;;  %v1208_v8 = vmul.f32 0.5, %v1100_v62 }
 0x215   :  { %v1333_v38 = vmul.f32 %v1301_v4, %v1205_v21 }
 0x216   :  { %3693 = verf.f32 %v1240_v22  ;;  %v1241_v34 = vmul.f32 0.70710677, %v1103_v24  ;;  %v3162_v20 = vpop.f32.mrb[16].mxu1  ;;  %v1209_v53 = vmul.f32 0.5, %v1103_v24 }
 0x217   :  { %v1363_v43 = vpack.c.bf16 %v1333_v38, %v1332_v35  ;;  %v3163_v23 = vpop.f32.mrb[17].mxu1 }
 0x218   :  { %v3690_v32 = vpop.eup %3689  ;;  %3695 = verf.f32 %v1241_v34  ;;  %v3164_v25 = vadd.f32 %v3163_v23, %v3162_v20  ;;  %v3165_v40 = vpop.f32.mrb[18].mxu1 }
 0x219   :  { %v1302_v26 = vadd.f32 1.0, %v3690_v32  ;;  %v3166_v44 = vpop.f32.mrb[19].mxu1  ;;  %3299 = vmatmul.mubr.bf16.vlgmr.msra.gmra.mrb[64].mxu1 %v1363_v43 }
 0x21a   :  { %v3692_v45 = vpop.eup %3691  ;;  %v1108_v46 = vadd.f32 %v3164_v25, %v4524_v37  ;;  %v3167_v29 = vadd.f32 %v3166_v44, %v3165_v40 }
 0x21b   :  { %v1303_v30 = vadd.f32 1.0, %v3692_v45  ;;  %v1334_v41 = vmul.f32 %v1302_v26, %v1206_v47 }
 0x21c   :  { %v1242_v33 = vmul.f32 0.70710677, %v1108_v46  ;;  %v1111_v36 = vadd.f32 %v3167_v29, %v4524_v37  ;;  %v1210_v62 = vmul.f32 0.5, %v1108_v46 }
 0x21d   :  { %v1335_v42 = vmul.f32 %v1303_v30, %v1207_v27 }
 0x21e   :  { %3697 = verf.f32 %v1242_v33  ;;  %v1243_v48 = vmul.f32 0.70710677, %v1111_v36  ;;  %v3168_v49 = vpop.f32.mrb[20].mxu1  ;;  %v1211_v15 = vmul.f32 0.5, %v1111_v36 }
 0x21f   :  { %v3169_v50 = vpop.f32.mrb[21].mxu1  ;;  %v1364_v52 = vpack.c.bf16 %v1335_v42, %v1334_v41 }
 0x220   :  { %v3694_v39 = vpop.eup %3693  ;;  %3699 = verf.f32 %v1243_v48  ;;  %v3170_v17 = vadd.f32 %v3169_v50, %v3168_v49  ;;  %v3171_v54 = vpop.f32.mrb[22].mxu1 }
 0x221   :  { %v1304_v0 = vadd.f32 1.0, %v3694_v39  ;;  %v3172_v18 = vpop.f32.mrb[23].mxu1  ;;  %3302 = vmatprep.mubr.bf16.mxu1 %v1364_v52 }
 0x222   :  { %v3696_v3 = vpop.eup %3695  ;;  %v1116_v5 = vadd.f32 %v3170_v17, %v4524_v37  ;;  %v3173_v7 = vadd.f32 %v3172_v18, %v3171_v54 }
 0x223   :  { %v1305_v2 = vadd.f32 1.0, %v3696_v3  ;;  %v1336_v57 = vmul.f32 %v1304_v0, %v1208_v8 }
 0x224   :  { %v1244_v55 = vmul.f32 0.70710677, %v1116_v5  ;;  %v1119_v60 = vadd.f32 %v3173_v7, %v4524_v37  ;;  %v1212_v28 = vmul.f32 0.5, %v1116_v5 }
 0x225   :  { %v1337_v9 = vmul.f32 %v1305_v2, %v1209_v53 }
 0x226   :  { %3701 = verf.f32 %v1244_v55  ;;  %v1245_v58 = vmul.f32 0.70710677, %v1119_v60  ;;  %v3174_v10 = vpop.f32.mrb[24].mxu1  ;;  %v1213_v45 = vmul.f32 0.5, %v1119_v60 }
 0x227   :  { %v3175_v59 = vpop.f32.mrb[25].mxu1  ;;  %v1365_v11 = vpack.c.bf16 %v1337_v9, %v1336_v57 }
 0x228   :  { %v3698_v56 = vpop.eup %3697  ;;  %3703 = verf.f32 %v1245_v58  ;;  %v3176_v6 = vadd.f32 %v3175_v59, %v3174_v10  ;;  %v3177_v61 = vpop.f32.mrb[26].mxu1 }
 0x229   :  { %v1306_v13 = vadd.f32 1.0, %v3698_v56  ;;  %v3178_v63 = vpop.f32.mrb[27].mxu1  ;;  %3303 = vmatmul.mubr.bf16.gmra.mrb[68].mxu1 %v1365_v11 }
 0x22a   :  { %v3700_v12 = vpop.eup %3699  ;;  %v1124_v1 = vadd.f32 %v3176_v6, %v4524_v37  ;;  %v3179_v51 = vadd.f32 %v3178_v63, %v3177_v61 }
 0x22b   :  { %v1307_v19 = vadd.f32 1.0, %v3700_v12  ;;  %v1338_v22 = vmul.f32 %v1306_v13, %v1210_v62 }
 0x22c   :  { %v1246_v21 = vmul.f32 0.70710677, %v1124_v1  ;;  %v1127_v4 = vadd.f32 %v3179_v51, %v4524_v37  ;;  %v1214_v18 = vmul.f32 0.5, %v1124_v1 }
 0x22d   :  { %v1339_v24 = vmul.f32 %v1307_v19, %v1211_v15 }
 0x22e   :  { %3705 = verf.f32 %v1246_v21  ;;  %v1247_v35 = vmul.f32 0.70710677, %v1127_v4  ;;  %v3180_v38 = vpop.f32.mrb[28].mxu1  ;;  %v1215_v3 = vmul.f32 0.5, %v1127_v4 }
 0x22f   :  { %v3181_v31 = vpop.f32.mrb[29].mxu1  ;;  %v1366_v34 = vpack.c.bf16 %v1339_v24, %v1338_v22 }
 0x230   :  { %v3702_v20 = vpop.eup %3701  ;;  %3707 = verf.f32 %v1247_v35  ;;  %v3182_v43 = vadd.f32 %v3181_v31, %v3180_v38  ;;  %v3183_v23 = vpop.f32.mrb[30].mxu1 }
 0x231   :  { %v1308_v32 = vadd.f32 1.0, %v3702_v20  ;;  %v3184_v25 = vpop.f32.mrb[31].mxu1  ;;  %3306 = vmatprep.mubr.bf16.mxu1 %v1366_v34 }
 0x232   :  { %v3704_v40 = vpop.eup %3703  ;;  %v1132_v26 = vadd.f32 %v3182_v43, %v4524_v37  ;;  %v3185_v44 = vadd.f32 %v3184_v25, %v3183_v23 }
 0x233   :  { %v1309_v46 = vadd.f32 1.0, %v3704_v40  ;;  %v1340_v27 = vmul.f32 %v1308_v32, %v1212_v28 }
 0x234   :  { %v1248_v29 = vmul.f32 0.70710677, %v1132_v26  ;;  %v1135_v47 = vadd.f32 %v3185_v44, %v4524_v37  ;;  %v1216_v63 = vmul.f32 0.5, %v1132_v26 }
 0x235   :  { %v1341_v30 = vmul.f32 %v1309_v46, %v1213_v45 }
 0x236   :  { %3709 = verf.f32 %v1248_v29  ;;  %v1249_v33 = vmul.f32 0.70710677, %v1135_v47  ;;  %v3186_v36 = vpop.f32.mrb[32].mxu1  ;;  %v1217_v12 = vmul.f32 0.5, %v1135_v47 }
 0x237   :  { %v3187_v41 = vpop.f32.mrb[33].mxu1  ;;  %v1367_v42 = vpack.c.bf16 %v1341_v30, %v1340_v27 }
 0x238   :  { %v3706_v48 = vpop.eup %3705  ;;  %3711 = verf.f32 %v1249_v33  ;;  %v3188_v49 = vadd.f32 %v3187_v41, %v3186_v36  ;;  %v3189_v50 = vpop.f32.mrb[34].mxu1 }
 0x239   :  { %v1310_v52 = vadd.f32 1.0, %v3706_v48  ;;  %v3190_v39 = vpop.f32.mrb[35].mxu1  ;;  %3307 = vmatmul.mubr.bf16.gmra.mrb[72].mxu1 %v1367_v42 }
 0x23a   :  { %v3708_v17 = vpop.eup %3707  ;;  %v1140_v54 = vadd.f32 %v3188_v49, %v4524_v37  ;;  %v3191_v0 = vadd.f32 %v3190_v39, %v3189_v50 }
 0x23b   :  { %v1311_v5 = vadd.f32 1.0, %v3708_v17  ;;  %v1342_v53 = vmul.f32 %v1310_v52, %v1214_v18 }
 0x23c   :  { %v1250_v7 = vmul.f32 0.70710677, %v1140_v54  ;;  %v1143_v8 = vadd.f32 %v3191_v0, %v4524_v37  ;;  %v1218_v25 = vmul.f32 0.5, %v1140_v54 }
 0x23d   :  { %v1343_v2 = vmul.f32 %v1311_v5, %v1215_v3 }
 0x23e   :  { %3713 = verf.f32 %v1250_v7  ;;  %v1251_v55 = vmul.f32 0.70710677, %v1143_v8  ;;  %v3192_v60 = vpop.f32.mrb[36].mxu1  ;;  %v1219_v40 = vmul.f32 0.5, %v1143_v8 }
 0x23f   :  { %v3193_v57 = vpop.f32.mrb[37].mxu1  ;;  %v1368_v9 = vpack.c.bf16 %v1343_v2, %v1342_v53 }
 0x240   :  { %v3710_v58 = vpop.eup %3709  ;;  %3715 = verf.f32 %v1251_v55  ;;  %v3194_v10 = vadd.f32 %v3193_v57, %v3192_v60  ;;  %v3195_v59 = vpop.f32.mrb[38].mxu1 }
 0x241   :  { %v1312_v11 = vadd.f32 1.0, %v3710_v58  ;;  %v3196_v56 = vpop.f32.mrb[39].mxu1  ;;  %3310 = vmatprep.mubr.bf16.mxu1 %v1368_v9 }
 0x242   :  { %v3712_v6 = vpop.eup %3711  ;;  %v1148_v61 = vadd.f32 %v3194_v10, %v4524_v37  ;;  %v3197_v13 = vadd.f32 %v3196_v56, %v3195_v59 }
 0x243   :  { %v1313_v1 = vadd.f32 1.0, %v3712_v6  ;;  %v1344_v15 = vmul.f32 %v1312_v11, %v1216_v63 }
 0x244   :  { %v1252_v51 = vmul.f32 0.70710677, %v1148_v61  ;;  %v1151_v62 = vadd.f32 %v3197_v13, %v4524_v37  ;;  %v1220_v39 = vmul.f32 0.5, %v1148_v61 }
 0x245   :  { %v1345_v19 = vmul.f32 %v1313_v1, %v1217_v12 }
 0x246   :  { %3717 = verf.f32 %v1252_v51  ;;  %v1253_v21 = vmul.f32 0.70710677, %v1151_v62  ;;  %v3198_v4 = vpop.f32.mrb[40].mxu1  ;;  %v1221_v17 = vmul.f32 0.5, %v1151_v62 }
 0x247   :  { %v3199_v22 = vpop.f32.mrb[41].mxu1  ;;  %v1369_v24 = vpack.c.bf16 %v1345_v19, %v1344_v15 }
 0x248   :  { %v3714_v35 = vpop.eup %3713  ;;  %3719 = verf.f32 %v1253_v21  ;;  %v3200_v38 = vadd.f32 %v3199_v22, %v3198_v4  ;;  %v3201_v31 = vpop.f32.mrb[42].mxu1 }
 0x249   :  { %v1314_v34 = vadd.f32 1.0, %v3714_v35  ;;  %v3202_v20 = vpop.f32.mrb[43].mxu1  ;;  %3311 = vmatmul.mubr.bf16.gmra.mrb[76].mxu1 %v1369_v24 }
 0x24a   :  { %v3716_v43 = vpop.eup %3715  ;;  %v1156_v23 = vadd.f32 %v3200_v38, %v4524_v37  ;;  %v3203_v32 = vadd.f32 %v3202_v20, %v3201_v31 }
 0x24b   :  { %v1315_v26 = vadd.f32 1.0, %v3716_v43  ;;  %v1346_v45 = vmul.f32 %v1314_v34, %v1218_v25 }
 0x24c   :  { %v1254_v44 = vmul.f32 0.70710677, %v1156_v23  ;;  %v1159_v28 = vadd.f32 %v3203_v32, %v4524_v37  ;;  %v1222_v56 = vmul.f32 0.5, %v1156_v23 }
 0x24d   :  { %v1347_v46 = vmul.f32 %v1315_v26, %v1219_v40 }
 0x24e   :  { %3721 = verf.f32 %v1254_v44  ;;  %v1255_v29 = vmul.f32 0.70710677, %v1159_v28  ;;  %v3204_v47 = vpop.f32.mrb[44].mxu1  ;;  %v1223_v6 = vmul.f32 0.5, %v1159_v28 }
 0x24f   :  { %v3205_v27 = vpop.f32.mrb[45].mxu1  ;;  %v1370_v30 = vpack.c.bf16 %v1347_v46, %v1346_v45 }
 0x250   :  { %v3718_v33 = vpop.eup %3717  ;;  %3723 = verf.f32 %v1255_v29  ;;  %v3206_v36 = vadd.f32 %v3205_v27, %v3204_v47  ;;  %v3207_v41 = vpop.f32.mrb[46].mxu1 }
 0x251   :  { %v1316_v42 = vadd.f32 1.0, %v3718_v33  ;;  %v3208_v48 = vpop.f32.mrb[47].mxu1  ;;  %3314 = vmatprep.mubr.bf16.mxu1 %v1370_v30 }
 0x252   :  { %v3720_v49 = vpop.eup %3719  ;;  %v1164_v50 = vadd.f32 %v3206_v36, %v4524_v37  ;;  %v3209_v52 = vadd.f32 %v3208_v48, %v3207_v41 }
 0x253   :  { %v1317_v54 = vadd.f32 1.0, %v3720_v49  ;;  %v1348_v3 = vmul.f32 %v1316_v42, %v1220_v39 }
 0x254   :  { %v1256_v0 = vmul.f32 0.70710677, %v1164_v50  ;;  %v1167_v18 = vadd.f32 %v3209_v52, %v4524_v37  ;;  %v1224_v20 = vmul.f32 0.5, %v1164_v50 }
 0x255   :  { %v1349_v5 = vmul.f32 %v1317_v54, %v1221_v17 }
 0x256   :  { %3725 = verf.f32 %v1256_v0  ;;  %v1257_v7 = vmul.f32 0.70710677, %v1167_v18  ;;  %v3210_v8 = vpop.f32.mrb[48].mxu1  ;;  %v1225_v43 = vmul.f32 0.5, %v1167_v18 }
 0x257   :  { %v3211_v53 = vpop.f32.mrb[49].mxu1  ;;  %v1371_v2 = vpack.c.bf16 %v1349_v5, %v1348_v3 }
 0x258   :  { %v3722_v55 = vpop.eup %3721  ;;  %3727 = verf.f32 %v1257_v7  ;;  %v3212_v60 = vadd.f32 %v3211_v53, %v3210_v8  ;;  %v3213_v57 = vpop.f32.mrb[50].mxu1 }
 0x259   :  { %v1318_v9 = vadd.f32 1.0, %v3722_v55  ;;  %v3214_v58 = vpop.f32.mrb[51].mxu1  ;;  %3315 = vmatmul.mubr.bf16.gmra.mrb[80].mxu1 %v1371_v2 }
 0x25a   :  { %v3724_v10 = vpop.eup %3723  ;;  %v1172_v59 = vadd.f32 %v3212_v60, %v4524_v37  ;;  %v3215_v11 = vadd.f32 %v3214_v58, %v3213_v57 }
 0x25b   :  { %v1319_v61 = vadd.f32 1.0, %v3724_v10  ;;  %v1350_v12 = vmul.f32 %v1318_v9, %v1222_v56 }
 0x25c   :  { %v1258_v13 = vmul.f32 0.70710677, %v1172_v59  ;;  %v1175_v63 = vadd.f32 %v3215_v11, %v4524_v37  ;;  %v1226_v48 = vmul.f32 0.5, %v1172_v59 }
 0x25d   :  { %v1351_v1 = vmul.f32 %v1319_v61, %v1223_v6 }
 0x25e   :  { %3729 = verf.f32 %v1258_v13  ;;  %v1259_v51 = vmul.f32 0.70710677, %v1175_v63  ;;  %v3216_v62 = vpop.f32.mrb[52].mxu1  ;;  %v1227_v49 = vmul.f32 0.5, %v1175_v63 }
 0x25f   :  { %v3217_v15 = vpop.f32.mrb[53].mxu1  ;;  %v1372_v19 = vpack.c.bf16 %v1351_v1, %v1350_v12 }
 0x260   :  { %v3726_v21 = vpop.eup %3725  ;;  %3731 = verf.f32 %v1259_v51  ;;  %v3218_v4 = vadd.f32 %v3217_v15, %v3216_v62  ;;  %v3219_v22 = vpop.f32.mrb[54].mxu1 }
 0x261   :  { %v1320_v24 = vadd.f32 1.0, %v3726_v21  ;;  %v3220_v35 = vpop.f32.mrb[55].mxu1  ;;  %3318 = vmatprep.mubr.bf16.mxu1 %v1372_v19 }
 0x262   :  { %v3728_v38 = vpop.eup %3727  ;;  %v1180_v31 = vadd.f32 %v3218_v4, %v4524_v37  ;;  %v3221_v34 = vadd.f32 %v3220_v35, %v3219_v22 }
 0x263   :  { %v1321_v23 = vadd.f32 1.0, %v3728_v38  ;;  %v1352_v40 = vmul.f32 %v1320_v24, %v1224_v20 }
 0x264   :  { %v1260_v32 = vmul.f32 0.70710677, %v1180_v31  ;;  %v1183_v25 = vadd.f32 %v3221_v34, %v4524_v37  ;;  %v1228_v58 = vmul.f32 0.5, %v1180_v31 }
 0x265   :  { %v1353_v26 = vmul.f32 %v1321_v23, %v1225_v43 }
 0x266   :  { %3733 = verf.f32 %v1260_v32  ;;  %v1261_v44 = vmul.f32 0.70710677, %v1183_v25  ;;  %v3222_v28 = vpop.f32.mrb[56].mxu1  ;;  %v1229_v10 = vmul.f32 0.5, %v1183_v25  ;;  %v4585_v25 = vld [vmem:[%s5289_s6] ss:$0 sm:$0xff] }
 0x267   :  { %v3223_v45 = vpop.f32.mrb[57].mxu1  ;;  %v1373_v46 = vpack.c.bf16 %v1353_v26, %v1352_v40 }
 0x268   :  { %v3730_v29 = vpop.eup %3729  ;;  %3735 = verf.f32 %v1261_v44  ;;  %v3224_v47 = vadd.f32 %v3223_v45, %v3222_v28  ;;  %v3225_v27 = vpop.f32.mrb[58].mxu1 }
 0x269   :  { %v1322_v30 = vadd.f32 1.0, %v3730_v29  ;;  %v3226_v33 = vpop.f32.mrb[59].mxu1  ;;  %3319 = vmatmul.mubr.bf16.gmra.mrb[84].mxu1 %v1373_v46 }
 0x26a   :  { %v3732_v36 = vpop.eup %3731  ;;  %v1188_v41 = vadd.f32 %v3224_v47, %v4524_v37  ;;  %v3227_v42 = vadd.f32 %v3226_v33, %v3225_v27 }
 0x26b   :  { %v1323_v50 = vadd.f32 1.0, %v3732_v36  ;;  %v1354_v17 = vmul.f32 %v1322_v30, %v1226_v48  ;;  %v3486_v48 = vld [vmem:[%s5290_s9 + $0x14] ss:$8 sps:$4 sm:$0xff]  }
 0x26c   :  { %v1262_v52 = vmul.f32 0.70710677, %v1188_v41  ;;  %v1191_v39 = vadd.f32 %v3227_v42, %v4524_v37  ;;  %v1230_v62 = vmul.f32 0.5, %v1188_v41  ;;  %v3481_v41 = vld [vmem:[%s5290_s9] ss:$8 sps:$4 sm:$0xff]  }
 0x26d   :  { %v1355_v54 = vmul.f32 %v1323_v50, %v1227_v49  ;;  %v3483_v42 = vld [vmem:[%s5290_s9 + $0x4] ss:$8 sps:$4 sm:$0xff]  }
 0x26e   :  { %3737 = verf.f32 %v1262_v52  ;;  %v1263_v0 = vmul.f32 0.70710677, %v1191_v39  ;;  %v3228_v18 = vpop.f32.mrb[60].mxu1  ;;  %v1231_v15 = vmul.f32 0.5, %v1191_v39  ;;  %2174 = vmatprep.subr.bf16.mxu1 %v3483_v42 }
 0x26f   :  { %v3229_v3 = vpop.f32.mrb[61].mxu1  ;;  %v1374_v5 = vpack.c.bf16 %v1355_v54, %v1354_v17  ;;  %2175 = vmatpush1.bf16.msra.mxu1 %v3481_v41  ;;  %v3484_v54 = vld [vmem:[%s5290_s9 + $0x10] ss:$8 sps:$4 sm:$0xff]  }
 0x270   :  { %v3734_v7 = vpop.eup %3733  ;;  %3739 = verf.f32 %v1263_v0  ;;  %v3230_v8 = vadd.f32 %v3229_v3, %v3228_v18  ;;  %v3231_v53 = vpop.f32.mrb[62].mxu1  ;;  %2176 = vmatprep.subr.bf16.mxu1 %v3486_v48 }
 0x271   :  { %v1324_v2 = vadd.f32 1.0, %v3734_v7  ;;  %v3232_v55 = vpop.f32.mrb[63].mxu1  ;;  %3322 = vmatprep.mubr.bf16.mxu1 %v1374_v5  ;;  %v3489_v7 = vld [vmem:[%s5290_s9 + $0x24] ss:$8 sps:$4 sm:$0xff]  }
 0x272   :  { %v3736_v60 = vpop.eup %3735  ;;  %v1196_v57 = vadd.f32 %v3230_v8, %v4524_v37  ;;  %v3233_v9 = vadd.f32 %v3232_v55, %v3231_v53 }
 0x273   :  { %v1325_v59 = vadd.f32 1.0, %v3736_v60  ;;  %v1356_v6 = vmul.f32 %v1324_v2, %v1228_v58  ;;  %2177 = vmatpush1.bf16.msra.mxu1 %v3484_v54 }
 0x274   :  { %v1264_v11 = vmul.f32 0.70710677, %v1196_v57  ;;  %v1199_v56 = vadd.f32 %v3233_v9, %v4524_v37  ;;  %v3480_v37 = vld [vmem:[%s5288_s7 + $0x38] sm:$0xff]   ;;  %v1232_v31 = vmul.f32 0.5, %v1196_v57  ;;  %2178 = vmatprep.subr.bf16.mxu1 %v3489_v7 }
 0x275   :  { %v1357_v61 = vmul.f32 %v1325_v59, %v1229_v10  ;;  %3344 = vmatprep.subr.bf16.mxu0 %v3480_v37 }
 0x276   :  { %3741 = verf.f32 %v1264_v11  ;;  %v1265_v13 = vmul.f32 0.70710677, %v1199_v56  ;;  %v1233_v34 = vmul.f32 0.5, %v1199_v56  ;;  %3345 = vmatpush3.bf16.msra.mxu0 %v3480_v37 }
 0x277   :  { %v1375_v63 = vpack.c.bf16 %v1357_v61, %v1356_v6 }
 0x278   :  { %v3738_v12 = vpop.eup %3737  ;;  %3743 = verf.f32 %v1265_v13  ;;  %v3487_v13 = vld [vmem:[%s5290_s9 + $0x20] ss:$8 sps:$4 sm:$0xff]  }
 0x279   :  { %v1326_v1 = vadd.f32 1.0, %v3738_v12  ;;  %3323 = vmatmul.mubr.bf16.gmra.mrb[88].mxu1 %v1375_v63 }
 0x27a   :  { %v3740_v51 = vpop.eup %3739  ;;  %2179 = vmatpush1.bf16.msra.mxu1 %v3487_v13 }
 0x27b   :  { %v1327_v19 = vadd.f32 1.0, %v3740_v51  ;;  %v1358_v21 = vmul.f32 %v1326_v1, %v1230_v62  ;;  %v3492_v51 = vld [vmem:[%s5290_s9 + $0x34] ss:$8 sps:$4 sm:$0xff]  }
 0x27c   :  { %2180 = vmatprep.subr.bf16.mxu1 %v3492_v51 }
 0x27d   :  { %v1359_v4 = vmul.f32 %v1327_v19, %v1231_v15 }
 0x27f   :  { %v1376_v22 = vpack.c.bf16 %v1359_v4, %v1358_v21  ;;  %v3490_v4 = vld [vmem:[%s5290_s9 + $0x30] ss:$8 sps:$4 sm:$0xff]  }
 0x280   :  { %v3742_v24 = vpop.eup %3741  ;;  %2181 = vmatpush1.bf16.msra.mxu1 %v3490_v4 }
 0x281   :  { %v1328_v35 = vadd.f32 1.0, %v3742_v24  ;;  %3326 = vmatprep.mubr.bf16.mxu1 %v1376_v22  ;;  %v3495_v22 = vld [vmem:[%s5290_s9 + $0x44] ss:$8 sps:$4 sm:$0xff]   ;;  %v3493_v24 = vld [vmem:[%s5290_s9 + $0x40] ss:$8 sps:$4 sm:$0xff]  }
 0x282   :  { %v3744_v38 = vpop.eup %3743  ;;  %2182 = vmatprep.subr.bf16.mxu1 %v3495_v22 }
 0x283   :  { %v1329_v20 = vadd.f32 1.0, %v3744_v38  ;;  %v1360_v43 = vmul.f32 %v1328_v35, %v1232_v31  ;;  %v3498_v35 = vld [vmem:[%s5290_s9 + $0x54] ss:$8 sps:$4 sm:$0xff]  }
 0x284   :  { %2183 = vmatpush1.bf16.msra.mxu1 %v3493_v24 }
 0x285   :  { %v1361_v23 = vmul.f32 %v1329_v20, %v1233_v34  ;;  %v3496_v34 = vld [vmem:[%s5290_s9 + $0x50] ss:$8 sps:$4 sm:$0xff]   ;;  %2184 = vmatprep.subr.bf16.mxu1 %v3498_v35 }
 0x287   :  { %v1377_v32 = vpack.c.bf16 %v1361_v23, %v1360_v43 }
 0x288   :  { %2185 = vmatpush1.bf16.msra.mxu1 %v3496_v34 }
 0x289   :  { %3327 = vmatmul.mubr.bf16.gmra.mrb[92].mxu1 %v1377_v32  ;;  %v3501_v32 = vld [vmem:[%s5290_s9 + $0x64] ss:$8 sps:$4 sm:$0xff]  }
 0x28a   :  { %2186 = vmatprep.subr.bf16.mxu1 %v3501_v32 }
 0x2ec   :  { %v3300_v40 = vpop.f32.mrb[64].mxu1 }
 0x2ed   :  { %v1492_v26 = vadd.f32 %v3300_v40, %v4585_v25  ;;  %v1483_v44 = vpop.f32.mrb[65].mxu1 }
 0x2ee   :  { %v1484_v28 = vadd.f32 %v4585_v25, %v1483_v44  ;;  %v3301_v45 = vpop.f32.mrb[66].mxu1 }
 0x2ef   :  { %v1644_v46 = vmul.f32 0.70710677, %v1492_v26  ;;  %v1495_v29 = vadd.f32 %v3301_v45, %v4585_v25  ;;  %v1486_v47 = vpop.f32.mrb[67].mxu1  ;;  %v1612_v50 = vmul.f32 0.5, %v1492_v26 }
 0x2f0   :  { %v1642_v27 = vmul.f32 0.70710677, %v1484_v28  ;;  %v1487_v30 = vadd.f32 %v4585_v25, %v1486_v47  ;;  %v1610_v53 = vmul.f32 0.5, %v1484_v28 }
 0x2f1   :  { %3745 = verf.f32 %v1644_v46  ;;  %v1645_v33 = vmul.f32 0.70710677, %v1495_v29  ;;  %v1613_v2 = vmul.f32 0.5, %v1495_v29 }
 0x2f2   :  { %3747 = verf.f32 %v1642_v27  ;;  %v1643_v36 = vmul.f32 0.70710677, %v1487_v30  ;;  %v1611_v9 = vmul.f32 0.5, %v1487_v30 }
 0x2f3   :  { %3749 = verf.f32 %v1645_v33 }
 0x2f4   :  { %3751 = verf.f32 %v1643_v36 }
 0x2fb   :  { %v3746_v49 = vpop.eup %3745 }
 0x2fc   :  { %v3748_v52 = vpop.eup %3747  ;;  %v1708_v39 = vadd.f32 1.0, %v3746_v49  ;;  %v3304_v17 = vpop.f32.mrb[68].mxu1  ;;  %v3499_v49 = vld [vmem:[%s5290_s9 + $0x60] ss:$8 sps:$4 sm:$0xff]  }
 0x2fd   :  { %v3750_v0 = vpop.eup %3749  ;;  %v1706_v18 = vadd.f32 1.0, %v3748_v52  ;;  %v1508_v3 = vadd.f32 %v3304_v17, %v4585_v25  ;;  %v1499_v5 = vpop.f32.mrb[69].mxu1  ;;  %v3504_v17 = vld [vmem:[%s5290_s9 + $0x74] ss:$8 sps:$4 sm:$0xff]   ;;  %2187 = vmatpush1.bf16.msra.mxu1 %v3499_v49 }
 0x2fe   :  { %v3752_v8 = vpop.eup %3751  ;;  %v1709_v55 = vadd.f32 1.0, %v3750_v0  ;;  %v1500_v60 = vadd.f32 %v4585_v25, %v1499_v5  ;;  %v3305_v57 = vpop.f32.mrb[70].mxu1  ;;  %v1740_v11 = vmul.f32 %v1708_v39, %v1612_v50  ;;  %2188 = vmatprep.subr.bf16.mxu1 %v3504_v17 }
 0x2ff   :  { %v1707_v58 = vadd.f32 1.0, %v3752_v8  ;;  %v1648_v10 = vmul.f32 0.70710677, %v1508_v3  ;;  %v1502_v59 = vpop.f32.mrb[71].mxu1  ;;  %v1511_v61 = vadd.f32 %v3305_v57, %v4585_v25  ;;  %v1738_v63 = vmul.f32 %v1706_v18, %v1610_v53  ;;  %v3502_v8 = vld [vmem:[%s5290_s9 + $0x70] ss:$8 sps:$4 sm:$0xff]  }
 0x300   :  { %v1741_v56 = vmul.f32 %v1709_v55, %v1613_v2  ;;  %v1646_v6 = vmul.f32 0.70710677, %v1500_v60  ;;  %v1503_v1 = vadd.f32 %v4585_v25, %v1502_v59  ;;  %v1616_v26 = vmul.f32 0.5, %v1508_v3 }
 0x301   :  { %v1739_v12 = vmul.f32 %v1707_v58, %v1611_v9  ;;  %3753 = verf.f32 %v1648_v10  ;;  %v1649_v15 = vmul.f32 0.70710677, %v1511_v61  ;;  %v1614_v29 = vmul.f32 0.5, %v1500_v60  ;;  %2189 = vmatpush1.bf16.msra.mxu1 %v3502_v8 }
 0x302   :  { %v1771_v62 = vpack.c.bf16 %v1741_v56, %v1740_v11  ;;  %3755 = verf.f32 %v1646_v6  ;;  %v1647_v19 = vmul.f32 0.70710677, %v1503_v1  ;;  %v1617_v47 = vmul.f32 0.5, %v1511_v61 }
 0x303   :  { %v1770_v21 = vpack.c.bf16 %v1739_v12, %v1738_v63  ;;  %3757 = verf.f32 %v1649_v15  ;;  %v1615_v36 = vmul.f32 0.5, %v1503_v1 }
 0x304   :  { %3759 = verf.f32 %v1647_v19 }
 0x305   :  { %3346 = vmatprep.mubr.bf16.mxu0 %v1770_v21 }
 0x306   :  { %3347 = vmatmul.mubr.bf16.vlgmr.msra.gmra.mrb[64].mxu0 %v1771_v62 }
 0x30b   :  { %v3754_v37 = vpop.eup %3753 }
 0x30c   :  { %v3756_v38 = vpop.eup %3755  ;;  %v3308_v31 = vpop.f32.mrb[72].mxu1  ;;  %v1712_v20 = vadd.f32 1.0, %v3754_v37 }
 0x30d   :  { %v1524_v43 = vadd.f32 %v3308_v31, %v4585_v25  ;;  %v1515_v23 = vpop.f32.mrb[73].mxu1  ;;  %v3758_v40 = vpop.eup %3757  ;;  %v1710_v44 = vadd.f32 1.0, %v3756_v38 }
 0x30e   :  { %v1516_v28 = vadd.f32 %v4585_v25, %v1515_v23  ;;  %v3309_v45 = vpop.f32.mrb[74].mxu1  ;;  %v3760_v46 = vpop.eup %3759  ;;  %v1713_v27 = vadd.f32 1.0, %v3758_v40  ;;  %v1744_v50 = vmul.f32 %v1712_v20, %v1616_v26 }
 0x30f   :  { %v1652_v30 = vmul.f32 0.70710677, %v1524_v43  ;;  %v1518_v33 = vpop.f32.mrb[75].mxu1  ;;  %v1711_v41 = vadd.f32 1.0, %v3760_v46  ;;  %v1527_v48 = vadd.f32 %v3309_v45, %v4585_v25  ;;  %v1742_v54 = vmul.f32 %v1710_v44, %v1614_v29 }
 0x310   :  { %v1650_v42 = vmul.f32 0.70710677, %v1516_v28  ;;  %v1745_v52 = vmul.f32 %v1713_v27, %v1617_v47  ;;  %v1519_v39 = vadd.f32 %v4585_v25, %v1518_v33  ;;  %v1620_v10 = vmul.f32 0.5, %v1524_v43 }
 0x311   :  { %3761 = verf.f32 %v1652_v30  ;;  %v1743_v0 = vmul.f32 %v1711_v41, %v1615_v36  ;;  %v1653_v18 = vmul.f32 0.70710677, %v1527_v48  ;;  %v1618_v61 = vmul.f32 0.5, %v1516_v28 }
 0x312   :  { %3763 = verf.f32 %v1650_v42  ;;  %v1651_v3 = vmul.f32 0.70710677, %v1519_v39  ;;  %v1773_v5 = vpack.c.bf16 %v1745_v52, %v1744_v50  ;;  %v1621_v13 = vmul.f32 0.5, %v1527_v48 }
 0x313   :  { %3765 = verf.f32 %v1653_v18  ;;  %v1772_v7 = vpack.c.bf16 %v1743_v0, %v1742_v54  ;;  %v1619_v51 = vmul.f32 0.5, %v1519_v39 }
 0x314   :  { %3767 = verf.f32 %v1651_v3 }
 0x315   :  { %3350 = vmatprep.mubr.bf16.mxu0 %v1772_v7 }
 0x316   :  { %3351 = vmatmul.mubr.bf16.gmra.mrb[68].mxu0 %v1773_v5 }
 0x31b   :  { %v3762_v53 = vpop.eup %3761 }
 0x31c   :  { %v3764_v2 = vpop.eup %3763  ;;  %v3312_v55 = vpop.f32.mrb[76].mxu1  ;;  %v1716_v60 = vadd.f32 1.0, %v3762_v53 }
 0x31d   :  { %v1540_v57 = vadd.f32 %v3312_v55, %v4585_v25  ;;  %v1531_v9 = vpop.f32.mrb[77].mxu1  ;;  %v3766_v58 = vpop.eup %3765  ;;  %v1714_v59 = vadd.f32 1.0, %v3764_v2 }
 0x31e   :  { %v1532_v11 = vadd.f32 %v4585_v25, %v1531_v9  ;;  %v3313_v56 = vpop.f32.mrb[78].mxu1  ;;  %v3768_v6 = vpop.eup %3767  ;;  %v1717_v63 = vadd.f32 1.0, %v3766_v58  ;;  %v1748_v21 = vmul.f32 %v1716_v60, %v1620_v10 }
 0x31f   :  { %v1656_v12 = vmul.f32 0.70710677, %v1540_v57  ;;  %v1534_v1 = vpop.f32.mrb[79].mxu1  ;;  %v1715_v62 = vadd.f32 1.0, %v3768_v6  ;;  %v1543_v19 = vadd.f32 %v3313_v56, %v4585_v25  ;;  %v1746_v24 = vmul.f32 %v1714_v59, %v1618_v61 }
 0x320   :  { %v1654_v15 = vmul.f32 0.70710677, %v1532_v11  ;;  %v1749_v4 = vmul.f32 %v1717_v63, %v1621_v13  ;;  %v1535_v22 = vadd.f32 %v4585_v25, %v1534_v1  ;;  %v1624_v28 = vmul.f32 0.5, %v1540_v57 }
 0x321   :  { %3769 = verf.f32 %v1656_v12  ;;  %v1747_v35 = vmul.f32 %v1715_v62, %v1619_v51  ;;  %v1657_v37 = vmul.f32 0.70710677, %v1543_v19  ;;  %v1622_v27 = vmul.f32 0.5, %v1532_v11 }
 0x322   :  { %3771 = verf.f32 %v1654_v15  ;;  %v1655_v38 = vmul.f32 0.70710677, %v1535_v22  ;;  %v1775_v31 = vpack.c.bf16 %v1749_v4, %v1748_v21  ;;  %v1625_v30 = vmul.f32 0.5, %v1543_v19 }
 0x323   :  { %3773 = verf.f32 %v1657_v37  ;;  %v1774_v34 = vpack.c.bf16 %v1747_v35, %v1746_v24  ;;  %v1623_v42 = vmul.f32 0.5, %v1535_v22 }
 0x324   :  { %3775 = verf.f32 %v1655_v38 }
 0x325   :  { %3354 = vmatprep.mubr.bf16.mxu0 %v1774_v34 }
 0x326   :  { %3355 = vmatmul.mubr.bf16.gmra.mrb[72].mxu0 %v1775_v31 }
 0x32b   :  { %v3770_v20 = vpop.eup %3769 }
 0x32c   :  { %v3772_v43 = vpop.eup %3771  ;;  %v3316_v23 = vpop.f32.mrb[80].mxu1  ;;  %v1720_v32 = vadd.f32 1.0, %v3770_v20 }
 0x32d   :  { %v1556_v40 = vadd.f32 %v3316_v23, %v4585_v25  ;;  %v1547_v26 = vpop.f32.mrb[81].mxu1  ;;  %v3774_v44 = vpop.eup %3773  ;;  %v1718_v45 = vadd.f32 1.0, %v3772_v43 }
 0x32e   :  { %v1548_v46 = vadd.f32 %v4585_v25, %v1547_v26  ;;  %v3317_v29 = vpop.f32.mrb[82].mxu1  ;;  %v3776_v47 = vpop.eup %3775  ;;  %v1721_v33 = vadd.f32 1.0, %v3774_v44  ;;  %v1752_v52 = vmul.f32 %v1720_v32, %v1624_v28 }
 0x32f   :  { %v1660_v36 = vmul.f32 0.70710677, %v1556_v40  ;;  %v1550_v41 = vpop.f32.mrb[83].mxu1  ;;  %v1719_v48 = vadd.f32 1.0, %v3776_v47  ;;  %v1559_v50 = vadd.f32 %v3317_v29, %v4585_v25  ;;  %v1750_v54 = vmul.f32 %v1718_v45, %v1622_v27 }
 0x330   :  { %v1658_v49 = vmul.f32 0.70710677, %v1548_v46  ;;  %v1753_v39 = vmul.f32 %v1721_v33, %v1625_v30  ;;  %v1551_v17 = vadd.f32 %v4585_v25, %v1550_v41  ;;  %v1628_v58 = vmul.f32 0.5, %v1556_v40 }
 0x331   :  { %3777 = verf.f32 %v1660_v36  ;;  %v1751_v0 = vmul.f32 %v1719_v48, %v1623_v42  ;;  %v1661_v18 = vmul.f32 0.70710677, %v1559_v50  ;;  %v1626_v6 = vmul.f32 0.5, %v1548_v46 }
 0x332   :  { %3779 = verf.f32 %v1658_v49  ;;  %v1659_v3 = vmul.f32 0.70710677, %v1551_v17  ;;  %v1777_v5 = vpack.c.bf16 %v1753_v39, %v1752_v52  ;;  %v1629_v61 = vmul.f32 0.5, %v1559_v50 }
 0x333   :  { %3781 = verf.f32 %v1661_v18  ;;  %v1776_v7 = vpack.c.bf16 %v1751_v0, %v1750_v54  ;;  %v1627_v1 = vmul.f32 0.5, %v1551_v17 }
 0x334   :  { %3783 = verf.f32 %v1659_v3 }
 0x335   :  { %3358 = vmatprep.mubr.bf16.mxu0 %v1776_v7 }
 0x336   :  { %3359 = vmatmul.mubr.bf16.gmra.mrb[76].mxu0 %v1777_v5 }
 0x33b   :  { %v3778_v8 = vpop.eup %3777 }
 0x33c   :  { %v3780_v53 = vpop.eup %3779  ;;  %v3320_v2 = vpop.f32.mrb[84].mxu1  ;;  %v1724_v55 = vadd.f32 1.0, %v3778_v8 }
 0x33d   :  { %v1572_v60 = vadd.f32 %v3320_v2, %v4585_v25  ;;  %v1563_v57 = vpop.f32.mrb[85].mxu1  ;;  %v3782_v9 = vpop.eup %3781  ;;  %v1722_v10 = vadd.f32 1.0, %v3780_v53 }
 0x33e   :  { %v1564_v59 = vadd.f32 %v4585_v25, %v1563_v57  ;;  %v3321_v11 = vpop.f32.mrb[86].mxu1  ;;  %v3784_v56 = vpop.eup %3783  ;;  %v1725_v13 = vadd.f32 1.0, %v3782_v9  ;;  %v1756_v19 = vmul.f32 %v1724_v55, %v1628_v58 }
 0x33f   :  { %v1664_v63 = vmul.f32 0.70710677, %v1572_v60  ;;  %v1566_v12 = vpop.f32.mrb[87].mxu1  ;;  %v1723_v51 = vadd.f32 1.0, %v3784_v56  ;;  %v1575_v15 = vadd.f32 %v3321_v11, %v4585_v25  ;;  %v1754_v22 = vmul.f32 %v1722_v10, %v1626_v6 }
 0x340   :  { %v1662_v62 = vmul.f32 0.70710677, %v1564_v59  ;;  %v1757_v21 = vmul.f32 %v1725_v13, %v1629_v61  ;;  %v1567_v4 = vadd.f32 %v4585_v25, %v1566_v12  ;;  %v1632_v44 = vmul.f32 0.5, %v1572_v60 }
 0x341   :  { %3785 = verf.f32 %v1664_v63  ;;  %v1755_v24 = vmul.f32 %v1723_v51, %v1627_v1  ;;  %v1665_v35 = vmul.f32 0.70710677, %v1575_v15  ;;  %v1630_v47 = vmul.f32 0.5, %v1564_v59 }
 0x342   :  { %3787 = verf.f32 %v1662_v62  ;;  %v1663_v37 = vmul.f32 0.70710677, %v1567_v4  ;;  %v1779_v38 = vpack.c.bf16 %v1757_v21, %v1756_v19  ;;  %v1633_v27 = vmul.f32 0.5, %v1575_v15 }
 0x343   :  { %3789 = verf.f32 %v1665_v35  ;;  %v1778_v31 = vpack.c.bf16 %v1755_v24, %v1754_v22  ;;  %v1631_v41 = vmul.f32 0.5, %v1567_v4  ;;  %v3809_v35 = vmov 0  }
 0x344   :  { %3791 = verf.f32 %v1663_v37  ;;  %2206 = vmatprep.mubr.bf16.mxu1 %v3809_v35 }
 0x345   :  { %3362 = vmatprep.mubr.bf16.mxu0 %v1778_v31 }
 0x346   :  { %3363 = vmatmul.mubr.bf16.gmra.mrb[80].mxu0 %v1779_v38 }
 0x34b   :  { %v3786_v34 = vpop.eup %3785 }
 0x34c   :  { %v3788_v20 = vpop.eup %3787  ;;  %v3324_v43 = vpop.f32.mrb[88].mxu1  ;;  %v1728_v23 = vadd.f32 1.0, %v3786_v34 }
 0x34d   :  { %v1588_v32 = vadd.f32 %v3324_v43, %v4585_v25  ;;  %v1579_v40 = vpop.f32.mrb[89].mxu1  ;;  %v3790_v26 = vpop.eup %3789  ;;  %v1726_v28 = vadd.f32 1.0, %v3788_v20 }
 0x34e   :  { %v1580_v45 = vadd.f32 %v4585_v25, %v1579_v40  ;;  %v3325_v46 = vpop.f32.mrb[90].mxu1  ;;  %v3792_v29 = vpop.eup %3791  ;;  %v1729_v30 = vadd.f32 1.0, %v3790_v26  ;;  %v1760_v50 = vmul.f32 %v1728_v23, %v1632_v44 }
 0x34f   :  { %v1668_v33 = vmul.f32 0.70710677, %v1588_v32  ;;  %v1582_v36 = vpop.f32.mrb[91].mxu1  ;;  %v1727_v42 = vadd.f32 1.0, %v3792_v29  ;;  %v1591_v49 = vadd.f32 %v3325_v46, %v4585_v25  ;;  %v1758_v17 = vmul.f32 %v1726_v28, %v1630_v47 }
 0x350   :  { %v1666_v48 = vmul.f32 0.70710677, %v1580_v45  ;;  %v1761_v52 = vmul.f32 %v1729_v30, %v1633_v27  ;;  %v1583_v39 = vadd.f32 %v4585_v25, %v1582_v36  ;;  %v1636_v9 = vmul.f32 0.5, %v1588_v32 }
 0x351   :  { %3793 = verf.f32 %v1668_v33  ;;  %v1759_v54 = vmul.f32 %v1727_v42, %v1631_v41  ;;  %v1669_v0 = vmul.f32 0.70710677, %v1591_v49  ;;  %v1634_v58 = vmul.f32 0.5, %v1580_v45  ;;  %v4671_v41 = vld [vmem:[%s5291_s8] ss:$0 sm:$0xff] }
 0x352   :  { %3795 = verf.f32 %v1666_v48  ;;  %v1667_v18 = vmul.f32 0.70710677, %v1583_v39  ;;  %v1781_v3 = vpack.c.bf16 %v1761_v52, %v1760_v50  ;;  %v1637_v6 = vmul.f32 0.5, %v1591_v49 }
 0x353   :  { %3797 = verf.f32 %v1669_v0  ;;  %v1780_v5 = vpack.c.bf16 %v1759_v54, %v1758_v17  ;;  %v1635_v13 = vmul.f32 0.5, %v1583_v39  ;;  %v3505_v39 = vld [vmem:[%s5293_s11] ss:$8 sps:$4 sm:$0xff]   ;;  %v3507_v0 = vld [vmem:[%s5293_s11 + $0x4] ss:$8 sps:$4 sm:$0xff]  }
 0x354   :  { %3799 = verf.f32 %v1667_v18  ;;  %2667 = vmatprep.subr.bf16.mxu0 %v3507_v0  ;;  %3378 = vmatprep.subr.bf16.mxu1 %v3507_v0 }
 0x355   :  { %3366 = vmatprep.mubr.bf16.mxu0 %v1780_v5  ;;  %2668 = vmatpush1.bf16.msra.mxu0 %v3505_v39 }
 0x356   :  { %3367 = vmatmul.mubr.bf16.gmra.mrb[84].mxu0 %v1781_v3  ;;  %v3510_v3 = vld [vmem:[%s5293_s11 + $0x14] ss:$8 sps:$4 sm:$0xff]  }
 0x357   :  { %2669 = vmatprep.subr.bf16.mxu0 %v3510_v3 }
 0x35b   :  { %v3794_v7 = vpop.eup %3793 }
 0x35c   :  { %v3796_v8 = vpop.eup %3795  ;;  %v1732_v53 = vadd.f32 1.0, %v3794_v7  ;;  %v3328_v2 = vpop.f32.mrb[92].mxu1 }
 0x35d   :  { %v1604_v55 = vadd.f32 %v3328_v2, %v4585_v25  ;;  %v1595_v60 = vpop.f32.mrb[93].mxu1  ;;  %v3798_v57 = vpop.eup %3797  ;;  %v1730_v10 = vadd.f32 1.0, %v3796_v8  ;;  %v3508_v8 = vld [vmem:[%s5293_s11 + $0x10] ss:$8 sps:$4 sm:$0xff]   ;;  %v3511_v2 = vld [vmem:[%s5293_s11 + $0x20] ss:$8 sps:$4 sm:$0xff]  }
 0x35e   :  { %v1596_v59 = vadd.f32 %v4585_v25, %v1595_v60  ;;  %v3329_v11 = vpop.f32.mrb[94].mxu1  ;;  %v3800_v56 = vpop.eup %3799  ;;  %v1733_v61 = vadd.f32 1.0, %v3798_v57  ;;  %v1764_v1 = vmul.f32 %v1732_v53, %v1636_v9  ;;  %v3513_v53 = vld [vmem:[%s5293_s11 + $0x24] ss:$8 sps:$4 sm:$0xff]   ;;  %2670 = vmatpush1.bf16.msra.mxu0 %v3508_v8  ;;  %v3514_v60 = vld [vmem:[%s5293_s11 + $0x30] ss:$8 sps:$4 sm:$0xff]  }
 0x35f   :  { %v1672_v63 = vmul.f32 0.70710677, %v1604_v55  ;;  %v1598_v12 = vpop.f32.mrb[95].mxu1  ;;  %v1731_v51 = vadd.f32 1.0, %v3800_v56  ;;  %v1607_v15 = vadd.f32 %v3329_v11, %v4585_v25  ;;  %v1762_v4 = vmul.f32 %v1730_v10, %v1634_v58  ;;  %2671 = vmatprep.subr.bf16.mxu0 %v3513_v53  ;;  %v3519_v57 = vld [vmem:[%s5293_s11 + $0x44] ss:$8 sps:$4 sm:$0xff]  }
 0x360   :  { %v1670_v62 = vmul.f32 0.70710677, %v1596_v59  ;;  %v1765_v19 = vmul.f32 %v1733_v61, %v1637_v6  ;;  %v1599_v21 = vadd.f32 %v4585_v25, %v1598_v12  ;;  %v1640_v40 = vmul.f32 0.5, %v1604_v55  ;;  %v3516_v55 = vld [vmem:[%s5293_s11 + $0x34] ss:$8 sps:$4 sm:$0xff]  }
 0x361   :  { %3801 = verf.f32 %v1672_v63  ;;  %v1763_v22 = vmul.f32 %v1731_v51, %v1635_v13  ;;  %v1673_v24 = vmul.f32 0.70710677, %v1607_v15  ;;  %v1641_v26 = vmul.f32 0.5, %v1607_v15  ;;  %v3522_v6 = vld [vmem:[%s5293_s11 + $0x54] ss:$8 sps:$4 sm:$0xff]  }
 0x362   :  { %3803 = verf.f32 %v1670_v62  ;;  %v1671_v37 = vmul.f32 0.70710677, %v1599_v21  ;;  %v1783_v38 = vpack.c.bf16 %v1765_v19, %v1764_v1  ;;  %v1638_v28 = vmul.f32 0.5, %v1596_v59  ;;  %2672 = vmatpush1.bf16.msra.mxu0 %v3511_v2  ;;  %v3517_v59 = vld [vmem:[%s5293_s11 + $0x40] ss:$8 sps:$4 sm:$0xff]  }
 0x363   :  { %3805 = verf.f32 %v1673_v24  ;;  %v1782_v31 = vpack.c.bf16 %v1763_v22, %v1762_v4  ;;  %v1639_v45 = vmul.f32 0.5, %v1599_v21  ;;  %2673 = vmatprep.subr.bf16.mxu0 %v3516_v55  ;;  %v3520_v1 = vld [vmem:[%s5293_s11 + $0x50] ss:$8 sps:$4 sm:$0xff]   ;;  %v3525_v62 = vld [vmem:[%s5293_s11 + $0x64] ss:$8 sps:$4 sm:$0xff]  }
 0x364   :  { %3807 = verf.f32 %v1671_v37  ;;  %v3523_v15 = vld [vmem:[%s5293_s11 + $0x60] ss:$8 sps:$4 sm:$0xff]   ;;  %v3528_v19 = vld [vmem:[%s5293_s11 + $0x74] ss:$8 sps:$4 sm:$0xff]   ;;  %v3526_v21 = vld [vmem:[%s5293_s11 + $0x70] ss:$8 sps:$4 sm:$0xff]  }
 0x365   :  { %3370 = vmatprep.mubr.bf16.mxu0 %v1782_v31  ;;  %v3531_v4 = vld [vmem:[%s5293_s11 + $0x84] ss:$8 sps:$4 sm:$0xff]  }
 0x366   :  { %3371 = vmatmul.mubr.bf16.gmra.mrb[88].mxu0 %v1783_v38  ;;  %v3529_v38 = vld [vmem:[%s5293_s11 + $0x80] ss:$8 sps:$4 sm:$0xff]  }
 0x367   :  { %2674 = vmatpush1.bf16.msra.mxu0 %v3514_v60 }
 0x368   :  { %2675 = vmatprep.subr.bf16.mxu0 %v3519_v57 }
 0x36b   :  { %v3802_v34 = vpop.eup %3801  ;;  %2676 = vmatpush1.bf16.msra.mxu0 %v3517_v59 }
 0x36c   :  { %v3804_v20 = vpop.eup %3803  ;;  %v1736_v43 = vadd.f32 1.0, %v3802_v34  ;;  %2677 = vmatprep.subr.bf16.mxu0 %v3522_v6 }
 0x36d   :  { %v3806_v23 = vpop.eup %3805  ;;  %v1734_v32 = vadd.f32 1.0, %v3804_v20  ;;  %v3534_v20 = vld [vmem:[%s5293_s11 + $0x94] ss:$8 sps:$4 sm:$0xff]  }
 0x36e   :  { %v3808_v25 = vpop.eup %3807  ;;  %v1737_v44 = vadd.f32 1.0, %v3806_v23  ;;  %v1768_v29 = vmul.f32 %v1736_v43, %v1640_v40  ;;  %v3532_v40 = vld [vmem:[%s5293_s11 + $0x90] ss:$8 sps:$4 sm:$0xff]  }
 0x36f   :  { %v1735_v46 = vadd.f32 1.0, %v3808_v25  ;;  %v1766_v27 = vmul.f32 %v1734_v32, %v1638_v28  ;;  %2678 = vmatpush1.bf16.msra.mxu0 %v3520_v1  ;;  %v3535_v28 = vld [vmem:[%s5293_s11 + $0xa0] ss:$8 sps:$4 sm:$0xff]  }
 0x370   :  { %v1769_v47 = vmul.f32 %v1737_v44, %v1641_v26  ;;  %2679 = vmatprep.subr.bf16.mxu0 %v3525_v62  ;;  %v3537_v44 = vld [vmem:[%s5293_s11 + $0xa4] ss:$8 sps:$4 sm:$0xff]  }
 0x371   :  { %v1767_v30 = vmul.f32 %v1735_v46, %v1639_v45  ;;  %v3540_v45 = vld [vmem:[%s5293_s11 + $0xb4] ss:$8 sps:$4 sm:$0xff]   ;;  %v3538_v46 = vld [vmem:[%s5293_s11 + $0xb0] ss:$8 sps:$4 sm:$0xff]  }
 0x372   :  { %v1785_v33 = vpack.c.bf16 %v1769_v47, %v1768_v29  ;;  %v3543_v29 = vld [vmem:[%s5293_s11 + $0xc4] ss:$8 sps:$4 sm:$0xff]  }
 0x373   :  { %v1784_v36 = vpack.c.bf16 %v1767_v30, %v1766_v27  ;;  %2680 = vmatpush1.bf16.msra.mxu0 %v3523_v15 }
 0x374   :  { %2681 = vmatprep.subr.bf16.mxu0 %v3528_v19 }
 0x375   :  { %3374 = vmatprep.mubr.bf16.mxu0 %v1784_v36 }
 0x376   :  { %3375 = vmatmul.mubr.bf16.gmra.mrb[92].mxu0 %v1785_v33  ;;  %v3541_v33 = vld [vmem:[%s5293_s11 + $0xc0] ss:$8 sps:$4 sm:$0xff]  }
 0x377   :  { %2682 = vmatpush1.bf16.msra.mxu0 %v3526_v21 }
 0x378   :  { %2683 = vmatprep.subr.bf16.mxu0 %v3531_v4 }
 0x37b   :  { %2684 = vmatpush1.bf16.msra.mxu0 %v3529_v38 }
 0x37c   :  { %2685 = vmatprep.subr.bf16.mxu0 %v3534_v20 }
 0x37f   :  { %2686 = vmatpush1.bf16.msra.mxu0 %v3532_v40 }
 0x380   :  { %2687 = vmatprep.subr.bf16.mxu0 %v3537_v44 }
 0x383   :  { %2688 = vmatpush1.bf16.msra.mxu0 %v3535_v28 }
 0x384   :  { %2689 = vmatprep.subr.bf16.mxu0 %v3540_v45 }
 0x387   :  { %2690 = vmatpush1.bf16.msra.mxu0 %v3538_v46 }
 0x388   :  { %2691 = vmatprep.subr.bf16.mxu0 %v3543_v29 }
 0x38b   :  { %2692 = vmatpush1.bf16.msra.mxu0 %v3541_v33 }
 0x3d9   :  { %v3348_v42 = vpop.f32.mrb[64].mxu0 }
 0x3da   :  { %v1900_v48 = vadd.f32 %v3348_v42, %v4671_v41  ;;  %v1891_v49 = vpop.f32.mrb[65].mxu0 }
 0x3db   :  { %v1892_v50 = vadd.f32 %v4671_v41, %v1891_v49  ;;  %v3349_v52 = vpop.f32.mrb[66].mxu0 }
 0x3dc   :  { %2020 = vst [vmem:[%s5292_s14 + $0x10] sm:$0xff] %v1900_v48  ;;  %v1903_v17 = vadd.f32 %v3349_v52, %v4671_v41  ;;  %v1894_v54 = vpop.f32.mrb[67].mxu0 }
 0x3dd   :  { %2018 = vst [vmem:[%s5292_s14] sm:$0xff] %v1892_v50  ;;  %v1895_v18 = vadd.f32 %v4671_v41, %v1894_v54 }
 0x3de   :  { %2021 = vst [vmem:[%s5292_s14 + $0x18] sm:$0xff] %v1903_v17  ;;  %v2051_v5 = vpack.c.bf16 %v1903_v17, %v1900_v48  ;;  %v3546_v48 = vld [vmem:[%s5293_s11 + $0xd4] ss:$8 sps:$4 sm:$0xff]   ;;  %v3544_v17 = vld [vmem:[%s5293_s11 + $0xd0] ss:$8 sps:$4 sm:$0xff]  }
 0x3df   :  { %2019 = vst [vmem:[%s5292_s14 + $0x8] sm:$0xff] %v1895_v18  ;;  %v2050_v7 = vpack.c.bf16 %v1895_v18, %v1892_v50  ;;  %2693 = vmatprep.subr.bf16.mxu0 %v3546_v48 }
 0x3e0   :  { %2694 = vmatpush1.bf16.msra.mxu0 %v3544_v17 }
 0x3e1   :  { %2207 = vmatmul.mubr.bf16.vlgmr.msra.gmra.mrb[96].mxu1 %v2050_v7 }
 0x3e2   :  { %2216 = vmatprep.mubr.bf16.mxu1 %v3809_v35  ;;  %3394 = vmatpush1.bf16.msra.mxu1 %v3505_v39 }
 0x3e3   :  { %3379 = vmatprep.subr.bf16.mxu1 %v3510_v3 }
 0x3e6   :  { %3395 = vmatpush1.bf16.msra.mxu1 %v3508_v8 }
 0x3e7   :  { %3380 = vmatprep.subr.bf16.mxu1 %v3513_v53 }
 0x3e9   :  { %2217 = vmatmul.mubr.bf16.gmra.mrb[100].mxu1 %v2051_v5  ;;  %v3352_v9 = vpop.f32.mrb[68].mxu0 }
 0x3ea   :  { %2226 = vmatprep.mubr.bf16.mxu1 %v3809_v35  ;;  %3396 = vmatpush1.bf16.msra.mxu1 %v3511_v2  ;;  %v1916_v58 = vadd.f32 %v3352_v9, %v4671_v41  ;;  %v1907_v10 = vpop.f32.mrb[69].mxu0 }
 0x3eb   :  { %3381 = vmatprep.subr.bf16.mxu1 %v3516_v55  ;;  %v1908_v11 = vadd.f32 %v4671_v41, %v1907_v10  ;;  %v3353_v56 = vpop.f32.mrb[70].mxu0 }
 0x3ec   :  { %2024 = vst [vmem:[%s5292_s14 + $0x30] sm:$0xff] %v1916_v58  ;;  %v1919_v61 = vadd.f32 %v3353_v56, %v4671_v41  ;;  %v1910_v13 = vpop.f32.mrb[71].mxu0 }
 0x3ed   :  { %2022 = vst [vmem:[%s5292_s14 + $0x20] sm:$0xff] %v1908_v11  ;;  %v1911_v63 = vadd.f32 %v4671_v41, %v1910_v13 }
 0x3ee   :  { %3397 = vmatpush1.bf16.msra.mxu1 %v3514_v60  ;;  %2025 = vst [vmem:[%s5292_s14 + $0x38] sm:$0xff] %v1919_v61  ;;  %v2053_v12 = vpack.c.bf16 %v1919_v61, %v1916_v58 }
 0x3ef   :  { %3382 = vmatprep.subr.bf16.mxu1 %v3519_v57  ;;  %2023 = vst [vmem:[%s5292_s14 + $0x28] sm:$0xff] %v1911_v63  ;;  %v2052_v51 = vpack.c.bf16 %v1911_v63, %v1908_v11  ;;  %v3549_v63 = vld [vmem:[%s5293_s11 + $0xe4] ss:$8 sps:$4 sm:$0xff]  }
 0x3f0   :  { %2695 = vmatprep.subr.bf16.mxu0 %v3549_v63 }
 0x3f1   :  { %2227 = vmatmul.mubr.bf16.gmra.mrb[104].mxu1 %v2052_v51  ;;  %v3552_v51 = vld [vmem:[%s5293_s11 + $0xf4] ss:$8 sps:$4 sm:$0xff]  }
 0x3f2   :  { %2236 = vmatprep.mubr.bf16.mxu1 %v3809_v35  ;;  %3398 = vmatpush1.bf16.msra.mxu1 %v3517_v59 }
 0x3f3   :  { %3383 = vmatprep.subr.bf16.mxu1 %v3522_v6 }
 0x3f6   :  { %3399 = vmatpush1.bf16.msra.mxu1 %v3520_v1 }
 0x3f7   :  { %3384 = vmatprep.subr.bf16.mxu1 %v3525_v62 }
 0x3f9   :  { %v3356_v22 = vpop.f32.mrb[72].mxu0  ;;  %2237 = vmatmul.mubr.bf16.gmra.mrb[108].mxu1 %v2053_v12  ;;  %v3547_v12 = vld [vmem:[%s5293_s11 + $0xe0] ss:$8 sps:$4 sm:$0xff]  }
 0x3fa   :  { %v1932_v24 = vadd.f32 %v3356_v22, %v4671_v41  ;;  %v1923_v37 = vpop.f32.mrb[73].mxu0  ;;  %2246 = vmatprep.mubr.bf16.mxu1 %v3809_v35  ;;  %3400 = vmatpush1.bf16.msra.mxu1 %v3523_v15 }
 0x3fb   :  { %v1924_v31 = vadd.f32 %v4671_v41, %v1923_v37  ;;  %v3357_v34 = vpop.f32.mrb[74].mxu0  ;;  %3385 = vmatprep.subr.bf16.mxu1 %v3528_v19  ;;  %2696 = vmatpush1.bf16.msra.mxu0 %v3547_v12  ;;  %v3550_v19 = vld [vmem:[%s5293_s11 + $0xf0] ss:$8 sps:$4 sm:$0xff]  }
 0x3fc   :  { %2028 = vst [vmem:[%s5292_s14 + $0x50] sm:$0xff] %v1932_v24  ;;  %v1935_v43 = vadd.f32 %v3357_v34, %v4671_v41  ;;  %v1926_v23 = vpop.f32.mrb[75].mxu0  ;;  %2697 = vmatprep.subr.bf16.mxu0 %v3552_v51 }
 0x3fd   :  { %2026 = vst [vmem:[%s5292_s14 + $0x40] sm:$0xff] %v1924_v31  ;;  %v1927_v32 = vadd.f32 %v4671_v41, %v1926_v23 }
 0x3fe   :  { %2029 = vst [vmem:[%s5292_s14 + $0x58] sm:$0xff] %v1935_v43  ;;  %v2055_v25 = vpack.c.bf16 %v1935_v43, %v1932_v24  ;;  %3401 = vmatpush1.bf16.msra.mxu1 %v3526_v21 }
 0x3ff   :  { %2027 = vst [vmem:[%s5292_s14 + $0x48] sm:$0xff] %v1927_v32  ;;  %v2054_v26 = vpack.c.bf16 %v1927_v32, %v1924_v31  ;;  %3386 = vmatprep.subr.bf16.mxu1 %v3531_v4  ;;  %2698 = vmatpush1.bf16.msra.mxu0 %v3550_v19 }
 0x401   :  { %2247 = vmatmul.mubr.bf16.gmra.mrb[112].mxu1 %v2054_v26 }
 0x402   :  { %2256 = vmatprep.mubr.bf16.mxu1 %v3809_v35  ;;  %3402 = vmatpush1.bf16.msra.mxu1 %v3529_v38 }
 0x403   :  { %3387 = vmatprep.subr.bf16.mxu1 %v3534_v20 }
 0x406   :  { %3403 = vmatpush1.bf16.msra.mxu1 %v3532_v40 }
 0x407   :  { %3388 = vmatprep.subr.bf16.mxu1 %v3537_v44 }
 0x409   :  { %v3360_v47 = vpop.f32.mrb[76].mxu0  ;;  %2257 = vmatmul.mubr.bf16.gmra.mrb[116].mxu1 %v2055_v25 }
 0x40a   :  { %v1948_v27 = vadd.f32 %v3360_v47, %v4671_v41  ;;  %v1939_v30 = vpop.f32.mrb[77].mxu0  ;;  %2266 = vmatprep.mubr.bf16.mxu1 %v3809_v35  ;;  %3404 = vmatpush1.bf16.msra.mxu1 %v3535_v28 }
 0x40b   :  { %v1940_v36 = vadd.f32 %v4671_v41, %v1939_v30  ;;  %v3361_v42 = vpop.f32.mrb[78].mxu0  ;;  %3389 = vmatprep.subr.bf16.mxu1 %v3540_v45  ;;  %v2082_v45 = vld [vmem:[%s5294_s10] sm:$0x3] }
 0x40c   :  { %2032 = vst [vmem:[%s5292_s14 + $0x70] sm:$0xff] %v1948_v27  ;;  %v1951_v49 = vadd.f32 %v3361_v42, %v4671_v41  ;;  %v1942_v50 = vpop.f32.mrb[79].mxu0 }
 0x40d   :  { %2030 = vst [vmem:[%s5292_s14 + $0x60] sm:$0xff] %v1940_v36  ;;  %v1943_v52 = vadd.f32 %v4671_v41, %v1942_v50 }
 0x40e   :  { %2033 = vst [vmem:[%s5292_s14 + $0x78] sm:$0xff] %v1951_v49  ;;  %v2057_v39 = vpack.c.bf16 %v1951_v49, %v1948_v27  ;;  %3405 = vmatpush1.bf16.msra.mxu1 %v3538_v46  ;;  %v4919_v46 = vrot.slane %v2082_v45, %v4221_v16 }
 0x40f   :  { %2031 = vst [vmem:[%s5292_s14 + $0x68] sm:$0xff] %v1943_v52  ;;  %v2056_v54 = vpack.c.bf16 %v1943_v52, %v1940_v36  ;;  %3390 = vmatprep.subr.bf16.mxu1 %v3543_v29 }
 0x411   :  { %2267 = vmatmul.mubr.bf16.gmra.mrb[120].mxu1 %v2056_v54 }
 0x412   :  { %2276 = vmatprep.mubr.bf16.mxu1 %v3809_v35  ;;  %3406 = vmatpush1.bf16.msra.mxu1 %v3541_v33 }
 0x413   :  { %3391 = vmatprep.subr.bf16.mxu1 %v3546_v48 }
 0x416   :  { %3407 = vmatpush1.bf16.msra.mxu1 %v3544_v17 }
 0x417   :  { %3392 = vmatprep.subr.bf16.mxu1 %v3549_v63 }
 0x419   :  { %v3364_v0 = vpop.f32.mrb[80].mxu0  ;;  %2277 = vmatmul.mubr.bf16.gmra.mrb[124].mxu1 %v2057_v39 }
 0x41a   :  { %v1964_v18 = vadd.f32 %v3364_v0, %v4671_v41  ;;  %v1955_v3 = vpop.f32.mrb[81].mxu0  ;;  %2286 = vmatprep.mubr.bf16.mxu1 %v3809_v35  ;;  %3408 = vmatpush1.bf16.msra.mxu1 %v3547_v12 }
 0x41b   :  { %v1956_v5 = vadd.f32 %v4671_v41, %v1955_v3  ;;  %v3365_v7 = vpop.f32.mrb[82].mxu0  ;;  %3393 = vmatprep.subr.bf16.mxu1 %v3552_v51 }
 0x41c   :  { %2036 = vst [vmem:[%s5292_s14 + $0x90] sm:$0xff] %v1964_v18  ;;  %v1967_v8 = vadd.f32 %v3365_v7, %v4671_v41  ;;  %v1958_v53 = vpop.f32.mrb[83].mxu0 }
 0x41d   :  { %2034 = vst [vmem:[%s5292_s14 + $0x80] sm:$0xff] %v1956_v5  ;;  %v1959_v2 = vadd.f32 %v4671_v41, %v1958_v53 }
 0x41e   :  { %2037 = vst [vmem:[%s5292_s14 + $0x98] sm:$0xff] %v1967_v8  ;;  %v2059_v55 = vpack.c.bf16 %v1967_v8, %v1964_v18  ;;  %3409 = vmatpush1.bf16.msra.mxu1 %v3550_v19 }
 0x41f   :  { %2035 = vst [vmem:[%s5292_s14 + $0x88] sm:$0xff] %v1959_v2  ;;  %v2058_v60 = vpack.c.bf16 %v1959_v2, %v1956_v5 }
 0x421   :  { %2287 = vmatmul.mubr.bf16.gmra.mrb[128].mxu1 %v2058_v60 }
 0x422   :  { %2296 = vmatprep.mubr.bf16.mxu1 %v3809_v35 }
 0x429   :  { %v3368_v57 = vpop.f32.mrb[84].mxu0  ;;  %2297 = vmatmul.mubr.bf16.gmra.mrb[132].mxu1 %v2059_v55 }
 0x42a   :  { %v1980_v9 = vadd.f32 %v3368_v57, %v4671_v41  ;;  %v1971_v58 = vpop.f32.mrb[85].mxu0  ;;  %2306 = vmatprep.mubr.bf16.mxu1 %v3809_v35 }
 0x42b   :  { %v1972_v10 = vadd.f32 %v4671_v41, %v1971_v58  ;;  %v3369_v59 = vpop.f32.mrb[86].mxu0 }
 0x42c   :  { %2040 = vst [vmem:[%s5292_s14 + $0xb0] sm:$0xff] %v1980_v9  ;;  %v1983_v11 = vadd.f32 %v3369_v59, %v4671_v41  ;;  %v1974_v56 = vpop.f32.mrb[87].mxu0 }
 0x42d   :  { %2038 = vst [vmem:[%s5292_s14 + $0xa0] sm:$0xff] %v1972_v10  ;;  %v1975_v6 = vadd.f32 %v4671_v41, %v1974_v56 }
 0x42e   :  { %2041 = vst [vmem:[%s5292_s14 + $0xb8] sm:$0xff] %v1983_v11  ;;  %v2061_v61 = vpack.c.bf16 %v1983_v11, %v1980_v9 }
 0x42f   :  { %2039 = vst [vmem:[%s5292_s14 + $0xa8] sm:$0xff] %v1975_v6  ;;  %v2060_v13 = vpack.c.bf16 %v1975_v6, %v1972_v10 }
 0x431   :  { %2307 = vmatmul.mubr.bf16.gmra.mrb[136].mxu1 %v2060_v13 }
 0x432   :  { %2316 = vmatprep.mubr.bf16.mxu1 %v3809_v35 }
 0x439   :  { %v3372_v1 = vpop.f32.mrb[88].mxu0  ;;  %2317 = vmatmul.mubr.bf16.gmra.mrb[140].mxu1 %v2061_v61 }
 0x43a   :  { %v1996_v62 = vadd.f32 %v3372_v1, %v4671_v41  ;;  %v1987_v15 = vpop.f32.mrb[89].mxu0  ;;  %2326 = vmatprep.mubr.bf16.mxu1 %v3809_v35 }
 0x43b   :  { %v1988_v21 = vadd.f32 %v4671_v41, %v1987_v15  ;;  %v3373_v4 = vpop.f32.mrb[90].mxu0 }
 0x43c   :  { %2044 = vst [vmem:[%s5292_s14 + $0xd0] sm:$0xff] %v1996_v62  ;;  %v1999_v22 = vadd.f32 %v3373_v4, %v4671_v41  ;;  %v1990_v24 = vpop.f32.mrb[91].mxu0 }
 0x43d   :  { %2042 = vst [vmem:[%s5292_s14 + $0xc0] sm:$0xff] %v1988_v21  ;;  %v1991_v37 = vadd.f32 %v4671_v41, %v1990_v24 }
 0x43e   :  { %2045 = vst [vmem:[%s5292_s14 + $0xd8] sm:$0xff] %v1999_v22  ;;  %v2063_v38 = vpack.c.bf16 %v1999_v22, %v1996_v62 }
 0x43f   :  { %2043 = vst [vmem:[%s5292_s14 + $0xc8] sm:$0xff] %v1991_v37  ;;  %v2062_v31 = vpack.c.bf16 %v1991_v37, %v1988_v21 }
 0x441   :  { %2327 = vmatmul.mubr.bf16.gmra.mrb[144].mxu1 %v2062_v31 }
 0x442   :  { %2336 = vmatprep.mubr.bf16.mxu1 %v3809_v35 }
 0x449   :  { %v3376_v34 = vpop.f32.mrb[92].mxu0  ;;  %2337 = vmatmul.mubr.bf16.gmra.mrb[148].mxu1 %v2063_v38 }
 0x44a   :  { %v2012_v20 = vadd.f32 %v3376_v34, %v4671_v41  ;;  %v2003_v43 = vpop.f32.mrb[93].mxu0  ;;  %2346 = vmatprep.mubr.bf16.mxu1 %v3809_v35 }
 0x44b   :  { %v2004_v23 = vadd.f32 %v4671_v41, %v2003_v43  ;;  %v3377_v32 = vpop.f32.mrb[94].mxu0 }
 0x44c   :  { %2048 = vst [vmem:[%s5292_s14 + $0xf0] sm:$0xff] %v2012_v20  ;;  %v2015_v25 = vadd.f32 %v3377_v32, %v4671_v41  ;;  %v2006_v40 = vpop.f32.mrb[95].mxu0 }
 0x44d   :  { %2046 = vst [vmem:[%s5292_s14 + $0xe0] sm:$0xff] %v2004_v23  ;;  %v2007_v26 = vadd.f32 %v4671_v41, %v2006_v40  ;;  %v4916_v41 = vrot.slane %v2082_v45, %v4216_v14 }
 0x44e   :  { %2049 = vst [vmem:[%s5292_s14 + $0xf8] sm:$0xff] %v2015_v25  ;;  %v2065_v44 = vpack.c.bf16 %v2015_v25, %v2012_v20 }
 0x44f   :  { %2047 = vst [vmem:[%s5292_s14 + $0xe8] sm:$0xff] %v2007_v26  ;;  %v2064_v28 = vpack.c.bf16 %v2007_v26, %v2004_v23 }
 0x451   :  { %2347 = vmatmul.mubr.bf16.gmra.mrb[152].mxu1 %v2064_v28 }
 0x452   :  { %2356 = vmatprep.mubr.bf16.mxu1 %v3809_v35 }
 0x459   :  { %2357 = vmatmul.mubr.bf16.gmra.mrb[156].mxu1 %v2065_v44 }
 0x4b4   :  { %v2208_v29 = vpop.f32.mrb[96].mxu1 }
 0x4b5   :  { %v2209_v47 = vadd.f32 %v2208_v29, %v4916_v41  ;;  %v2210_v27 = vpop.f32.mrb[97].mxu1 }
 0x4b6   :  { %v2211_v30 = vadd.f32 %v2210_v27, %v4919_v46  ;;  %v2212_v33 = vpop.f32.mrb[98].mxu1 }
 0x4b7   :  { %v2213_v35 = vadd.f32 %v2212_v33, %v4916_v41  ;;  %v2214_v36 = vpop.f32.mrb[99].mxu1  ;;  %v2367_v48 = vmax.f32 %v2209_v47, 0.0 }
 0x4b8   :  { %v2215_v42 = vadd.f32 %v2214_v36, %v4919_v46  ;;  %v2368_v50 = vmax.f32 %v2211_v30, 0.0 }
 0x4b9   :  { %v2369_v49 = vmax.f32 %v2213_v35, 0.0 }
 0x4ba   :  { %v2370_v52 = vmax.f32 %v2215_v42, 0.0 }
 0x4bb   :  { %v2431_v39 = vpack.c.bf16 %v2369_v49, %v2367_v48 }
 0x4bc   :  { %v2432_v17 = vpack.c.bf16 %v2370_v52, %v2368_v50  ;;  %v2218_v54 = vpop.f32.mrb[100].mxu1 }
 0x4bd   :  { %v2219_v0 = vadd.f32 %v2218_v54, %v4916_v41  ;;  %v2220_v18 = vpop.f32.mrb[101].mxu1 }
 0x4be   :  { %v2221_v3 = vadd.f32 %v2220_v18, %v4919_v46  ;;  %v2222_v5 = vpop.f32.mrb[102].mxu1  ;;  %2699 = vmatprep.mubr.bf16.mxu0 %v2432_v17 }
 0x4bf   :  { %v2223_v7 = vadd.f32 %v2222_v5, %v4916_v41  ;;  %v2224_v8 = vpop.f32.mrb[103].mxu1  ;;  %2700 = vmatmul.mubr.bf16.vlgmr.msra.gmra.mrb[96].mxu0 %v2431_v39  ;;  %v2371_v2 = vmax.f32 %v2219_v0, 0.0 }
 0x4c0   :  { %v2225_v53 = vadd.f32 %v2224_v8, %v4919_v46  ;;  %v2372_v60 = vmax.f32 %v2221_v3, 0.0 }
 0x4c1   :  { %v2373_v55 = vmax.f32 %v2223_v7, 0.0 }
 0x4c2   :  { %v2374_v57 = vmax.f32 %v2225_v53, 0.0 }
 0x4c3   :  { %v2433_v9 = vpack.c.bf16 %v2373_v55, %v2371_v2 }
 0x4c4   :  { %v2434_v58 = vpack.c.bf16 %v2374_v57, %v2372_v60  ;;  %v2228_v10 = vpop.f32.mrb[104].mxu1 }
 0x4c5   :  { %v2229_v59 = vadd.f32 %v2228_v10, %v4916_v41  ;;  %v2230_v11 = vpop.f32.mrb[105].mxu1 }
 0x4c6   :  { %2709 = vmatprep.mubr.bf16.mxu0 %v2434_v58  ;;  %v2231_v56 = vadd.f32 %v2230_v11, %v4919_v46  ;;  %v2232_v6 = vpop.f32.mrb[106].mxu1 }
 0x4c7   :  { %2710 = vmatmul.mubr.bf16.gmra.mrb[100].mxu0 %v2433_v9  ;;  %v2233_v61 = vadd.f32 %v2232_v6, %v4916_v41  ;;  %v2234_v13 = vpop.f32.mrb[107].mxu1  ;;  %v2375_v12 = vmax.f32 %v2229_v59, 0.0 }
 0x4c8   :  { %v2235_v63 = vadd.f32 %v2234_v13, %v4919_v46  ;;  %v2376_v51 = vmax.f32 %v2231_v56, 0.0 }
 0x4c9   :  { %v2377_v1 = vmax.f32 %v2233_v61, 0.0 }
 0x4ca   :  { %v2378_v62 = vmax.f32 %v2235_v63, 0.0 }
 0x4cb   :  { %v2435_v15 = vpack.c.bf16 %v2377_v1, %v2375_v12 }
 0x4cc   :  { %v2436_v19 = vpack.c.bf16 %v2378_v62, %v2376_v51  ;;  %v2238_v21 = vpop.f32.mrb[108].mxu1 }
 0x4cd   :  { %v2239_v4 = vadd.f32 %v2238_v21, %v4916_v41  ;;  %v2240_v22 = vpop.f32.mrb[109].mxu1 }
 0x4ce   :  { %v2241_v24 = vadd.f32 %v2240_v22, %v4919_v46  ;;  %v2242_v37 = vpop.f32.mrb[110].mxu1  ;;  %2719 = vmatprep.mubr.bf16.mxu0 %v2436_v19 }
 0x4cf   :  { %v2243_v38 = vadd.f32 %v2242_v37, %v4916_v41  ;;  %v2244_v31 = vpop.f32.mrb[111].mxu1  ;;  %2720 = vmatmul.mubr.bf16.gmra.mrb[104].mxu0 %v2435_v15  ;;  %v2379_v20 = vmax.f32 %v2239_v4, 0.0 }
 0x4d0   :  { %v2245_v34 = vadd.f32 %v2244_v31, %v4919_v46  ;;  %v2380_v23 = vmax.f32 %v2241_v24, 0.0 }
 0x4d1   :  { %v2381_v43 = vmax.f32 %v2243_v38, 0.0 }
 0x4d2   :  { %v2382_v32 = vmax.f32 %v2245_v34, 0.0 }
 0x4d3   :  { %v2437_v25 = vpack.c.bf16 %v2381_v43, %v2379_v20 }
 0x4d4   :  { %v2438_v40 = vpack.c.bf16 %v2382_v32, %v2380_v23  ;;  %v2248_v26 = vpop.f32.mrb[112].mxu1 }
 0x4d5   :  { %v2249_v44 = vadd.f32 %v2248_v26, %v4916_v41  ;;  %v2250_v28 = vpop.f32.mrb[113].mxu1 }
 0x4d6   :  { %v2251_v45 = vadd.f32 %v2250_v28, %v4919_v46  ;;  %v2252_v29 = vpop.f32.mrb[114].mxu1  ;;  %2729 = vmatprep.mubr.bf16.mxu0 %v2438_v40 }
 0x4d7   :  { %v2253_v47 = vadd.f32 %v2252_v29, %v4916_v41  ;;  %v2254_v27 = vpop.f32.mrb[115].mxu1  ;;  %2730 = vmatmul.mubr.bf16.gmra.mrb[108].mxu0 %v2437_v25  ;;  %v2383_v33 = vmax.f32 %v2249_v44, 0.0 }
 0x4d8   :  { %v2255_v30 = vadd.f32 %v2254_v27, %v4919_v46  ;;  %v2384_v36 = vmax.f32 %v2251_v45, 0.0 }
 0x4d9   :  { %v2385_v35 = vmax.f32 %v2253_v47, 0.0 }
 0x4da   :  { %v2386_v42 = vmax.f32 %v2255_v30, 0.0 }
 0x4db   :  { %v2439_v48 = vpack.c.bf16 %v2385_v35, %v2383_v33 }
 0x4dc   :  { %v2440_v49 = vpack.c.bf16 %v2386_v42, %v2384_v36  ;;  %v2258_v50 = vpop.f32.mrb[116].mxu1 }
 0x4dd   :  { %v2259_v52 = vadd.f32 %v2258_v50, %v4916_v41  ;;  %v2260_v39 = vpop.f32.mrb[117].mxu1 }
 0x4de   :  { %v2261_v17 = vadd.f32 %v2260_v39, %v4919_v46  ;;  %v2262_v54 = vpop.f32.mrb[118].mxu1  ;;  %2739 = vmatprep.mubr.bf16.mxu0 %v2440_v49 }
 0x4df   :  { %v2263_v0 = vadd.f32 %v2262_v54, %v4916_v41  ;;  %v2264_v18 = vpop.f32.mrb[119].mxu1  ;;  %2740 = vmatmul.mubr.bf16.gmra.mrb[112].mxu0 %v2439_v48  ;;  %v2387_v5 = vmax.f32 %v2259_v52, 0.0 }
 0x4e0   :  { %v2265_v3 = vadd.f32 %v2264_v18, %v4919_v46  ;;  %v2388_v8 = vmax.f32 %v2261_v17, 0.0 }
 0x4e1   :  { %v2389_v7 = vmax.f32 %v2263_v0, 0.0 }
 0x4e2   :  { %v2390_v53 = vmax.f32 %v2265_v3, 0.0 }
 0x4e3   :  { %v2441_v2 = vpack.c.bf16 %v2389_v7, %v2387_v5 }
 0x4e4   :  { %v2442_v55 = vpack.c.bf16 %v2390_v53, %v2388_v8  ;;  %v2268_v60 = vpop.f32.mrb[120].mxu1 }
 0x4e5   :  { %v2269_v57 = vadd.f32 %v2268_v60, %v4916_v41  ;;  %v2270_v9 = vpop.f32.mrb[121].mxu1 }
 0x4e6   :  { %v2271_v58 = vadd.f32 %v2270_v9, %v4919_v46  ;;  %v2272_v10 = vpop.f32.mrb[122].mxu1  ;;  %2749 = vmatprep.mubr.bf16.mxu0 %v2442_v55 }
 0x4e7   :  { %v2273_v59 = vadd.f32 %v2272_v10, %v4916_v41  ;;  %v2274_v11 = vpop.f32.mrb[123].mxu1  ;;  %2750 = vmatmul.mubr.bf16.gmra.mrb[116].mxu0 %v2441_v2  ;;  %v2391_v6 = vmax.f32 %v2269_v57, 0.0 }
 0x4e8   :  { %v2275_v56 = vadd.f32 %v2274_v11, %v4919_v46  ;;  %v2392_v13 = vmax.f32 %v2271_v58, 0.0 }
 0x4e9   :  { %v2393_v61 = vmax.f32 %v2273_v59, 0.0 }
 0x4ea   :  { %v2394_v63 = vmax.f32 %v2275_v56, 0.0 }
 0x4eb   :  { %v2443_v12 = vpack.c.bf16 %v2393_v61, %v2391_v6 }
 0x4ec   :  { %v2444_v1 = vpack.c.bf16 %v2394_v63, %v2392_v13  ;;  %v2278_v51 = vpop.f32.mrb[124].mxu1 }
 0x4ed   :  { %v2279_v62 = vadd.f32 %v2278_v51, %v4916_v41  ;;  %v2280_v15 = vpop.f32.mrb[125].mxu1 }
 0x4ee   :  { %v2281_v19 = vadd.f32 %v2280_v15, %v4919_v46  ;;  %v2282_v21 = vpop.f32.mrb[126].mxu1  ;;  %2759 = vmatprep.mubr.bf16.mxu0 %v2444_v1 }
 0x4ef   :  { %v2283_v4 = vadd.f32 %v2282_v21, %v4916_v41  ;;  %v2284_v22 = vpop.f32.mrb[127].mxu1  ;;  %2760 = vmatmul.mubr.bf16.gmra.mrb[120].mxu0 %v2443_v12  ;;  %v2395_v37 = vmax.f32 %v2279_v62, 0.0 }
 0x4f0   :  { %v2285_v24 = vadd.f32 %v2284_v22, %v4919_v46  ;;  %v2396_v31 = vmax.f32 %v2281_v19, 0.0 }
 0x4f1   :  { %v2397_v38 = vmax.f32 %v2283_v4, 0.0 }
 0x4f2   :  { %v2398_v34 = vmax.f32 %v2285_v24, 0.0 }
 0x4f3   :  { %v2445_v20 = vpack.c.bf16 %v2397_v38, %v2395_v37 }
 0x4f4   :  { %v2446_v43 = vpack.c.bf16 %v2398_v34, %v2396_v31  ;;  %v2288_v23 = vpop.f32.mrb[128].mxu1 }
 0x4f5   :  { %v2289_v32 = vadd.f32 %v2288_v23, %v4916_v41  ;;  %v2290_v25 = vpop.f32.mrb[129].mxu1 }
 0x4f6   :  { %v2291_v40 = vadd.f32 %v2290_v25, %v4919_v46  ;;  %v2292_v26 = vpop.f32.mrb[130].mxu1  ;;  %2769 = vmatprep.mubr.bf16.mxu0 %v2446_v43 }
 0x4f7   :  { %v2293_v44 = vadd.f32 %v2292_v26, %v4916_v41  ;;  %v2294_v28 = vpop.f32.mrb[131].mxu1  ;;  %2770 = vmatmul.mubr.bf16.gmra.mrb[124].mxu0 %v2445_v20  ;;  %v2399_v29 = vmax.f32 %v2289_v32, 0.0 }
 0x4f8   :  { %v2295_v45 = vadd.f32 %v2294_v28, %v4919_v46  ;;  %v2400_v27 = vmax.f32 %v2291_v40, 0.0 }
 0x4f9   :  { %v2401_v47 = vmax.f32 %v2293_v44, 0.0 }
 0x4fa   :  { %v2402_v30 = vmax.f32 %v2295_v45, 0.0 }
 0x4fb   :  { %v2447_v33 = vpack.c.bf16 %v2401_v47, %v2399_v29 }
 0x4fc   :  { %v2448_v35 = vpack.c.bf16 %v2402_v30, %v2400_v27  ;;  %v2298_v36 = vpop.f32.mrb[132].mxu1 }
 0x4fd   :  { %v2299_v42 = vadd.f32 %v2298_v36, %v4916_v41  ;;  %v2300_v48 = vpop.f32.mrb[133].mxu1 }
 0x4fe   :  { %v2301_v49 = vadd.f32 %v2300_v48, %v4919_v46  ;;  %v2302_v50 = vpop.f32.mrb[134].mxu1  ;;  %2779 = vmatprep.mubr.bf16.mxu0 %v2448_v35 }
 0x4ff   :  { %v2303_v52 = vadd.f32 %v2302_v50, %v4916_v41  ;;  %v2304_v39 = vpop.f32.mrb[135].mxu1  ;;  %2780 = vmatmul.mubr.bf16.gmra.mrb[128].mxu0 %v2447_v33  ;;  %v2403_v54 = vmax.f32 %v2299_v42, 0.0 }
 0x500   :  { %v2305_v17 = vadd.f32 %v2304_v39, %v4919_v46  ;;  %v2404_v18 = vmax.f32 %v2301_v49, 0.0 }
 0x501   :  { %v2405_v0 = vmax.f32 %v2303_v52, 0.0 }
 0x502   :  { %v2406_v3 = vmax.f32 %v2305_v17, 0.0 }
 0x503   :  { %v2449_v5 = vpack.c.bf16 %v2405_v0, %v2403_v54 }
 0x504   :  { %v2450_v7 = vpack.c.bf16 %v2406_v3, %v2404_v18  ;;  %v2308_v8 = vpop.f32.mrb[136].mxu1 }
 0x505   :  { %v2309_v53 = vadd.f32 %v2308_v8, %v4916_v41  ;;  %v2310_v2 = vpop.f32.mrb[137].mxu1 }
 0x506   :  { %v2311_v55 = vadd.f32 %v2310_v2, %v4919_v46  ;;  %v2312_v60 = vpop.f32.mrb[138].mxu1  ;;  %2789 = vmatprep.mubr.bf16.mxu0 %v2450_v7 }
 0x507   :  { %v2313_v57 = vadd.f32 %v2312_v60, %v4916_v41  ;;  %v2314_v9 = vpop.f32.mrb[139].mxu1  ;;  %2790 = vmatmul.mubr.bf16.gmra.mrb[132].mxu0 %v2449_v5  ;;  %v2407_v10 = vmax.f32 %v2309_v53, 0.0 }
 0x508   :  { %v2315_v58 = vadd.f32 %v2314_v9, %v4919_v46  ;;  %v2408_v11 = vmax.f32 %v2311_v55, 0.0 }
 0x509   :  { %v2409_v59 = vmax.f32 %v2313_v57, 0.0 }
 0x50a   :  { %v2410_v56 = vmax.f32 %v2315_v58, 0.0 }
 0x50b   :  { %v2451_v6 = vpack.c.bf16 %v2409_v59, %v2407_v10 }
 0x50c   :  { %v2452_v61 = vpack.c.bf16 %v2410_v56, %v2408_v11  ;;  %v2318_v13 = vpop.f32.mrb[140].mxu1 }
 0x50d   :  { %v2319_v63 = vadd.f32 %v2318_v13, %v4916_v41  ;;  %v2320_v12 = vpop.f32.mrb[141].mxu1 }
 0x50e   :  { %v2321_v1 = vadd.f32 %v2320_v12, %v4919_v46  ;;  %v2322_v51 = vpop.f32.mrb[142].mxu1  ;;  %2799 = vmatprep.mubr.bf16.mxu0 %v2452_v61 }
 0x50f   :  { %v2323_v62 = vadd.f32 %v2322_v51, %v4916_v41  ;;  %v2324_v15 = vpop.f32.mrb[143].mxu1  ;;  %2800 = vmatmul.mubr.bf16.gmra.mrb[136].mxu0 %v2451_v6  ;;  %v2411_v21 = vmax.f32 %v2319_v63, 0.0 }
 0x510   :  { %v2325_v19 = vadd.f32 %v2324_v15, %v4919_v46  ;;  %v2412_v22 = vmax.f32 %v2321_v1, 0.0 }
 0x511   :  { %v2413_v4 = vmax.f32 %v2323_v62, 0.0 }
 0x512   :  { %v2414_v24 = vmax.f32 %v2325_v19, 0.0 }
 0x513   :  { %v2453_v37 = vpack.c.bf16 %v2413_v4, %v2411_v21 }
 0x514   :  { %v2454_v38 = vpack.c.bf16 %v2414_v24, %v2412_v22  ;;  %v2328_v31 = vpop.f32.mrb[144].mxu1  ;;  %v2495_v22 = vld [vmem:[%s5295_s12] sm:$0x3] }
 0x515   :  { %v2329_v34 = vadd.f32 %v2328_v31, %v4916_v41  ;;  %v2330_v20 = vpop.f32.mrb[145].mxu1  ;;  %v4989_v24 = vrot.slane %v2495_v22, %v4216_v14 }
 0x516   :  { %v2331_v43 = vadd.f32 %v2330_v20, %v4919_v46  ;;  %v2332_v23 = vpop.f32.mrb[146].mxu1  ;;  %2809 = vmatprep.mubr.bf16.mxu0 %v2454_v38 }
 0x517   :  { %v2333_v32 = vadd.f32 %v2332_v23, %v4916_v41  ;;  %v2334_v25 = vpop.f32.mrb[147].mxu1  ;;  %2810 = vmatmul.mubr.bf16.gmra.mrb[140].mxu0 %v2453_v37  ;;  %v2415_v26 = vmax.f32 %v2329_v34, 0.0 }
 0x518   :  { %v2335_v40 = vadd.f32 %v2334_v25, %v4919_v46  ;;  %v2416_v28 = vmax.f32 %v2331_v43, 0.0 }
 0x519   :  { %v2417_v44 = vmax.f32 %v2333_v32, 0.0 }
 0x51a   :  { %v2418_v45 = vmax.f32 %v2335_v40, 0.0 }
 0x51b   :  { %v2455_v29 = vpack.c.bf16 %v2417_v44, %v2415_v26 }
 0x51c   :  { %v2456_v47 = vpack.c.bf16 %v2418_v45, %v2416_v28  ;;  %v2338_v27 = vpop.f32.mrb[148].mxu1 }
 0x51d   :  { %v2339_v30 = vadd.f32 %v2338_v27, %v4916_v41  ;;  %v2340_v33 = vpop.f32.mrb[149].mxu1 }
 0x51e   :  { %v2341_v35 = vadd.f32 %v2340_v33, %v4919_v46  ;;  %v2342_v36 = vpop.f32.mrb[150].mxu1  ;;  %2819 = vmatprep.mubr.bf16.mxu0 %v2456_v47 }
 0x51f   :  { %v2343_v42 = vadd.f32 %v2342_v36, %v4916_v41  ;;  %v2344_v48 = vpop.f32.mrb[151].mxu1  ;;  %2820 = vmatmul.mubr.bf16.gmra.mrb[144].mxu0 %v2455_v29  ;;  %v2419_v50 = vmax.f32 %v2339_v30, 0.0 }
 0x520   :  { %v2345_v49 = vadd.f32 %v2344_v48, %v4919_v46  ;;  %v2420_v39 = vmax.f32 %v2341_v35, 0.0 }
 0x521   :  { %v2421_v52 = vmax.f32 %v2343_v42, 0.0 }
 0x522   :  { %v2422_v17 = vmax.f32 %v2345_v49, 0.0 }
 0x523   :  { %v2457_v54 = vpack.c.bf16 %v2421_v52, %v2419_v50 }
 0x524   :  { %v2458_v0 = vpack.c.bf16 %v2422_v17, %v2420_v39  ;;  %v2348_v18 = vpop.f32.mrb[152].mxu1 }
 0x525   :  { %v2349_v3 = vadd.f32 %v2348_v18, %v4916_v41  ;;  %v2350_v5 = vpop.f32.mrb[153].mxu1 }
 0x526   :  { %v2351_v7 = vadd.f32 %v2350_v5, %v4919_v46  ;;  %v2352_v8 = vpop.f32.mrb[154].mxu1  ;;  %2829 = vmatprep.mubr.bf16.mxu0 %v2458_v0 }
 0x527   :  { %v2353_v53 = vadd.f32 %v2352_v8, %v4916_v41  ;;  %v2354_v2 = vpop.f32.mrb[155].mxu1  ;;  %2830 = vmatmul.mubr.bf16.gmra.mrb[148].mxu0 %v2457_v54  ;;  %v2423_v60 = vmax.f32 %v2349_v3, 0.0 }
 0x528   :  { %v2355_v55 = vadd.f32 %v2354_v2, %v4919_v46  ;;  %v2424_v9 = vmax.f32 %v2351_v7, 0.0 }
 0x529   :  { %v2425_v57 = vmax.f32 %v2353_v53, 0.0 }
 0x52a   :  { %v2426_v58 = vmax.f32 %v2355_v55, 0.0 }
 0x52b   :  { %v2459_v10 = vpack.c.bf16 %v2425_v57, %v2423_v60 }
 0x52c   :  { %v2460_v59 = vpack.c.bf16 %v2426_v58, %v2424_v9  ;;  %v2358_v11 = vpop.f32.mrb[156].mxu1 }
 0x52d   :  { %v2359_v56 = vadd.f32 %v2358_v11, %v4916_v41  ;;  %v2360_v6 = vpop.f32.mrb[157].mxu1 }
 0x52e   :  { %v2361_v61 = vadd.f32 %v2360_v6, %v4919_v46  ;;  %v2362_v13 = vpop.f32.mrb[158].mxu1  ;;  %2839 = vmatprep.mubr.bf16.mxu0 %v2460_v59 }
 0x52f   :  { %v2363_v63 = vadd.f32 %v2362_v13, %v4916_v41  ;;  %v2364_v12 = vpop.f32.mrb[159].mxu1  ;;  %2840 = vmatmul.mubr.bf16.gmra.mrb[152].mxu0 %v2459_v10  ;;  %v2427_v51 = vmax.f32 %v2359_v56, 0.0  ;;  %v4992_v41 = vrot.slane %v2495_v22, %v4221_v16 }
 0x530   :  { %v2365_v1 = vadd.f32 %v2364_v12, %v4919_v46  ;;  %v2428_v15 = vmax.f32 %v2361_v61, 0.0 }
 0x531   :  { %v2429_v62 = vmax.f32 %v2363_v63, 0.0 }
 0x532   :  { %v2430_v19 = vmax.f32 %v2365_v1, 0.0 }
 0x533   :  { %v2461_v21 = vpack.c.bf16 %v2429_v62, %v2427_v51 }
 0x534   :  { %v2462_v4 = vpack.c.bf16 %v2430_v19, %v2428_v15 }
 0x536   :  { %2849 = vmatprep.mubr.bf16.mxu1 %v2462_v4 }
 0x537   :  { %2850 = vmatmul.mubr.bf16.vlgmr.msra.gmra.mrb[160].mxu1 %v2461_v21 }
 0x592   :  { %v2701_v37 = vpop.f32.mrb[96].mxu0 }
 0x593   :  { %v2702_v46 = vadd.f32 %v2701_v37, %v4989_v24  ;;  %v2703_v38 = vpop.f32.mrb[97].mxu0 }
 0x594   :  { %v2704_v31 = vadd.f32 %v2703_v38, %v4992_v41  ;;  %v2705_v34 = vpop.f32.mrb[98].mxu0 }
 0x595   :  { %v2860_v20 = vmax.f32 %v2702_v46, 0.0  ;;  %v2706_v43 = vadd.f32 %v2705_v34, %v4989_v24  ;;  %v2707_v23 = vpop.f32.mrb[99].mxu0 }
 0x596   :  { %v2861_v32 = vmax.f32 %v2704_v31, 0.0  ;;  %v2708_v25 = vadd.f32 %v2707_v23, %v4992_v41 }
 0x597   :  { %2924 = vst [vmem:[%s5296_s13] sm:$0xff] %v2860_v20  ;;  %v2862_v14 = vmax.f32 %v2706_v43, 0.0 }
 0x598   :  { %2925 = vst.msk [vmem:[%s5296_s13 + $0x8] sm:$0xff] %vm305_vm0, %v2861_v32  ;;  %v2863_v16 = vmax.f32 %v2708_v25, 0.0 }
 0x599   :  { %2926 = vst [vmem:[%s5296_s13 + $0x10] sm:$0xff] %v2862_v14 }
 0x59a   :  { %2927 = vst.msk [vmem:[%s5296_s13 + $0x18] sm:$0xff] %vm305_vm0, %v2863_v16  ;;  %v2711_v40 = vpop.f32.mrb[100].mxu0 }
 0x59b   :  { %v2712_v26 = vadd.f32 %v2711_v40, %v4989_v24  ;;  %v2713_v44 = vpop.f32.mrb[101].mxu0 }
 0x59c   :  { %v2714_v28 = vadd.f32 %v2713_v44, %v4992_v41  ;;  %v2715_v45 = vpop.f32.mrb[102].mxu0 }
 0x59d   :  { %v2864_v29 = vmax.f32 %v2712_v26, 0.0  ;;  %v2716_v47 = vadd.f32 %v2715_v45, %v4989_v24  ;;  %v2717_v27 = vpop.f32.mrb[103].mxu0 }
 0x59e   :  { %v2865_v30 = vmax.f32 %v2714_v28, 0.0  ;;  %v2718_v33 = vadd.f32 %v2717_v27, %v4992_v41 }
 0x59f   :  { %2928 = vst [vmem:[%s5296_s13 + $0x20] sm:$0xff] %v2864_v29  ;;  %v2866_v35 = vmax.f32 %v2716_v47, 0.0 }
 0x5a0   :  { %2929 = vst.msk [vmem:[%s5296_s13 + $0x28] sm:$0xff] %vm305_vm0, %v2865_v30  ;;  %v2867_v36 = vmax.f32 %v2718_v33, 0.0 }
 0x5a1   :  { %2930 = vst [vmem:[%s5296_s13 + $0x30] sm:$0xff] %v2866_v35 }
 0x5a2   :  { %2931 = vst.msk [vmem:[%s5296_s13 + $0x38] sm:$0xff] %vm305_vm0, %v2867_v36  ;;  %v2721_v42 = vpop.f32.mrb[104].mxu0 }
 0x5a3   :  { %v2722_v48 = vadd.f32 %v2721_v42, %v4989_v24  ;;  %v2723_v49 = vpop.f32.mrb[105].mxu0 }
 0x5a4   :  { %v2724_v50 = vadd.f32 %v2723_v49, %v4992_v41  ;;  %v2725_v52 = vpop.f32.mrb[106].mxu0 }
 0x5a5   :  { %v2868_v39 = vmax.f32 %v2722_v48, 0.0  ;;  %v2726_v17 = vadd.f32 %v2725_v52, %v4989_v24  ;;  %v2727_v54 = vpop.f32.mrb[107].mxu0 }
 0x5a6   :  { %v2869_v0 = vmax.f32 %v2724_v50, 0.0  ;;  %v2728_v18 = vadd.f32 %v2727_v54, %v4992_v41 }
 0x5a7   :  { %2932 = vst [vmem:[%s5296_s13 + $0x40] sm:$0xff] %v2868_v39  ;;  %v2870_v3 = vmax.f32 %v2726_v17, 0.0 }
 0x5a8   :  { %2933 = vst.msk [vmem:[%s5296_s13 + $0x48] sm:$0xff] %vm305_vm0, %v2869_v0  ;;  %v2871_v5 = vmax.f32 %v2728_v18, 0.0 }
 0x5a9   :  { %2934 = vst [vmem:[%s5296_s13 + $0x50] sm:$0xff] %v2870_v3 }
 0x5aa   :  { %2935 = vst.msk [vmem:[%s5296_s13 + $0x58] sm:$0xff] %vm305_vm0, %v2871_v5  ;;  %v2731_v7 = vpop.f32.mrb[108].mxu0 }
 0x5ab   :  { %v2732_v8 = vadd.f32 %v2731_v7, %v4989_v24  ;;  %v2733_v53 = vpop.f32.mrb[109].mxu0 }
 0x5ac   :  { %v2734_v2 = vadd.f32 %v2733_v53, %v4992_v41  ;;  %v2735_v55 = vpop.f32.mrb[110].mxu0 }
 0x5ad   :  { %v2872_v60 = vmax.f32 %v2732_v8, 0.0  ;;  %v2736_v57 = vadd.f32 %v2735_v55, %v4989_v24  ;;  %v2737_v9 = vpop.f32.mrb[111].mxu0 }
 0x5ae   :  { %v2873_v58 = vmax.f32 %v2734_v2, 0.0  ;;  %v2738_v10 = vadd.f32 %v2737_v9, %v4992_v41 }
 0x5af   :  { %2936 = vst [vmem:[%s5296_s13 + $0x60] sm:$0xff] %v2872_v60  ;;  %v2874_v59 = vmax.f32 %v2736_v57, 0.0 }
 0x5b0   :  { %2937 = vst.msk [vmem:[%s5296_s13 + $0x68] sm:$0xff] %vm305_vm0, %v2873_v58  ;;  %v2875_v11 = vmax.f32 %v2738_v10, 0.0 }
 0x5b1   :  { %2938 = vst [vmem:[%s5296_s13 + $0x70] sm:$0xff] %v2874_v59 }
 0x5b2   :  { %2939 = vst.msk [vmem:[%s5296_s13 + $0x78] sm:$0xff] %vm305_vm0, %v2875_v11  ;;  %v2741_v56 = vpop.f32.mrb[112].mxu0 }
 0x5b3   :  { %v2742_v6 = vadd.f32 %v2741_v56, %v4989_v24  ;;  %v2743_v61 = vpop.f32.mrb[113].mxu0 }
 0x5b4   :  { %v2744_v13 = vadd.f32 %v2743_v61, %v4992_v41  ;;  %v2745_v63 = vpop.f32.mrb[114].mxu0 }
 0x5b5   :  { %v2876_v12 = vmax.f32 %v2742_v6, 0.0  ;;  %v2746_v1 = vadd.f32 %v2745_v63, %v4989_v24  ;;  %v2747_v51 = vpop.f32.mrb[115].mxu0 }
 0x5b6   :  { %v2877_v62 = vmax.f32 %v2744_v13, 0.0  ;;  %v2748_v15 = vadd.f32 %v2747_v51, %v4992_v41 }
 0x5b7   :  { %2940 = vst [vmem:[%s5296_s13 + $0x80] sm:$0xff] %v2876_v12  ;;  %v2878_v19 = vmax.f32 %v2746_v1, 0.0 }
 0x5b8   :  { %2941 = vst.msk [vmem:[%s5296_s13 + $0x88] sm:$0xff] %vm305_vm0, %v2877_v62  ;;  %v2879_v21 = vmax.f32 %v2748_v15, 0.0 }
 0x5b9   :  { %2942 = vst [vmem:[%s5296_s13 + $0x90] sm:$0xff] %v2878_v19 }
 0x5ba   :  { %2943 = vst.msk [vmem:[%s5296_s13 + $0x98] sm:$0xff] %vm305_vm0, %v2879_v21  ;;  %v2751_v4 = vpop.f32.mrb[116].mxu0 }
 0x5bb   :  { %v2752_v22 = vadd.f32 %v2751_v4, %v4989_v24  ;;  %v2753_v37 = vpop.f32.mrb[117].mxu0 }
 0x5bc   :  { %v2754_v46 = vadd.f32 %v2753_v37, %v4992_v41  ;;  %v2755_v38 = vpop.f32.mrb[118].mxu0 }
 0x5bd   :  { %v2880_v31 = vmax.f32 %v2752_v22, 0.0  ;;  %v2756_v34 = vadd.f32 %v2755_v38, %v4989_v24  ;;  %v2757_v20 = vpop.f32.mrb[119].mxu0 }
 0x5be   :  { %v2881_v43 = vmax.f32 %v2754_v46, 0.0  ;;  %v2758_v23 = vadd.f32 %v2757_v20, %v4992_v41 }
 0x5bf   :  { %2944 = vst [vmem:[%s5296_s13 + $0xa0] sm:$0xff] %v2880_v31  ;;  %v2882_v32 = vmax.f32 %v2756_v34, 0.0 }
 0x5c0   :  { %2945 = vst.msk [vmem:[%s5296_s13 + $0xa8] sm:$0xff] %vm305_vm0, %v2881_v43  ;;  %v2883_v25 = vmax.f32 %v2758_v23, 0.0 }
 0x5c1   :  { %2946 = vst [vmem:[%s5296_s13 + $0xb0] sm:$0xff] %v2882_v32 }
 0x5c2   :  { %2947 = vst.msk [vmem:[%s5296_s13 + $0xb8] sm:$0xff] %vm305_vm0, %v2883_v25  ;;  %v2761_v14 = vpop.f32.mrb[120].mxu0 }
 0x5c3   :  { %v2762_v16 = vadd.f32 %v2761_v14, %v4989_v24  ;;  %v2763_v40 = vpop.f32.mrb[121].mxu0 }
 0x5c4   :  { %v2764_v26 = vadd.f32 %v2763_v40, %v4992_v41  ;;  %v2765_v44 = vpop.f32.mrb[122].mxu0 }
 0x5c5   :  { %v2884_v28 = vmax.f32 %v2762_v16, 0.0  ;;  %v2766_v45 = vadd.f32 %v2765_v44, %v4989_v24  ;;  %v2767_v29 = vpop.f32.mrb[123].mxu0 }
 0x5c6   :  { %v2885_v47 = vmax.f32 %v2764_v26, 0.0  ;;  %v2768_v27 = vadd.f32 %v2767_v29, %v4992_v41 }
 0x5c7   :  { %2948 = vst [vmem:[%s5296_s13 + $0xc0] sm:$0xff] %v2884_v28  ;;  %v2886_v30 = vmax.f32 %v2766_v45, 0.0 }
 0x5c8   :  { %2949 = vst.msk [vmem:[%s5296_s13 + $0xc8] sm:$0xff] %vm305_vm0, %v2885_v47  ;;  %v2887_v33 = vmax.f32 %v2768_v27, 0.0 }
 0x5c9   :  { %2950 = vst [vmem:[%s5296_s13 + $0xd0] sm:$0xff] %v2886_v30 }
 0x5ca   :  { %2951 = vst.msk [vmem:[%s5296_s13 + $0xd8] sm:$0xff] %vm305_vm0, %v2887_v33  ;;  %v2771_v35 = vpop.f32.mrb[124].mxu0 }
 0x5cb   :  { %v2772_v36 = vadd.f32 %v2771_v35, %v4989_v24  ;;  %v2773_v42 = vpop.f32.mrb[125].mxu0 }
 0x5cc   :  { %v2774_v48 = vadd.f32 %v2773_v42, %v4992_v41  ;;  %v2775_v49 = vpop.f32.mrb[126].mxu0 }
 0x5cd   :  { %v2888_v50 = vmax.f32 %v2772_v36, 0.0  ;;  %v2776_v52 = vadd.f32 %v2775_v49, %v4989_v24  ;;  %v2777_v39 = vpop.f32.mrb[127].mxu0 }
 0x5ce   :  { %v2889_v17 = vmax.f32 %v2774_v48, 0.0  ;;  %v2778_v54 = vadd.f32 %v2777_v39, %v4992_v41 }
 0x5cf   :  { %2952 = vst [vmem:[%s5296_s13 + $0xe0] sm:$0xff] %v2888_v50  ;;  %v2890_v0 = vmax.f32 %v2776_v52, 0.0 }
 0x5d0   :  { %2953 = vst.msk [vmem:[%s5296_s13 + $0xe8] sm:$0xff] %vm305_vm0, %v2889_v17  ;;  %v2891_v18 = vmax.f32 %v2778_v54, 0.0 }
 0x5d1   :  { %2954 = vst [vmem:[%s5296_s13 + $0xf0] sm:$0xff] %v2890_v0 }
 0x5d2   :  { %2955 = vst.msk [vmem:[%s5296_s13 + $0xf8] sm:$0xff] %vm305_vm0, %v2891_v18  ;;  %v2781_v3 = vpop.f32.mrb[128].mxu0 }
 0x5d3   :  { %v2782_v5 = vadd.f32 %v2781_v3, %v4989_v24  ;;  %v2783_v7 = vpop.f32.mrb[129].mxu0 }
 0x5d4   :  { %v2784_v8 = vadd.f32 %v2783_v7, %v4992_v41  ;;  %v2785_v53 = vpop.f32.mrb[130].mxu0 }
 0x5d5   :  { %v2892_v2 = vmax.f32 %v2782_v5, 0.0  ;;  %v2786_v55 = vadd.f32 %v2785_v53, %v4989_v24  ;;  %v2787_v60 = vpop.f32.mrb[131].mxu0 }
 0x5d6   :  { %v2893_v57 = vmax.f32 %v2784_v8, 0.0  ;;  %v2788_v9 = vadd.f32 %v2787_v60, %v4992_v41 }
 0x5d7   :  { %2956 = vst [vmem:[%s5296_s13 + $0x100] sm:$0xff] %v2892_v2  ;;  %v2894_v58 = vmax.f32 %v2786_v55, 0.0 }
 0x5d8   :  { %2957 = vst.msk [vmem:[%s5296_s13 + $0x108] sm:$0xff] %vm305_vm0, %v2893_v57  ;;  %v2895_v10 = vmax.f32 %v2788_v9, 0.0 }
 0x5d9   :  { %2958 = vst [vmem:[%s5296_s13 + $0x110] sm:$0xff] %v2894_v58 }
 0x5da   :  { %2959 = vst.msk [vmem:[%s5296_s13 + $0x118] sm:$0xff] %vm305_vm0, %v2895_v10  ;;  %v2791_v59 = vpop.f32.mrb[132].mxu0 }
 0x5db   :  { %v2792_v11 = vadd.f32 %v2791_v59, %v4989_v24  ;;  %v2793_v56 = vpop.f32.mrb[133].mxu0 }
 0x5dc   :  { %v2794_v6 = vadd.f32 %v2793_v56, %v4992_v41  ;;  %v2795_v61 = vpop.f32.mrb[134].mxu0 }
 0x5dd   :  { %v2896_v13 = vmax.f32 %v2792_v11, 0.0  ;;  %v2796_v63 = vadd.f32 %v2795_v61, %v4989_v24  ;;  %v2797_v12 = vpop.f32.mrb[135].mxu0 }
 0x5de   :  { %v2897_v1 = vmax.f32 %v2794_v6, 0.0  ;;  %v2798_v51 = vadd.f32 %v2797_v12, %v4992_v41 }
 0x5df   :  { %2960 = vst [vmem:[%s5296_s13 + $0x120] sm:$0xff] %v2896_v13  ;;  %v2898_v62 = vmax.f32 %v2796_v63, 0.0 }
 0x5e0   :  { %2961 = vst.msk [vmem:[%s5296_s13 + $0x128] sm:$0xff] %vm305_vm0, %v2897_v1  ;;  %v2899_v15 = vmax.f32 %v2798_v51, 0.0 }
 0x5e1   :  { %2962 = vst [vmem:[%s5296_s13 + $0x130] sm:$0xff] %v2898_v62 }
 0x5e2   :  { %2963 = vst.msk [vmem:[%s5296_s13 + $0x138] sm:$0xff] %vm305_vm0, %v2899_v15  ;;  %v2801_v19 = vpop.f32.mrb[136].mxu0 }
 0x5e3   :  { %v2802_v21 = vadd.f32 %v2801_v19, %v4989_v24  ;;  %v2803_v4 = vpop.f32.mrb[137].mxu0 }
 0x5e4   :  { %v2804_v22 = vadd.f32 %v2803_v4, %v4992_v41  ;;  %v2805_v37 = vpop.f32.mrb[138].mxu0 }
 0x5e5   :  { %v2900_v46 = vmax.f32 %v2802_v21, 0.0  ;;  %v2806_v38 = vadd.f32 %v2805_v37, %v4989_v24  ;;  %v2807_v31 = vpop.f32.mrb[139].mxu0 }
 0x5e6   :  { %v2901_v34 = vmax.f32 %v2804_v22, 0.0  ;;  %v2808_v20 = vadd.f32 %v2807_v31, %v4992_v41 }
 0x5e7   :  { %2964 = vst [vmem:[%s5296_s13 + $0x140] sm:$0xff] %v2900_v46  ;;  %v2902_v43 = vmax.f32 %v2806_v38, 0.0 }
 0x5e8   :  { %2965 = vst.msk [vmem:[%s5296_s13 + $0x148] sm:$0xff] %vm305_vm0, %v2901_v34  ;;  %v2903_v23 = vmax.f32 %v2808_v20, 0.0 }
 0x5e9   :  { %2966 = vst [vmem:[%s5296_s13 + $0x150] sm:$0xff] %v2902_v43 }
 0x5ea   :  { %2967 = vst.msk [vmem:[%s5296_s13 + $0x158] sm:$0xff] %vm305_vm0, %v2903_v23  ;;  %v2811_v32 = vpop.f32.mrb[140].mxu0 }
 0x5eb   :  { %v2812_v25 = vadd.f32 %v2811_v32, %v4989_v24  ;;  %v2813_v14 = vpop.f32.mrb[141].mxu0 }
 0x5ec   :  { %v2814_v16 = vadd.f32 %v2813_v14, %v4992_v41  ;;  %v2815_v40 = vpop.f32.mrb[142].mxu0 }
 0x5ed   :  { %v2904_v26 = vmax.f32 %v2812_v25, 0.0  ;;  %v2816_v44 = vadd.f32 %v2815_v40, %v4989_v24  ;;  %v2817_v28 = vpop.f32.mrb[143].mxu0 }
 0x5ee   :  { %v2905_v45 = vmax.f32 %v2814_v16, 0.0  ;;  %v2818_v29 = vadd.f32 %v2817_v28, %v4992_v41 }
 0x5ef   :  { %2968 = vst [vmem:[%s5296_s13 + $0x160] sm:$0xff] %v2904_v26  ;;  %v2906_v47 = vmax.f32 %v2816_v44, 0.0 }
 0x5f0   :  { %2969 = vst.msk [vmem:[%s5296_s13 + $0x168] sm:$0xff] %vm305_vm0, %v2905_v45  ;;  %v2907_v27 = vmax.f32 %v2818_v29, 0.0 }
 0x5f1   :  { %2970 = vst [vmem:[%s5296_s13 + $0x170] sm:$0xff] %v2906_v47 }
 0x5f2   :  { %2971 = vst.msk [vmem:[%s5296_s13 + $0x178] sm:$0xff] %vm305_vm0, %v2907_v27  ;;  %v2821_v30 = vpop.f32.mrb[144].mxu0 }
 0x5f3   :  { %v2822_v33 = vadd.f32 %v2821_v30, %v4989_v24  ;;  %v2823_v35 = vpop.f32.mrb[145].mxu0 }
 0x5f4   :  { %v2824_v36 = vadd.f32 %v2823_v35, %v4992_v41  ;;  %v2825_v42 = vpop.f32.mrb[146].mxu0 }
 0x5f5   :  { %v2908_v48 = vmax.f32 %v2822_v33, 0.0  ;;  %v2826_v49 = vadd.f32 %v2825_v42, %v4989_v24  ;;  %v2827_v50 = vpop.f32.mrb[147].mxu0 }
 0x5f6   :  { %v2909_v52 = vmax.f32 %v2824_v36, 0.0  ;;  %v2828_v39 = vadd.f32 %v2827_v50, %v4992_v41 }
 0x5f7   :  { %2972 = vst [vmem:[%s5296_s13 + $0x180] sm:$0xff] %v2908_v48  ;;  %v2910_v17 = vmax.f32 %v2826_v49, 0.0 }
 0x5f8   :  { %2973 = vst.msk [vmem:[%s5296_s13 + $0x188] sm:$0xff] %vm305_vm0, %v2909_v52  ;;  %v2911_v54 = vmax.f32 %v2828_v39, 0.0 }
 0x5f9   :  { %2974 = vst [vmem:[%s5296_s13 + $0x190] sm:$0xff] %v2910_v17 }
 0x5fa   :  { %2975 = vst.msk [vmem:[%s5296_s13 + $0x198] sm:$0xff] %vm305_vm0, %v2911_v54  ;;  %v2831_v0 = vpop.f32.mrb[148].mxu0 }
 0x5fb   :  { %v2832_v18 = vadd.f32 %v2831_v0, %v4989_v24  ;;  %v2833_v3 = vpop.f32.mrb[149].mxu0 }
 0x5fc   :  { %v2834_v5 = vadd.f32 %v2833_v3, %v4992_v41  ;;  %v2835_v7 = vpop.f32.mrb[150].mxu0 }
 0x5fd   :  { %v2912_v8 = vmax.f32 %v2832_v18, 0.0  ;;  %v2836_v53 = vadd.f32 %v2835_v7, %v4989_v24  ;;  %v2837_v2 = vpop.f32.mrb[151].mxu0 }
 0x5fe   :  { %v2913_v55 = vmax.f32 %v2834_v5, 0.0  ;;  %v2838_v60 = vadd.f32 %v2837_v2, %v4992_v41 }
 0x5ff   :  { %2976 = vst [vmem:[%s5296_s13 + $0x1a0] sm:$0xff] %v2912_v8  ;;  %v2914_v57 = vmax.f32 %v2836_v53, 0.0 }
 0x600   :  { %2977 = vst.msk [vmem:[%s5296_s13 + $0x1a8] sm:$0xff] %vm305_vm0, %v2913_v55  ;;  %v2915_v9 = vmax.f32 %v2838_v60, 0.0 }
 0x601   :  { %2978 = vst [vmem:[%s5296_s13 + $0x1b0] sm:$0xff] %v2914_v57 }
 0x602   :  { %2979 = vst.msk [vmem:[%s5296_s13 + $0x1b8] sm:$0xff] %vm305_vm0, %v2915_v9  ;;  %v2841_v58 = vpop.f32.mrb[152].mxu0 }
 0x603   :  { %v2842_v10 = vadd.f32 %v2841_v58, %v4989_v24  ;;  %v2843_v59 = vpop.f32.mrb[153].mxu0 }
 0x604   :  { %v2844_v11 = vadd.f32 %v2843_v59, %v4992_v41  ;;  %v2845_v56 = vpop.f32.mrb[154].mxu0 }
 0x605   :  { %v2916_v6 = vmax.f32 %v2842_v10, 0.0  ;;  %v2846_v61 = vadd.f32 %v2845_v56, %v4989_v24  ;;  %v2847_v13 = vpop.f32.mrb[155].mxu0 }
 0x606   :  { %v2917_v63 = vmax.f32 %v2844_v11, 0.0  ;;  %v2848_v12 = vadd.f32 %v2847_v13, %v4992_v41 }
 0x607   :  { %2980 = vst [vmem:[%s5296_s13 + $0x1c0] sm:$0xff] %v2916_v6  ;;  %v2918_v1 = vmax.f32 %v2846_v61, 0.0 }
 0x608   :  { %2981 = vst.msk [vmem:[%s5296_s13 + $0x1c8] sm:$0xff] %vm305_vm0, %v2917_v63  ;;  %v2919_v51 = vmax.f32 %v2848_v12, 0.0 }
 0x609   :  { %2982 = vst [vmem:[%s5296_s13 + $0x1d0] sm:$0xff] %v2918_v1 }
 0x60a   :  { %2983 = vst.msk [vmem:[%s5296_s13 + $0x1d8] sm:$0xff] %vm305_vm0, %v2919_v51  ;;  %v2851_v62 = vpop.f32.mrb[160].mxu1 }
 0x60b   :  { %v2852_v15 = vadd.f32 %v2851_v62, %v4989_v24  ;;  %v2853_v19 = vpop.f32.mrb[161].mxu1 }
 0x60c   :  { %v2854_v21 = vadd.f32 %v2853_v19, %v4992_v41  ;;  %v2855_v4 = vpop.f32.mrb[162].mxu1 }
 0x60d   :  { %v2920_v22 = vmax.f32 %v2852_v15, 0.0  ;;  %v2856_v37 = vadd.f32 %v2855_v4, %v4989_v24  ;;  %v2857_v46 = vpop.f32.mrb[163].mxu1 }
 0x60e   :  { %v2921_v38 = vmax.f32 %v2854_v21, 0.0  ;;  %v2858_v31 = vadd.f32 %v2857_v46, %v4992_v41 }
 0x60f   :  { %2984 = vst [vmem:[%s5296_s13 + $0x1e0] sm:$0xff] %v2920_v22  ;;  %v2922_v34 = vmax.f32 %v2856_v37, 0.0 }
 0x610   :  { %2985 = vst.msk [vmem:[%s5296_s13 + $0x1e8] sm:$0xff] %vm305_vm0, %v2921_v38  ;;  %v2923_v20 = vmax.f32 %v2858_v31, 0.0 }
 0x611   :  { %2986 = vst [vmem:[%s5296_s13 + $0x1f0] sm:$0xff] %v2922_v34 }
 0x612   :  { %2987 = vst.msk [vmem:[%s5296_s13 + $0x1f8] sm:$0xff] %vm305_vm0, %v2923_v20 }

// kernel: jae_forward.1
= control target key start
LH: loop header
LB: loop body
LE: loop exit
PB: predicated region body
PF: predicated region fallthrough
CT: control target
= control target key end

     0   :  { %vm305_vm0 = vcmask 588800   ;;  %vm354_vm1 = vcmask 1043456   ;;  %s5282_s1 = inlined_call_operand.vmem [shape: bf16[200,256], index: 1, kind: input, shape index: {}]   ;;  %s5283_s0 = inlined_call_operand.vmem [shape: f32[256,200], index: 0, kind: input, shape index: {}]   ;;  %s5284_s3 = inlined_call_operand.vmem [shape: bf16[256,128], index: 3, kind: input, shape index: {}]   ;;  %s5285_s2 = inlined_call_operand.vmem [shape: f32[1,256], index: 2, kind: input, shape index: {}]   ;;  %s5286_s5 = inlined_call_operand.vmem [shape: bf16[128,128], index: 5, kind: input, shape index: {}]   ;;  %s5287_s4 = inlined_call_operand.vmem [shape: f32[1,128], index: 4, kind: input, shape index: {}]   ;;  %s5288_s7 = inlined_call_operand.vmem [shape: bf16[128,128], index: 7, kind: input, shape index: {}]   ;;  %s5289_s6 = inlined_call_operand.vmem [shape: f32[1,128], index: 6, kind: input, shape index: {}]   ;;  %s5290_s9 = inlined_call_operand.vmem [shape: bf16[128,256], index: 9, kind: input, shape index: {}]   ;;  %s5291_s8 = inlined_call_operand.vmem [shape: f32[1,128], index: 8, kind: input, shape index: {}]   ;;  %s5292_s14 = inlined_call_operand.vmem [shape: f32[256,128], index: 14, kind: output, shape index: {1}]   ;;  %s5293_s11 = inlined_call_operand.vmem [shape: bf16[256,200], index: 11, kind: input, shape index: {}]   ;;  %s5294_s10 = inlined_call_operand.vmem [shape: f32[1,256], index: 10, kind: input, shape index: {}]   ;;  %s5295_s12 = inlined_call_operand.vmem [shape: f32[1,200], index: 12, kind: input, shape index: {}]   ;;  %s5296_s13 = inlined_call_operand.vmem [shape: f32[256,200], index: 13, kind: output, shape index: {0}]  }
   0x1   :  { %v3411_v0 = vld [vmem:[%s5282_s1 + $0x4] ss:$8 sps:$4 sm:$0xff]   ;;  %v3413_v1 = vld [vmem:[%s5282_s1] ss:$8 sps:$4 sm:$0xff]   ;;  %v3414_v2 = vld [vmem:[%s5282_s1 + $0x14] ss:$8 sps:$4 sm:$0xff]  }
   0x2   :  { %361 = vmatprep.subr.bf16.mxu0 %v3411_v0  ;;  %v3416_v3 = vld [vmem:[%s5282_s1 + $0x10] ss:$8 sps:$4 sm:$0xff]   ;;  %v3417_v4 = vld [vmem:[%s5282_s1 + $0x24] ss:$8 sps:$4 sm:$0xff]   ;;  %v3419_v5 = vld [vmem:[%s5282_s1 + $0x20] ss:$8 sps:$4 sm:$0xff]  }
   0x3   :  { %362 = vmatpush1.bf16.msra.mxu0 %v3413_v1  ;;  %v3420_v6 = vld [vmem:[%s5282_s1 + $0x34] ss:$8 sps:$4 sm:$0xff]   ;;  %v3422_v7 = vld [vmem:[%s5282_s1 + $0x30] ss:$8 sps:$4 sm:$0xff]   ;;  %v3423_v8 = vld [vmem:[%s5282_s1 + $0x44] ss:$8 sps:$4 sm:$0xff]  }
   0x4   :  { %363 = vmatprep.subr.bf16.mxu0 %v3414_v2  ;;  %v3425_v9 = vld [vmem:[%s5282_s1 + $0x40] ss:$8 sps:$4 sm:$0xff]   ;;  %v3426_v10 = vld [vmem:[%s5282_s1 + $0x54] ss:$8 sps:$4 sm:$0xff]   ;;  %v3428_v14 = vld [vmem:[%s5282_s1 + $0x50] ss:$8 sps:$4 sm:$0xff]  }
   0x5   :  { %v48_v11 = vld [vmem:[%s5283_s0 + $0x8] sm:$0xff]  ;;  %v50_v12 = vld [vmem:[%s5283_s0 + $0x18] sm:$0xff]  ;;  %v167_v26 = vld [vmem:[%s5282_s1 + $0xc0] sm:$0xff] }
   0x6   :  { %v112_v13 = vpack.c.bf16 %v50_v12, %v48_v11  ;;  %v3429_v15 = vld [vmem:[%s5282_s1 + $0x64] ss:$8 sps:$4 sm:$0xff]   ;;  %v3431_v16 = vld [vmem:[%s5282_s1 + $0x60] ss:$8 sps:$4 sm:$0xff]   ;;  %v3432_v17 = vld [vmem:[%s5282_s1 + $0x74] ss:$8 sps:$4 sm:$0xff]   ;;  %v3021_v28 = vcombine.high %v167_v26, %v167_v26  ;;  %v3020_v29 = vcombine.low %v167_v26, %v167_v26 }
   0x7   :  { %364 = vmatpush1.bf16.msra.mxu0 %v3416_v3  ;;  %v3434_v18 = vld [vmem:[%s5282_s1 + $0x70] ss:$8 sps:$4 sm:$0xff]   ;;  %v3435_v19 = vld [vmem:[%s5282_s1 + $0x84] ss:$8 sps:$4 sm:$0xff]   ;;  %v3437_v20 = vld [vmem:[%s5282_s1 + $0x80] ss:$8 sps:$4 sm:$0xff]  }
   0x8   :  { %365 = vmatprep.subr.bf16.mxu0 %v3417_v4  ;;  %3023 = vmatprep.mubr.msk.bf16.mxu0 %vm305_vm0, %v112_v13  ;;  %v3438_v21 = vld [vmem:[%s5282_s1 + $0x94] ss:$8 sps:$4 sm:$0xff]   ;;  %v3440_v22 = vld [vmem:[%s5282_s1 + $0x90] ss:$8 sps:$4 sm:$0xff]   ;;  %v3441_v23 = vld [vmem:[%s5282_s1 + $0xa4] ss:$8 sps:$4 sm:$0xff]  }
   0x9   :  { %v3443_v24 = vld [vmem:[%s5282_s1 + $0xa0] ss:$8 sps:$4 sm:$0xff]   ;;  %v3444_v25 = vld [vmem:[%s5282_s1 + $0xb4] ss:$8 sps:$4 sm:$0xff]   ;;  %v3446_v27 = vld [vmem:[%s5282_s1 + $0xb0] ss:$8 sps:$4 sm:$0xff]  }
   0xa   :  { %v47_v30 = vld [vmem:[%s5283_s0] sm:$0xff]  ;;  %v49_v31 = vld [vmem:[%s5283_s0 + $0x10] sm:$0xff]  ;;  %v52_v32 = vld [vmem:[%s5283_s0 + $0x28] sm:$0xff]  ;;  %v356_v35 = vsel %vm354_vm1, %v3020_v29, 0 }
   0xb   :  { %366 = vmatpush1.bf16.msra.mxu0 %v3419_v5  ;;  %v54_v33 = vld [vmem:[%s5283_s0 + $0x38] sm:$0xff]  ;;  %v3449_v34 = vld [vmem:[%s5284_s3 + $0x40] sm:$0xff]   ;;  %v3451_v37 = vld [vmem:[%s5284_s3 + $0x48] sm:$0xff]   ;;  %v111_v38 = vpack.c.bf16 %v49_v31, %v47_v30 }
   0xc   :  { %367 = vmatprep.subr.bf16.mxu0 %v3420_v6  ;;  %v3450_v36 = vld [vmem:[%s5284_s3] sm:$0xff]   ;;  %3122 = vmatprep.subr.bf16.mxu1 %v3449_v34  ;;  %v3452_v39 = vld [vmem:[%s5284_s3 + $0x8] sm:$0xff]   ;;  %v114_v40 = vpack.c.bf16 %v54_v33, %v52_v32  ;;  %v53_v42 = vld [vmem:[%s5283_s0 + $0x30] sm:$0xff] }
   0xd   :  { %3123 = vmatpush3.bf16.msra.mxu1 %v3450_v36  ;;  %v51_v41 = vld [vmem:[%s5283_s0 + $0x20] sm:$0xff]  ;;  %v56_v43 = vld [vmem:[%s5283_s0 + $0x48] sm:$0xff]  ;;  %v58_v44 = vld [vmem:[%s5283_s0 + $0x58] sm:$0xff] }
   0xe   :  { %3124 = vmatprep.subr.bf16.mxu1 %v3451_v37  ;;  %v113_v45 = vpack.c.bf16 %v53_v42, %v51_v41  ;;  %v116_v46 = vpack.c.bf16 %v58_v44, %v56_v43  ;;  %v55_v47 = vld [vmem:[%s5283_s0 + $0x40] sm:$0xff]  ;;  %v57_v48 = vld [vmem:[%s5283_s0 + $0x50] sm:$0xff]  ;;  %v60_v49 = vld [vmem:[%s5283_s0 + $0x68] sm:$0xff] }
   0xf   :  { %368 = vmatpush1.bf16.msra.mxu0 %v3422_v7  ;;  %v62_v50 = vld [vmem:[%s5283_s0 + $0x78] sm:$0xff]  ;;  %v115_v51 = vpack.c.bf16 %v57_v48, %v55_v47  ;;  %v59_v53 = vld [vmem:[%s5283_s0 + $0x60] sm:$0xff]  ;;  %v61_v54 = vld [vmem:[%s5283_s0 + $0x70] sm:$0xff] }
  0x10   :  { %369 = vmatprep.subr.bf16.mxu0 %v3423_v8  ;;  %v118_v52 = vpack.c.bf16 %v62_v50, %v60_v49  ;;  %v64_v55 = vld [vmem:[%s5283_s0 + $0x88] sm:$0xff]  ;;  %v66_v56 = vld [vmem:[%s5283_s0 + $0x98] sm:$0xff]  ;;  %v117_v57 = vpack.c.bf16 %v61_v54, %v59_v53  ;;  %v63_v59 = vld [vmem:[%s5283_s0 + $0x80] sm:$0xff] }
  0x11   :  { %3125 = vmatpush3.bf16.msra.mxu1 %v3452_v39  ;;  %v120_v58 = vpack.c.bf16 %v66_v56, %v64_v55  ;;  %v65_v60 = vld [vmem:[%s5283_s0 + $0x90] sm:$0xff]  ;;  %v68_v61 = vld [vmem:[%s5283_s0 + $0xa8] sm:$0xff]  ;;  %v70_v62 = vld [vmem:[%s5283_s0 + $0xb8] sm:$0xff] }
  0x12   :  { %v119_v63 = vpack.c.bf16 %v65_v60, %v63_v59  ;;  %v122_v0 = vpack.c.bf16 %v70_v62, %v68_v61  ;;  %v67_v1 = vld [vmem:[%s5283_s0 + $0xa0] sm:$0xff]  ;;  %v69_v2 = vld [vmem:[%s5283_s0 + $0xb0] sm:$0xff]  ;;  %v72_v3 = vld [vmem:[%s5283_s0 + $0xc8] sm:$0xff] }
  0x13   :  { %370 = vmatpush1.bf16.msra.mxu0 %v3425_v9  ;;  %v74_v4 = vld [vmem:[%s5283_s0 + $0xd8] sm:$0xff]  ;;  %v121_v5 = vpack.c.bf16 %v69_v2, %v67_v1  ;;  %v71_v7 = vld [vmem:[%s5283_s0 + $0xc0] sm:$0xff]  ;;  %v73_v8 = vld [vmem:[%s5283_s0 + $0xd0] sm:$0xff] }
  0x14   :  { %371 = vmatprep.subr.bf16.mxu0 %v3426_v10  ;;  %v124_v6 = vpack.c.bf16 %v74_v4, %v72_v3  ;;  %v76_v9 = vld [vmem:[%s5283_s0 + $0xe8] sm:$0xff]  ;;  %v78_v10 = vld [vmem:[%s5283_s0 + $0xf8] sm:$0xff]  ;;  %v123_v11 = vpack.c.bf16 %v73_v8, %v71_v7  ;;  %v75_v13 = vld [vmem:[%s5283_s0 + $0xe0] sm:$0xff] }
  0x15   :  { %v126_v12 = vpack.c.bf16 %v78_v10, %v76_v9  ;;  %v85_v26 = vld [vmem:[%s5283_s0 + $0x130] sm:$0xff]  ;;  %v87_v31 = vld [vmem:[%s5283_s0 + $0x140] sm:$0xff]  ;;  %v92_v33 = vld [vmem:[%s5283_s0 + $0x168] sm:$0xff] }
  0x16   :  { %v89_v32 = vld [vmem:[%s5283_s0 + $0x150] sm:$0xff]  ;;  %v94_v34 = vld [vmem:[%s5283_s0 + $0x178] sm:$0xff]  ;;  %v91_v37 = vld [vmem:[%s5283_s0 + $0x160] sm:$0xff] }
  0x17   :  { %372 = vmatpush1.bf16.msra.mxu0 %v3428_v14  ;;  %v77_v14 = vld [vmem:[%s5283_s0 + $0xf0] sm:$0xff]  ;;  %v134_v36 = vpack.c.bf16 %v94_v34, %v92_v33  ;;  %v96_v39 = vld [vmem:[%s5283_s0 + $0x188] sm:$0xff]  ;;  %v95_v47 = vld [vmem:[%s5283_s0 + $0x180] sm:$0xff] }
  0x18   :  { %373 = vmatprep.subr.bf16.mxu0 %v3429_v15  ;;  %v80_v15 = vld [vmem:[%s5283_s0 + $0x108] sm:$0xff]  ;;  %v3453_v41 = vld [vmem:[%s5284_s3 + $0x50] sm:$0xff]   ;;  %v102_v50 = vld [vmem:[%s5283_s0 + $0x1b8] sm:$0xff] }
  0x19   :  { %v3454_v43 = vld [vmem:[%s5284_s3 + $0x10] sm:$0xff]   ;;  %3126 = vmatprep.subr.bf16.mxu1 %v3453_v41  ;;  %v100_v49 = vld [vmem:[%s5283_s0 + $0x1a8] sm:$0xff]  ;;  %v3458_v53 = vld [vmem:[%s5284_s3 + $0x20] sm:$0xff]  }
  0x1a   :  { %3127 = vmatpush3.bf16.msra.mxu1 %v3454_v43  ;;  %v97_v48 = vld [vmem:[%s5283_s0 + $0x190] sm:$0xff]  ;;  %v138_v54 = vpack.c.bf16 %v102_v50, %v100_v49  ;;  %v3459_v55 = vld [vmem:[%s5284_s3 + $0x68] sm:$0xff]   ;;  %v106_v60 = vld [vmem:[%s5283_s0 + $0x1d8] sm:$0xff] }
  0x1b   :  { %374 = vmatpush1.bf16.msra.mxu0 %v3431_v16  ;;  %v82_v16 = vld [vmem:[%s5283_s0 + $0x118] sm:$0xff]  ;;  %v3460_v56 = vld [vmem:[%s5284_s3 + $0x28] sm:$0xff]   ;;  %v3461_v61 = vld [vmem:[%s5284_s3 + $0x70] sm:$0xff]  }
  0x1c   :  { %375 = vmatprep.subr.bf16.mxu0 %v3432_v17  ;;  %v125_v17 = vpack.c.bf16 %v77_v14, %v75_v13  ;;  %v104_v59 = vld [vmem:[%s5283_s0 + $0x1c8] sm:$0xff]  ;;  %v3463_v1 = vld [vmem:[%s5284_s3 + $0x78] sm:$0xff]   ;;  %v103_v3 = vld [vmem:[%s5283_s0 + $0x1c0] sm:$0xff] }
  0x1d   :  { %v3464_v2 = vld [vmem:[%s5284_s3 + $0x38] sm:$0xff]   ;;  %v105_v4 = vld [vmem:[%s5283_s0 + $0x1d0] sm:$0xff]  ;;  %v107_v9 = vld [vmem:[%s5283_s0 + $0x1e0] sm:$0xff] }
  0x1e   :  { %v139_v7 = vpack.c.bf16 %v105_v4, %v103_v3  ;;  %v109_v10 = vld [vmem:[%s5283_s0 + $0x1f0] sm:$0xff] }
  0x1f   :  { %376 = vmatpush1.bf16.msra.mxu0 %v3434_v18  ;;  %v128_v18 = vpack.c.bf16 %v82_v16, %v80_v15  ;;  %v168_v15 = vld [vmem:[%s5285_s2] sm:$0x3] }
  0x20   :  { %377 = vmatprep.subr.bf16.mxu0 %v3435_v19  ;;  %v79_v19 = vld [vmem:[%s5283_s0 + $0x100] sm:$0xff] }
  0x23   :  { %378 = vmatpush1.bf16.msra.mxu0 %v3437_v20  ;;  %v81_v20 = vld [vmem:[%s5283_s0 + $0x110] sm:$0xff] }
  0x24   :  { %379 = vmatprep.subr.bf16.mxu0 %v3438_v21  ;;  %v84_v21 = vld [vmem:[%s5283_s0 + $0x128] sm:$0xff] }
  0x27   :  { %380 = vmatpush1.bf16.msra.mxu0 %v3440_v22  ;;  %v86_v22 = vld [vmem:[%s5283_s0 + $0x138] sm:$0xff] }
  0x28   :  { %381 = vmatprep.subr.bf16.mxu0 %v3441_v23  ;;  %v127_v23 = vpack.c.bf16 %v81_v20, %v79_v19 }
  0x2b   :  { %382 = vmatpush1.bf16.msra.mxu0 %v3443_v24  ;;  %v130_v24 = vpack.c.bf16 %v86_v22, %v84_v21 }
  0x2c   :  { %383 = vmatprep.subr.bf16.mxu0 %v3444_v25  ;;  %v83_v25 = vld [vmem:[%s5283_s0 + $0x120] sm:$0xff] }
  0x2d   :  { %v129_v29 = vpack.c.bf16 %v85_v26, %v83_v25 }
  0x2f   :  { %384 = vmatpush1.bf16.msra.mxu0 %v3446_v27  ;;  %v88_v27 = vld [vmem:[%s5283_s0 + $0x148] sm:$0xff] }
  0x30   :  { %3022 = vmatprep.subr.msk.bf16.mxu0 %vm354_vm1, %v3021_v28  ;;  %v90_v28 = vld [vmem:[%s5283_s0 + $0x158] sm:$0xff] }
  0x31   :  { %v132_v30 = vpack.c.bf16 %v90_v28, %v88_v27 }
  0x33   :  { %386 = vmatpush1.bf16.msra.mxu0 %v356_v35  ;;  %v131_v35 = vpack.c.bf16 %v89_v32, %v87_v31 }
  0x36   :  { %394 = vmatmul.mubr.bf16.vlgmr.msra.gmra.mrb[0].mxu0 %v111_v38  ;;  %v93_v38 = vld [vmem:[%s5283_s0 + $0x170] sm:$0xff] }
  0x37   :  { %3024 = vmatprep.mubr.msk.bf16.mxu0 %vm305_vm0, %v114_v40  ;;  %v98_v40 = vld [vmem:[%s5283_s0 + $0x198] sm:$0xff]  ;;  %v133_v42 = vpack.c.bf16 %v93_v38, %v91_v37 }
  0x38   :  { %v136_v44 = vpack.c.bf16 %v98_v40, %v96_v39 }
  0x3e   :  { %404 = vmatmul.mubr.bf16.gmra.mrb[4].mxu0 %v113_v45  ;;  %v3455_v45 = vld [vmem:[%s5284_s3 + $0x58] sm:$0xff]  }
  0x3f   :  { %3025 = vmatprep.mubr.msk.bf16.mxu0 %vm305_vm0, %v116_v46  ;;  %v3456_v46 = vld [vmem:[%s5284_s3 + $0x18] sm:$0xff]   ;;  %3128 = vmatprep.subr.bf16.mxu1 %v3455_v45 }
  0x40   :  { %3129 = vmatpush3.bf16.msra.mxu1 %v3456_v46  ;;  %v3465_v46 = vld [vmem:[%s5286_s5] sm:$0xff]  }
  0x46   :  { %414 = vmatmul.mubr.bf16.gmra.mrb[8].mxu0 %v115_v51  ;;  %v3457_v51 = vld [vmem:[%s5284_s3 + $0x60] sm:$0xff]  }
  0x47   :  { %3026 = vmatprep.mubr.msk.bf16.mxu0 %vm305_vm0, %v118_v52  ;;  %v135_v52 = vpack.c.bf16 %v97_v48, %v95_v47  ;;  %3130 = vmatprep.subr.bf16.mxu1 %v3457_v51 }
  0x48   :  { %3131 = vmatpush3.bf16.msra.mxu1 %v3458_v53 }
  0x49   :  { %3132 = vmatprep.subr.bf16.mxu1 %v3459_v55 }
  0x4c   :  { %3133 = vmatpush3.bf16.msra.mxu1 %v3460_v56 }
  0x4d   :  { %3134 = vmatprep.subr.bf16.mxu1 %v3461_v61 }
  0x4e   :  { %424 = vmatmul.mubr.bf16.gmra.mrb[12].mxu0 %v117_v57  ;;  %v99_v57 = vld [vmem:[%s5283_s0 + $0x1a0] sm:$0xff] }
  0x4f   :  { %3027 = vmatprep.mubr.msk.bf16.mxu0 %vm305_vm0, %v120_v58  ;;  %v101_v58 = vld [vmem:[%s5283_s0 + $0x1b0] sm:$0xff] }
  0x50   :  { %v137_v62 = vpack.c.bf16 %v101_v58, %v99_v57 }
  0x56   :  { %434 = vmatmul.mubr.bf16.gmra.mrb[16].mxu0 %v119_v63  ;;  %v3462_v63 = vld [vmem:[%s5284_s3 + $0x30] sm:$0xff]  }
  0x57   :  { %3028 = vmatprep.mubr.msk.bf16.mxu0 %vm305_vm0, %v122_v0  ;;  %v140_v0 = vpack.c.bf16 %v106_v60, %v104_v59  ;;  %3135 = vmatpush3.bf16.msra.mxu1 %v3462_v63 }
  0x58   :  { %3136 = vmatprep.subr.bf16.mxu1 %v3463_v1 }
  0x5b   :  { %3137 = vmatpush3.bf16.msra.mxu1 %v3464_v2 }
  0x5c   :  { %3282 = vmatprep.subr.bf16.mxu1 %v3465_v46 }
  0x5e   :  { %444 = vmatmul.mubr.bf16.gmra.mrb[20].mxu0 %v121_v5  ;;  %v108_v5 = vld [vmem:[%s5283_s0 + $0x1e8] sm:$0xff] }
  0x5f   :  { %3029 = vmatprep.mubr.msk.bf16.mxu0 %vm305_vm0, %v124_v6  ;;  %v110_v6 = vld [vmem:[%s5283_s0 + $0x1f8] sm:$0xff] }
  0x60   :  { %v142_v8 = vpack.c.bf16 %v110_v6, %v108_v5 }
  0x66   :  { %454 = vmatmul.mubr.bf16.gmra.mrb[24].mxu0 %v123_v11  ;;  %v141_v11 = vpack.c.bf16 %v109_v10, %v107_v9 }
  0x67   :  { %3030 = vmatprep.mubr.msk.bf16.mxu0 %vm305_vm0, %v126_v12  ;;  %v170_v12 = vlaneseq }
  0x69   :  { %v171_v13 = vshrl.u32 %v170_v12, 7 }
  0x6b   :  { %v4216_v14 = vsub.s32 0, %v171_v13  ;;  %v4221_v16 = vsub.s32 1, %v171_v13 }
  0x6e   :  { %464 = vmatmul.mubr.bf16.gmra.mrb[28].mxu0 %v125_v17  ;;  %v4224_v17 = vrot.slane %v168_v15, %v4216_v14 }
  0x6f   :  { %3031 = vmatprep.mubr.msk.bf16.mxu0 %vm305_vm0, %v128_v18  ;;  %v4227_v18 = vrot.slane %v168_v15, %v4221_v16 }
  0x76   :  { %474 = vmatmul.mubr.bf16.gmra.mrb[32].mxu0 %v127_v23 }
  0x77   :  { %3032 = vmatprep.mubr.msk.bf16.mxu0 %vm305_vm0, %v130_v24 }
  0x7e   :  { %484 = vmatmul.mubr.bf16.gmra.mrb[36].mxu0 %v129_v29 }
  0x7f   :  { %3033 = vmatprep.mubr.msk.bf16.mxu0 %vm305_vm0, %v132_v30 }
  0x86   :  { %494 = vmatmul.mubr.bf16.gmra.mrb[40].mxu0 %v131_v35 }
  0x87   :  { %3034 = vmatprep.mubr.msk.bf16.mxu0 %vm305_vm0, %v134_v36 }
  0x8e   :  { %504 = vmatmul.mubr.bf16.gmra.mrb[44].mxu0 %v133_v42 }
  0x8f   :  { %3035 = vmatprep.mubr.msk.bf16.mxu0 %vm305_vm0, %v136_v44 }
  0x96   :  { %514 = vmatmul.mubr.bf16.gmra.mrb[48].mxu0 %v135_v52 }
  0x97   :  { %3036 = vmatprep.mubr.msk.bf16.mxu0 %vm305_vm0, %v138_v54 }
  0x9e   :  { %524 = vmatmul.mubr.bf16.gmra.mrb[52].mxu0 %v137_v62 }
  0x9f   :  { %3037 = vmatprep.mubr.msk.bf16.mxu0 %vm305_vm0, %v140_v0 }
  0xa6   :  { %534 = vmatmul.mubr.bf16.gmra.mrb[56].mxu0 %v139_v7 }
  0xa7   :  { %3038 = vmatprep.mubr.msk.bf16.mxu0 %vm305_vm0, %v142_v8 }
  0xae   :  { %544 = vmatmul.mubr.bf16.gmra.mrb[60].mxu0 %v141_v11 }
 0x109   :  { %v395_v19 = vpop.f32.mrb[0].mxu0 }
 0x10a   :  { %v396_v20 = vadd.f32 %v395_v19, %v4224_v17  ;;  %v397_v21 = vpop.f32.mrb[1].mxu0 }
 0x10b   :  { %v398_v22 = vadd.f32 %v397_v21, %v4227_v18  ;;  %v399_v23 = vpop.f32.mrb[2].mxu0 }
 0x10c   :  { %v618_v24 = vmul.f32 0.70710677, %v396_v20  ;;  %v400_v25 = vadd.f32 %v399_v23, %v4224_v17  ;;  %v401_v26 = vpop.f32.mrb[3].mxu0  ;;  %v554_v42 = vmul.f32 0.5, %v396_v20 }
 0x10d   :  { %v619_v27 = vmul.f32 0.70710677, %v398_v22  ;;  %v402_v28 = vadd.f32 %v401_v26, %v4227_v18  ;;  %v555_v58 = vmul.f32 0.5, %v398_v22  ;;  %v3466_v22 = vld [vmem:[%s5286_s5 + $0x8] sm:$0xff]  }
 0x10e   :  { %3553 = verf.f32 %v618_v24  ;;  %v620_v29 = vmul.f32 0.70710677, %v400_v25  ;;  %v556_v45 = vmul.f32 0.5, %v400_v25 }
 0x10f   :  { %3555 = verf.f32 %v619_v27  ;;  %v621_v30 = vmul.f32 0.70710677, %v402_v28  ;;  %v557_v0 = vmul.f32 0.5, %v402_v28 }
 0x110   :  { %3557 = verf.f32 %v620_v29 }
 0x111   :  { %3559 = verf.f32 %v621_v30  ;;  %v405_v31 = vpop.f32.mrb[4].mxu0 }
 0x112   :  { %v406_v32 = vadd.f32 %v405_v31, %v4224_v17  ;;  %v407_v33 = vpop.f32.mrb[5].mxu0 }
 0x113   :  { %v4235_v34 = vadd.f32 %v407_v33, %v4227_v18  ;;  %v409_v35 = vpop.f32.mrb[6].mxu0 }
 0x114   :  { %v622_v36 = vmul.f32 0.70710677, %v406_v32  ;;  %v410_v37 = vadd.f32 %v409_v35, %v4224_v17  ;;  %v411_v38 = vpop.f32.mrb[7].mxu0  ;;  %v558_v24 = vmul.f32 0.5, %v406_v32 }
 0x115   :  { %v623_v39 = vmul.f32 0.70710677, %v4235_v34  ;;  %v412_v40 = vadd.f32 %v411_v38, %v4227_v18  ;;  %v559_v29 = vmul.f32 0.5, %v4235_v34  ;;  %v3467_v34 = vld [vmem:[%s5286_s5 + $0x10] sm:$0xff]  }
 0x116   :  { %3561 = verf.f32 %v622_v36  ;;  %v624_v41 = vmul.f32 0.70710677, %v410_v37  ;;  %v560_v25 = vmul.f32 0.5, %v410_v37 }
 0x117   :  { %3563 = verf.f32 %v623_v39  ;;  %v625_v43 = vmul.f32 0.70710677, %v412_v40  ;;  %v561_v30 = vmul.f32 0.5, %v412_v40 }
 0x118   :  { %v3554_v44 = vpop.eup %3553  ;;  %3565 = verf.f32 %v624_v41 }
 0x119   :  { %v3556_v47 = vpop.eup %3555  ;;  %v746_v48 = vadd.f32 1.0, %v3554_v44  ;;  %3567 = verf.f32 %v625_v43  ;;  %v415_v49 = vpop.f32.mrb[8].mxu0 }
 0x11a   :  { %v3558_v50 = vpop.eup %3557  ;;  %v4244_v51 = vadd.f32 %v415_v49, %v4224_v17  ;;  %v417_v52 = vpop.f32.mrb[9].mxu0  ;;  %v747_v53 = vadd.f32 1.0, %v3556_v47 }
 0x11b   :  { %v3560_v54 = vpop.eup %3559  ;;  %v748_v55 = vadd.f32 1.0, %v3558_v50  ;;  %v4247_v56 = vadd.f32 %v417_v52, %v4227_v18  ;;  %v419_v57 = vpop.f32.mrb[10].mxu0  ;;  %v810_v3 = vmul.f32 %v746_v48, %v554_v42 }
 0x11c   :  { %v626_v59 = vmul.f32 0.70710677, %v4244_v51  ;;  %v4251_v60 = vadd.f32 %v419_v57, %v4224_v17  ;;  %v421_v61 = vpop.f32.mrb[11].mxu0  ;;  %v749_v62 = vadd.f32 1.0, %v3560_v54  ;;  %v811_v6 = vmul.f32 %v747_v53, %v555_v58 }
 0x11d   :  { %v812_v63 = vmul.f32 %v748_v55, %v556_v45  ;;  %v627_v1 = vmul.f32 0.70710677, %v4247_v56  ;;  %v4255_v2 = vadd.f32 %v421_v61, %v4227_v18  ;;  %v3468_v55 = vld [vmem:[%s5286_s5 + $0x18] sm:$0xff]   ;;  %v562_v58 = vmul.f32 0.5, %v4244_v51 }
 0x11e   :  { %3569 = verf.f32 %v626_v59  ;;  %v628_v4 = vmul.f32 0.70710677, %v4251_v60  ;;  %v813_v7 = vmul.f32 %v749_v62, %v557_v0  ;;  %v564_v59 = vmul.f32 0.5, %v4251_v60 }
 0x11f   :  { %3571 = verf.f32 %v627_v1  ;;  %v629_v5 = vmul.f32 0.70710677, %v4255_v2  ;;  %v874_v9 = vpack.c.bf16 %v812_v63, %v810_v3  ;;  %v563_v0 = vmul.f32 0.5, %v4247_v56 }
 0x120   :  { %v3562_v8 = vpop.eup %3561  ;;  %3573 = verf.f32 %v628_v4  ;;  %v875_v13 = vpack.c.bf16 %v813_v7, %v811_v6  ;;  %v565_v1 = vmul.f32 0.5, %v4255_v2  ;;  %v3469_v2 = vld [vmem:[%s5286_s5 + $0x20] sm:$0xff]  }
 0x121   :  { %v3564_v10 = vpop.eup %3563  ;;  %v750_v11 = vadd.f32 1.0, %v3562_v8  ;;  %3575 = verf.f32 %v629_v5  ;;  %v425_v12 = vpop.f32.mrb[12].mxu0 }
 0x122   :  { %v3566_v15 = vpop.eup %3565  ;;  %v751_v19 = vadd.f32 1.0, %v3564_v10  ;;  %v4260_v20 = vadd.f32 %v425_v12, %v4224_v17  ;;  %v427_v21 = vpop.f32.mrb[13].mxu0  ;;  %1073 = vmatprep.mubr.bf16.mxu1 %v875_v13 }
 0x123   :  { %v3568_v23 = vpop.eup %3567  ;;  %v752_v26 = vadd.f32 1.0, %v3566_v15  ;;  %v4266_v27 = vadd.f32 %v427_v21, %v4227_v18  ;;  %v429_v28 = vpop.f32.mrb[14].mxu0  ;;  %1074 = vmatmul.mubr.bf16.vlgmr.msra.gmra.mrb[0].mxu1 %v874_v9  ;;  %v814_v36 = vmul.f32 %v750_v11, %v558_v24 }
 0x124   :  { %v753_v31 = vadd.f32 1.0, %v3568_v23  ;;  %v630_v33 = vmul.f32 0.70710677, %v4260_v20  ;;  %v431_v35 = vpop.f32.mrb[15].mxu0  ;;  %v4272_v32 = vadd.f32 %v429_v28, %v4224_v17  ;;  %3283 = vmatpush3.bf16.msra.mxu1 %v3465_v46  ;;  %v815_v37 = vmul.f32 %v751_v19, %v559_v29 }
 0x125   :  { %v816_v38 = vmul.f32 %v752_v26, %v560_v25  ;;  %v631_v39 = vmul.f32 0.70710677, %v4266_v27  ;;  %v4275_v42 = vadd.f32 %v431_v35, %v4227_v18  ;;  %3284 = vmatprep.subr.bf16.mxu1 %v3466_v22  ;;  %v3470_v25 = vld [vmem:[%s5286_s5 + $0x28] sm:$0xff]   ;;  %v566_v28 = vmul.f32 0.5, %v4260_v20 }
 0x126   :  { %v817_v41 = vmul.f32 %v753_v31, %v561_v30  ;;  %3577 = verf.f32 %v630_v33  ;;  %v632_v40 = vmul.f32 0.70710677, %v4272_v32  ;;  %v567_v35 = vmul.f32 0.5, %v4266_v27 }
 0x127   :  { %3579 = verf.f32 %v631_v39  ;;  %v876_v43 = vpack.c.bf16 %v816_v38, %v814_v36  ;;  %v633_v45 = vmul.f32 0.70710677, %v4275_v42  ;;  %v568_v36 = vmul.f32 0.5, %v4272_v32 }
 0x128   :  { %v3570_v44 = vpop.eup %3569  ;;  %v877_v47 = vpack.c.bf16 %v817_v41, %v815_v37  ;;  %3581 = verf.f32 %v632_v40  ;;  %3285 = vmatpush3.bf16.msra.mxu1 %v3466_v22  ;;  %v569_v41 = vmul.f32 0.5, %v4275_v42 }
 0x129   :  { %v3572_v46 = vpop.eup %3571  ;;  %v754_v48 = vadd.f32 1.0, %v3570_v44  ;;  %v435_v49 = vpop.f32.mrb[16].mxu0  ;;  %3583 = verf.f32 %v633_v45  ;;  %3286 = vmatprep.subr.bf16.mxu1 %v3467_v34 }
 0x12a   :  { %v3574_v50 = vpop.eup %3573  ;;  %v755_v52 = vadd.f32 1.0, %v3572_v46  ;;  %v4283_v53 = vadd.f32 %v435_v49, %v4224_v17  ;;  %v437_v54 = vpop.f32.mrb[17].mxu0  ;;  %1081 = vmatprep.mubr.bf16.mxu1 %v877_v47 }
 0x12b   :  { %v3576_v57 = vpop.eup %3575  ;;  %v756_v61 = vadd.f32 1.0, %v3574_v50  ;;  %v4291_v62 = vadd.f32 %v437_v54, %v4227_v18  ;;  %v439_v63 = vpop.f32.mrb[18].mxu0  ;;  %1082 = vmatmul.mubr.bf16.gmra.mrb[4].mxu1 %v876_v43  ;;  %v818_v6 = vmul.f32 %v754_v48, %v562_v58 }
 0x12c   :  { %v757_v3 = vadd.f32 1.0, %v3576_v57  ;;  %v634_v4 = vmul.f32 0.70710677, %v4283_v53  ;;  %v441_v5 = vpop.f32.mrb[19].mxu0  ;;  %v4298_v60 = vadd.f32 %v439_v63, %v4224_v17  ;;  %3287 = vmatpush3.bf16.msra.mxu1 %v3467_v34  ;;  %v819_v8 = vmul.f32 %v755_v52, %v563_v0 }
 0x12d   :  { %v820_v7 = vmul.f32 %v756_v61, %v564_v59  ;;  %v635_v51 = vmul.f32 0.70710677, %v4291_v62  ;;  %v4301_v56 = vadd.f32 %v441_v5, %v4227_v18  ;;  %3288 = vmatprep.subr.bf16.mxu1 %v3468_v55  ;;  %v570_v59 = vmul.f32 0.5, %v4283_v53 }
 0x12e   :  { %v821_v9 = vmul.f32 %v757_v3, %v565_v1  ;;  %3585 = verf.f32 %v634_v4  ;;  %v636_v10 = vmul.f32 0.70710677, %v4298_v60  ;;  %v571_v3 = vmul.f32 0.5, %v4291_v62 }
 0x12f   :  { %3587 = verf.f32 %v635_v51  ;;  %v878_v11 = vpack.c.bf16 %v820_v7, %v818_v6  ;;  %v637_v13 = vmul.f32 0.70710677, %v4301_v56  ;;  %v572_v4 = vmul.f32 0.5, %v4298_v60 }
 0x130   :  { %v3578_v12 = vpop.eup %3577  ;;  %v879_v15 = vpack.c.bf16 %v821_v9, %v819_v8  ;;  %3589 = verf.f32 %v636_v10  ;;  %3289 = vmatpush3.bf16.msra.mxu1 %v3468_v55  ;;  %v573_v51 = vmul.f32 0.5, %v4301_v56 }
 0x131   :  { %v3580_v19 = vpop.eup %3579  ;;  %v445_v21 = vpop.f32.mrb[20].mxu0  ;;  %v758_v22 = vadd.f32 1.0, %v3578_v12  ;;  %3591 = verf.f32 %v637_v13  ;;  %3290 = vmatprep.subr.bf16.mxu1 %v3469_v2 }
 0x132   :  { %v4309_v23 = vadd.f32 %v445_v21, %v4224_v17  ;;  %v447_v24 = vpop.f32.mrb[21].mxu0  ;;  %1089 = vmatprep.mubr.bf16.mxu1 %v879_v15  ;;  %v3582_v26 = vpop.eup %3581  ;;  %v759_v29 = vadd.f32 1.0, %v3580_v19 }
 0x133   :  { %v4316_v30 = vadd.f32 %v447_v24, %v4227_v18  ;;  %v449_v31 = vpop.f32.mrb[22].mxu0  ;;  %v3584_v33 = vpop.eup %3583  ;;  %v760_v38 = vadd.f32 1.0, %v3582_v26  ;;  %1090 = vmatmul.mubr.bf16.gmra.mrb[8].mxu1 %v878_v11  ;;  %v822_v43 = vmul.f32 %v758_v22, %v566_v28 }
 0x134   :  { %v638_v39 = vmul.f32 0.70710677, %v4309_v23  ;;  %v451_v37 = vpop.f32.mrb[23].mxu0  ;;  %v761_v34 = vadd.f32 1.0, %v3584_v33  ;;  %v4324_v40 = vadd.f32 %v449_v31, %v4224_v17  ;;  %3291 = vmatpush3.bf16.msra.mxu1 %v3469_v2  ;;  %v823_v32 = vmul.f32 %v759_v29, %v567_v35 }
 0x135   :  { %v639_v20 = vmul.f32 0.70710677, %v4316_v30  ;;  %v824_v44 = vmul.f32 %v760_v38, %v568_v36  ;;  %v4327_v27 = vadd.f32 %v451_v37, %v4227_v18  ;;  %3292 = vmatprep.subr.bf16.mxu1 %v3470_v25  ;;  %v574_v29 = vmul.f32 0.5, %v4309_v23 }
 0x136   :  { %3593 = verf.f32 %v638_v39  ;;  %v825_v45 = vmul.f32 %v761_v34, %v569_v41  ;;  %v640_v47 = vmul.f32 0.70710677, %v4324_v40  ;;  %v575_v38 = vmul.f32 0.5, %v4316_v30 }
 0x137   :  { %3595 = verf.f32 %v639_v20  ;;  %v641_v46 = vmul.f32 0.70710677, %v4327_v27  ;;  %v880_v48 = vpack.c.bf16 %v824_v44, %v822_v43  ;;  %v576_v39 = vmul.f32 0.5, %v4324_v40 }
 0x138   :  { %v3586_v42 = vpop.eup %3585  ;;  %3597 = verf.f32 %v640_v47  ;;  %v881_v52 = vpack.c.bf16 %v825_v45, %v823_v32  ;;  %3293 = vmatpush3.bf16.msra.mxu1 %v3470_v25  ;;  %v577_v20 = vmul.f32 0.5, %v4327_v27 }
 0x139   :  { %v3588_v49 = vpop.eup %3587  ;;  %v455_v50 = vpop.f32.mrb[24].mxu0  ;;  %v762_v54 = vadd.f32 1.0, %v3586_v42  ;;  %3599 = verf.f32 %v641_v46 }
 0x13a   :  { %v4332_v55 = vadd.f32 %v455_v50, %v4224_v17  ;;  %v457_v57 = vpop.f32.mrb[25].mxu0  ;;  %v3590_v58 = vpop.eup %3589  ;;  %v763_v61 = vadd.f32 1.0, %v3588_v49  ;;  %1097 = vmatprep.mubr.bf16.mxu1 %v881_v52 }
 0x13b   :  { %v4336_v63 = vadd.f32 %v457_v57, %v4227_v18  ;;  %v459_v0 = vpop.f32.mrb[26].mxu0  ;;  %v3592_v1 = vpop.eup %3591  ;;  %v764_v5 = vadd.f32 1.0, %v3590_v58  ;;  %1098 = vmatmul.mubr.bf16.gmra.mrb[12].mxu1 %v880_v48  ;;  %v826_v2 = vmul.f32 %v762_v54, %v570_v59 }
 0x13c   :  { %v642_v6 = vmul.f32 0.70710677, %v4332_v55  ;;  %v461_v7 = vpop.f32.mrb[27].mxu0  ;;  %v765_v8 = vadd.f32 1.0, %v3592_v1  ;;  %v4344_v9 = vadd.f32 %v459_v0, %v4224_v17  ;;  %v827_v60 = vmul.f32 %v763_v61, %v571_v3 }
 0x13d   :  { %v643_v53 = vmul.f32 0.70710677, %v4336_v63  ;;  %v828_v10 = vmul.f32 %v764_v5, %v572_v4  ;;  %v4347_v62 = vadd.f32 %v461_v7, %v4227_v18  ;;  %v578_v61 = vmul.f32 0.5, %v4332_v55 }
 0x13e   :  { %3601 = verf.f32 %v642_v6  ;;  %v829_v11 = vmul.f32 %v765_v8, %v573_v51  ;;  %v644_v12 = vmul.f32 0.70710677, %v4344_v9  ;;  %v579_v5 = vmul.f32 0.5, %v4336_v63 }
 0x13f   :  { %3603 = verf.f32 %v643_v53  ;;  %v645_v56 = vmul.f32 0.70710677, %v4347_v62  ;;  %v882_v15 = vpack.c.bf16 %v828_v10, %v826_v2  ;;  %v580_v6 = vmul.f32 0.5, %v4344_v9 }
 0x140   :  { %v3594_v13 = vpop.eup %3593  ;;  %3605 = verf.f32 %v644_v12  ;;  %v883_v22 = vpack.c.bf16 %v829_v11, %v827_v60  ;;  %v581_v53 = vmul.f32 0.5, %v4347_v62 }
 0x141   :  { %v3596_v19 = vpop.eup %3595  ;;  %v465_v21 = vpop.f32.mrb[28].mxu0  ;;  %v766_v24 = vadd.f32 1.0, %v3594_v13  ;;  %3607 = verf.f32 %v645_v56 }
 0x142   :  { %v4352_v25 = vadd.f32 %v465_v21, %v4224_v17  ;;  %v467_v26 = vpop.f32.mrb[29].mxu0  ;;  %v3598_v28 = vpop.eup %3597  ;;  %v767_v31 = vadd.f32 1.0, %v3596_v19  ;;  %1105 = vmatprep.mubr.bf16.mxu1 %v883_v22 }
 0x143   :  { %v4356_v33 = vadd.f32 %v467_v26, %v4227_v18  ;;  %v469_v35 = vpop.f32.mrb[30].mxu0  ;;  %v3600_v36 = vpop.eup %3599  ;;  %v768_v37 = vadd.f32 1.0, %v3598_v28  ;;  %1106 = vmatmul.mubr.bf16.gmra.mrb[16].mxu1 %v882_v15  ;;  %v830_v32 = vmul.f32 %v766_v24, %v574_v29 }
 0x144   :  { %v646_v41 = vmul.f32 0.70710677, %v4352_v25  ;;  %v471_v34 = vpop.f32.mrb[31].mxu0  ;;  %v769_v43 = vadd.f32 1.0, %v3600_v36  ;;  %v4364_v44 = vadd.f32 %v469_v35, %v4224_v17  ;;  %v831_v40 = vmul.f32 %v767_v31, %v575_v38 }
 0x145   :  { %v647_v23 = vmul.f32 0.70710677, %v4356_v33  ;;  %v832_v45 = vmul.f32 %v768_v37, %v576_v39  ;;  %v4367_v30 = vadd.f32 %v471_v34, %v4227_v18  ;;  %v582_v31 = vmul.f32 0.5, %v4352_v25 }
 0x146   :  { %3609 = verf.f32 %v646_v41  ;;  %v833_v47 = vmul.f32 %v769_v43, %v577_v20  ;;  %v648_v42 = vmul.f32 0.70710677, %v4364_v44  ;;  %v583_v37 = vmul.f32 0.5, %v4356_v33 }
 0x147   :  { %3611 = verf.f32 %v647_v23  ;;  %v649_v27 = vmul.f32 0.70710677, %v4367_v30  ;;  %v884_v48 = vpack.c.bf16 %v832_v45, %v830_v32  ;;  %v584_v41 = vmul.f32 0.5, %v4364_v44 }
 0x148   :  { %v3602_v46 = vpop.eup %3601  ;;  %3613 = verf.f32 %v648_v42  ;;  %v885_v52 = vpack.c.bf16 %v833_v47, %v831_v40  ;;  %v585_v23 = vmul.f32 0.5, %v4367_v30 }
 0x149   :  { %v3604_v49 = vpop.eup %3603  ;;  %v475_v50 = vpop.f32.mrb[32].mxu0  ;;  %v770_v54 = vadd.f32 1.0, %v3602_v46  ;;  %3615 = verf.f32 %v649_v27 }
 0x14a   :  { %v4372_v57 = vadd.f32 %v475_v50, %v4224_v17  ;;  %v477_v58 = vpop.f32.mrb[33].mxu0  ;;  %v3606_v59 = vpop.eup %3605  ;;  %v771_v0 = vadd.f32 1.0, %v3604_v49  ;;  %1113 = vmatprep.mubr.bf16.mxu1 %v885_v52 }
 0x14b   :  { %v4376_v1 = vadd.f32 %v477_v58, %v4227_v18  ;;  %v479_v3 = vpop.f32.mrb[34].mxu0  ;;  %v3608_v4 = vpop.eup %3607  ;;  %v772_v7 = vadd.f32 1.0, %v3606_v59  ;;  %1114 = vmatmul.mubr.bf16.gmra.mrb[20].mxu1 %v884_v48  ;;  %v834_v60 = vmul.f32 %v770_v54, %v578_v61 }
 0x14c   :  { %v650_v51 = vmul.f32 0.70710677, %v4372_v57  ;;  %v481_v8 = vpop.f32.mrb[35].mxu0  ;;  %v773_v2 = vadd.f32 1.0, %v3608_v4  ;;  %v4384_v10 = vadd.f32 %v479_v3, %v4224_v17  ;;  %v835_v9 = vmul.f32 %v771_v0, %v579_v5 }
 0x14d   :  { %v651_v55 = vmul.f32 0.70710677, %v4376_v1  ;;  %v836_v11 = vmul.f32 %v772_v7, %v580_v6  ;;  %v4387_v63 = vadd.f32 %v481_v8, %v4227_v18  ;;  %v586_v0 = vmul.f32 0.5, %v4372_v57 }
 0x14e   :  { %3617 = verf.f32 %v650_v51  ;;  %v837_v12 = vmul.f32 %v773_v2, %v581_v53  ;;  %v652_v13 = vmul.f32 0.70710677, %v4384_v10  ;;  %v587_v7 = vmul.f32 0.5, %v4376_v1 }
 0x14f   :  { %3619 = verf.f32 %v651_v55  ;;  %v653_v62 = vmul.f32 0.70710677, %v4387_v63  ;;  %v886_v15 = vpack.c.bf16 %v836_v11, %v834_v60  ;;  %v588_v51 = vmul.f32 0.5, %v4384_v10 }
 0x150   :  { %v3610_v56 = vpop.eup %3609  ;;  %3621 = verf.f32 %v652_v13  ;;  %v887_v22 = vpack.c.bf16 %v837_v12, %v835_v9  ;;  %v589_v55 = vmul.f32 0.5, %v4387_v63 }
 0x151   :  { %v3612_v19 = vpop.eup %3611  ;;  %v485_v21 = vpop.f32.mrb[36].mxu0  ;;  %v774_v24 = vadd.f32 1.0, %v3610_v56  ;;  %3623 = verf.f32 %v653_v62 }
 0x152   :  { %v4392_v26 = vadd.f32 %v485_v21, %v4224_v17  ;;  %v487_v28 = vpop.f32.mrb[37].mxu0  ;;  %v3614_v29 = vpop.eup %3613  ;;  %v775_v35 = vadd.f32 1.0, %v3612_v19  ;;  %1121 = vmatprep.mubr.bf16.mxu1 %v887_v22 }
 0x153   :  { %v4396_v36 = vadd.f32 %v487_v28, %v4227_v18  ;;  %v489_v38 = vpop.f32.mrb[38].mxu0  ;;  %v3616_v39 = vpop.eup %3615  ;;  %v776_v34 = vadd.f32 1.0, %v3614_v29  ;;  %1122 = vmatmul.mubr.bf16.gmra.mrb[24].mxu1 %v886_v15  ;;  %v838_v40 = vmul.f32 %v774_v24, %v582_v31 }
 0x154   :  { %v654_v20 = vmul.f32 0.70710677, %v4392_v26  ;;  %v491_v43 = vpop.f32.mrb[39].mxu0  ;;  %v777_v32 = vadd.f32 1.0, %v3616_v39  ;;  %v4404_v45 = vadd.f32 %v489_v38, %v4224_v17  ;;  %v839_v44 = vmul.f32 %v775_v35, %v583_v37 }
 0x155   :  { %v655_v25 = vmul.f32 0.70710677, %v4396_v36  ;;  %v840_v47 = vmul.f32 %v776_v34, %v584_v41  ;;  %v4407_v33 = vadd.f32 %v491_v43, %v4227_v18  ;;  %v590_v35 = vmul.f32 0.5, %v4392_v26 }
 0x156   :  { %3625 = verf.f32 %v654_v20  ;;  %v841_v42 = vmul.f32 %v777_v32, %v585_v23  ;;  %v656_v46 = vmul.f32 0.70710677, %v4404_v45  ;;  %v591_v34 = vmul.f32 0.5, %v4396_v36 }
 0x157   :  { %3627 = verf.f32 %v655_v25  ;;  %v657_v30 = vmul.f32 0.70710677, %v4407_v33  ;;  %v888_v48 = vpack.c.bf16 %v840_v47, %v838_v40  ;;  %v592_v20 = vmul.f32 0.5, %v4404_v45 }
 0x158   :  { %v3618_v27 = vpop.eup %3617  ;;  %3629 = verf.f32 %v656_v46  ;;  %v889_v52 = vpack.c.bf16 %v841_v42, %v839_v44  ;;  %v593_v25 = vmul.f32 0.5, %v4407_v33 }
 0x159   :  { %v3620_v49 = vpop.eup %3619  ;;  %v495_v50 = vpop.f32.mrb[40].mxu0  ;;  %v778_v54 = vadd.f32 1.0, %v3618_v27  ;;  %3631 = verf.f32 %v657_v30 }
 0x15a   :  { %v4412_v58 = vadd.f32 %v495_v50, %v4224_v17  ;;  %v497_v59 = vpop.f32.mrb[41].mxu0  ;;  %v3622_v61 = vpop.eup %3621  ;;  %v779_v3 = vadd.f32 1.0, %v3620_v49  ;;  %1129 = vmatprep.mubr.bf16.mxu1 %v889_v52 }
 0x15b   :  { %v4416_v4 = vadd.f32 %v497_v59, %v4227_v18  ;;  %v499_v5 = vpop.f32.mrb[42].mxu0  ;;  %v3624_v6 = vpop.eup %3623  ;;  %v780_v8 = vadd.f32 1.0, %v3622_v61  ;;  %1130 = vmatmul.mubr.bf16.gmra.mrb[28].mxu1 %v888_v48  ;;  %v842_v9 = vmul.f32 %v778_v54, %v586_v0 }
 0x15c   :  { %v658_v53 = vmul.f32 0.70710677, %v4412_v58  ;;  %v501_v2 = vpop.f32.mrb[43].mxu0  ;;  %v781_v60 = vadd.f32 1.0, %v3624_v6  ;;  %v4424_v11 = vadd.f32 %v499_v5, %v4224_v17  ;;  %v843_v10 = vmul.f32 %v779_v3, %v587_v7 }
 0x15d   :  { %v659_v57 = vmul.f32 0.70710677, %v4416_v4  ;;  %v844_v12 = vmul.f32 %v780_v8, %v588_v51  ;;  %v4427_v1 = vadd.f32 %v501_v2, %v4227_v18  ;;  %v594_v3 = vmul.f32 0.5, %v4412_v58 }
 0x15e   :  { %3633 = verf.f32 %v658_v53  ;;  %v845_v13 = vmul.f32 %v781_v60, %v589_v55  ;;  %v660_v56 = vmul.f32 0.70710677, %v4424_v11  ;;  %v595_v8 = vmul.f32 0.5, %v4416_v4 }
 0x15f   :  { %3635 = verf.f32 %v659_v57  ;;  %v661_v63 = vmul.f32 0.70710677, %v4427_v1  ;;  %v890_v15 = vpack.c.bf16 %v844_v12, %v842_v9  ;;  %v596_v53 = vmul.f32 0.5, %v4424_v11 }
 0x160   :  { %v3626_v62 = vpop.eup %3625  ;;  %3637 = verf.f32 %v660_v56  ;;  %v891_v22 = vpack.c.bf16 %v845_v13, %v843_v10  ;;  %v597_v57 = vmul.f32 0.5, %v4427_v1 }
 0x161   :  { %v3628_v19 = vpop.eup %3627  ;;  %v505_v21 = vpop.f32.mrb[44].mxu0  ;;  %v782_v24 = vadd.f32 1.0, %v3626_v62  ;;  %3639 = verf.f32 %v661_v63 }
 0x162   :  { %v4432_v28 = vadd.f32 %v505_v21, %v4224_v17  ;;  %v507_v29 = vpop.f32.mrb[45].mxu0  ;;  %v3630_v31 = vpop.eup %3629  ;;  %v783_v38 = vadd.f32 1.0, %v3628_v19  ;;  %1137 = vmatprep.mubr.bf16.mxu1 %v891_v22 }
 0x163   :  { %v4436_v39 = vadd.f32 %v507_v29, %v4227_v18  ;;  %v509_v37 = vpop.f32.mrb[46].mxu0  ;;  %v3632_v41 = vpop.eup %3631  ;;  %v784_v43 = vadd.f32 1.0, %v3630_v31  ;;  %1138 = vmatmul.mubr.bf16.gmra.mrb[32].mxu1 %v890_v15  ;;  %v846_v44 = vmul.f32 %v782_v24, %v590_v35 }
 0x164   :  { %v662_v23 = vmul.f32 0.70710677, %v4432_v28  ;;  %v511_v32 = vpop.f32.mrb[47].mxu0  ;;  %v785_v40 = vadd.f32 1.0, %v3632_v41  ;;  %v4444_v47 = vadd.f32 %v509_v37, %v4224_v17  ;;  %v847_v45 = vmul.f32 %v783_v38, %v591_v34 }
 0x165   :  { %v663_v26 = vmul.f32 0.70710677, %v4436_v39  ;;  %v848_v42 = vmul.f32 %v784_v43, %v592_v20  ;;  %v4447_v36 = vadd.f32 %v511_v32, %v4227_v18  ;;  %v598_v38 = vmul.f32 0.5, %v4432_v28 }
 0x166   :  { %3641 = verf.f32 %v662_v23  ;;  %v849_v46 = vmul.f32 %v785_v40, %v593_v25  ;;  %v664_v27 = vmul.f32 0.70710677, %v4444_v47  ;;  %v599_v43 = vmul.f32 0.5, %v4436_v39 }
 0x167   :  { %3643 = verf.f32 %v663_v26  ;;  %v665_v33 = vmul.f32 0.70710677, %v4447_v36  ;;  %v892_v48 = vpack.c.bf16 %v848_v42, %v846_v44  ;;  %v600_v23 = vmul.f32 0.5, %v4444_v47 }
 0x168   :  { %v3634_v30 = vpop.eup %3633  ;;  %3645 = verf.f32 %v664_v27  ;;  %v893_v52 = vpack.c.bf16 %v849_v46, %v847_v45  ;;  %v601_v26 = vmul.f32 0.5, %v4447_v36 }
 0x169   :  { %v3636_v49 = vpop.eup %3635  ;;  %v515_v50 = vpop.f32.mrb[48].mxu0  ;;  %v786_v54 = vadd.f32 1.0, %v3634_v30  ;;  %3647 = verf.f32 %v665_v33 }
 0x16a   :  { %v4452_v59 = vadd.f32 %v515_v50, %v4224_v17  ;;  %v517_v61 = vpop.f32.mrb[49].mxu0  ;;  %v3638_v0 = vpop.eup %3637  ;;  %v787_v5 = vadd.f32 1.0, %v3636_v49  ;;  %1145 = vmatprep.mubr.bf16.mxu1 %v893_v52 }
 0x16b   :  { %v4456_v6 = vadd.f32 %v517_v61, %v4227_v18  ;;  %v519_v7 = vpop.f32.mrb[50].mxu0  ;;  %v3640_v51 = vpop.eup %3639  ;;  %v788_v2 = vadd.f32 1.0, %v3638_v0  ;;  %1146 = vmatmul.mubr.bf16.gmra.mrb[36].mxu1 %v892_v48  ;;  %v850_v10 = vmul.f32 %v786_v54, %v594_v3 }
 0x16c   :  { %v666_v55 = vmul.f32 0.70710677, %v4452_v59  ;;  %v521_v60 = vpop.f32.mrb[51].mxu0  ;;  %v789_v9 = vadd.f32 1.0, %v3640_v51  ;;  %v4464_v12 = vadd.f32 %v519_v7, %v4224_v17  ;;  %v851_v11 = vmul.f32 %v787_v5, %v595_v8 }
 0x16d   :  { %v667_v58 = vmul.f32 0.70710677, %v4456_v6  ;;  %v852_v13 = vmul.f32 %v788_v2, %v596_v53  ;;  %v4467_v4 = vadd.f32 %v521_v60, %v4227_v18  ;;  %v602_v5 = vmul.f32 0.5, %v4452_v59 }
 0x16e   :  { %3649 = verf.f32 %v666_v55  ;;  %v853_v56 = vmul.f32 %v789_v9, %v597_v57  ;;  %v668_v62 = vmul.f32 0.70710677, %v4464_v12  ;;  %v603_v2 = vmul.f32 0.5, %v4456_v6 }
 0x16f   :  { %3651 = verf.f32 %v667_v58  ;;  %v669_v1 = vmul.f32 0.70710677, %v4467_v4  ;;  %v894_v15 = vpack.c.bf16 %v852_v13, %v850_v10  ;;  %v604_v55 = vmul.f32 0.5, %v4464_v12 }
 0x170   :  { %v3642_v63 = vpop.eup %3641  ;;  %3653 = verf.f32 %v668_v62  ;;  %v895_v22 = vpack.c.bf16 %v853_v56, %v851_v11  ;;  %v605_v58 = vmul.f32 0.5, %v4467_v4 }
 0x171   :  { %v3644_v19 = vpop.eup %3643  ;;  %v525_v21 = vpop.f32.mrb[52].mxu0  ;;  %v790_v24 = vadd.f32 1.0, %v3642_v63  ;;  %3655 = verf.f32 %v669_v1 }
 0x172   :  { %v4472_v29 = vadd.f32 %v525_v21, %v4224_v17  ;;  %v527_v31 = vpop.f32.mrb[53].mxu0  ;;  %v3646_v35 = vpop.eup %3645  ;;  %v791_v37 = vadd.f32 1.0, %v3644_v19  ;;  %1153 = vmatprep.mubr.bf16.mxu1 %v895_v22 }
 0x173   :  { %v4476_v41 = vadd.f32 %v527_v31, %v4227_v18  ;;  %v529_v34 = vpop.f32.mrb[54].mxu0  ;;  %v3648_v20 = vpop.eup %3647  ;;  %v792_v32 = vadd.f32 1.0, %v3646_v35  ;;  %1154 = vmatmul.mubr.bf16.gmra.mrb[40].mxu1 %v894_v15  ;;  %v854_v45 = vmul.f32 %v790_v24, %v598_v38 }
 0x174   :  { %v670_v25 = vmul.f32 0.70710677, %v4472_v29  ;;  %v531_v40 = vpop.f32.mrb[55].mxu0  ;;  %v793_v44 = vadd.f32 1.0, %v3648_v20  ;;  %v4484_v42 = vadd.f32 %v529_v34, %v4224_v17  ;;  %v855_v47 = vmul.f32 %v791_v37, %v599_v43 }
 0x175   :  { %v671_v28 = vmul.f32 0.70710677, %v4476_v41  ;;  %v856_v46 = vmul.f32 %v792_v32, %v600_v23  ;;  %v4487_v39 = vadd.f32 %v531_v40, %v4227_v18  ;;  %v606_v37 = vmul.f32 0.5, %v4472_v29 }
 0x176   :  { %3657 = verf.f32 %v670_v25  ;;  %v857_v27 = vmul.f32 %v793_v44, %v601_v26  ;;  %v672_v30 = vmul.f32 0.70710677, %v4484_v42  ;;  %v607_v32 = vmul.f32 0.5, %v4476_v41 }
 0x177   :  { %3659 = verf.f32 %v671_v28  ;;  %v673_v36 = vmul.f32 0.70710677, %v4487_v39  ;;  %v896_v48 = vpack.c.bf16 %v856_v46, %v854_v45  ;;  %v608_v25 = vmul.f32 0.5, %v4484_v42 }
 0x178   :  { %v3650_v33 = vpop.eup %3649  ;;  %3661 = verf.f32 %v672_v30  ;;  %v897_v52 = vpack.c.bf16 %v857_v27, %v855_v47  ;;  %v609_v28 = vmul.f32 0.5, %v4487_v39 }
 0x179   :  { %v3652_v49 = vpop.eup %3651  ;;  %v535_v50 = vpop.f32.mrb[56].mxu0  ;;  %v794_v54 = vadd.f32 1.0, %v3650_v33  ;;  %3663 = verf.f32 %v673_v36 }
 0x17a   :  { %v4492_v61 = vadd.f32 %v535_v50, %v4224_v17  ;;  %v537_v0 = vpop.f32.mrb[57].mxu0  ;;  %v3654_v3 = vpop.eup %3653  ;;  %v795_v7 = vadd.f32 1.0, %v3652_v49  ;;  %1161 = vmatprep.mubr.bf16.mxu1 %v897_v52 }
 0x17b   :  { %v4496_v51 = vadd.f32 %v537_v0, %v4227_v18  ;;  %v539_v8 = vpop.f32.mrb[58].mxu0  ;;  %v3656_v53 = vpop.eup %3655  ;;  %v796_v60 = vadd.f32 1.0, %v3654_v3  ;;  %1162 = vmatmul.mubr.bf16.gmra.mrb[44].mxu1 %v896_v48  ;;  %v858_v11 = vmul.f32 %v794_v54, %v602_v5 }
 0x17c   :  { %v674_v57 = vmul.f32 0.70710677, %v4492_v61  ;;  %v541_v9 = vpop.f32.mrb[59].mxu0  ;;  %v797_v10 = vadd.f32 1.0, %v3656_v53  ;;  %v540_v13 = vadd.f32 %v539_v8, %v4224_v17  ;;  %v859_v6 = vmul.f32 %v795_v7, %v603_v2 }
 0x17d   :  { %v675_v59 = vmul.f32 0.70710677, %v4496_v51  ;;  %v860_v56 = vmul.f32 %v796_v60, %v604_v55  ;;  %v542_v62 = vadd.f32 %v541_v9, %v4227_v18  ;;  %v610_v3 = vmul.f32 0.5, %v4492_v61 }
 0x17e   :  { %3665 = verf.f32 %v674_v57  ;;  %v861_v63 = vmul.f32 %v797_v10, %v605_v58  ;;  %v676_v12 = vmul.f32 0.70710677, %v540_v13  ;;  %v612_v5 = vmul.f32 0.5, %v540_v13 }
 0x17f   :  { %3667 = verf.f32 %v675_v59  ;;  %v677_v15 = vmul.f32 0.70710677, %v542_v62  ;;  %v898_v19 = vpack.c.bf16 %v860_v56, %v858_v11  ;;  %v611_v8 = vmul.f32 0.5, %v4496_v51 }
 0x180   :  { %v3658_v1 = vpop.eup %3657  ;;  %3669 = verf.f32 %v676_v12  ;;  %v899_v22 = vpack.c.bf16 %v861_v63, %v859_v6  ;;  %v613_v53 = vmul.f32 0.5, %v542_v62 }
 0x181   :  { %v3660_v21 = vpop.eup %3659  ;;  %v545_v4 = vpop.f32.mrb[60].mxu0  ;;  %v798_v24 = vadd.f32 1.0, %v3658_v1  ;;  %3671 = verf.f32 %v677_v15 }
 0x182   :  { %v546_v31 = vadd.f32 %v545_v4, %v4224_v17  ;;  %v547_v35 = vpop.f32.mrb[61].mxu0  ;;  %v3662_v38 = vpop.eup %3661  ;;  %v799_v34 = vadd.f32 1.0, %v3660_v21  ;;  %1169 = vmatprep.mubr.bf16.mxu1 %v899_v22 }
 0x183   :  { %v548_v20 = vadd.f32 %v547_v35, %v4227_v18  ;;  %v549_v43 = vpop.f32.mrb[62].mxu0  ;;  %v3664_v23 = vpop.eup %3663  ;;  %v800_v40 = vadd.f32 1.0, %v3662_v38  ;;  %1170 = vmatmul.mubr.bf16.gmra.mrb[48].mxu1 %v898_v19  ;;  %v862_v47 = vmul.f32 %v798_v24, %v606_v37  ;;  %v3472_v19 = vld [vmem:[%s5286_s5 + $0x38] sm:$0xff]   ;;  %v4524_v37 = vld [vmem:[%s5287_s4] ss:$0 sm:$0xff] }
 0x184   :  { %v678_v26 = vmul.f32 0.70710677, %v546_v31  ;;  %v551_v44 = vpop.f32.mrb[63].mxu0  ;;  %v801_v45 = vadd.f32 1.0, %v3664_v23  ;;  %v550_v29 = vadd.f32 %v549_v43, %v4224_v17  ;;  %v863_v33 = vmul.f32 %v799_v34, %v607_v32  ;;  %v3471_v17 = vld [vmem:[%s5286_s5 + $0x30] sm:$0xff]  }
 0x185   :  { %v679_v46 = vmul.f32 0.70710677, %v548_v20  ;;  %v864_v27 = vmul.f32 %v800_v40, %v608_v25  ;;  %v552_v30 = vadd.f32 %v551_v44, %v4227_v18  ;;  %3294 = vmatprep.subr.bf16.mxu1 %v3471_v17  ;;  %v614_v63 = vmul.f32 0.5, %v546_v31 }
 0x186   :  { %3673 = verf.f32 %v678_v26  ;;  %v865_v36 = vmul.f32 %v801_v45, %v609_v28  ;;  %v680_v41 = vmul.f32 0.70710677, %v550_v29  ;;  %3295 = vmatpush3.bf16.msra.mxu1 %v3471_v17  ;;  %v616_v12 = vmul.f32 0.5, %v550_v29 }
 0x187   :  { %3675 = verf.f32 %v679_v46  ;;  %v681_v48 = vmul.f32 0.70710677, %v552_v30  ;;  %v900_v49 = vpack.c.bf16 %v864_v27, %v862_v47  ;;  %v615_v51 = vmul.f32 0.5, %v548_v20  ;;  %3296 = vmatprep.subr.bf16.mxu1 %v3472_v19 }
 0x188   :  { %v3666_v42 = vpop.eup %3665  ;;  %3677 = verf.f32 %v680_v41  ;;  %v901_v52 = vpack.c.bf16 %v865_v36, %v863_v33  ;;  %v617_v62 = vmul.f32 0.5, %v552_v30  ;;  %v3473_v41 = vld [vmem:[%s5288_s7] sm:$0xff]  }
 0x189   :  { %v3668_v50 = vpop.eup %3667  ;;  %v802_v39 = vadd.f32 1.0, %v3666_v42  ;;  %3679 = verf.f32 %v681_v48  ;;  %3330 = vmatprep.subr.bf16.mxu0 %v3473_v41 }
 0x18a   :  { %v3670_v54 = vpop.eup %3669  ;;  %v803_v0 = vadd.f32 1.0, %v3668_v50  ;;  %1177 = vmatprep.mubr.bf16.mxu1 %v901_v52  ;;  %3297 = vmatpush3.bf16.msra.mxu1 %v3472_v19 }
 0x18b   :  { %v3672_v18 = vpop.eup %3671  ;;  %v804_v7 = vadd.f32 1.0, %v3670_v54  ;;  %1178 = vmatmul.mubr.bf16.gmra.mrb[52].mxu1 %v900_v49  ;;  %v866_v55 = vmul.f32 %v802_v39, %v610_v3  ;;  %3331 = vmatpush3.bf16.msra.mxu0 %v3473_v41 }
 0x18c   :  { %v805_v2 = vadd.f32 1.0, %v3672_v18  ;;  %v867_v57 = vmul.f32 %v803_v0, %v611_v8  ;;  %v3474_v0 = vld [vmem:[%s5288_s7 + $0x8] sm:$0xff]   ;;  %v3475_v18 = vld [vmem:[%s5288_s7 + $0x10] sm:$0xff]  }
 0x18d   :  { %v868_v60 = vmul.f32 %v804_v7, %v612_v5  ;;  %3332 = vmatprep.subr.bf16.mxu0 %v3474_v0 }
 0x18e   :  { %v869_v9 = vmul.f32 %v805_v2, %v613_v53 }
 0x18f   :  { %v902_v10 = vpack.c.bf16 %v868_v60, %v866_v55  ;;  %3333 = vmatpush3.bf16.msra.mxu0 %v3474_v0 }
 0x190   :  { %v3674_v58 = vpop.eup %3673  ;;  %v903_v11 = vpack.c.bf16 %v869_v9, %v867_v57  ;;  %3334 = vmatprep.subr.bf16.mxu0 %v3475_v18 }
 0x191   :  { %v3676_v59 = vpop.eup %3675  ;;  %v806_v56 = vadd.f32 1.0, %v3674_v58  ;;  %v3476_v58 = vld [vmem:[%s5288_s7 + $0x18] sm:$0xff]  }
 0x192   :  { %v3678_v6 = vpop.eup %3677  ;;  %v807_v61 = vadd.f32 1.0, %v3676_v59  ;;  %1185 = vmatprep.mubr.bf16.mxu1 %v903_v11 }
 0x193   :  { %v3680_v13 = vpop.eup %3679  ;;  %v808_v1 = vadd.f32 1.0, %v3678_v6  ;;  %1186 = vmatmul.mubr.bf16.gmra.mrb[56].mxu1 %v902_v10  ;;  %v870_v21 = vmul.f32 %v806_v56, %v614_v63  ;;  %3335 = vmatpush3.bf16.msra.mxu0 %v3475_v18 }
 0x194   :  { %v809_v15 = vadd.f32 1.0, %v3680_v13  ;;  %v871_v22 = vmul.f32 %v807_v61, %v615_v51  ;;  %3336 = vmatprep.subr.bf16.mxu0 %v3476_v58 }
 0x195   :  { %v872_v4 = vmul.f32 %v808_v1, %v616_v12  ;;  %v3477_v1 = vld [vmem:[%s5288_s7 + $0x20] sm:$0xff]  }
 0x196   :  { %v873_v24 = vmul.f32 %v809_v15, %v617_v62 }
 0x197   :  { %v904_v35 = vpack.c.bf16 %v872_v4, %v870_v21  ;;  %3337 = vmatpush3.bf16.msra.mxu0 %v3476_v58 }
 0x198   :  { %v905_v38 = vpack.c.bf16 %v873_v24, %v871_v22  ;;  %3338 = vmatprep.subr.bf16.mxu0 %v3477_v1 }
 0x19a   :  { %1193 = vmatprep.mubr.bf16.mxu1 %v905_v38 }
 0x19b   :  { %1194 = vmatmul.mubr.bf16.gmra.mrb[60].mxu1 %v904_v35  ;;  %3339 = vmatpush3.bf16.msra.mxu0 %v3477_v1 }
 0x1f6   :  { %v3138_v31 = vpop.f32.mrb[0].mxu1 }
 0x1f7   :  { %v3139_v34 = vpop.f32.mrb[1].mxu1 }
 0x1f8   :  { %v3140_v20 = vadd.f32 %v3139_v34, %v3138_v31  ;;  %v3141_v43 = vpop.f32.mrb[2].mxu1  ;;  %v3478_v31 = vld [vmem:[%s5288_s7 + $0x28] sm:$0xff]  }
 0x1f9   :  { %v3142_v23 = vpop.f32.mrb[3].mxu1  ;;  %3340 = vmatprep.subr.bf16.mxu0 %v3478_v31 }
 0x1fa   :  { %v1076_v32 = vadd.f32 %v3140_v20, %v4524_v37  ;;  %v3143_v25 = vadd.f32 %v3142_v23, %v3141_v43  ;;  %3341 = vmatpush3.bf16.msra.mxu0 %v3478_v31 }
 0x1fc   :  { %v1234_v40 = vmul.f32 0.70710677, %v1076_v32  ;;  %v1079_v26 = vadd.f32 %v3143_v25, %v4524_v37  ;;  %v1202_v5 = vmul.f32 0.5, %v1076_v32 }
 0x1fe   :  { %3681 = verf.f32 %v1234_v40  ;;  %v1235_v44 = vmul.f32 0.70710677, %v1079_v26  ;;  %v3144_v28 = vpop.f32.mrb[4].mxu1  ;;  %v1203_v53 = vmul.f32 0.5, %v1079_v26 }
 0x1ff   :  { %v3145_v45 = vpop.f32.mrb[5].mxu1 }
 0x200   :  { %3683 = verf.f32 %v1235_v44  ;;  %v3146_v46 = vadd.f32 %v3145_v45, %v3144_v28  ;;  %v3147_v29 = vpop.f32.mrb[6].mxu1  ;;  %v3479_v28 = vld [vmem:[%s5288_s7 + $0x30] sm:$0xff]  }
 0x201   :  { %v3148_v47 = vpop.f32.mrb[7].mxu1  ;;  %3342 = vmatprep.subr.bf16.mxu0 %v3479_v28 }
 0x202   :  { %v1084_v27 = vadd.f32 %v3146_v46, %v4524_v37  ;;  %v3149_v30 = vadd.f32 %v3148_v47, %v3147_v29  ;;  %3343 = vmatpush3.bf16.msra.mxu0 %v3479_v28 }
 0x204   :  { %v1236_v33 = vmul.f32 0.70710677, %v1084_v27  ;;  %v1087_v36 = vadd.f32 %v3149_v30, %v4524_v37  ;;  %v1204_v19 = vmul.f32 0.5, %v1084_v27 }
 0x206   :  { %3685 = verf.f32 %v1236_v33  ;;  %v1237_v42 = vmul.f32 0.70710677, %v1087_v36  ;;  %v3150_v48 = vpop.f32.mrb[8].mxu1  ;;  %v1205_v21 = vmul.f32 0.5, %v1087_v36 }
 0x207   :  { %v3151_v49 = vpop.f32.mrb[9].mxu1 }
 0x208   :  { %v3682_v50 = vpop.eup %3681  ;;  %3687 = verf.f32 %v1237_v42  ;;  %v3152_v52 = vadd.f32 %v3151_v49, %v3150_v48  ;;  %v3153_v39 = vpop.f32.mrb[10].mxu1 }
 0x209   :  { %v1298_v17 = vadd.f32 1.0, %v3682_v50  ;;  %v3154_v54 = vpop.f32.mrb[11].mxu1 }
 0x20a   :  { %v3684_v3 = vpop.eup %3683  ;;  %v1092_v7 = vadd.f32 %v3152_v52, %v4524_v37  ;;  %v3155_v8 = vadd.f32 %v3154_v54, %v3153_v39 }
 0x20b   :  { %v1299_v2 = vadd.f32 1.0, %v3684_v3  ;;  %v1330_v57 = vmul.f32 %v1298_v17, %v1202_v5 }
 0x20c   :  { %v1238_v55 = vmul.f32 0.70710677, %v1092_v7  ;;  %v1095_v60 = vadd.f32 %v3155_v8, %v4524_v37  ;;  %v1206_v47 = vmul.f32 0.5, %v1092_v7 }
 0x20d   :  { %v1331_v9 = vmul.f32 %v1299_v2, %v1203_v53 }
 0x20e   :  { %3689 = verf.f32 %v1238_v55  ;;  %v1239_v10 = vmul.f32 0.70710677, %v1095_v60  ;;  %v3156_v59 = vpop.f32.mrb[12].mxu1  ;;  %v1207_v27 = vmul.f32 0.5, %v1095_v60 }
 0x20f   :  { %v3157_v11 = vpop.f32.mrb[13].mxu1  ;;  %v1362_v56 = vpack.c.bf16 %v1331_v9, %v1330_v57 }
 0x210   :  { %v3686_v6 = vpop.eup %3685  ;;  %3691 = verf.f32 %v1239_v10  ;;  %v3158_v61 = vadd.f32 %v3157_v11, %v3156_v59  ;;  %v3159_v13 = vpop.f32.mrb[14].mxu1 }
 0x211   :  { %v1300_v63 = vadd.f32 1.0, %v3686_v6  ;;  %v3160_v12 = vpop.f32.mrb[15].mxu1  ;;  %3298 = vmatprep.mubr.bf16.mxu1 %v1362_v56 }
 0x212   :  { %v3688_v51 = vpop.eup %3687  ;;  %v1100_v62 = vadd.f32 %v3158_v61, %v4524_v37  ;;  %v3161_v15 = vadd.f32 %v3160_v12, %v3159_v13 }
 0x213   :  { %v1301_v4 = vadd.f32 1.0, %v3688_v51  ;;  %v1332_v35 = vmul.f32 %v1300_v63, %v1204_v19 }
 0x214   :  { %v1240_v22 = vmul.f32 0.70710677, %v1100_v62  ;;  %v1103_v24 = vadd.f32 %v3161_v15, %v4524_v37  ;;  %v1208_v8 = vmul.f32 0.5, %v1100_v62 }
 0x215   :  { %v1333_v38 = vmul.f32 %v1301_v4, %v1205_v21 }
 0x216   :  { %3693 = verf.f32 %v1240_v22  ;;  %v1241_v34 = vmul.f32 0.70710677, %v1103_v24  ;;  %v3162_v20 = vpop.f32.mrb[16].mxu1  ;;  %v1209_v53 = vmul.f32 0.5, %v1103_v24 }
 0x217   :  { %v1363_v43 = vpack.c.bf16 %v1333_v38, %v1332_v35  ;;  %v3163_v23 = vpop.f32.mrb[17].mxu1 }
 0x218   :  { %v3690_v32 = vpop.eup %3689  ;;  %3695 = verf.f32 %v1241_v34  ;;  %v3164_v25 = vadd.f32 %v3163_v23, %v3162_v20  ;;  %v3165_v40 = vpop.f32.mrb[18].mxu1 }
 0x219   :  { %v1302_v26 = vadd.f32 1.0, %v3690_v32  ;;  %v3166_v44 = vpop.f32.mrb[19].mxu1  ;;  %3299 = vmatmul.mubr.bf16.vlgmr.msra.gmra.mrb[64].mxu1 %v1363_v43 }
 0x21a   :  { %v3692_v45 = vpop.eup %3691  ;;  %v1108_v46 = vadd.f32 %v3164_v25, %v4524_v37  ;;  %v3167_v29 = vadd.f32 %v3166_v44, %v3165_v40 }
 0x21b   :  { %v1303_v30 = vadd.f32 1.0, %v3692_v45  ;;  %v1334_v41 = vmul.f32 %v1302_v26, %v1206_v47 }
 0x21c   :  { %v1242_v33 = vmul.f32 0.70710677, %v1108_v46  ;;  %v1111_v36 = vadd.f32 %v3167_v29, %v4524_v37  ;;  %v1210_v62 = vmul.f32 0.5, %v1108_v46 }
 0x21d   :  { %v1335_v42 = vmul.f32 %v1303_v30, %v1207_v27 }
 0x21e   :  { %3697 = verf.f32 %v1242_v33  ;;  %v1243_v48 = vmul.f32 0.70710677, %v1111_v36  ;;  %v3168_v49 = vpop.f32.mrb[20].mxu1  ;;  %v1211_v15 = vmul.f32 0.5, %v1111_v36 }
 0x21f   :  { %v3169_v50 = vpop.f32.mrb[21].mxu1  ;;  %v1364_v52 = vpack.c.bf16 %v1335_v42, %v1334_v41 }
 0x220   :  { %v3694_v39 = vpop.eup %3693  ;;  %3699 = verf.f32 %v1243_v48  ;;  %v3170_v17 = vadd.f32 %v3169_v50, %v3168_v49  ;;  %v3171_v54 = vpop.f32.mrb[22].mxu1 }
 0x221   :  { %v1304_v0 = vadd.f32 1.0, %v3694_v39  ;;  %v3172_v18 = vpop.f32.mrb[23].mxu1  ;;  %3302 = vmatprep.mubr.bf16.mxu1 %v1364_v52 }
 0x222   :  { %v3696_v3 = vpop.eup %3695  ;;  %v1116_v5 = vadd.f32 %v3170_v17, %v4524_v37  ;;  %v3173_v7 = vadd.f32 %v3172_v18, %v3171_v54 }
 0x223   :  { %v1305_v2 = vadd.f32 1.0, %v3696_v3  ;;  %v1336_v57 = vmul.f32 %v1304_v0, %v1208_v8 }
 0x224   :  { %v1244_v55 = vmul.f32 0.70710677, %v1116_v5  ;;  %v1119_v60 = vadd.f32 %v3173_v7, %v4524_v37  ;;  %v1212_v28 = vmul.f32 0.5, %v1116_v5 }
 0x225   :  { %v1337_v9 = vmul.f32 %v1305_v2, %v1209_v53 }
 0x226   :  { %3701 = verf.f32 %v1244_v55  ;;  %v1245_v58 = vmul.f32 0.70710677, %v1119_v60  ;;  %v3174_v10 = vpop.f32.mrb[24].mxu1  ;;  %v1213_v45 = vmul.f32 0.5, %v1119_v60 }
 0x227   :  { %v3175_v59 = vpop.f32.mrb[25].mxu1  ;;  %v1365_v11 = vpack.c.bf16 %v1337_v9, %v1336_v57 }
 0x228   :  { %v3698_v56 = vpop.eup %3697  ;;  %3703 = verf.f32 %v1245_v58  ;;  %v3176_v6 = vadd.f32 %v3175_v59, %v3174_v10  ;;  %v3177_v61 = vpop.f32.mrb[26].mxu1 }
 0x229   :  { %v1306_v13 = vadd.f32 1.0, %v3698_v56  ;;  %v3178_v63 = vpop.f32.mrb[27].mxu1  ;;  %3303 = vmatmul.mubr.bf16.gmra.mrb[68].mxu1 %v1365_v11 }
 0x22a   :  { %v3700_v12 = vpop.eup %3699  ;;  %v1124_v1 = vadd.f32 %v3176_v6, %v4524_v37  ;;  %v3179_v51 = vadd.f32 %v3178_v63, %v3177_v61 }
 0x22b   :  { %v1307_v19 = vadd.f32 1.0, %v3700_v12  ;;  %v1338_v22 = vmul.f32 %v1306_v13, %v1210_v62 }
 0x22c   :  { %v1246_v21 = vmul.f32 0.70710677, %v1124_v1  ;;  %v1127_v4 = vadd.f32 %v3179_v51, %v4524_v37  ;;  %v1214_v18 = vmul.f32 0.5, %v1124_v1 }
 0x22d   :  { %v1339_v24 = vmul.f32 %v1307_v19, %v1211_v15 }
 0x22e   :  { %3705 = verf.f32 %v1246_v21  ;;  %v1247_v35 = vmul.f32 0.70710677, %v1127_v4  ;;  %v3180_v38 = vpop.f32.mrb[28].mxu1  ;;  %v1215_v3 = vmul.f32 0.5, %v1127_v4 }
 0x22f   :  { %v3181_v31 = vpop.f32.mrb[29].mxu1  ;;  %v1366_v34 = vpack.c.bf16 %v1339_v24, %v1338_v22 }
 0x230   :  { %v3702_v20 = vpop.eup %3701  ;;  %3707 = verf.f32 %v1247_v35  ;;  %v3182_v43 = vadd.f32 %v3181_v31, %v3180_v38  ;;  %v3183_v23 = vpop.f32.mrb[30].mxu1 }
 0x231   :  { %v1308_v32 = vadd.f32 1.0, %v3702_v20  ;;  %v3184_v25 = vpop.f32.mrb[31].mxu1  ;;  %3306 = vmatprep.mubr.bf16.mxu1 %v1366_v34 }
 0x232   :  { %v3704_v40 = vpop.eup %3703  ;;  %v1132_v26 = vadd.f32 %v3182_v43, %v4524_v37  ;;  %v3185_v44 = vadd.f32 %v3184_v25, %v3183_v23 }
 0x233   :  { %v1309_v46 = vadd.f32 1.0, %v3704_v40  ;;  %v1340_v27 = vmul.f32 %v1308_v32, %v1212_v28 }
 0x234   :  { %v1248_v29 = vmul.f32 0.70710677, %v1132_v26  ;;  %v1135_v47 = vadd.f32 %v3185_v44, %v4524_v37  ;;  %v1216_v63 = vmul.f32 0.5, %v1132_v26 }
 0x235   :  { %v1341_v30 = vmul.f32 %v1309_v46, %v1213_v45 }
 0x236   :  { %3709 = verf.f32 %v1248_v29  ;;  %v1249_v33 = vmul.f32 0.70710677, %v1135_v47  ;;  %v3186_v36 = vpop.f32.mrb[32].mxu1  ;;  %v1217_v12 = vmul.f32 0.5, %v1135_v47 }
 0x237   :  { %v3187_v41 = vpop.f32.mrb[33].mxu1  ;;  %v1367_v42 = vpack.c.bf16 %v1341_v30, %v1340_v27 }
 0x238   :  { %v3706_v48 = vpop.eup %3705  ;;  %3711 = verf.f32 %v1249_v33  ;;  %v3188_v49 = vadd.f32 %v3187_v41, %v3186_v36  ;;  %v3189_v50 = vpop.f32.mrb[34].mxu1 }
 0x239   :  { %v1310_v52 = vadd.f32 1.0, %v3706_v48  ;;  %v3190_v39 = vpop.f32.mrb[35].mxu1  ;;  %3307 = vmatmul.mubr.bf16.gmra.mrb[72].mxu1 %v1367_v42 }
 0x23a   :  { %v3708_v17 = vpop.eup %3707  ;;  %v1140_v54 = vadd.f32 %v3188_v49, %v4524_v37  ;;  %v3191_v0 = vadd.f32 %v3190_v39, %v3189_v50 }
 0x23b   :  { %v1311_v5 = vadd.f32 1.0, %v3708_v17  ;;  %v1342_v53 = vmul.f32 %v1310_v52, %v1214_v18 }
 0x23c   :  { %v1250_v7 = vmul.f32 0.70710677, %v1140_v54  ;;  %v1143_v8 = vadd.f32 %v3191_v0, %v4524_v37  ;;  %v1218_v25 = vmul.f32 0.5, %v1140_v54 }
 0x23d   :  { %v1343_v2 = vmul.f32 %v1311_v5, %v1215_v3 }
 0x23e   :  { %3713 = verf.f32 %v1250_v7  ;;  %v1251_v55 = vmul.f32 0.70710677, %v1143_v8  ;;  %v3192_v60 = vpop.f32.mrb[36].mxu1  ;;  %v1219_v40 = vmul.f32 0.5, %v1143_v8 }
 0x23f   :  { %v3193_v57 = vpop.f32.mrb[37].mxu1  ;;  %v1368_v9 = vpack.c.bf16 %v1343_v2, %v1342_v53 }
 0x240   :  { %v3710_v58 = vpop.eup %3709  ;;  %3715 = verf.f32 %v1251_v55  ;;  %v3194_v10 = vadd.f32 %v3193_v57, %v3192_v60  ;;  %v3195_v59 = vpop.f32.mrb[38].mxu1 }
 0x241   :  { %v1312_v11 = vadd.f32 1.0, %v3710_v58  ;;  %v3196_v56 = vpop.f32.mrb[39].mxu1  ;;  %3310 = vmatprep.mubr.bf16.mxu1 %v1368_v9 }
 0x242   :  { %v3712_v6 = vpop.eup %3711  ;;  %v1148_v61 = vadd.f32 %v3194_v10, %v4524_v37  ;;  %v3197_v13 = vadd.f32 %v3196_v56, %v3195_v59 }
 0x243   :  { %v1313_v1 = vadd.f32 1.0, %v3712_v6  ;;  %v1344_v15 = vmul.f32 %v1312_v11, %v1216_v63 }
 0x244   :  { %v1252_v51 = vmul.f32 0.70710677, %v1148_v61  ;;  %v1151_v62 = vadd.f32 %v3197_v13, %v4524_v37  ;;  %v1220_v39 = vmul.f32 0.5, %v1148_v61 }
 0x245   :  { %v1345_v19 = vmul.f32 %v1313_v1, %v1217_v12 }
 0x246   :  { %3717 = verf.f32 %v1252_v51  ;;  %v1253_v21 = vmul.f32 0.70710677, %v1151_v62  ;;  %v3198_v4 = vpop.f32.mrb[40].mxu1  ;;  %v1221_v17 = vmul.f32 0.5, %v1151_v62 }
 0x247   :  { %v3199_v22 = vpop.f32.mrb[41].mxu1  ;;  %v1369_v24 = vpack.c.bf16 %v1345_v19, %v1344_v15 }
 0x248   :  { %v3714_v35 = vpop.eup %3713  ;;  %3719 = verf.f32 %v1253_v21  ;;  %v3200_v38 = vadd.f32 %v3199_v22, %v3198_v4  ;;  %v3201_v31 = vpop.f32.mrb[42].mxu1 }
 0x249   :  { %v1314_v34 = vadd.f32 1.0, %v3714_v35  ;;  %v3202_v20 = vpop.f32.mrb[43].mxu1  ;;  %3311 = vmatmul.mubr.bf16.gmra.mrb[76].mxu1 %v1369_v24 }
 0x24a   :  { %v3716_v43 = vpop.eup %3715  ;;  %v1156_v23 = vadd.f32 %v3200_v38, %v4524_v37  ;;  %v3203_v32 = vadd.f32 %v3202_v20, %v3201_v31 }
 0x24b   :  { %v1315_v26 = vadd.f32 1.0, %v3716_v43  ;;  %v1346_v45 = vmul.f32 %v1314_v34, %v1218_v25 }
 0x24c   :  { %v1254_v44 = vmul.f32 0.70710677, %v1156_v23  ;;  %v1159_v28 = vadd.f32 %v3203_v32, %v4524_v37  ;;  %v1222_v56 = vmul.f32 0.5, %v1156_v23 }
 0x24d   :  { %v1347_v46 = vmul.f32 %v1315_v26, %v1219_v40 }
 0x24e   :  { %3721 = verf.f32 %v1254_v44  ;;  %v1255_v29 = vmul.f32 0.70710677, %v1159_v28  ;;  %v3204_v47 = vpop.f32.mrb[44].mxu1  ;;  %v1223_v6 = vmul.f32 0.5, %v1159_v28 }
 0x24f   :  { %v3205_v27 = vpop.f32.mrb[45].mxu1  ;;  %v1370_v30 = vpack.c.bf16 %v1347_v46, %v1346_v45 }
 0x250   :  { %v3718_v33 = vpop.eup %3717  ;;  %3723 = verf.f32 %v1255_v29  ;;  %v3206_v36 = vadd.f32 %v3205_v27, %v3204_v47  ;;  %v3207_v41 = vpop.f32.mrb[46].mxu1 }
 0x251   :  { %v1316_v42 = vadd.f32 1.0, %v3718_v33  ;;  %v3208_v48 = vpop.f32.mrb[47].mxu1  ;;  %3314 = vmatprep.mubr.bf16.mxu1 %v1370_v30 }
 0x252   :  { %v3720_v49 = vpop.eup %3719  ;;  %v1164_v50 = vadd.f32 %v3206_v36, %v4524_v37  ;;  %v3209_v52 = vadd.f32 %v3208_v48, %v3207_v41 }
 0x253   :  { %v1317_v54 = vadd.f32 1.0, %v3720_v49  ;;  %v1348_v3 = vmul.f32 %v1316_v42, %v1220_v39 }
 0x254   :  { %v1256_v0 = vmul.f32 0.70710677, %v1164_v50  ;;  %v1167_v18 = vadd.f32 %v3209_v52, %v4524_v37  ;;  %v1224_v20 = vmul.f32 0.5, %v1164_v50 }
 0x255   :  { %v1349_v5 = vmul.f32 %v1317_v54, %v1221_v17 }
 0x256   :  { %3725 = verf.f32 %v1256_v0  ;;  %v1257_v7 = vmul.f32 0.70710677, %v1167_v18  ;;  %v3210_v8 = vpop.f32.mrb[48].mxu1  ;;  %v1225_v43 = vmul.f32 0.5, %v1167_v18 }
 0x257   :  { %v3211_v53 = vpop.f32.mrb[49].mxu1  ;;  %v1371_v2 = vpack.c.bf16 %v1349_v5, %v1348_v3 }
 0x258   :  { %v3722_v55 = vpop.eup %3721  ;;  %3727 = verf.f32 %v1257_v7  ;;  %v3212_v60 = vadd.f32 %v3211_v53, %v3210_v8  ;;  %v3213_v57 = vpop.f32.mrb[50].mxu1 }
 0x259   :  { %v1318_v9 = vadd.f32 1.0, %v3722_v55  ;;  %v3214_v58 = vpop.f32.mrb[51].mxu1  ;;  %3315 = vmatmul.mubr.bf16.gmra.mrb[80].mxu1 %v1371_v2 }
 0x25a   :  { %v3724_v10 = vpop.eup %3723  ;;  %v1172_v59 = vadd.f32 %v3212_v60, %v4524_v37  ;;  %v3215_v11 = vadd.f32 %v3214_v58, %v3213_v57 }
 0x25b   :  { %v1319_v61 = vadd.f32 1.0, %v3724_v10  ;;  %v1350_v12 = vmul.f32 %v1318_v9, %v1222_v56 }
 0x25c   :  { %v1258_v13 = vmul.f32 0.70710677, %v1172_v59  ;;  %v1175_v63 = vadd.f32 %v3215_v11, %v4524_v37  ;;  %v1226_v48 = vmul.f32 0.5, %v1172_v59 }
 0x25d   :  { %v1351_v1 = vmul.f32 %v1319_v61, %v1223_v6 }
 0x25e   :  { %3729 = verf.f32 %v1258_v13  ;;  %v1259_v51 = vmul.f32 0.70710677, %v1175_v63  ;;  %v3216_v62 = vpop.f32.mrb[52].mxu1  ;;  %v1227_v49 = vmul.f32 0.5, %v1175_v63 }
 0x25f   :  { %v3217_v15 = vpop.f32.mrb[53].mxu1  ;;  %v1372_v19 = vpack.c.bf16 %v1351_v1, %v1350_v12 }
 0x260   :  { %v3726_v21 = vpop.eup %3725  ;;  %3731 = verf.f32 %v1259_v51  ;;  %v3218_v4 = vadd.f32 %v3217_v15, %v3216_v62  ;;  %v3219_v22 = vpop.f32.mrb[54].mxu1 }
 0x261   :  { %v1320_v24 = vadd.f32 1.0, %v3726_v21  ;;  %v3220_v35 = vpop.f32.mrb[55].mxu1  ;;  %3318 = vmatprep.mubr.bf16.mxu1 %v1372_v19 }
 0x262   :  { %v3728_v38 = vpop.eup %3727  ;;  %v1180_v31 = vadd.f32 %v3218_v4, %v4524_v37  ;;  %v3221_v34 = vadd.f32 %v3220_v35, %v3219_v22 }
 0x263   :  { %v1321_v23 = vadd.f32 1.0, %v3728_v38  ;;  %v1352_v40 = vmul.f32 %v1320_v24, %v1224_v20 }
 0x264   :  { %v1260_v32 = vmul.f32 0.70710677, %v1180_v31  ;;  %v1183_v25 = vadd.f32 %v3221_v34, %v4524_v37  ;;  %v1228_v58 = vmul.f32 0.5, %v1180_v31 }
 0x265   :  { %v1353_v26 = vmul.f32 %v1321_v23, %v1225_v43 }
 0x266   :  { %3733 = verf.f32 %v1260_v32  ;;  %v1261_v44 = vmul.f32 0.70710677, %v1183_v25  ;;  %v3222_v28 = vpop.f32.mrb[56].mxu1  ;;  %v1229_v10 = vmul.f32 0.5, %v1183_v25  ;;  %v4585_v25 = vld [vmem:[%s5289_s6] ss:$0 sm:$0xff] }
 0x267   :  { %v3223_v45 = vpop.f32.mrb[57].mxu1  ;;  %v1373_v46 = vpack.c.bf16 %v1353_v26, %v1352_v40 }
 0x268   :  { %v3730_v29 = vpop.eup %3729  ;;  %3735 = verf.f32 %v1261_v44  ;;  %v3224_v47 = vadd.f32 %v3223_v45, %v3222_v28  ;;  %v3225_v27 = vpop.f32.mrb[58].mxu1 }
 0x269   :  { %v1322_v30 = vadd.f32 1.0, %v3730_v29  ;;  %v3226_v33 = vpop.f32.mrb[59].mxu1  ;;  %3319 = vmatmul.mubr.bf16.gmra.mrb[84].mxu1 %v1373_v46 }
 0x26a   :  { %v3732_v36 = vpop.eup %3731  ;;  %v1188_v41 = vadd.f32 %v3224_v47, %v4524_v37  ;;  %v3227_v42 = vadd.f32 %v3226_v33, %v3225_v27 }
 0x26b   :  { %v1323_v50 = vadd.f32 1.0, %v3732_v36  ;;  %v1354_v17 = vmul.f32 %v1322_v30, %v1226_v48  ;;  %v3486_v48 = vld [vmem:[%s5290_s9 + $0x14] ss:$8 sps:$4 sm:$0xff]  }
 0x26c   :  { %v1262_v52 = vmul.f32 0.70710677, %v1188_v41  ;;  %v1191_v39 = vadd.f32 %v3227_v42, %v4524_v37  ;;  %v1230_v62 = vmul.f32 0.5, %v1188_v41  ;;  %v3481_v41 = vld [vmem:[%s5290_s9] ss:$8 sps:$4 sm:$0xff]  }
 0x26d   :  { %v1355_v54 = vmul.f32 %v1323_v50, %v1227_v49  ;;  %v3483_v42 = vld [vmem:[%s5290_s9 + $0x4] ss:$8 sps:$4 sm:$0xff]  }
 0x26e   :  { %3737 = verf.f32 %v1262_v52  ;;  %v1263_v0 = vmul.f32 0.70710677, %v1191_v39  ;;  %v3228_v18 = vpop.f32.mrb[60].mxu1  ;;  %v1231_v15 = vmul.f32 0.5, %v1191_v39  ;;  %2174 = vmatprep.subr.bf16.mxu1 %v3483_v42 }
 0x26f   :  { %v3229_v3 = vpop.f32.mrb[61].mxu1  ;;  %v1374_v5 = vpack.c.bf16 %v1355_v54, %v1354_v17  ;;  %2175 = vmatpush1.bf16.msra.mxu1 %v3481_v41  ;;  %v3484_v54 = vld [vmem:[%s5290_s9 + $0x10] ss:$8 sps:$4 sm:$0xff]  }
 0x270   :  { %v3734_v7 = vpop.eup %3733  ;;  %3739 = verf.f32 %v1263_v0  ;;  %v3230_v8 = vadd.f32 %v3229_v3, %v3228_v18  ;;  %v3231_v53 = vpop.f32.mrb[62].mxu1  ;;  %2176 = vmatprep.subr.bf16.mxu1 %v3486_v48 }
 0x271   :  { %v1324_v2 = vadd.f32 1.0, %v3734_v7  ;;  %v3232_v55 = vpop.f32.mrb[63].mxu1  ;;  %3322 = vmatprep.mubr.bf16.mxu1 %v1374_v5  ;;  %v3489_v7 = vld [vmem:[%s5290_s9 + $0x24] ss:$8 sps:$4 sm:$0xff]  }
 0x272   :  { %v3736_v60 = vpop.eup %3735  ;;  %v1196_v57 = vadd.f32 %v3230_v8, %v4524_v37  ;;  %v3233_v9 = vadd.f32 %v3232_v55, %v3231_v53 }
 0x273   :  { %v1325_v59 = vadd.f32 1.0, %v3736_v60  ;;  %v1356_v6 = vmul.f32 %v1324_v2, %v1228_v58  ;;  %2177 = vmatpush1.bf16.msra.mxu1 %v3484_v54 }
 0x274   :  { %v1264_v11 = vmul.f32 0.70710677, %v1196_v57  ;;  %v1199_v56 = vadd.f32 %v3233_v9, %v4524_v37  ;;  %v3480_v37 = vld [vmem:[%s5288_s7 + $0x38] sm:$0xff]   ;;  %v1232_v31 = vmul.f32 0.5, %v1196_v57  ;;  %2178 = vmatprep.subr.bf16.mxu1 %v3489_v7 }
 0x275   :  { %v1357_v61 = vmul.f32 %v1325_v59, %v1229_v10  ;;  %3344 = vmatprep.subr.bf16.mxu0 %v3480_v37 }
 0x276   :  { %3741 = verf.f32 %v1264_v11  ;;  %v1265_v13 = vmul.f32 0.70710677, %v1199_v56  ;;  %v1233_v34 = vmul.f32 0.5, %v1199_v56  ;;  %3345 = vmatpush3.bf16.msra.mxu0 %v3480_v37 }
 0x277   :  { %v1375_v63 = vpack.c.bf16 %v1357_v61, %v1356_v6 }
 0x278   :  { %v3738_v12 = vpop.eup %3737  ;;  %3743 = verf.f32 %v1265_v13  ;;  %v3487_v13 = vld [vmem:[%s5290_s9 + $0x20] ss:$8 sps:$4 sm:$0xff]  }
 0x279   :  { %v1326_v1 = vadd.f32 1.0, %v3738_v12  ;;  %3323 = vmatmul.mubr.bf16.gmra.mrb[88].mxu1 %v1375_v63 }
 0x27a   :  { %v3740_v51 = vpop.eup %3739  ;;  %2179 = vmatpush1.bf16.msra.mxu1 %v3487_v13 }
 0x27b   :  { %v1327_v19 = vadd.f32 1.0, %v3740_v51  ;;  %v1358_v21 = vmul.f32 %v1326_v1, %v1230_v62  ;;  %v3492_v51 = vld [vmem:[%s5290_s9 + $0x34] ss:$8 sps:$4 sm:$0xff]  }
 0x27c   :  { %2180 = vmatprep.subr.bf16.mxu1 %v3492_v51 }
 0x27d   :  { %v1359_v4 = vmul.f32 %v1327_v19, %v1231_v15 }
 0x27f   :  { %v1376_v22 = vpack.c.bf16 %v1359_v4, %v1358_v21  ;;  %v3490_v4 = vld [vmem:[%s5290_s9 + $0x30] ss:$8 sps:$4 sm:$0xff]  }
 0x280   :  { %v3742_v24 = vpop.eup %3741  ;;  %2181 = vmatpush1.bf16.msra.mxu1 %v3490_v4 }
 0x281   :  { %v1328_v35 = vadd.f32 1.0, %v3742_v24  ;;  %3326 = vmatprep.mubr.bf16.mxu1 %v1376_v22  ;;  %v3495_v22 = vld [vmem:[%s5290_s9 + $0x44] ss:$8 sps:$4 sm:$0xff]   ;;  %v3493_v24 = vld [vmem:[%s5290_s9 + $0x40] ss:$8 sps:$4 sm:$0xff]  }
 0x282   :  { %v3744_v38 = vpop.eup %3743  ;;  %2182 = vmatprep.subr.bf16.mxu1 %v3495_v22 }
 0x283   :  { %v1329_v20 = vadd.f32 1.0, %v3744_v38  ;;  %v1360_v43 = vmul.f32 %v1328_v35, %v1232_v31  ;;  %v3498_v35 = vld [vmem:[%s5290_s9 + $0x54] ss:$8 sps:$4 sm:$0xff]  }
 0x284   :  { %2183 = vmatpush1.bf16.msra.mxu1 %v3493_v24 }
 0x285   :  { %v1361_v23 = vmul.f32 %v1329_v20, %v1233_v34  ;;  %v3496_v34 = vld [vmem:[%s5290_s9 + $0x50] ss:$8 sps:$4 sm:$0xff]   ;;  %2184 = vmatprep.subr.bf16.mxu1 %v3498_v35 }
 0x287   :  { %v1377_v32 = vpack.c.bf16 %v1361_v23, %v1360_v43 }
 0x288   :  { %2185 = vmatpush1.bf16.msra.mxu1 %v3496_v34 }
 0x289   :  { %3327 = vmatmul.mubr.bf16.gmra.mrb[92].mxu1 %v1377_v32  ;;  %v3501_v32 = vld [vmem:[%s5290_s9 + $0x64] ss:$8 sps:$4 sm:$0xff]  }
 0x28a   :  { %2186 = vmatprep.subr.bf16.mxu1 %v3501_v32 }
 0x2ec   :  { %v3300_v40 = vpop.f32.mrb[64].mxu1 }
 0x2ed   :  { %v1492_v26 = vadd.f32 %v3300_v40, %v4585_v25  ;;  %v1483_v44 = vpop.f32.mrb[65].mxu1 }
 0x2ee   :  { %v1484_v28 = vadd.f32 %v4585_v25, %v1483_v44  ;;  %v3301_v45 = vpop.f32.mrb[66].mxu1 }
 0x2ef   :  { %v1644_v46 = vmul.f32 0.70710677, %v1492_v26  ;;  %v1495_v29 = vadd.f32 %v3301_v45, %v4585_v25  ;;  %v1486_v47 = vpop.f32.mrb[67].mxu1  ;;  %v1612_v50 = vmul.f32 0.5, %v1492_v26 }
 0x2f0   :  { %v1642_v27 = vmul.f32 0.70710677, %v1484_v28  ;;  %v1487_v30 = vadd.f32 %v4585_v25, %v1486_v47  ;;  %v1610_v53 = vmul.f32 0.5, %v1484_v28 }
 0x2f1   :  { %3745 = verf.f32 %v1644_v46  ;;  %v1645_v33 = vmul.f32 0.70710677, %v1495_v29  ;;  %v1613_v2 = vmul.f32 0.5, %v1495_v29 }
 0x2f2   :  { %3747 = verf.f32 %v1642_v27  ;;  %v1643_v36 = vmul.f32 0.70710677, %v1487_v30  ;;  %v1611_v9 = vmul.f32 0.5, %v1487_v30 }
 0x2f3   :  { %3749 = verf.f32 %v1645_v33 }
 0x2f4   :  { %3751 = verf.f32 %v1643_v36 }
 0x2fb   :  { %v3746_v49 = vpop.eup %3745 }
 0x2fc   :  { %v3748_v52 = vpop.eup %3747  ;;  %v1708_v39 = vadd.f32 1.0, %v3746_v49  ;;  %v3304_v17 = vpop.f32.mrb[68].mxu1  ;;  %v3499_v49 = vld [vmem:[%s5290_s9 + $0x60] ss:$8 sps:$4 sm:$0xff]  }
 0x2fd   :  { %v3750_v0 = vpop.eup %3749  ;;  %v1706_v18 = vadd.f32 1.0, %v3748_v52  ;;  %v1508_v3 = vadd.f32 %v3304_v17, %v4585_v25  ;;  %v1499_v5 = vpop.f32.mrb[69].mxu1  ;;  %v3504_v17 = vld [vmem:[%s5290_s9 + $0x74] ss:$8 sps:$4 sm:$0xff]   ;;  %2187 = vmatpush1.bf16.msra.mxu1 %v3499_v49 }
 0x2fe   :  { %v3752_v8 = vpop.eup %3751  ;;  %v1709_v55 = vadd.f32 1.0, %v3750_v0  ;;  %v1500_v60 = vadd.f32 %v4585_v25, %v1499_v5  ;;  %v3305_v57 = vpop.f32.mrb[70].mxu1  ;;  %v1740_v11 = vmul.f32 %v1708_v39, %v1612_v50  ;;  %2188 = vmatprep.subr.bf16.mxu1 %v3504_v17 }
 0x2ff   :  { %v1707_v58 = vadd.f32 1.0, %v3752_v8  ;;  %v1648_v10 = vmul.f32 0.70710677, %v1508_v3  ;;  %v1502_v59 = vpop.f32.mrb[71].mxu1  ;;  %v1511_v61 = vadd.f32 %v3305_v57, %v4585_v25  ;;  %v1738_v63 = vmul.f32 %v1706_v18, %v1610_v53  ;;  %v3502_v8 = vld [vmem:[%s5290_s9 + $0x70] ss:$8 sps:$4 sm:$0xff]  }
 0x300   :  { %v1741_v56 = vmul.f32 %v1709_v55, %v1613_v2  ;;  %v1646_v6 = vmul.f32 0.70710677, %v1500_v60  ;;  %v1503_v1 = vadd.f32 %v4585_v25, %v1502_v59  ;;  %v1616_v26 = vmul.f32 0.5, %v1508_v3 }
 0x301   :  { %v1739_v12 = vmul.f32 %v1707_v58, %v1611_v9  ;;  %3753 = verf.f32 %v1648_v10  ;;  %v1649_v15 = vmul.f32 0.70710677, %v1511_v61  ;;  %v1614_v29 = vmul.f32 0.5, %v1500_v60  ;;  %2189 = vmatpush1.bf16.msra.mxu1 %v3502_v8 }
 0x302   :  { %v1771_v62 = vpack.c.bf16 %v1741_v56, %v1740_v11  ;;  %3755 = verf.f32 %v1646_v6  ;;  %v1647_v19 = vmul.f32 0.70710677, %v1503_v1  ;;  %v1617_v47 = vmul.f32 0.5, %v1511_v61 }
 0x303   :  { %v1770_v21 = vpack.c.bf16 %v1739_v12, %v1738_v63  ;;  %3757 = verf.f32 %v1649_v15  ;;  %v1615_v36 = vmul.f32 0.5, %v1503_v1 }
 0x304   :  { %3759 = verf.f32 %v1647_v19 }
 0x305   :  { %3346 = vmatprep.mubr.bf16.mxu0 %v1770_v21 }
 0x306   :  { %3347 = vmatmul.mubr.bf16.vlgmr.msra.gmra.mrb[64].mxu0 %v1771_v62 }
 0x30b   :  { %v3754_v37 = vpop.eup %3753 }
 0x30c   :  { %v3756_v38 = vpop.eup %3755  ;;  %v3308_v31 = vpop.f32.mrb[72].mxu1  ;;  %v1712_v20 = vadd.f32 1.0, %v3754_v37 }
 0x30d   :  { %v1524_v43 = vadd.f32 %v3308_v31, %v4585_v25  ;;  %v1515_v23 = vpop.f32.mrb[73].mxu1  ;;  %v3758_v40 = vpop.eup %3757  ;;  %v1710_v44 = vadd.f32 1.0, %v3756_v38 }
 0x30e   :  { %v1516_v28 = vadd.f32 %v4585_v25, %v1515_v23  ;;  %v3309_v45 = vpop.f32.mrb[74].mxu1  ;;  %v3760_v46 = vpop.eup %3759  ;;  %v1713_v27 = vadd.f32 1.0, %v3758_v40  ;;  %v1744_v50 = vmul.f32 %v1712_v20, %v1616_v26 }
 0x30f   :  { %v1652_v30 = vmul.f32 0.70710677, %v1524_v43  ;;  %v1518_v33 = vpop.f32.mrb[75].mxu1  ;;  %v1711_v41 = vadd.f32 1.0, %v3760_v46  ;;  %v1527_v48 = vadd.f32 %v3309_v45, %v4585_v25  ;;  %v1742_v54 = vmul.f32 %v1710_v44, %v1614_v29 }
 0x310   :  { %v1650_v42 = vmul.f32 0.70710677, %v1516_v28  ;;  %v1745_v52 = vmul.f32 %v1713_v27, %v1617_v47  ;;  %v1519_v39 = vadd.f32 %v4585_v25, %v1518_v33  ;;  %v1620_v10 = vmul.f32 0.5, %v1524_v43 }
 0x311   :  { %3761 = verf.f32 %v1652_v30  ;;  %v1743_v0 = vmul.f32 %v1711_v41, %v1615_v36  ;;  %v1653_v18 = vmul.f32 0.70710677, %v1527_v48  ;;  %v1618_v61 = vmul.f32 0.5, %v1516_v28 }
 0x312   :  { %3763 = verf.f32 %v1650_v42  ;;  %v1651_v3 = vmul.f32 0.70710677, %v1519_v39  ;;  %v1773_v5 = vpack.c.bf16 %v1745_v52, %v1744_v50  ;;  %v1621_v13 = vmul.f32 0.5, %v1527_v48 }
 0x313   :  { %3765 = verf.f32 %v1653_v18  ;;  %v1772_v7 = vpack.c.bf16 %v1743_v0, %v1742_v54  ;;  %v1619_v51 = vmul.f32 0.5, %v1519_v39 }
 0x314   :  { %3767 = verf.f32 %v1651_v3 }
 0x315   :  { %3350 = vmatprep.mubr.bf16.mxu0 %v1772_v7 }
 0x316   :  { %3351 = vmatmul.mubr.bf16.gmra.mrb[68].mxu0 %v1773_v5 }
 0x31b   :  { %v3762_v53 = vpop.eup %3761 }
 0x31c   :  { %v3764_v2 = vpop.eup %3763  ;;  %v3312_v55 = vpop.f32.mrb[76].mxu1  ;;  %v1716_v60 = vadd.f32 1.0, %v3762_v53 }
 0x31d   :  { %v1540_v57 = vadd.f32 %v3312_v55, %v4585_v25  ;;  %v1531_v9 = vpop.f32.mrb[77].mxu1  ;;  %v3766_v58 = vpop.eup %3765  ;;  %v1714_v59 = vadd.f32 1.0, %v3764_v2 }
 0x31e   :  { %v1532_v11 = vadd.f32 %v4585_v25, %v1531_v9  ;;  %v3313_v56 = vpop.f32.mrb[78].mxu1  ;;  %v3768_v6 = vpop.eup %3767  ;;  %v1717_v63 = vadd.f32 1.0, %v3766_v58  ;;  %v1748_v21 = vmul.f32 %v1716_v60, %v1620_v10 }
 0x31f   :  { %v1656_v12 = vmul.f32 0.70710677, %v1540_v57  ;;  %v1534_v1 = vpop.f32.mrb[79].mxu1  ;;  %v1715_v62 = vadd.f32 1.0, %v3768_v6  ;;  %v1543_v19 = vadd.f32 %v3313_v56, %v4585_v25  ;;  %v1746_v24 = vmul.f32 %v1714_v59, %v1618_v61 }
 0x320   :  { %v1654_v15 = vmul.f32 0.70710677, %v1532_v11  ;;  %v1749_v4 = vmul.f32 %v1717_v63, %v1621_v13  ;;  %v1535_v22 = vadd.f32 %v4585_v25, %v1534_v1  ;;  %v1624_v28 = vmul.f32 0.5, %v1540_v57 }
 0x321   :  { %3769 = verf.f32 %v1656_v12  ;;  %v1747_v35 = vmul.f32 %v1715_v62, %v1619_v51  ;;  %v1657_v37 = vmul.f32 0.70710677, %v1543_v19  ;;  %v1622_v27 = vmul.f32 0.5, %v1532_v11 }
 0x322   :  { %3771 = verf.f32 %v1654_v15  ;;  %v1655_v38 = vmul.f32 0.70710677, %v1535_v22  ;;  %v1775_v31 = vpack.c.bf16 %v1749_v4, %v1748_v21  ;;  %v1625_v30 = vmul.f32 0.5, %v1543_v19 }
 0x323   :  { %3773 = verf.f32 %v1657_v37  ;;  %v1774_v34 = vpack.c.bf16 %v1747_v35, %v1746_v24  ;;  %v1623_v42 = vmul.f32 0.5, %v1535_v22 }
 0x324   :  { %3775 = verf.f32 %v1655_v38 }
 0x325   :  { %3354 = vmatprep.mubr.bf16.mxu0 %v1774_v34 }
 0x326   :  { %3355 = vmatmul.mubr.bf16.gmra.mrb[72].mxu0 %v1775_v31 }
 0x32b   :  { %v3770_v20 = vpop.eup %3769 }
 0x32c   :  { %v3772_v43 = vpop.eup %3771  ;;  %v3316_v23 = vpop.f32.mrb[80].mxu1  ;;  %v1720_v32 = vadd.f32 1.0, %v3770_v20 }
 0x32d   :  { %v1556_v40 = vadd.f32 %v3316_v23, %v4585_v25  ;;  %v1547_v26 = vpop.f32.mrb[81].mxu1  ;;  %v3774_v44 = vpop.eup %3773  ;;  %v1718_v45 = vadd.f32 1.0, %v3772_v43 }
 0x32e   :  { %v1548_v46 = vadd.f32 %v4585_v25, %v1547_v26  ;;  %v3317_v29 = vpop.f32.mrb[82].mxu1  ;;  %v3776_v47 = vpop.eup %3775  ;;  %v1721_v33 = vadd.f32 1.0, %v3774_v44  ;;  %v1752_v52 = vmul.f32 %v1720_v32, %v1624_v28 }
 0x32f   :  { %v1660_v36 = vmul.f32 0.70710677, %v1556_v40  ;;  %v1550_v41 = vpop.f32.mrb[83].mxu1  ;;  %v1719_v48 = vadd.f32 1.0, %v3776_v47  ;;  %v1559_v50 = vadd.f32 %v3317_v29, %v4585_v25  ;;  %v1750_v54 = vmul.f32 %v1718_v45, %v1622_v27 }
 0x330   :  { %v1658_v49 = vmul.f32 0.70710677, %v1548_v46  ;;  %v1753_v39 = vmul.f32 %v1721_v33, %v1625_v30  ;;  %v1551_v17 = vadd.f32 %v4585_v25, %v1550_v41  ;;  %v1628_v58 = vmul.f32 0.5, %v1556_v40 }
 0x331   :  { %3777 = verf.f32 %v1660_v36  ;;  %v1751_v0 = vmul.f32 %v1719_v48, %v1623_v42  ;;  %v1661_v18 = vmul.f32 0.70710677, %v1559_v50  ;;  %v1626_v6 = vmul.f32 0.5, %v1548_v46 }
 0x332   :  { %3779 = verf.f32 %v1658_v49  ;;  %v1659_v3 = vmul.f32 0.70710677, %v1551_v17  ;;  %v1777_v5 = vpack.c.bf16 %v1753_v39, %v1752_v52  ;;  %v1629_v61 = vmul.f32 0.5, %v1559_v50 }
 0x333   :  { %3781 = verf.f32 %v1661_v18  ;;  %v1776_v7 = vpack.c.bf16 %v1751_v0, %v1750_v54  ;;  %v1627_v1 = vmul.f32 0.5, %v1551_v17 }
 0x334   :  { %3783 = verf.f32 %v1659_v3 }
 0x335   :  { %3358 = vmatprep.mubr.bf16.mxu0 %v1776_v7 }
 0x336   :  { %3359 = vmatmul.mubr.bf16.gmra.mrb[76].mxu0 %v1777_v5 }
 0x33b   :  { %v3778_v8 = vpop.eup %3777 }
 0x33c   :  { %v3780_v53 = vpop.eup %3779  ;;  %v3320_v2 = vpop.f32.mrb[84].mxu1  ;;  %v1724_v55 = vadd.f32 1.0, %v3778_v8 }
 0x33d   :  { %v1572_v60 = vadd.f32 %v3320_v2, %v4585_v25  ;;  %v1563_v57 = vpop.f32.mrb[85].mxu1  ;;  %v3782_v9 = vpop.eup %3781  ;;  %v1722_v10 = vadd.f32 1.0, %v3780_v53 }
 0x33e   :  { %v1564_v59 = vadd.f32 %v4585_v25, %v1563_v57  ;;  %v3321_v11 = vpop.f32.mrb[86].mxu1  ;;  %v3784_v56 = vpop.eup %3783  ;;  %v1725_v13 = vadd.f32 1.0, %v3782_v9  ;;  %v1756_v19 = vmul.f32 %v1724_v55, %v1628_v58 }
 0x33f   :  { %v1664_v63 = vmul.f32 0.70710677, %v1572_v60  ;;  %v1566_v12 = vpop.f32.mrb[87].mxu1  ;;  %v1723_v51 = vadd.f32 1.0, %v3784_v56  ;;  %v1575_v15 = vadd.f32 %v3321_v11, %v4585_v25  ;;  %v1754_v22 = vmul.f32 %v1722_v10, %v1626_v6 }
 0x340   :  { %v1662_v62 = vmul.f32 0.70710677, %v1564_v59  ;;  %v1757_v21 = vmul.f32 %v1725_v13, %v1629_v61  ;;  %v1567_v4 = vadd.f32 %v4585_v25, %v1566_v12  ;;  %v1632_v44 = vmul.f32 0.5, %v1572_v60 }
 0x341   :  { %3785 = verf.f32 %v1664_v63  ;;  %v1755_v24 = vmul.f32 %v1723_v51, %v1627_v1  ;;  %v1665_v35 = vmul.f32 0.70710677, %v1575_v15  ;;  %v1630_v47 = vmul.f32 0.5, %v1564_v59 }
 0x342   :  { %3787 = verf.f32 %v1662_v62  ;;  %v1663_v37 = vmul.f32 0.70710677, %v1567_v4  ;;  %v1779_v38 = vpack.c.bf16 %v1757_v21, %v1756_v19  ;;  %v1633_v27 = vmul.f32 0.5, %v1575_v15 }
 0x343   :  { %3789 = verf.f32 %v1665_v35  ;;  %v1778_v31 = vpack.c.bf16 %v1755_v24, %v1754_v22  ;;  %v1631_v41 = vmul.f32 0.5, %v1567_v4  ;;  %v3809_v35 = vmov 0  }
 0x344   :  { %3791 = verf.f32 %v1663_v37  ;;  %2206 = vmatprep.mubr.bf16.mxu1 %v3809_v35 }
 0x345   :  { %3362 = vmatprep.mubr.bf16.mxu0 %v1778_v31 }
 0x346   :  { %3363 = vmatmul.mubr.bf16.gmra.mrb[80].mxu0 %v1779_v38 }
 0x34b   :  { %v3786_v34 = vpop.eup %3785 }
 0x34c   :  { %v3788_v20 = vpop.eup %3787  ;;  %v3324_v43 = vpop.f32.mrb[88].mxu1  ;;  %v1728_v23 = vadd.f32 1.0, %v3786_v34 }
 0x34d   :  { %v1588_v32 = vadd.f32 %v3324_v43, %v4585_v25  ;;  %v1579_v40 = vpop.f32.mrb[89].mxu1  ;;  %v3790_v26 = vpop.eup %3789  ;;  %v1726_v28 = vadd.f32 1.0, %v3788_v20 }
 0x34e   :  { %v1580_v45 = vadd.f32 %v4585_v25, %v1579_v40  ;;  %v3325_v46 = vpop.f32.mrb[90].mxu1  ;;  %v3792_v29 = vpop.eup %3791  ;;  %v1729_v30 = vadd.f32 1.0, %v3790_v26  ;;  %v1760_v50 = vmul.f32 %v1728_v23, %v1632_v44 }
 0x34f   :  { %v1668_v33 = vmul.f32 0.70710677, %v1588_v32  ;;  %v1582_v36 = vpop.f32.mrb[91].mxu1  ;;  %v1727_v42 = vadd.f32 1.0, %v3792_v29  ;;  %v1591_v49 = vadd.f32 %v3325_v46, %v4585_v25  ;;  %v1758_v17 = vmul.f32 %v1726_v28, %v1630_v47 }
 0x350   :  { %v1666_v48 = vmul.f32 0.70710677, %v1580_v45  ;;  %v1761_v52 = vmul.f32 %v1729_v30, %v1633_v27  ;;  %v1583_v39 = vadd.f32 %v4585_v25, %v1582_v36  ;;  %v1636_v9 = vmul.f32 0.5, %v1588_v32 }
 0x351   :  { %3793 = verf.f32 %v1668_v33  ;;  %v1759_v54 = vmul.f32 %v1727_v42, %v1631_v41  ;;  %v1669_v0 = vmul.f32 0.70710677, %v1591_v49  ;;  %v1634_v58 = vmul.f32 0.5, %v1580_v45  ;;  %v4671_v41 = vld [vmem:[%s5291_s8] ss:$0 sm:$0xff] }
 0x352   :  { %3795 = verf.f32 %v1666_v48  ;;  %v1667_v18 = vmul.f32 0.70710677, %v1583_v39  ;;  %v1781_v3 = vpack.c.bf16 %v1761_v52, %v1760_v50  ;;  %v1637_v6 = vmul.f32 0.5, %v1591_v49 }
 0x353   :  { %3797 = verf.f32 %v1669_v0  ;;  %v1780_v5 = vpack.c.bf16 %v1759_v54, %v1758_v17  ;;  %v1635_v13 = vmul.f32 0.5, %v1583_v39  ;;  %v3505_v39 = vld [vmem:[%s5293_s11] ss:$8 sps:$4 sm:$0xff]   ;;  %v3507_v0 = vld [vmem:[%s5293_s11 + $0x4] ss:$8 sps:$4 sm:$0xff]  }
 0x354   :  { %3799 = verf.f32 %v1667_v18  ;;  %2667 = vmatprep.subr.bf16.mxu0 %v3507_v0  ;;  %3378 = vmatprep.subr.bf16.mxu1 %v3507_v0 }
 0x355   :  { %3366 = vmatprep.mubr.bf16.mxu0 %v1780_v5  ;;  %2668 = vmatpush1.bf16.msra.mxu0 %v3505_v39 }
 0x356   :  { %3367 = vmatmul.mubr.bf16.gmra.mrb[84].mxu0 %v1781_v3  ;;  %v3510_v3 = vld [vmem:[%s5293_s11 + $0x14] ss:$8 sps:$4 sm:$0xff]  }
 0x357   :  { %2669 = vmatprep.subr.bf16.mxu0 %v3510_v3 }
 0x35b   :  { %v3794_v7 = vpop.eup %3793 }
 0x35c   :  { %v3796_v8 = vpop.eup %3795  ;;  %v1732_v53 = vadd.f32 1.0, %v3794_v7  ;;  %v3328_v2 = vpop.f32.mrb[92].mxu1 }
 0x35d   :  { %v1604_v55 = vadd.f32 %v3328_v2, %v4585_v25  ;;  %v1595_v60 = vpop.f32.mrb[93].mxu1  ;;  %v3798_v57 = vpop.eup %3797  ;;  %v1730_v10 = vadd.f32 1.0, %v3796_v8  ;;  %v3508_v8 = vld [vmem:[%s5293_s11 + $0x10] ss:$8 sps:$4 sm:$0xff]   ;;  %v3511_v2 = vld [vmem:[%s5293_s11 + $0x20] ss:$8 sps:$4 sm:$0xff]  }
 0x35e   :  { %v1596_v59 = vadd.f32 %v4585_v25, %v1595_v60  ;;  %v3329_v11 = vpop.f32.mrb[94].mxu1  ;;  %v3800_v56 = vpop.eup %3799  ;;  %v1733_v61 = vadd.f32 1.0, %v3798_v57  ;;  %v1764_v1 = vmul.f32 %v1732_v53, %v1636_v9  ;;  %v3513_v53 = vld [vmem:[%s5293_s11 + $0x24] ss:$8 sps:$4 sm:$0xff]   ;;  %2670 = vmatpush1.bf16.msra.mxu0 %v3508_v8  ;;  %v3514_v60 = vld [vmem:[%s5293_s11 + $0x30] ss:$8 sps:$4 sm:$0xff]  }
 0x35f   :  { %v1672_v63 = vmul.f32 0.70710677, %v1604_v55  ;;  %v1598_v12 = vpop.f32.mrb[95].mxu1  ;;  %v1731_v51 = vadd.f32 1.0, %v3800_v56  ;;  %v1607_v15 = vadd.f32 %v3329_v11, %v4585_v25  ;;  %v1762_v4 = vmul.f32 %v1730_v10, %v1634_v58  ;;  %2671 = vmatprep.subr.bf16.mxu0 %v3513_v53  ;;  %v3519_v57 = vld [vmem:[%s5293_s11 + $0x44] ss:$8 sps:$4 sm:$0xff]  }
 0x360   :  { %v1670_v62 = vmul.f32 0.70710677, %v1596_v59  ;;  %v1765_v19 = vmul.f32 %v1733_v61, %v1637_v6  ;;  %v1599_v21 = vadd.f32 %v4585_v25, %v1598_v12  ;;  %v1640_v40 = vmul.f32 0.5, %v1604_v55  ;;  %v3516_v55 = vld [vmem:[%s5293_s11 + $0x34] ss:$8 sps:$4 sm:$0xff]  }
 0x361   :  { %3801 = verf.f32 %v1672_v63  ;;  %v1763_v22 = vmul.f32 %v1731_v51, %v1635_v13  ;;  %v1673_v24 = vmul.f32 0.70710677, %v1607_v15  ;;  %v1641_v26 = vmul.f32 0.5, %v1607_v15  ;;  %v3522_v6 = vld [vmem:[%s5293_s11 + $0x54] ss:$8 sps:$4 sm:$0xff]  }
 0x362   :  { %3803 = verf.f32 %v1670_v62  ;;  %v1671_v37 = vmul.f32 0.70710677, %v1599_v21  ;;  %v1783_v38 = vpack.c.bf16 %v1765_v19, %v1764_v1  ;;  %v1638_v28 = vmul.f32 0.5, %v1596_v59  ;;  %2672 = vmatpush1.bf16.msra.mxu0 %v3511_v2  ;;  %v3517_v59 = vld [vmem:[%s5293_s11 + $0x40] ss:$8 sps:$4 sm:$0xff]  }
 0x363   :  { %3805 = verf.f32 %v1673_v24  ;;  %v1782_v31 = vpack.c.bf16 %v1763_v22, %v1762_v4  ;;  %v1639_v45 = vmul.f32 0.5, %v1599_v21  ;;  %2673 = vmatprep.subr.bf16.mxu0 %v3516_v55  ;;  %v3520_v1 = vld [vmem:[%s5293_s11 + $0x50] ss:$8 sps:$4 sm:$0xff]   ;;  %v3525_v62 = vld [vmem:[%s5293_s11 + $0x64] ss:$8 sps:$4 sm:$0xff]  }
 0x364   :  { %3807 = verf.f32 %v1671_v37  ;;  %v3523_v15 = vld [vmem:[%s5293_s11 + $0x60] ss:$8 sps:$4 sm:$0xff]   ;;  %v3528_v19 = vld [vmem:[%s5293_s11 + $0x74] ss:$8 sps:$4 sm:$0xff]   ;;  %v3526_v21 = vld [vmem:[%s5293_s11 + $0x70] ss:$8 sps:$4 sm:$0xff]  }
 0x365   :  { %3370 = vmatprep.mubr.bf16.mxu0 %v1782_v31  ;;  %v3531_v4 = vld [vmem:[%s5293_s11 + $0x84] ss:$8 sps:$4 sm:$0xff]  }
 0x366   :  { %3371 = vmatmul.mubr.bf16.gmra.mrb[88].mxu0 %v1783_v38  ;;  %v3529_v38 = vld [vmem:[%s5293_s11 + $0x80] ss:$8 sps:$4 sm:$0xff]  }
 0x367   :  { %2674 = vmatpush1.bf16.msra.mxu0 %v3514_v60 }
 0x368   :  { %2675 = vmatprep.subr.bf16.mxu0 %v3519_v57 }
 0x36b   :  { %v3802_v34 = vpop.eup %3801  ;;  %2676 = vmatpush1.bf16.msra.mxu0 %v3517_v59 }
 0x36c   :  { %v3804_v20 = vpop.eup %3803  ;;  %v1736_v43 = vadd.f32 1.0, %v3802_v34  ;;  %2677 = vmatprep.subr.bf16.mxu0 %v3522_v6 }
 0x36d   :  { %v3806_v23 = vpop.eup %3805  ;;  %v1734_v32 = vadd.f32 1.0, %v3804_v20  ;;  %v3534_v20 = vld [vmem:[%s5293_s11 + $0x94] ss:$8 sps:$4 sm:$0xff]  }
 0x36e   :  { %v3808_v25 = vpop.eup %3807  ;;  %v1737_v44 = vadd.f32 1.0, %v3806_v23  ;;  %v1768_v29 = vmul.f32 %v1736_v43, %v1640_v40  ;;  %v3532_v40 = vld [vmem:[%s5293_s11 + $0x90] ss:$8 sps:$4 sm:$0xff]  }
 0x36f   :  { %v1735_v46 = vadd.f32 1.0, %v3808_v25  ;;  %v1766_v27 = vmul.f32 %v1734_v32, %v1638_v28  ;;  %2678 = vmatpush1.bf16.msra.mxu0 %v3520_v1  ;;  %v3535_v28 = vld [vmem:[%s5293_s11 + $0xa0] ss:$8 sps:$4 sm:$0xff]  }
 0x370   :  { %v1769_v47 = vmul.f32 %v1737_v44, %v1641_v26  ;;  %2679 = vmatprep.subr.bf16.mxu0 %v3525_v62  ;;  %v3537_v44 = vld [vmem:[%s5293_s11 + $0xa4] ss:$8 sps:$4 sm:$0xff]  }
 0x371   :  { %v1767_v30 = vmul.f32 %v1735_v46, %v1639_v45  ;;  %v3540_v45 = vld [vmem:[%s5293_s11 + $0xb4] ss:$8 sps:$4 sm:$0xff]   ;;  %v3538_v46 = vld [vmem:[%s5293_s11 + $0xb0] ss:$8 sps:$4 sm:$0xff]  }
 0x372   :  { %v1785_v33 = vpack.c.bf16 %v1769_v47, %v1768_v29  ;;  %v3543_v29 = vld [vmem:[%s5293_s11 + $0xc4] ss:$8 sps:$4 sm:$0xff]  }
 0x373   :  { %v1784_v36 = vpack.c.bf16 %v1767_v30, %v1766_v27  ;;  %2680 = vmatpush1.bf16.msra.mxu0 %v3523_v15 }
 0x374   :  { %2681 = vmatprep.subr.bf16.mxu0 %v3528_v19 }
 0x375   :  { %3374 = vmatprep.mubr.bf16.mxu0 %v1784_v36 }
 0x376   :  { %3375 = vmatmul.mubr.bf16.gmra.mrb[92].mxu0 %v1785_v33  ;;  %v3541_v33 = vld [vmem:[%s5293_s11 + $0xc0] ss:$8 sps:$4 sm:$0xff]  }
 0x377   :  { %2682 = vmatpush1.bf16.msra.mxu0 %v3526_v21 }
 0x378   :  { %2683 = vmatprep.subr.bf16.mxu0 %v3531_v4 }
 0x37b   :  { %2684 = vmatpush1.bf16.msra.mxu0 %v3529_v38 }
 0x37c   :  { %2685 = vmatprep.subr.bf16.mxu0 %v3534_v20 }
 0x37f   :  { %2686 = vmatpush1.bf16.msra.mxu0 %v3532_v40 }
 0x380   :  { %2687 = vmatprep.subr.bf16.mxu0 %v3537_v44 }
 0x383   :  { %2688 = vmatpush1.bf16.msra.mxu0 %v3535_v28 }
 0x384   :  { %2689 = vmatprep.subr.bf16.mxu0 %v3540_v45 }
 0x387   :  { %2690 = vmatpush1.bf16.msra.mxu0 %v3538_v46 }
 0x388   :  { %2691 = vmatprep.subr.bf16.mxu0 %v3543_v29 }
 0x38b   :  { %2692 = vmatpush1.bf16.msra.mxu0 %v3541_v33 }
 0x3d9   :  { %v3348_v42 = vpop.f32.mrb[64].mxu0 }
 0x3da   :  { %v1900_v48 = vadd.f32 %v3348_v42, %v4671_v41  ;;  %v1891_v49 = vpop.f32.mrb[65].mxu0 }
 0x3db   :  { %v1892_v50 = vadd.f32 %v4671_v41, %v1891_v49  ;;  %v3349_v52 = vpop.f32.mrb[66].mxu0 }
 0x3dc   :  { %2020 = vst [vmem:[%s5292_s14 + $0x10] sm:$0xff] %v1900_v48  ;;  %v1903_v17 = vadd.f32 %v3349_v52, %v4671_v41  ;;  %v1894_v54 = vpop.f32.mrb[67].mxu0 }
 0x3dd   :  { %2018 = vst [vmem:[%s5292_s14] sm:$0xff] %v1892_v50  ;;  %v1895_v18 = vadd.f32 %v4671_v41, %v1894_v54 }
 0x3de   :  { %2021 = vst [vmem:[%s5292_s14 + $0x18] sm:$0xff] %v1903_v17  ;;  %v2051_v5 = vpack.c.bf16 %v1903_v17, %v1900_v48  ;;  %v3546_v48 = vld [vmem:[%s5293_s11 + $0xd4] ss:$8 sps:$4 sm:$0xff]   ;;  %v3544_v17 = vld [vmem:[%s5293_s11 + $0xd0] ss:$8 sps:$4 sm:$0xff]  }
 0x3df   :  { %2019 = vst [vmem:[%s5292_s14 + $0x8] sm:$0xff] %v1895_v18  ;;  %v2050_v7 = vpack.c.bf16 %v1895_v18, %v1892_v50  ;;  %2693 = vmatprep.subr.bf16.mxu0 %v3546_v48 }
 0x3e0   :  { %2694 = vmatpush1.bf16.msra.mxu0 %v3544_v17 }
 0x3e1   :  { %2207 = vmatmul.mubr.bf16.vlgmr.msra.gmra.mrb[96].mxu1 %v2050_v7 }
 0x3e2   :  { %2216 = vmatprep.mubr.bf16.mxu1 %v3809_v35  ;;  %3394 = vmatpush1.bf16.msra.mxu1 %v3505_v39 }
 0x3e3   :  { %3379 = vmatprep.subr.bf16.mxu1 %v3510_v3 }
 0x3e6   :  { %3395 = vmatpush1.bf16.msra.mxu1 %v3508_v8 }
 0x3e7   :  { %3380 = vmatprep.subr.bf16.mxu1 %v3513_v53 }
 0x3e9   :  { %2217 = vmatmul.mubr.bf16.gmra.mrb[100].mxu1 %v2051_v5  ;;  %v3352_v9 = vpop.f32.mrb[68].mxu0 }
 0x3ea   :  { %2226 = vmatprep.mubr.bf16.mxu1 %v3809_v35  ;;  %3396 = vmatpush1.bf16.msra.mxu1 %v3511_v2  ;;  %v1916_v58 = vadd.f32 %v3352_v9, %v4671_v41  ;;  %v1907_v10 = vpop.f32.mrb[69].mxu0 }
 0x3eb   :  { %3381 = vmatprep.subr.bf16.mxu1 %v3516_v55  ;;  %v1908_v11 = vadd.f32 %v4671_v41, %v1907_v10  ;;  %v3353_v56 = vpop.f32.mrb[70].mxu0 }
 0x3ec   :  { %2024 = vst [vmem:[%s5292_s14 + $0x30] sm:$0xff] %v1916_v58  ;;  %v1919_v61 = vadd.f32 %v3353_v56, %v4671_v41  ;;  %v1910_v13 = vpop.f32.mrb[71].mxu0 }
 0x3ed   :  { %2022 = vst [vmem:[%s5292_s14 + $0x20] sm:$0xff] %v1908_v11  ;;  %v1911_v63 = vadd.f32 %v4671_v41, %v1910_v13 }
 0x3ee   :  { %3397 = vmatpush1.bf16.msra.mxu1 %v3514_v60  ;;  %2025 = vst [vmem:[%s5292_s14 + $0x38] sm:$0xff] %v1919_v61  ;;  %v2053_v12 = vpack.c.bf16 %v1919_v61, %v1916_v58 }
 0x3ef   :  { %3382 = vmatprep.subr.bf16.mxu1 %v3519_v57  ;;  %2023 = vst [vmem:[%s5292_s14 + $0x28] sm:$0xff] %v1911_v63  ;;  %v2052_v51 = vpack.c.bf16 %v1911_v63, %v1908_v11  ;;  %v3549_v63 = vld [vmem:[%s5293_s11 + $0xe4] ss:$8 sps:$4 sm:$0xff]  }
 0x3f0   :  { %2695 = vmatprep.subr.bf16.mxu0 %v3549_v63 }
 0x3f1   :  { %2227 = vmatmul.mubr.bf16.gmra.mrb[104].mxu1 %v2052_v51  ;;  %v3552_v51 = vld [vmem:[%s5293_s11 + $0xf4] ss:$8 sps:$4 sm:$0xff]  }
 0x3f2   :  { %2236 = vmatprep.mubr.bf16.mxu1 %v3809_v35  ;;  %3398 = vmatpush1.bf16.msra.mxu1 %v3517_v59 }
 0x3f3   :  { %3383 = vmatprep.subr.bf16.mxu1 %v3522_v6 }
 0x3f6   :  { %3399 = vmatpush1.bf16.msra.mxu1 %v3520_v1 }
 0x3f7   :  { %3384 = vmatprep.subr.bf16.mxu1 %v3525_v62 }
 0x3f9   :  { %v3356_v22 = vpop.f32.mrb[72].mxu0  ;;  %2237 = vmatmul.mubr.bf16.gmra.mrb[108].mxu1 %v2053_v12  ;;  %v3547_v12 = vld [vmem:[%s5293_s11 + $0xe0] ss:$8 sps:$4 sm:$0xff]  }
 0x3fa   :  { %v1932_v24 = vadd.f32 %v3356_v22, %v4671_v41  ;;  %v1923_v37 = vpop.f32.mrb[73].mxu0  ;;  %2246 = vmatprep.mubr.bf16.mxu1 %v3809_v35  ;;  %3400 = vmatpush1.bf16.msra.mxu1 %v3523_v15 }
 0x3fb   :  { %v1924_v31 = vadd.f32 %v4671_v41, %v1923_v37  ;;  %v3357_v34 = vpop.f32.mrb[74].mxu0  ;;  %3385 = vmatprep.subr.bf16.mxu1 %v3528_v19  ;;  %2696 = vmatpush1.bf16.msra.mxu0 %v3547_v12  ;;  %v3550_v19 = vld [vmem:[%s5293_s11 + $0xf0] ss:$8 sps:$4 sm:$0xff]  }
 0x3fc   :  { %2028 = vst [vmem:[%s5292_s14 + $0x50] sm:$0xff] %v1932_v24  ;;  %v1935_v43 = vadd.f32 %v3357_v34, %v4671_v41  ;;  %v1926_v23 = vpop.f32.mrb[75].mxu0  ;;  %2697 = vmatprep.subr.bf16.mxu0 %v3552_v51 }
 0x3fd   :  { %2026 = vst [vmem:[%s5292_s14 + $0x40] sm:$0xff] %v1924_v31  ;;  %v1927_v32 = vadd.f32 %v4671_v41, %v1926_v23 }
 0x3fe   :  { %2029 = vst [vmem:[%s5292_s14 + $0x58] sm:$0xff] %v1935_v43  ;;  %v2055_v25 = vpack.c.bf16 %v1935_v43, %v1932_v24  ;;  %3401 = vmatpush1.bf16.msra.mxu1 %v3526_v21 }
 0x3ff   :  { %2027 = vst [vmem:[%s5292_s14 + $0x48] sm:$0xff] %v1927_v32  ;;  %v2054_v26 = vpack.c.bf16 %v1927_v32, %v1924_v31  ;;  %3386 = vmatprep.subr.bf16.mxu1 %v3531_v4  ;;  %2698 = vmatpush1.bf16.msra.mxu0 %v3550_v19 }
 0x401   :  { %2247 = vmatmul.mubr.bf16.gmra.mrb[112].mxu1 %v2054_v26 }
 0x402   :  { %2256 = vmatprep.mubr.bf16.mxu1 %v3809_v35  ;;  %3402 = vmatpush1.bf16.msra.mxu1 %v3529_v38 }
 0x403   :  { %3387 = vmatprep.subr.bf16.mxu1 %v3534_v20 }
 0x406   :  { %3403 = vmatpush1.bf16.msra.mxu1 %v3532_v40 }
 0x407   :  { %3388 = vmatprep.subr.bf16.mxu1 %v3537_v44 }
 0x409   :  { %v3360_v47 = vpop.f32.mrb[76].mxu0  ;;  %2257 = vmatmul.mubr.bf16.gmra.mrb[116].mxu1 %v2055_v25 }
 0x40a   :  { %v1948_v27 = vadd.f32 %v3360_v47, %v4671_v41  ;;  %v1939_v30 = vpop.f32.mrb[77].mxu0  ;;  %2266 = vmatprep.mubr.bf16.mxu1 %v3809_v35  ;;  %3404 = vmatpush1.bf16.msra.mxu1 %v3535_v28 }
 0x40b   :  { %v1940_v36 = vadd.f32 %v4671_v41, %v1939_v30  ;;  %v3361_v42 = vpop.f32.mrb[78].mxu0  ;;  %3389 = vmatprep.subr.bf16.mxu1 %v3540_v45  ;;  %v2082_v45 = vld [vmem:[%s5294_s10] sm:$0x3] }
 0x40c   :  { %2032 = vst [vmem:[%s5292_s14 + $0x70] sm:$0xff] %v1948_v27  ;;  %v1951_v49 = vadd.f32 %v3361_v42, %v4671_v41  ;;  %v1942_v50 = vpop.f32.mrb[79].mxu0 }
 0x40d   :  { %2030 = vst [vmem:[%s5292_s14 + $0x60] sm:$0xff] %v1940_v36  ;;  %v1943_v52 = vadd.f32 %v4671_v41, %v1942_v50 }
 0x40e   :  { %2033 = vst [vmem:[%s5292_s14 + $0x78] sm:$0xff] %v1951_v49  ;;  %v2057_v39 = vpack.c.bf16 %v1951_v49, %v1948_v27  ;;  %3405 = vmatpush1.bf16.msra.mxu1 %v3538_v46  ;;  %v4919_v46 = vrot.slane %v2082_v45, %v4221_v16 }
 0x40f   :  { %2031 = vst [vmem:[%s5292_s14 + $0x68] sm:$0xff] %v1943_v52  ;;  %v2056_v54 = vpack.c.bf16 %v1943_v52, %v1940_v36  ;;  %3390 = vmatprep.subr.bf16.mxu1 %v3543_v29 }
 0x411   :  { %2267 = vmatmul.mubr.bf16.gmra.mrb[120].mxu1 %v2056_v54 }
 0x412   :  { %2276 = vmatprep.mubr.bf16.mxu1 %v3809_v35  ;;  %3406 = vmatpush1.bf16.msra.mxu1 %v3541_v33 }
 0x413   :  { %3391 = vmatprep.subr.bf16.mxu1 %v3546_v48 }
 0x416   :  { %3407 = vmatpush1.bf16.msra.mxu1 %v3544_v17 }
 0x417   :  { %3392 = vmatprep.subr.bf16.mxu1 %v3549_v63 }
 0x419   :  { %v3364_v0 = vpop.f32.mrb[80].mxu0  ;;  %2277 = vmatmul.mubr.bf16.gmra.mrb[124].mxu1 %v2057_v39 }
 0x41a   :  { %v1964_v18 = vadd.f32 %v3364_v0, %v4671_v41  ;;  %v1955_v3 = vpop.f32.mrb[81].mxu0  ;;  %2286 = vmatprep.mubr.bf16.mxu1 %v3809_v35  ;;  %3408 = vmatpush1.bf16.msra.mxu1 %v3547_v12 }
 0x41b   :  { %v1956_v5 = vadd.f32 %v4671_v41, %v1955_v3  ;;  %v3365_v7 = vpop.f32.mrb[82].mxu0  ;;  %3393 = vmatprep.subr.bf16.mxu1 %v3552_v51 }
 0x41c   :  { %2036 = vst [vmem:[%s5292_s14 + $0x90] sm:$0xff] %v1964_v18  ;;  %v1967_v8 = vadd.f32 %v3365_v7, %v4671_v41  ;;  %v1958_v53 = vpop.f32.mrb[83].mxu0 }
 0x41d   :  { %2034 = vst [vmem:[%s5292_s14 + $0x80] sm:$0xff] %v1956_v5  ;;  %v1959_v2 = vadd.f32 %v4671_v41, %v1958_v53 }
 0x41e   :  { %2037 = vst [vmem:[%s5292_s14 + $0x98] sm:$0xff] %v1967_v8  ;;  %v2059_v55 = vpack.c.bf16 %v1967_v8, %v1964_v18  ;;  %3409 = vmatpush1.bf16.msra.mxu1 %v3550_v19 }
 0x41f   :  { %2035 = vst [vmem:[%s5292_s14 + $0x88] sm:$0xff] %v1959_v2  ;;  %v2058_v60 = vpack.c.bf16 %v1959_v2, %v1956_v5 }
 0x421   :  { %2287 = vmatmul.mubr.bf16.gmra.mrb[128].mxu1 %v2058_v60 }
 0x422   :  { %2296 = vmatprep.mubr.bf16.mxu1 %v3809_v35 }
 0x429   :  { %v3368_v57 = vpop.f32.mrb[84].mxu0  ;;  %2297 = vmatmul.mubr.bf16.gmra.mrb[132].mxu1 %v2059_v55 }
 0x42a   :  { %v1980_v9 = vadd.f32 %v3368_v57, %v4671_v41  ;;  %v1971_v58 = vpop.f32.mrb[85].mxu0  ;;  %2306 = vmatprep.mubr.bf16.mxu1 %v3809_v35 }
 0x42b   :  { %v1972_v10 = vadd.f32 %v4671_v41, %v1971_v58  ;;  %v3369_v59 = vpop.f32.mrb[86].mxu0 }
 0x42c   :  { %2040 = vst [vmem:[%s5292_s14 + $0xb0] sm:$0xff] %v1980_v9  ;;  %v1983_v11 = vadd.f32 %v3369_v59, %v4671_v41  ;;  %v1974_v56 = vpop.f32.mrb[87].mxu0 }
 0x42d   :  { %2038 = vst [vmem:[%s5292_s14 + $0xa0] sm:$0xff] %v1972_v10  ;;  %v1975_v6 = vadd.f32 %v4671_v41, %v1974_v56 }
 0x42e   :  { %2041 = vst [vmem:[%s5292_s14 + $0xb8] sm:$0xff] %v1983_v11  ;;  %v2061_v61 = vpack.c.bf16 %v1983_v11, %v1980_v9 }
 0x42f   :  { %2039 = vst [vmem:[%s5292_s14 + $0xa8] sm:$0xff] %v1975_v6  ;;  %v2060_v13 = vpack.c.bf16 %v1975_v6, %v1972_v10 }
 0x431   :  { %2307 = vmatmul.mubr.bf16.gmra.mrb[136].mxu1 %v2060_v13 }
 0x432   :  { %2316 = vmatprep.mubr.bf16.mxu1 %v3809_v35 }
 0x439   :  { %v3372_v1 = vpop.f32.mrb[88].mxu0  ;;  %2317 = vmatmul.mubr.bf16.gmra.mrb[140].mxu1 %v2061_v61 }
 0x43a   :  { %v1996_v62 = vadd.f32 %v3372_v1, %v4671_v41  ;;  %v1987_v15 = vpop.f32.mrb[89].mxu0  ;;  %2326 = vmatprep.mubr.bf16.mxu1 %v3809_v35 }
 0x43b   :  { %v1988_v21 = vadd.f32 %v4671_v41, %v1987_v15  ;;  %v3373_v4 = vpop.f32.mrb[90].mxu0 }
 0x43c   :  { %2044 = vst [vmem:[%s5292_s14 + $0xd0] sm:$0xff] %v1996_v62  ;;  %v1999_v22 = vadd.f32 %v3373_v4, %v4671_v41  ;;  %v1990_v24 = vpop.f32.mrb[91].mxu0 }
 0x43d   :  { %2042 = vst [vmem:[%s5292_s14 + $0xc0] sm:$0xff] %v1988_v21  ;;  %v1991_v37 = vadd.f32 %v4671_v41, %v1990_v24 }
 0x43e   :  { %2045 = vst [vmem:[%s5292_s14 + $0xd8] sm:$0xff] %v1999_v22  ;;  %v2063_v38 = vpack.c.bf16 %v1999_v22, %v1996_v62 }
 0x43f   :  { %2043 = vst [vmem:[%s5292_s14 + $0xc8] sm:$0xff] %v1991_v37  ;;  %v2062_v31 = vpack.c.bf16 %v1991_v37, %v1988_v21 }
 0x441   :  { %2327 = vmatmul.mubr.bf16.gmra.mrb[144].mxu1 %v2062_v31 }
 0x442   :  { %2336 = vmatprep.mubr.bf16.mxu1 %v3809_v35 }
 0x449   :  { %v3376_v34 = vpop.f32.mrb[92].mxu0  ;;  %2337 = vmatmul.mubr.bf16.gmra.mrb[148].mxu1 %v2063_v38 }
 0x44a   :  { %v2012_v20 = vadd.f32 %v3376_v34, %v4671_v41  ;;  %v2003_v43 = vpop.f32.mrb[93].mxu0  ;;  %2346 = vmatprep.mubr.bf16.mxu1 %v3809_v35 }
 0x44b   :  { %v2004_v23 = vadd.f32 %v4671_v41, %v2003_v43  ;;  %v3377_v32 = vpop.f32.mrb[94].mxu0 }
 0x44c   :  { %2048 = vst [vmem:[%s5292_s14 + $0xf0] sm:$0xff] %v2012_v20  ;;  %v2015_v25 = vadd.f32 %v3377_v32, %v4671_v41  ;;  %v2006_v40 = vpop.f32.mrb[95].mxu0 }
 0x44d   :  { %2046 = vst [vmem:[%s5292_s14 + $0xe0] sm:$0xff] %v2004_v23  ;;  %v2007_v26 = vadd.f32 %v4671_v41, %v2006_v40  ;;  %v4916_v41 = vrot.slane %v2082_v45, %v4216_v14 }
 0x44e   :  { %2049 = vst [vmem:[%s5292_s14 + $0xf8] sm:$0xff] %v2015_v25  ;;  %v2065_v44 = vpack.c.bf16 %v2015_v25, %v2012_v20 }
 0x44f   :  { %2047 = vst [vmem:[%s5292_s14 + $0xe8] sm:$0xff] %v2007_v26  ;;  %v2064_v28 = vpack.c.bf16 %v2007_v26, %v2004_v23 }
 0x451   :  { %2347 = vmatmul.mubr.bf16.gmra.mrb[152].mxu1 %v2064_v28 }
 0x452   :  { %2356 = vmatprep.mubr.bf16.mxu1 %v3809_v35 }
 0x459   :  { %2357 = vmatmul.mubr.bf16.gmra.mrb[156].mxu1 %v2065_v44 }
 0x4b4   :  { %v2208_v29 = vpop.f32.mrb[96].mxu1 }
 0x4b5   :  { %v2209_v47 = vadd.f32 %v2208_v29, %v4916_v41  ;;  %v2210_v27 = vpop.f32.mrb[97].mxu1 }
 0x4b6   :  { %v2211_v30 = vadd.f32 %v2210_v27, %v4919_v46  ;;  %v2212_v33 = vpop.f32.mrb[98].mxu1 }
 0x4b7   :  { %v2213_v35 = vadd.f32 %v2212_v33, %v4916_v41  ;;  %v2214_v36 = vpop.f32.mrb[99].mxu1  ;;  %v2367_v48 = vmax.f32 %v2209_v47, 0.0 }
 0x4b8   :  { %v2215_v42 = vadd.f32 %v2214_v36, %v4919_v46  ;;  %v2368_v50 = vmax.f32 %v2211_v30, 0.0 }
 0x4b9   :  { %v2369_v49 = vmax.f32 %v2213_v35, 0.0 }
 0x4ba   :  { %v2370_v52 = vmax.f32 %v2215_v42, 0.0 }
 0x4bb   :  { %v2431_v39 = vpack.c.bf16 %v2369_v49, %v2367_v48 }
 0x4bc   :  { %v2432_v17 = vpack.c.bf16 %v2370_v52, %v2368_v50  ;;  %v2218_v54 = vpop.f32.mrb[100].mxu1 }
 0x4bd   :  { %v2219_v0 = vadd.f32 %v2218_v54, %v4916_v41  ;;  %v2220_v18 = vpop.f32.mrb[101].mxu1 }
 0x4be   :  { %v2221_v3 = vadd.f32 %v2220_v18, %v4919_v46  ;;  %v2222_v5 = vpop.f32.mrb[102].mxu1  ;;  %2699 = vmatprep.mubr.bf16.mxu0 %v2432_v17 }
 0x4bf   :  { %v2223_v7 = vadd.f32 %v2222_v5, %v4916_v41  ;;  %v2224_v8 = vpop.f32.mrb[103].mxu1  ;;  %2700 = vmatmul.mubr.bf16.vlgmr.msra.gmra.mrb[96].mxu0 %v2431_v39  ;;  %v2371_v2 = vmax.f32 %v2219_v0, 0.0 }
 0x4c0   :  { %v2225_v53 = vadd.f32 %v2224_v8, %v4919_v46  ;;  %v2372_v60 = vmax.f32 %v2221_v3, 0.0 }
 0x4c1   :  { %v2373_v55 = vmax.f32 %v2223_v7, 0.0 }
 0x4c2   :  { %v2374_v57 = vmax.f32 %v2225_v53, 0.0 }
 0x4c3   :  { %v2433_v9 = vpack.c.bf16 %v2373_v55, %v2371_v2 }
 0x4c4   :  { %v2434_v58 = vpack.c.bf16 %v2374_v57, %v2372_v60  ;;  %v2228_v10 = vpop.f32.mrb[104].mxu1 }
 0x4c5   :  { %v2229_v59 = vadd.f32 %v2228_v10, %v4916_v41  ;;  %v2230_v11 = vpop.f32.mrb[105].mxu1 }
 0x4c6   :  { %2709 = vmatprep.mubr.bf16.mxu0 %v2434_v58  ;;  %v2231_v56 = vadd.f32 %v2230_v11, %v4919_v46  ;;  %v2232_v6 = vpop.f32.mrb[106].mxu1 }
 0x4c7   :  { %2710 = vmatmul.mubr.bf16.gmra.mrb[100].mxu0 %v2433_v9  ;;  %v2233_v61 = vadd.f32 %v2232_v6, %v4916_v41  ;;  %v2234_v13 = vpop.f32.mrb[107].mxu1  ;;  %v2375_v12 = vmax.f32 %v2229_v59, 0.0 }
 0x4c8   :  { %v2235_v63 = vadd.f32 %v2234_v13, %v4919_v46  ;;  %v2376_v51 = vmax.f32 %v2231_v56, 0.0 }
 0x4c9   :  { %v2377_v1 = vmax.f32 %v2233_v61, 0.0 }
 0x4ca   :  { %v2378_v62 = vmax.f32 %v2235_v63, 0.0 }
 0x4cb   :  { %v2435_v15 = vpack.c.bf16 %v2377_v1, %v2375_v12 }
 0x4cc   :  { %v2436_v19 = vpack.c.bf16 %v2378_v62, %v2376_v51  ;;  %v2238_v21 = vpop.f32.mrb[108].mxu1 }
 0x4cd   :  { %v2239_v4 = vadd.f32 %v2238_v21, %v4916_v41  ;;  %v2240_v22 = vpop.f32.mrb[109].mxu1 }
 0x4ce   :  { %v2241_v24 = vadd.f32 %v2240_v22, %v4919_v46  ;;  %v2242_v37 = vpop.f32.mrb[110].mxu1  ;;  %2719 = vmatprep.mubr.bf16.mxu0 %v2436_v19 }
 0x4cf   :  { %v2243_v38 = vadd.f32 %v2242_v37, %v4916_v41  ;;  %v2244_v31 = vpop.f32.mrb[111].mxu1  ;;  %2720 = vmatmul.mubr.bf16.gmra.mrb[104].mxu0 %v2435_v15  ;;  %v2379_v20 = vmax.f32 %v2239_v4, 0.0 }
 0x4d0   :  { %v2245_v34 = vadd.f32 %v2244_v31, %v4919_v46  ;;  %v2380_v23 = vmax.f32 %v2241_v24, 0.0 }
 0x4d1   :  { %v2381_v43 = vmax.f32 %v2243_v38, 0.0 }
 0x4d2   :  { %v2382_v32 = vmax.f32 %v2245_v34, 0.0 }
 0x4d3   :  { %v2437_v25 = vpack.c.bf16 %v2381_v43, %v2379_v20 }
 0x4d4   :  { %v2438_v40 = vpack.c.bf16 %v2382_v32, %v2380_v23  ;;  %v2248_v26 = vpop.f32.mrb[112].mxu1 }
 0x4d5   :  { %v2249_v44 = vadd.f32 %v2248_v26, %v4916_v41  ;;  %v2250_v28 = vpop.f32.mrb[113].mxu1 }
 0x4d6   :  { %v2251_v45 = vadd.f32 %v2250_v28, %v4919_v46  ;;  %v2252_v29 = vpop.f32.mrb[114].mxu1  ;;  %2729 = vmatprep.mubr.bf16.mxu0 %v2438_v40 }
 0x4d7   :  { %v2253_v47 = vadd.f32 %v2252_v29, %v4916_v41  ;;  %v2254_v27 = vpop.f32.mrb[115].mxu1  ;;  %2730 = vmatmul.mubr.bf16.gmra.mrb[108].mxu0 %v2437_v25  ;;  %v2383_v33 = vmax.f32 %v2249_v44, 0.0 }
 0x4d8   :  { %v2255_v30 = vadd.f32 %v2254_v27, %v4919_v46  ;;  %v2384_v36 = vmax.f32 %v2251_v45, 0.0 }
 0x4d9   :  { %v2385_v35 = vmax.f32 %v2253_v47, 0.0 }
 0x4da   :  { %v2386_v42 = vmax.f32 %v2255_v30, 0.0 }
 0x4db   :  { %v2439_v48 = vpack.c.bf16 %v2385_v35, %v2383_v33 }
 0x4dc   :  { %v2440_v49 = vpack.c.bf16 %v2386_v42, %v2384_v36  ;;  %v2258_v50 = vpop.f32.mrb[116].mxu1 }
 0x4dd   :  { %v2259_v52 = vadd.f32 %v2258_v50, %v4916_v41  ;;  %v2260_v39 = vpop.f32.mrb[117].mxu1 }
 0x4de   :  { %v2261_v17 = vadd.f32 %v2260_v39, %v4919_v46  ;;  %v2262_v54 = vpop.f32.mrb[118].mxu1  ;;  %2739 = vmatprep.mubr.bf16.mxu0 %v2440_v49 }
 0x4df   :  { %v2263_v0 = vadd.f32 %v2262_v54, %v4916_v41  ;;  %v2264_v18 = vpop.f32.mrb[119].mxu1  ;;  %2740 = vmatmul.mubr.bf16.gmra.mrb[112].mxu0 %v2439_v48  ;;  %v2387_v5 = vmax.f32 %v2259_v52, 0.0 }
 0x4e0   :  { %v2265_v3 = vadd.f32 %v2264_v18, %v4919_v46  ;;  %v2388_v8 = vmax.f32 %v2261_v17, 0.0 }
 0x4e1   :  { %v2389_v7 = vmax.f32 %v2263_v0, 0.0 }
 0x4e2   :  { %v2390_v53 = vmax.f32 %v2265_v3, 0.0 }
 0x4e3   :  { %v2441_v2 = vpack.c.bf16 %v2389_v7, %v2387_v5 }
 0x4e4   :  { %v2442_v55 = vpack.c.bf16 %v2390_v53, %v2388_v8  ;;  %v2268_v60 = vpop.f32.mrb[120].mxu1 }
 0x4e5   :  { %v2269_v57 = vadd.f32 %v2268_v60, %v4916_v41  ;;  %v2270_v9 = vpop.f32.mrb[121].mxu1 }
 0x4e6   :  { %v2271_v58 = vadd.f32 %v2270_v9, %v4919_v46  ;;  %v2272_v10 = vpop.f32.mrb[122].mxu1  ;;  %2749 = vmatprep.mubr.bf16.mxu0 %v2442_v55 }
 0x4e7   :  { %v2273_v59 = vadd.f32 %v2272_v10, %v4916_v41  ;;  %v2274_v11 = vpop.f32.mrb[123].mxu1  ;;  %2750 = vmatmul.mubr.bf16.gmra.mrb[116].mxu0 %v2441_v2  ;;  %v2391_v6 = vmax.f32 %v2269_v57, 0.0 }
 0x4e8   :  { %v2275_v56 = vadd.f32 %v2274_v11, %v4919_v46  ;;  %v2392_v13 = vmax.f32 %v2271_v58, 0.0 }
 0x4e9   :  { %v2393_v61 = vmax.f32 %v2273_v59, 0.0 }
 0x4ea   :  { %v2394_v63 = vmax.f32 %v2275_v56, 0.0 }
 0x4eb   :  { %v2443_v12 = vpack.c.bf16 %v2393_v61, %v2391_v6 }
 0x4ec   :  { %v2444_v1 = vpack.c.bf16 %v2394_v63, %v2392_v13  ;;  %v2278_v51 = vpop.f32.mrb[124].mxu1 }
 0x4ed   :  { %v2279_v62 = vadd.f32 %v2278_v51, %v4916_v41  ;;  %v2280_v15 = vpop.f32.mrb[125].mxu1 }
 0x4ee   :  { %v2281_v19 = vadd.f32 %v2280_v15, %v4919_v46  ;;  %v2282_v21 = vpop.f32.mrb[126].mxu1  ;;  %2759 = vmatprep.mubr.bf16.mxu0 %v2444_v1 }
 0x4ef   :  { %v2283_v4 = vadd.f32 %v2282_v21, %v4916_v41  ;;  %v2284_v22 = vpop.f32.mrb[127].mxu1  ;;  %2760 = vmatmul.mubr.bf16.gmra.mrb[120].mxu0 %v2443_v12  ;;  %v2395_v37 = vmax.f32 %v2279_v62, 0.0 }
 0x4f0   :  { %v2285_v24 = vadd.f32 %v2284_v22, %v4919_v46  ;;  %v2396_v31 = vmax.f32 %v2281_v19, 0.0 }
 0x4f1   :  { %v2397_v38 = vmax.f32 %v2283_v4, 0.0 }
 0x4f2   :  { %v2398_v34 = vmax.f32 %v2285_v24, 0.0 }
 0x4f3   :  { %v2445_v20 = vpack.c.bf16 %v2397_v38, %v2395_v37 }
 0x4f4   :  { %v2446_v43 = vpack.c.bf16 %v2398_v34, %v2396_v31  ;;  %v2288_v23 = vpop.f32.mrb[128].mxu1 }
 0x4f5   :  { %v2289_v32 = vadd.f32 %v2288_v23, %v4916_v41  ;;  %v2290_v25 = vpop.f32.mrb[129].mxu1 }
 0x4f6   :  { %v2291_v40 = vadd.f32 %v2290_v25, %v4919_v46  ;;  %v2292_v26 = vpop.f32.mrb[130].mxu1  ;;  %2769 = vmatprep.mubr.bf16.mxu0 %v2446_v43 }
 0x4f7   :  { %v2293_v44 = vadd.f32 %v2292_v26, %v4916_v41  ;;  %v2294_v28 = vpop.f32.mrb[131].mxu1  ;;  %2770 = vmatmul.mubr.bf16.gmra.mrb[124].mxu0 %v2445_v20  ;;  %v2399_v29 = vmax.f32 %v2289_v32, 0.0 }
 0x4f8   :  { %v2295_v45 = vadd.f32 %v2294_v28, %v4919_v46  ;;  %v2400_v27 = vmax.f32 %v2291_v40, 0.0 }
 0x4f9   :  { %v2401_v47 = vmax.f32 %v2293_v44, 0.0 }
 0x4fa   :  { %v2402_v30 = vmax.f32 %v2295_v45, 0.0 }
 0x4fb   :  { %v2447_v33 = vpack.c.bf16 %v2401_v47, %v2399_v29 }
 0x4fc   :  { %v2448_v35 = vpack.c.bf16 %v2402_v30, %v2400_v27  ;;  %v2298_v36 = vpop.f32.mrb[132].mxu1 }
 0x4fd   :  { %v2299_v42 = vadd.f32 %v2298_v36, %v4916_v41  ;;  %v2300_v48 = vpop.f32.mrb[133].mxu1 }
 0x4fe   :  { %v2301_v49 = vadd.f32 %v2300_v48, %v4919_v46  ;;  %v2302_v50 = vpop.f32.mrb[134].mxu1  ;;  %2779 = vmatprep.mubr.bf16.mxu0 %v2448_v35 }
 0x4ff   :  { %v2303_v52 = vadd.f32 %v2302_v50, %v4916_v41  ;;  %v2304_v39 = vpop.f32.mrb[135].mxu1  ;;  %2780 = vmatmul.mubr.bf16.gmra.mrb[128].mxu0 %v2447_v33  ;;  %v2403_v54 = vmax.f32 %v2299_v42, 0.0 }
 0x500   :  { %v2305_v17 = vadd.f32 %v2304_v39, %v4919_v46  ;;  %v2404_v18 = vmax.f32 %v2301_v49, 0.0 }
 0x501   :  { %v2405_v0 = vmax.f32 %v2303_v52, 0.0 }
 0x502   :  { %v2406_v3 = vmax.f32 %v2305_v17, 0.0 }
 0x503   :  { %v2449_v5 = vpack.c.bf16 %v2405_v0, %v2403_v54 }
 0x504   :  { %v2450_v7 = vpack.c.bf16 %v2406_v3, %v2404_v18  ;;  %v2308_v8 = vpop.f32.mrb[136].mxu1 }
 0x505   :  { %v2309_v53 = vadd.f32 %v2308_v8, %v4916_v41  ;;  %v2310_v2 = vpop.f32.mrb[137].mxu1 }
 0x506   :  { %v2311_v55 = vadd.f32 %v2310_v2, %v4919_v46  ;;  %v2312_v60 = vpop.f32.mrb[138].mxu1  ;;  %2789 = vmatprep.mubr.bf16.mxu0 %v2450_v7 }
 0x507   :  { %v2313_v57 = vadd.f32 %v2312_v60, %v4916_v41  ;;  %v2314_v9 = vpop.f32.mrb[139].mxu1  ;;  %2790 = vmatmul.mubr.bf16.gmra.mrb[132].mxu0 %v2449_v5  ;;  %v2407_v10 = vmax.f32 %v2309_v53, 0.0 }
 0x508   :  { %v2315_v58 = vadd.f32 %v2314_v9, %v4919_v46  ;;  %v2408_v11 = vmax.f32 %v2311_v55, 0.0 }
 0x509   :  { %v2409_v59 = vmax.f32 %v2313_v57, 0.0 }
 0x50a   :  { %v2410_v56 = vmax.f32 %v2315_v58, 0.0 }
 0x50b   :  { %v2451_v6 = vpack.c.bf16 %v2409_v59, %v2407_v10 }
 0x50c   :  { %v2452_v61 = vpack.c.bf16 %v2410_v56, %v2408_v11  ;;  %v2318_v13 = vpop.f32.mrb[140].mxu1 }
 0x50d   :  { %v2319_v63 = vadd.f32 %v2318_v13, %v4916_v41  ;;  %v2320_v12 = vpop.f32.mrb[141].mxu1 }
 0x50e   :  { %v2321_v1 = vadd.f32 %v2320_v12, %v4919_v46  ;;  %v2322_v51 = vpop.f32.mrb[142].mxu1  ;;  %2799 = vmatprep.mubr.bf16.mxu0 %v2452_v61 }
 0x50f   :  { %v2323_v62 = vadd.f32 %v2322_v51, %v4916_v41  ;;  %v2324_v15 = vpop.f32.mrb[143].mxu1  ;;  %2800 = vmatmul.mubr.bf16.gmra.mrb[136].mxu0 %v2451_v6  ;;  %v2411_v21 = vmax.f32 %v2319_v63, 0.0 }
 0x510   :  { %v2325_v19 = vadd.f32 %v2324_v15, %v4919_v46  ;;  %v2412_v22 = vmax.f32 %v2321_v1, 0.0 }
 0x511   :  { %v2413_v4 = vmax.f32 %v2323_v62, 0.0 }
 0x512   :  { %v2414_v24 = vmax.f32 %v2325_v19, 0.0 }
 0x513   :  { %v2453_v37 = vpack.c.bf16 %v2413_v4, %v2411_v21 }
 0x514   :  { %v2454_v38 = vpack.c.bf16 %v2414_v24, %v2412_v22  ;;  %v2328_v31 = vpop.f32.mrb[144].mxu1  ;;  %v2495_v22 = vld [vmem:[%s5295_s12] sm:$0x3] }
 0x515   :  { %v2329_v34 = vadd.f32 %v2328_v31, %v4916_v41  ;;  %v2330_v20 = vpop.f32.mrb[145].mxu1  ;;  %v4989_v24 = vrot.slane %v2495_v22, %v4216_v14 }
 0x516   :  { %v2331_v43 = vadd.f32 %v2330_v20, %v4919_v46  ;;  %v2332_v23 = vpop.f32.mrb[146].mxu1  ;;  %2809 = vmatprep.mubr.bf16.mxu0 %v2454_v38 }
 0x517   :  { %v2333_v32 = vadd.f32 %v2332_v23, %v4916_v41  ;;  %v2334_v25 = vpop.f32.mrb[147].mxu1  ;;  %2810 = vmatmul.mubr.bf16.gmra.mrb[140].mxu0 %v2453_v37  ;;  %v2415_v26 = vmax.f32 %v2329_v34, 0.0 }
 0x518   :  { %v2335_v40 = vadd.f32 %v2334_v25, %v4919_v46  ;;  %v2416_v28 = vmax.f32 %v2331_v43, 0.0 }
 0x519   :  { %v2417_v44 = vmax.f32 %v2333_v32, 0.0 }
 0x51a   :  { %v2418_v45 = vmax.f32 %v2335_v40, 0.0 }
 0x51b   :  { %v2455_v29 = vpack.c.bf16 %v2417_v44, %v2415_v26 }
 0x51c   :  { %v2456_v47 = vpack.c.bf16 %v2418_v45, %v2416_v28  ;;  %v2338_v27 = vpop.f32.mrb[148].mxu1 }
 0x51d   :  { %v2339_v30 = vadd.f32 %v2338_v27, %v4916_v41  ;;  %v2340_v33 = vpop.f32.mrb[149].mxu1 }
 0x51e   :  { %v2341_v35 = vadd.f32 %v2340_v33, %v4919_v46  ;;  %v2342_v36 = vpop.f32.mrb[150].mxu1  ;;  %2819 = vmatprep.mubr.bf16.mxu0 %v2456_v47 }
 0x51f   :  { %v2343_v42 = vadd.f32 %v2342_v36, %v4916_v41  ;;  %v2344_v48 = vpop.f32.mrb[151].mxu1  ;;  %2820 = vmatmul.mubr.bf16.gmra.mrb[144].mxu0 %v2455_v29  ;;  %v2419_v50 = vmax.f32 %v2339_v30, 0.0 }
 0x520   :  { %v2345_v49 = vadd.f32 %v2344_v48, %v4919_v46  ;;  %v2420_v39 = vmax.f32 %v2341_v35, 0.0 }
 0x521   :  { %v2421_v52 = vmax.f32 %v2343_v42, 0.0 }
 0x522   :  { %v2422_v17 = vmax.f32 %v2345_v49, 0.0 }
 0x523   :  { %v2457_v54 = vpack.c.bf16 %v2421_v52, %v2419_v50 }
 0x524   :  { %v2458_v0 = vpack.c.bf16 %v2422_v17, %v2420_v39  ;;  %v2348_v18 = vpop.f32.mrb[152].mxu1 }
 0x525   :  { %v2349_v3 = vadd.f32 %v2348_v18, %v4916_v41  ;;  %v2350_v5 = vpop.f32.mrb[153].mxu1 }
 0x526   :  { %v2351_v7 = vadd.f32 %v2350_v5, %v4919_v46  ;;  %v2352_v8 = vpop.f32.mrb[154].mxu1  ;;  %2829 = vmatprep.mubr.bf16.mxu0 %v2458_v0 }
 0x527   :  { %v2353_v53 = vadd.f32 %v2352_v8, %v4916_v41  ;;  %v2354_v2 = vpop.f32.mrb[155].mxu1  ;;  %2830 = vmatmul.mubr.bf16.gmra.mrb[148].mxu0 %v2457_v54  ;;  %v2423_v60 = vmax.f32 %v2349_v3, 0.0 }
 0x528   :  { %v2355_v55 = vadd.f32 %v2354_v2, %v4919_v46  ;;  %v2424_v9 = vmax.f32 %v2351_v7, 0.0 }
 0x529   :  { %v2425_v57 = vmax.f32 %v2353_v53, 0.0 }
 0x52a   :  { %v2426_v58 = vmax.f32 %v2355_v55, 0.0 }
 0x52b   :  { %v2459_v10 = vpack.c.bf16 %v2425_v57, %v2423_v60 }
 0x52c   :  { %v2460_v59 = vpack.c.bf16 %v2426_v58, %v2424_v9  ;;  %v2358_v11 = vpop.f32.mrb[156].mxu1 }
 0x52d   :  { %v2359_v56 = vadd.f32 %v2358_v11, %v4916_v41  ;;  %v2360_v6 = vpop.f32.mrb[157].mxu1 }
 0x52e   :  { %v2361_v61 = vadd.f32 %v2360_v6, %v4919_v46  ;;  %v2362_v13 = vpop.f32.mrb[158].mxu1  ;;  %2839 = vmatprep.mubr.bf16.mxu0 %v2460_v59 }
 0x52f   :  { %v2363_v63 = vadd.f32 %v2362_v13, %v4916_v41  ;;  %v2364_v12 = vpop.f32.mrb[159].mxu1  ;;  %2840 = vmatmul.mubr.bf16.gmra.mrb[152].mxu0 %v2459_v10  ;;  %v2427_v51 = vmax.f32 %v2359_v56, 0.0  ;;  %v4992_v41 = vrot.slane %v2495_v22, %v4221_v16 }
 0x530   :  { %v2365_v1 = vadd.f32 %v2364_v12, %v4919_v46  ;;  %v2428_v15 = vmax.f32 %v2361_v61, 0.0 }
 0x531   :  { %v2429_v62 = vmax.f32 %v2363_v63, 0.0 }
 0x532   :  { %v2430_v19 = vmax.f32 %v2365_v1, 0.0 }
 0x533   :  { %v2461_v21 = vpack.c.bf16 %v2429_v62, %v2427_v51 }
 0x534   :  { %v2462_v4 = vpack.c.bf16 %v2430_v19, %v2428_v15 }
 0x536   :  { %2849 = vmatprep.mubr.bf16.mxu1 %v2462_v4 }
 0x537   :  { %2850 = vmatmul.mubr.bf16.vlgmr.msra.gmra.mrb[160].mxu1 %v2461_v21 }
 0x592   :  { %v2701_v37 = vpop.f32.mrb[96].mxu0 }
 0x593   :  { %v2702_v46 = vadd.f32 %v2701_v37, %v4989_v24  ;;  %v2703_v38 = vpop.f32.mrb[97].mxu0 }
 0x594   :  { %v2704_v31 = vadd.f32 %v2703_v38, %v4992_v41  ;;  %v2705_v34 = vpop.f32.mrb[98].mxu0 }
 0x595   :  { %v2860_v20 = vmax.f32 %v2702_v46, 0.0  ;;  %v2706_v43 = vadd.f32 %v2705_v34, %v4989_v24  ;;  %v2707_v23 = vpop.f32.mrb[99].mxu0 }
 0x596   :  { %v2861_v32 = vmax.f32 %v2704_v31, 0.0  ;;  %v2708_v25 = vadd.f32 %v2707_v23, %v4992_v41 }
 0x597   :  { %2924 = vst [vmem:[%s5296_s13] sm:$0xff] %v2860_v20  ;;  %v2862_v14 = vmax.f32 %v2706_v43, 0.0 }
 0x598   :  { %2925 = vst.msk [vmem:[%s5296_s13 + $0x8] sm:$0xff] %vm305_vm0, %v2861_v32  ;;  %v2863_v16 = vmax.f32 %v2708_v25, 0.0 }
 0x599   :  { %2926 = vst [vmem:[%s5296_s13 + $0x10] sm:$0xff] %v2862_v14 }
 0x59a   :  { %2927 = vst.msk [vmem:[%s5296_s13 + $0x18] sm:$0xff] %vm305_vm0, %v2863_v16  ;;  %v2711_v40 = vpop.f32.mrb[100].mxu0 }
 0x59b   :  { %v2712_v26 = vadd.f32 %v2711_v40, %v4989_v24  ;;  %v2713_v44 = vpop.f32.mrb[101].mxu0 }
 0x59c   :  { %v2714_v28 = vadd.f32 %v2713_v44, %v4992_v41  ;;  %v2715_v45 = vpop.f32.mrb[102].mxu0 }
 0x59d   :  { %v2864_v29 = vmax.f32 %v2712_v26, 0.0  ;;  %v2716_v47 = vadd.f32 %v2715_v45, %v4989_v24  ;;  %v2717_v27 = vpop.f32.mrb[103].mxu0 }
 0x59e   :  { %v2865_v30 = vmax.f32 %v2714_v28, 0.0  ;;  %v2718_v33 = vadd.f32 %v2717_v27, %v4992_v41 }
 0x59f   :  { %2928 = vst [vmem:[%s5296_s13 + $0x20] sm:$0xff] %v2864_v29  ;;  %v2866_v35 = vmax.f32 %v2716_v47, 0.0 }
 0x5a0   :  { %2929 = vst.msk [vmem:[%s5296_s13 + $0x28] sm:$0xff] %vm305_vm0, %v2865_v30  ;;  %v2867_v36 = vmax.f32 %v2718_v33, 0.0 }
 0x5a1   :  { %2930 = vst [vmem:[%s5296_s13 + $0x30] sm:$0xff] %v2866_v35 }
 0x5a2   :  { %2931 = vst.msk [vmem:[%s5296_s13 + $0x38] sm:$0xff] %vm305_vm0, %v2867_v36  ;;  %v2721_v42 = vpop.f32.mrb[104].mxu0 }
 0x5a3   :  { %v2722_v48 = vadd.f32 %v2721_v42, %v4989_v24  ;;  %v2723_v49 = vpop.f32.mrb[105].mxu0 }
 0x5a4   :  { %v2724_v50 = vadd.f32 %v2723_v49, %v4992_v41  ;;  %v2725_v52 = vpop.f32.mrb[106].mxu0 }
 0x5a5   :  { %v2868_v39 = vmax.f32 %v2722_v48, 0.0  ;;  %v2726_v17 = vadd.f32 %v2725_v52, %v4989_v24  ;;  %v2727_v54 = vpop.f32.mrb[107].mxu0 }
 0x5a6   :  { %v2869_v0 = vmax.f32 %v2724_v50, 0.0  ;;  %v2728_v18 = vadd.f32 %v2727_v54, %v4992_v41 }
 0x5a7   :  { %2932 = vst [vmem:[%s5296_s13 + $0x40] sm:$0xff] %v2868_v39  ;;  %v2870_v3 = vmax.f32 %v2726_v17, 0.0 }
 0x5a8   :  { %2933 = vst.msk [vmem:[%s5296_s13 + $0x48] sm:$0xff] %vm305_vm0, %v2869_v0  ;;  %v2871_v5 = vmax.f32 %v2728_v18, 0.0 }
 0x5a9   :  { %2934 = vst [vmem:[%s5296_s13 + $0x50] sm:$0xff] %v2870_v3 }
 0x5aa   :  { %2935 = vst.msk [vmem:[%s5296_s13 + $0x58] sm:$0xff] %vm305_vm0, %v2871_v5  ;;  %v2731_v7 = vpop.f32.mrb[108].mxu0 }
 0x5ab   :  { %v2732_v8 = vadd.f32 %v2731_v7, %v4989_v24  ;;  %v2733_v53 = vpop.f32.mrb[109].mxu0 }
 0x5ac   :  { %v2734_v2 = vadd.f32 %v2733_v53, %v4992_v41  ;;  %v2735_v55 = vpop.f32.mrb[110].mxu0 }
 0x5ad   :  { %v2872_v60 = vmax.f32 %v2732_v8, 0.0  ;;  %v2736_v57 = vadd.f32 %v2735_v55, %v4989_v24  ;;  %v2737_v9 = vpop.f32.mrb[111].mxu0 }
 0x5ae   :  { %v2873_v58 = vmax.f32 %v2734_v2, 0.0  ;;  %v2738_v10 = vadd.f32 %v2737_v9, %v4992_v41 }
 0x5af   :  { %2936 = vst [vmem:[%s5296_s13 + $0x60] sm:$0xff] %v2872_v60  ;;  %v2874_v59 = vmax.f32 %v2736_v57, 0.0 }
 0x5b0   :  { %2937 = vst.msk [vmem:[%s5296_s13 + $0x68] sm:$0xff] %vm305_vm0, %v2873_v58  ;;  %v2875_v11 = vmax.f32 %v2738_v10, 0.0 }
 0x5b1   :  { %2938 = vst [vmem:[%s5296_s13 + $0x70] sm:$0xff] %v2874_v59 }
 0x5b2   :  { %2939 = vst.msk [vmem:[%s5296_s13 + $0x78] sm:$0xff] %vm305_vm0, %v2875_v11  ;;  %v2741_v56 = vpop.f32.mrb[112].mxu0 }
 0x5b3   :  { %v2742_v6 = vadd.f32 %v2741_v56, %v4989_v24  ;;  %v2743_v61 = vpop.f32.mrb[113].mxu0 }
 0x5b4   :  { %v2744_v13 = vadd.f32 %v2743_v61, %v4992_v41  ;;  %v2745_v63 = vpop.f32.mrb[114].mxu0 }
 0x5b5   :  { %v2876_v12 = vmax.f32 %v2742_v6, 0.0  ;;  %v2746_v1 = vadd.f32 %v2745_v63, %v4989_v24  ;;  %v2747_v51 = vpop.f32.mrb[115].mxu0 }
 0x5b6   :  { %v2877_v62 = vmax.f32 %v2744_v13, 0.0  ;;  %v2748_v15 = vadd.f32 %v2747_v51, %v4992_v41 }
 0x5b7   :  { %2940 = vst [vmem:[%s5296_s13 + $0x80] sm:$0xff] %v2876_v12  ;;  %v2878_v19 = vmax.f32 %v2746_v1, 0.0 }
 0x5b8   :  { %2941 = vst.msk [vmem:[%s5296_s13 + $0x88] sm:$0xff] %vm305_vm0, %v2877_v62  ;;  %v2879_v21 = vmax.f32 %v2748_v15, 0.0 }
 0x5b9   :  { %2942 = vst [vmem:[%s5296_s13 + $0x90] sm:$0xff] %v2878_v19 }
 0x5ba   :  { %2943 = vst.msk [vmem:[%s5296_s13 + $0x98] sm:$0xff] %vm305_vm0, %v2879_v21  ;;  %v2751_v4 = vpop.f32.mrb[116].mxu0 }
 0x5bb   :  { %v2752_v22 = vadd.f32 %v2751_v4, %v4989_v24  ;;  %v2753_v37 = vpop.f32.mrb[117].mxu0 }
 0x5bc   :  { %v2754_v46 = vadd.f32 %v2753_v37, %v4992_v41  ;;  %v2755_v38 = vpop.f32.mrb[118].mxu0 }
 0x5bd   :  { %v2880_v31 = vmax.f32 %v2752_v22, 0.0  ;;  %v2756_v34 = vadd.f32 %v2755_v38, %v4989_v24  ;;  %v2757_v20 = vpop.f32.mrb[119].mxu0 }
 0x5be   :  { %v2881_v43 = vmax.f32 %v2754_v46, 0.0  ;;  %v2758_v23 = vadd.f32 %v2757_v20, %v4992_v41 }
 0x5bf   :  { %2944 = vst [vmem:[%s5296_s13 + $0xa0] sm:$0xff] %v2880_v31  ;;  %v2882_v32 = vmax.f32 %v2756_v34, 0.0 }
 0x5c0   :  { %2945 = vst.msk [vmem:[%s5296_s13 + $0xa8] sm:$0xff] %vm305_vm0, %v2881_v43  ;;  %v2883_v25 = vmax.f32 %v2758_v23, 0.0 }
 0x5c1   :  { %2946 = vst [vmem:[%s5296_s13 + $0xb0] sm:$0xff] %v2882_v32 }
 0x5c2   :  { %2947 = vst.msk [vmem:[%s5296_s13 + $0xb8] sm:$0xff] %vm305_vm0, %v2883_v25  ;;  %v2761_v14 = vpop.f32.mrb[120].mxu0 }
 0x5c3   :  { %v2762_v16 = vadd.f32 %v2761_v14, %v4989_v24  ;;  %v2763_v40 = vpop.f32.mrb[121].mxu0 }
 0x5c4   :  { %v2764_v26 = vadd.f32 %v2763_v40, %v4992_v41  ;;  %v2765_v44 = vpop.f32.mrb[122].mxu0 }
 0x5c5   :  { %v2884_v28 = vmax.f32 %v2762_v16, 0.0  ;;  %v2766_v45 = vadd.f32 %v2765_v44, %v4989_v24  ;;  %v2767_v29 = vpop.f32.mrb[123].mxu0 }
 0x5c6   :  { %v2885_v47 = vmax.f32 %v2764_v26, 0.0  ;;  %v2768_v27 = vadd.f32 %v2767_v29, %v4992_v41 }
 0x5c7   :  { %2948 = vst [vmem:[%s5296_s13 + $0xc0] sm:$0xff] %v2884_v28  ;;  %v2886_v30 = vmax.f32 %v2766_v45, 0.0 }
 0x5c8   :  { %2949 = vst.msk [vmem:[%s5296_s13 + $0xc8] sm:$0xff] %vm305_vm0, %v2885_v47  ;;  %v2887_v33 = vmax.f32 %v2768_v27, 0.0 }
 0x5c9   :  { %2950 = vst [vmem:[%s5296_s13 + $0xd0] sm:$0xff] %v2886_v30 }
 0x5ca   :  { %2951 = vst.msk [vmem:[%s5296_s13 + $0xd8] sm:$0xff] %vm305_vm0, %v2887_v33  ;;  %v2771_v35 = vpop.f32.mrb[124].mxu0 }
 0x5cb   :  { %v2772_v36 = vadd.f32 %v2771_v35, %v4989_v24  ;;  %v2773_v42 = vpop.f32.mrb[125].mxu0 }
 0x5cc   :  { %v2774_v48 = vadd.f32 %v2773_v42, %v4992_v41  ;;  %v2775_v49 = vpop.f32.mrb[126].mxu0 }
 0x5cd   :  { %v2888_v50 = vmax.f32 %v2772_v36, 0.0  ;;  %v2776_v52 = vadd.f32 %v2775_v49, %v4989_v24  ;;  %v2777_v39 = vpop.f32.mrb[127].mxu0 }
 0x5ce   :  { %v2889_v17 = vmax.f32 %v2774_v48, 0.0  ;;  %v2778_v54 = vadd.f32 %v2777_v39, %v4992_v41 }
 0x5cf   :  { %2952 = vst [vmem:[%s5296_s13 + $0xe0] sm:$0xff] %v2888_v50  ;;  %v2890_v0 = vmax.f32 %v2776_v52, 0.0 }
 0x5d0   :  { %2953 = vst.msk [vmem:[%s5296_s13 + $0xe8] sm:$0xff] %vm305_vm0, %v2889_v17  ;;  %v2891_v18 = vmax.f32 %v2778_v54, 0.0 }
 0x5d1   :  { %2954 = vst [vmem:[%s5296_s13 + $0xf0] sm:$0xff] %v2890_v0 }
 0x5d2   :  { %2955 = vst.msk [vmem:[%s5296_s13 + $0xf8] sm:$0xff] %vm305_vm0, %v2891_v18  ;;  %v2781_v3 = vpop.f32.mrb[128].mxu0 }
 0x5d3   :  { %v2782_v5 = vadd.f32 %v2781_v3, %v4989_v24  ;;  %v2783_v7 = vpop.f32.mrb[129].mxu0 }
 0x5d4   :  { %v2784_v8 = vadd.f32 %v2783_v7, %v4992_v41  ;;  %v2785_v53 = vpop.f32.mrb[130].mxu0 }
 0x5d5   :  { %v2892_v2 = vmax.f32 %v2782_v5, 0.0  ;;  %v2786_v55 = vadd.f32 %v2785_v53, %v4989_v24  ;;  %v2787_v60 = vpop.f32.mrb[131].mxu0 }
 0x5d6   :  { %v2893_v57 = vmax.f32 %v2784_v8, 0.0  ;;  %v2788_v9 = vadd.f32 %v2787_v60, %v4992_v41 }
 0x5d7   :  { %2956 = vst [vmem:[%s5296_s13 + $0x100] sm:$0xff] %v2892_v2  ;;  %v2894_v58 = vmax.f32 %v2786_v55, 0.0 }
 0x5d8   :  { %2957 = vst.msk [vmem:[%s5296_s13 + $0x108] sm:$0xff] %vm305_vm0, %v2893_v57  ;;  %v2895_v10 = vmax.f32 %v2788_v9, 0.0 }
 0x5d9   :  { %2958 = vst [vmem:[%s5296_s13 + $0x110] sm:$0xff] %v2894_v58 }
 0x5da   :  { %2959 = vst.msk [vmem:[%s5296_s13 + $0x118] sm:$0xff] %vm305_vm0, %v2895_v10  ;;  %v2791_v59 = vpop.f32.mrb[132].mxu0 }
 0x5db   :  { %v2792_v11 = vadd.f32 %v2791_v59, %v4989_v24  ;;  %v2793_v56 = vpop.f32.mrb[133].mxu0 }
 0x5dc   :  { %v2794_v6 = vadd.f32 %v2793_v56, %v4992_v41  ;;  %v2795_v61 = vpop.f32.mrb[134].mxu0 }
 0x5dd   :  { %v2896_v13 = vmax.f32 %v2792_v11, 0.0  ;;  %v2796_v63 = vadd.f32 %v2795_v61, %v4989_v24  ;;  %v2797_v12 = vpop.f32.mrb[135].mxu0 }
 0x5de   :  { %v2897_v1 = vmax.f32 %v2794_v6, 0.0  ;;  %v2798_v51 = vadd.f32 %v2797_v12, %v4992_v41 }
 0x5df   :  { %2960 = vst [vmem:[%s5296_s13 + $0x120] sm:$0xff] %v2896_v13  ;;  %v2898_v62 = vmax.f32 %v2796_v63, 0.0 }
 0x5e0   :  { %2961 = vst.msk [vmem:[%s5296_s13 + $0x128] sm:$0xff] %vm305_vm0, %v2897_v1  ;;  %v2899_v15 = vmax.f32 %v2798_v51, 0.0 }
 0x5e1   :  { %2962 = vst [vmem:[%s5296_s13 + $0x130] sm:$0xff] %v2898_v62 }
 0x5e2   :  { %2963 = vst.msk [vmem:[%s5296_s13 + $0x138] sm:$0xff] %vm305_vm0, %v2899_v15  ;;  %v2801_v19 = vpop.f32.mrb[136].mxu0 }
 0x5e3   :  { %v2802_v21 = vadd.f32 %v2801_v19, %v4989_v24  ;;  %v2803_v4 = vpop.f32.mrb[137].mxu0 }
 0x5e4   :  { %v2804_v22 = vadd.f32 %v2803_v4, %v4992_v41  ;;  %v2805_v37 = vpop.f32.mrb[138].mxu0 }
 0x5e5   :  { %v2900_v46 = vmax.f32 %v2802_v21, 0.0  ;;  %v2806_v38 = vadd.f32 %v2805_v37, %v4989_v24  ;;  %v2807_v31 = vpop.f32.mrb[139].mxu0 }
 0x5e6   :  { %v2901_v34 = vmax.f32 %v2804_v22, 0.0  ;;  %v2808_v20 = vadd.f32 %v2807_v31, %v4992_v41 }
 0x5e7   :  { %2964 = vst [vmem:[%s5296_s13 + $0x140] sm:$0xff] %v2900_v46  ;;  %v2902_v43 = vmax.f32 %v2806_v38, 0.0 }
 0x5e8   :  { %2965 = vst.msk [vmem:[%s5296_s13 + $0x148] sm:$0xff] %vm305_vm0, %v2901_v34  ;;  %v2903_v23 = vmax.f32 %v2808_v20, 0.0 }
 0x5e9   :  { %2966 = vst [vmem:[%s5296_s13 + $0x150] sm:$0xff] %v2902_v43 }
 0x5ea   :  { %2967 = vst.msk [vmem:[%s5296_s13 + $0x158] sm:$0xff] %vm305_vm0, %v2903_v23  ;;  %v2811_v32 = vpop.f32.mrb[140].mxu0 }
 0x5eb   :  { %v2812_v25 = vadd.f32 %v2811_v32, %v4989_v24  ;;  %v2813_v14 = vpop.f32.mrb[141].mxu0 }
 0x5ec   :  { %v2814_v16 = vadd.f32 %v2813_v14, %v4992_v41  ;;  %v2815_v40 = vpop.f32.mrb[142].mxu0 }
 0x5ed   :  { %v2904_v26 = vmax.f32 %v2812_v25, 0.0  ;;  %v2816_v44 = vadd.f32 %v2815_v40, %v4989_v24  ;;  %v2817_v28 = vpop.f32.mrb[143].mxu0 }
 0x5ee   :  { %v2905_v45 = vmax.f32 %v2814_v16, 0.0  ;;  %v2818_v29 = vadd.f32 %v2817_v28, %v4992_v41 }
 0x5ef   :  { %2968 = vst [vmem:[%s5296_s13 + $0x160] sm:$0xff] %v2904_v26  ;;  %v2906_v47 = vmax.f32 %v2816_v44, 0.0 }
 0x5f0   :  { %2969 = vst.msk [vmem:[%s5296_s13 + $0x168] sm:$0xff] %vm305_vm0, %v2905_v45  ;;  %v2907_v27 = vmax.f32 %v2818_v29, 0.0 }
 0x5f1   :  { %2970 = vst [vmem:[%s5296_s13 + $0x170] sm:$0xff] %v2906_v47 }
 0x5f2   :  { %2971 = vst.msk [vmem:[%s5296_s13 + $0x178] sm:$0xff] %vm305_vm0, %v2907_v27  ;;  %v2821_v30 = vpop.f32.mrb[144].mxu0 }
 0x5f3   :  { %v2822_v33 = vadd.f32 %v2821_v30, %v4989_v24  ;;  %v2823_v35 = vpop.f32.mrb[145].mxu0 }
 0x5f4   :  { %v2824_v36 = vadd.f32 %v2823_v35, %v4992_v41  ;;  %v2825_v42 = vpop.f32.mrb[146].mxu0 }
 0x5f5   :  { %v2908_v48 = vmax.f32 %v2822_v33, 0.0  ;;  %v2826_v49 = vadd.f32 %v2825_v42, %v4989_v24  ;;  %v2827_v50 = vpop.f32.mrb[147].mxu0 }
 0x5f6   :  { %v2909_v52 = vmax.f32 %v2824_v36, 0.0  ;;  %v2828_v39 = vadd.f32 %v2827_v50, %v4992_v41 }
 0x5f7   :  { %2972 = vst [vmem:[%s5296_s13 + $0x180] sm:$0xff] %v2908_v48  ;;  %v2910_v17 = vmax.f32 %v2826_v49, 0.0 }
 0x5f8   :  { %2973 = vst.msk [vmem:[%s5296_s13 + $0x188] sm:$0xff] %vm305_vm0, %v2909_v52  ;;  %v2911_v54 = vmax.f32 %v2828_v39, 0.0 }
 0x5f9   :  { %2974 = vst [vmem:[%s5296_s13 + $0x190] sm:$0xff] %v2910_v17 }
 0x5fa   :  { %2975 = vst.msk [vmem:[%s5296_s13 + $0x198] sm:$0xff] %vm305_vm0, %v2911_v54  ;;  %v2831_v0 = vpop.f32.mrb[148].mxu0 }
 0x5fb   :  { %v2832_v18 = vadd.f32 %v2831_v0, %v4989_v24  ;;  %v2833_v3 = vpop.f32.mrb[149].mxu0 }
 0x5fc   :  { %v2834_v5 = vadd.f32 %v2833_v3, %v4992_v41  ;;  %v2835_v7 = vpop.f32.mrb[150].mxu0 }
 0x5fd   :  { %v2912_v8 = vmax.f32 %v2832_v18, 0.0  ;;  %v2836_v53 = vadd.f32 %v2835_v7, %v4989_v24  ;;  %v2837_v2 = vpop.f32.mrb[151].mxu0 }
 0x5fe   :  { %v2913_v55 = vmax.f32 %v2834_v5, 0.0  ;;  %v2838_v60 = vadd.f32 %v2837_v2, %v4992_v41 }
 0x5ff   :  { %2976 = vst [vmem:[%s5296_s13 + $0x1a0] sm:$0xff] %v2912_v8  ;;  %v2914_v57 = vmax.f32 %v2836_v53, 0.0 }
 0x600   :  { %2977 = vst.msk [vmem:[%s5296_s13 + $0x1a8] sm:$0xff] %vm305_vm0, %v2913_v55  ;;  %v2915_v9 = vmax.f32 %v2838_v60, 0.0 }
 0x601   :  { %2978 = vst [vmem:[%s5296_s13 + $0x1b0] sm:$0xff] %v2914_v57 }
 0x602   :  { %2979 = vst.msk [vmem:[%s5296_s13 + $0x1b8] sm:$0xff] %vm305_vm0, %v2915_v9  ;;  %v2841_v58 = vpop.f32.mrb[152].mxu0 }
 0x603   :  { %v2842_v10 = vadd.f32 %v2841_v58, %v4989_v24  ;;  %v2843_v59 = vpop.f32.mrb[153].mxu0 }
 0x604   :  { %v2844_v11 = vadd.f32 %v2843_v59, %v4992_v41  ;;  %v2845_v56 = vpop.f32.mrb[154].mxu0 }
 0x605   :  { %v2916_v6 = vmax.f32 %v2842_v10, 0.0  ;;  %v2846_v61 = vadd.f32 %v2845_v56, %v4989_v24  ;;  %v2847_v13 = vpop.f32.mrb[155].mxu0 }
 0x606   :  { %v2917_v63 = vmax.f32 %v2844_v11, 0.0  ;;  %v2848_v12 = vadd.f32 %v2847_v13, %v4992_v41 }
 0x607   :  { %2980 = vst [vmem:[%s5296_s13 + $0x1c0] sm:$0xff] %v2916_v6  ;;  %v2918_v1 = vmax.f32 %v2846_v61, 0.0 }
 0x608   :  { %2981 = vst.msk [vmem:[%s5296_s13 + $0x1c8] sm:$0xff] %vm305_vm0, %v2917_v63  ;;  %v2919_v51 = vmax.f32 %v2848_v12, 0.0 }
 0x609   :  { %2982 = vst [vmem:[%s5296_s13 + $0x1d0] sm:$0xff] %v2918_v1 }
 0x60a   :  { %2983 = vst.msk [vmem:[%s5296_s13 + $0x1d8] sm:$0xff] %vm305_vm0, %v2919_v51  ;;  %v2851_v62 = vpop.f32.mrb[160].mxu1 }
 0x60b   :  { %v2852_v15 = vadd.f32 %v2851_v62, %v4989_v24  ;;  %v2853_v19 = vpop.f32.mrb[161].mxu1 }
 0x60c   :  { %v2854_v21 = vadd.f32 %v2853_v19, %v4992_v41  ;;  %v2855_v4 = vpop.f32.mrb[162].mxu1 }
 0x60d   :  { %v2920_v22 = vmax.f32 %v2852_v15, 0.0  ;;  %v2856_v37 = vadd.f32 %v2855_v4, %v4989_v24  ;;  %v2857_v46 = vpop.f32.mrb[163].mxu1 }
 0x60e   :  { %v2921_v38 = vmax.f32 %v2854_v21, 0.0  ;;  %v2858_v31 = vadd.f32 %v2857_v46, %v4992_v41 }
 0x60f   :  { %2984 = vst [vmem:[%s5296_s13 + $0x1e0] sm:$0xff] %v2920_v22  ;;  %v2922_v34 = vmax.f32 %v2856_v37, 0.0 }
 0x610   :  { %2985 = vst.msk [vmem:[%s5296_s13 + $0x1e8] sm:$0xff] %vm305_vm0, %v2921_v38  ;;  %v2923_v20 = vmax.f32 %v2858_v31, 0.0 }
 0x611   :  { %2986 = vst [vmem:[%s5296_s13 + $0x1f0] sm:$0xff] %v2922_v34 }
 0x612   :  { %2987 = vst.msk [vmem:[%s5296_s13 + $0x1f8] sm:$0xff] %vm305_vm0, %v2923_v20 }

</bundles_post_ra>
